<compile_context>
chip_gen: v5e
topology: v5e:2x2
jax: 0.10.0
libtpu: 0.0.40
codegen_flags: <defaults>
</compile_context>

<pallas_src>
import functools

import jax
import jax.numpy as jnp
from jax import lax
from jax.experimental import pallas as pl
from jax.experimental.pallas import tpu as pltpu


def _distogram_kernel(pair_ref, pairT_ref, w_ref, b_ref, cb_ref, cbT_ref,
                      lo_ref, hi_ref, out_ref, *, n_res):
    tm, n_pad, pair_dim = pair_ref.shape
    n_bins = w_ref.shape[1]
    padded = n_pad != n_res        # trace-time flag: masks only when padding

    # ---- Linear(pair_dim -> n_bins) before symmetrisation (linearity):
    #      (x + x^T) @ W == x @ W + x^T @ W.  bf16 tiles feed the MXU only
    #      (f32 accumulate); the axis swap afterwards moves n_bins-wide rows.
    w = w_ref[...]                                                   # (D, B)
    a = jnp.dot(pair_ref[...].reshape(tm * n_pad, pair_dim), w,
                preferred_element_type=jnp.float32)                  # (tm*N, B)
    c = jnp.dot(pairT_ref[...].reshape(n_pad * tm, pair_dim), w,
                preferred_element_type=jnp.float32)                  # (N*tm, B)
    c_t = pltpu.einshape("jib->ijb", c.reshape(n_pad, tm, n_bins))   # (tm, N, B)
    logits = a.reshape(tm, n_pad, n_bins) + c_t + b_ref[...]

    # ---- Softmax(dim=-1): exact divide (no approx reciprocal).
    lmax = jnp.max(logits, axis=-1, keepdims=True)
    e = jnp.exp(logits - lmax)
    p3 = e / jnp.sum(e, axis=-1, keepdims=True)                      # in [0, 1]
    # TODO(synk): if a bundle dump shows the XLU lane reduce binding, swap this
    # denominator for an MXU ones-matmul (jnp.dot(e2d, ones((B, 1)), f32)).

    # ---- log_softmax over dim=1 (the class dim of F.cross_entropy).
    #      p3 in [0, 1] (exact softmax) -> exp cannot overflow: no max pass.
    exp_p = jnp.exp(p3)
    if padded:                     # padded j columns must not enter the LSE
        col3 = lax.broadcasted_iota(jnp.int32, (1, n_pad, n_bins), 1)
        exp_p = jnp.where(col3 < n_res, exp_p, 0.0)
    lse = jnp.log(jnp.sum(exp_p, axis=1, keepdims=True))             # (tm, 1, B)
    log_sm = p3 - lse

    # ---- torch.cdist(true_cb, true_cb): lane-dense (tm, N), no (N, N, 3).
    cb_i = cb_ref[...]                                               # (tm, 3)
    cb_j = cbT_ref[...]                                              # (3, N)
    d2 = jnp.zeros((tm, n_pad), jnp.float32)
    for k in range(cb_i.shape[1]):
        dk = cb_i[:, k:k + 1] - cb_j[k:k + 1, :]
        d2 = d2 + dk * dk
    dist = jnp.sqrt(d2)
    if padded:                     # push padded (i, j) pairs outside every bin
        row2 = (pl.program_id(0) * tm
                + lax.broadcasted_iota(jnp.int32, (tm, n_pad), 0))
        col2 = lax.broadcasted_iota(jnp.int32, (tm, n_pad), 1)
        dist = jnp.where(jnp.logical_and(row2 < n_res, col2 < n_res),
                         dist, jnp.inf)

    # ---- OneHotNearestBin via bucketize on bin-midpoint intervals; strict '>'
    #      on the lower edge reproduces torch.argmin's first-min tie-break.
    d3 = dist[:, :, None]                                            # (tm, N, 1)
    sel = jnp.logical_and(d3 > lo_ref[...].reshape(1, 1, n_bins),
                          d3 <= hi_ref[...].reshape(1, 1, n_bins))

    # ---- Per-tile partial of sum(one_hot * log_softmax): reduce over i first
    #      (plain vreg adds), then j; wrapper does the tiny bin reduce + /N^2.
    contrib = jnp.where(sel, log_sm, 0.0)
    per_bin = jnp.sum(jnp.sum(contrib, axis=0), axis=0, keepdims=True)  # (1, B)
    rows = lax.broadcasted_iota(jnp.int32, (8, n_bins), 0)
    out_ref[...] = jnp.where(rows == 0, per_bin, 0.0)   # (8, B), row 0 only


def _vmem_limit_bytes():
    """Scoped-VMEM request: ~3/4 of physical (v5e/v6e: 96 MiB, v7x: 48 MiB)."""
    try:
        cap = int(pltpu.get_tpu_info().vmem_capacity_bytes)
    except Exception:   # conservative default if the query is unavailable
        cap = 64 * 1024 * 1024
    return (cap * 3) // 4


def _pick_block_rows(n16, pair_dim, n_bins, in_itemsize, budget_bytes):
    """Largest i-row tile (multiple of 16, <= 64, dividing n16) in budget.

    Per-row VMEM model: pair + pairT bf16 tiles double-buffered (4x pair_dim),
    ~4 concurrently-live f32 (tm, N, n_bins) intermediates, ~2 lane-sparse
    (tm, N, 1) temporaries (512 B/row each in (8,128)-tiled VMEM).
    """
    per_row = n16 * (4 * pair_dim * in_itemsize + 4 * n_bins * 4 + 1024)
    cap = max(16, min(64, (budget_bytes // per_row) // 16 * 16))
    divs = [t for t in range(16, n16 + 1, 16) if n16 % t == 0 and t <= cap]
    tm = max(divs)                       # 16 always divides n16
    if tm == n16 and n16 >= 32:          # megacore (v7x): keep >= 2 grid tiles
        tm = max([t for t in divs if t < n16] or [16])
    return tm


def distogram_head(pair_rep, true_cb, weight, bias, bins, *, block_rows=None):
    """DistogramHead.forward as a Pallas TPU kernel.

    pair_rep: (N, N, pair_dim); true_cb: (N, 3); weight/bias follow PyTorch
    nn.Linear (weight: (n_bins, pair_dim)); `bins` sorted ascending.
    Returns the scalar L_dist.
    """
    n_res, _, pair_dim = pair_rep.shape
    n_bins = int(bins.shape[0])

    vmem_limit = _vmem_limit_bytes()
    n16 = max(16, ((n_res + 15) // 16) * 16)     # bf16 sublane packing = 16
    if block_rows is None:
        tm = _pick_block_rows(n16, pair_dim, n_bins, 2, (vmem_limit * 4) // 5)
    else:
        tm = int(block_rows)
        if tm <= 0 or tm % 16 != 0:
            raise ValueError("block_rows must be a positive multiple of 16")
    n_pad = ((n16 + tm - 1) // tm) * tm
    num_tiles = n_pad // tm
    pad = n_pad - n_res

    # Wrapper-side layout plumbing (tiny vs the kernel's HBM traffic).
    # bf16 inputs halve the HBM reads of pair_rep (read twice by the kernel)
    # and halve the pair/pairT VMEM tiles; padded rows/cols masked in-kernel.
    pair_b = jnp.pad(pair_rep, ((0, pad), (0, pad), (0, 0))).astype(jnp.bfloat16)
    w_t = jnp.transpose(weight).astype(jnp.bfloat16)                 # (D, B)
    b_row = bias.astype(jnp.float32).reshape(1, n_bins)
    cb = jnp.pad(true_cb.astype(jnp.float32), ((0, pad), (0, 0)))    # (n_pad, 3)
    cb_t = jnp.transpose(cb)                                         # (3, n_pad)
    bins_f = bins.astype(jnp.float32)
    mids = 0.5 * (bins_f[:-1] + bins_f[1:])
    lo = jnp.concatenate([jnp.full((1,), -3.0e38, jnp.float32), mids])
    hi = jnp.concatenate([mids, jnp.full((1,), 3.0e38, jnp.float32)])
    lo = lo.reshape(1, n_bins)
    hi = hi.reshape(1, n_bins)

    nn_ = n_pad * n_pad
    cost = pl.CostEstimate(
        flops=4 * nn_ * pair_dim * n_bins + 24 * nn_ * n_bins,
        transcendentals=2 * nn_ * n_bins + 2 * nn_,
        bytes_accessed=2 * nn_ * pair_dim * 2 + 16 * nn_,
    )

    kernel = functools.partial(_distogram_kernel, n_res=n_res)
    partials = pl.pallas_call(
        kernel,
        out_shape=jax.ShapeDtypeStruct((num_tiles * 8, n_bins), jnp.float32),
        grid=(num_tiles,),
        in_specs=[
            # pair_rep[i_tile, :, :]  (contiguous i-rows)
            pl.BlockSpec((tm, n_pad, pair_dim), lambda i: (i, 0, 0)),
            # pair_rep[:, i_tile, :]  (same array, swapped index_map -> the
            # transpose is never materialised in HBM)
            pl.BlockSpec((n_pad, tm, pair_dim), lambda i: (0, i, 0)),
            pl.BlockSpec((pair_dim, n_bins), lambda i: (0, 0)),
            pl.BlockSpec((1, n_bins), lambda i: (0, 0)),
            pl.BlockSpec((tm, 3), lambda i: (i, 0)),
            pl.BlockSpec((3, n_pad), lambda i: (0, 0)),
            pl.BlockSpec((1, n_bins), lambda i: (0, 0)),
            pl.BlockSpec((1, n_bins), lambda i: (0, 0)),
        ],
        # (8, n_bins) output block keeps the store (8,128)-tile aligned;
        # only row 0 of each block is non-zero.
        out_specs=pl.BlockSpec((8, n_bins), lambda i: (i, 0)),
        compiler_params=pltpu.CompilerParams(
            dimension_semantics=("parallel",),
            vmem_limit_bytes=vmem_limit),
        cost_estimate=cost,
    )(pair_b, pair_b, w_t, b_row, cb, cb_t, lo, hi)

    # L_dist = -F.cross_entropy(p_dist, true_dist, 'sum') / N^2
    #        = sum(one_hot * log_softmax(p_dist, dim=1)) / N^2
    return jnp.sum(partials) / float(n_res * n_res)


def _reference(pair_rep, true_cb, weight, bias, bins):
    """Pure-JAX (f32) replica of the PyTorch forward, for verification."""
    n = pair_rep.shape[0]
    sym = pair_rep + jnp.transpose(pair_rep, (1, 0, 2))
    p = jax.nn.softmax(sym @ weight.T + bias, axis=-1)
    d = jnp.sqrt(jnp.sum((true_cb[:, None, :] - true_cb[None, :, :]) ** 2, axis=-1))
    idx = jnp.argmin(jnp.abs(d[..., None] - bins), axis=-1)
    onehot = jax.nn.one_hot(idx, bins.shape[0], dtype=jnp.float32)
    log_sm = jax.nn.log_softmax(p, axis=1)     # F.cross_entropy class dim = 1
    return jnp.sum(onehot * log_sm) / (n * n)


if __name__ == "__main__":
    key = jax.random.PRNGKey(0)
    k1, k2, k3, k4 = jax.random.split(key, 4)

    N_RES, PAIR_DIM, N_BINS = 32, 32, 16
    pair_rep = jax.random.normal(k1, (N_RES, N_RES, PAIR_DIM), jnp.float32)
    true_cb = 5.0 * jax.random.normal(k2, (N_RES, 3), jnp.float32)

    # nn.Linear(pair_dim, n_bins) parameters, deterministic init
    lim = 1.0 / (PAIR_DIM ** 0.5)
    weight = jax.random.uniform(k3, (N_BINS, PAIR_DIM), jnp.float32, -lim, lim)
    bias = jax.random.uniform(k4, (N_BINS,), jnp.float32, -lim, lim)
    bins = jnp.linspace(2.0, 22.0, N_BINS, dtype=jnp.float32)

    fn = jax.jit(distogram_head, static_argnames=("block_rows",))

    # Case 1: multiple-of-16 sequence length, explicit 2-tile grid.
    loss = jax.block_until_ready(
        fn(pair_rep, true_cb, weight, bias, bins, block_rows=16))
    ref = _reference(pair_rep, true_cb, weight, bias, bins)
    assert jnp.allclose(loss, ref, rtol=2e-3, atol=1e-3), (float(loss), float(ref))

    # Case 2: ragged sequence length (exercises the pad + mask path, auto tile).
    n2 = 20
    loss2 = jax.block_until_ready(
        fn(pair_rep[:n2, :n2], true_cb[:n2], weight, bias, bins))
    ref2 = _reference(pair_rep[:n2, :n2], true_cb[:n2], weight, bias, bins)
    assert jnp.allclose(loss2, ref2, rtol=2e-3, atol=1e-3), (float(loss2), float(ref2))

    print("KERNEL_OK")
</pallas_src>

<mosaic_0001>
module attributes {stable_mosaic.version = 11 : i64} {
  func.func @_distogram_kernel(%arg0: i32, %arg1: memref<16x32x32xbf16, #tpu.memory_space<vmem>>, %arg2: memref<32x16x32xbf16, #tpu.memory_space<vmem>>, %arg3: memref<32x16xbf16, #tpu.memory_space<vmem>>, %arg4: memref<1x16xf32, #tpu.memory_space<vmem>>, %arg5: memref<16x3xf32, #tpu.memory_space<vmem>>, %arg6: memref<3x32xf32, #tpu.memory_space<vmem>>, %arg7: memref<1x16xf32, #tpu.memory_space<vmem>>, %arg8: memref<1x16xf32, #tpu.memory_space<vmem>>, %arg9: memref<8x16xf32, #tpu.memory_space<vmem>>) attributes {dimension_semantics = [#tpu.dimension_semantics<parallel>], iteration_bounds = array<i64: 2>, scalar_prefetch = 0 : i64, scratch_operands = 0 : i64, tpu.core_type = #tpu.core_type<tc>, window_params = [{transform_indices = @transform_0, window_bounds = array<i64: 16, 32, 32>}, {transform_indices = @transform_1, window_bounds = array<i64: 32, 16, 32>}, {pipeline_mode = #tpu.pipeline_mode<synchronous>, transform_indices = @transform_2, window_bounds = array<i64: 32, 16>}, {pipeline_mode = #tpu.pipeline_mode<synchronous>, transform_indices = @transform_3, window_bounds = array<i64: 1, 16>}, {transform_indices = @transform_4, window_bounds = array<i64: 16, 3>}, {pipeline_mode = #tpu.pipeline_mode<synchronous>, transform_indices = @transform_5, window_bounds = array<i64: 3, 32>}, {pipeline_mode = #tpu.pipeline_mode<synchronous>, transform_indices = @transform_6, window_bounds = array<i64: 1, 16>}, {pipeline_mode = #tpu.pipeline_mode<synchronous>, transform_indices = @transform_7, window_bounds = array<i64: 1, 16>}, {transform_indices = @transform_8, window_bounds = array<i64: 8, 16>}]} {
    %c0 = arith.constant 0 : index
    %c0_0 = arith.constant 0 : index
    %0 = vector.load %arg3[%c0, %c0_0] : memref<32x16xbf16, #tpu.memory_space<vmem>>, vector<32x16xbf16>
    %c0_1 = arith.constant 0 : index
    %c0_2 = arith.constant 0 : index
    %c0_3 = arith.constant 0 : index
    %1 = vector.load %arg1[%c0_1, %c0_2, %c0_3] : memref<16x32x32xbf16, #tpu.memory_space<vmem>>, vector<16x32x32xbf16>
    %2 = vector.shape_cast %1 : vector<16x32x32xbf16> to vector<512x32xbf16>
    %cst = arith.constant dense<0.000000e+00> : vector<512x16xf32>
    %3 = tpu.matmul %2, %0, %cst {dimension_numbers = #tpu.dot_dimension_numbers<[1], [0], [0], [1], [0, 0, 1, 1], [], []>} : vector<512x32xbf16>, vector<32x16xbf16>, vector<512x16xf32> -> vector<512x16xf32>
    %c0_4 = arith.constant 0 : index
    %c0_5 = arith.constant 0 : index
    %c0_6 = arith.constant 0 : index
    %4 = vector.load %arg2[%c0_4, %c0_5, %c0_6] : memref<32x16x32xbf16, #tpu.memory_space<vmem>>, vector<32x16x32xbf16>
    %5 = vector.shape_cast %4 : vector<32x16x32xbf16> to vector<512x32xbf16>
    %cst_7 = arith.constant dense<0.000000e+00> : vector<512x16xf32>
    %6 = tpu.matmul %5, %0, %cst_7 {dimension_numbers = #tpu.dot_dimension_numbers<[1], [0], [0], [1], [0, 0, 1, 1], [], []>} : vector<512x32xbf16>, vector<32x16xbf16>, vector<512x16xf32> -> vector<512x16xf32>
    %7 = vector.shape_cast %6 : vector<512x16xf32> to vector<32x16x16xf32>
    %8 = tpu.transpose %7, [1, 0, 2] : vector<32x16x16xf32> -> vector<16x32x16xf32>
    %9 = vector.shape_cast %3 : vector<512x16xf32> to vector<16x32x16xf32>
    %10 = arith.addf %9, %8 : vector<16x32x16xf32>
    %c0_8 = arith.constant 0 : index
    %c0_9 = arith.constant 0 : index
    %11 = vector.load %arg4[%c0_8, %c0_9] : memref<1x16xf32, #tpu.memory_space<vmem>>, vector<1x16xf32>
    %12 = vector.shape_cast %11 : vector<1x16xf32> to vector<1x1x16xf32>
    %13 = vector.broadcast %12 : vector<1x1x16xf32> to vector<16x32x16xf32>
    %14 = arith.addf %10, %13 : vector<16x32x16xf32>
    %cst_10 = arith.constant dense<0xFF800000> : vector<16x32xf32>
    %15 = vector.multi_reduction <maximumf>, %14, %cst_10 [2] : vector<16x32x16xf32> to vector<16x32xf32>
    %16 = vector.shape_cast %15 : vector<16x32xf32> to vector<16x32x1xf32>
    %17 = vector.broadcast %16 : vector<16x32x1xf32> to vector<16x32x16xf32>
    %18 = arith.subf %14, %17 : vector<16x32x16xf32>
    %19 = math.exp %18 : vector<16x32x16xf32>
    %cst_11 = arith.constant dense<0.000000e+00> : vector<16x32xf32>
    %20 = vector.multi_reduction <add>, %19, %cst_11 [2] : vector<16x32x16xf32> to vector<16x32xf32>
    %21 = vector.shape_cast %20 : vector<16x32xf32> to vector<16x32x1xf32>
    %22 = vector.broadcast %21 : vector<16x32x1xf32> to vector<16x32x16xf32>
    %23 = arith.divf %19, %22 : vector<16x32x16xf32>
    %24 = math.exp %23 : vector<16x32x16xf32>
    %cst_12 = arith.constant dense<0.000000e+00> : vector<16x16xf32>
    %25 = vector.multi_reduction <add>, %24, %cst_12 [1] : vector<16x32x16xf32> to vector<16x16xf32>
    %26 = vector.shape_cast %25 : vector<16x16xf32> to vector<16x1x16xf32>
    %27 = math.log %26 : vector<16x1x16xf32>
    %28 = vector.broadcast %27 : vector<16x1x16xf32> to vector<16x32x16xf32>
    %29 = arith.subf %23, %28 : vector<16x32x16xf32>
    %c0_13 = arith.constant 0 : index
    %c0_14 = arith.constant 0 : index
    %30 = vector.load %arg5[%c0_13, %c0_14] : memref<16x3xf32, #tpu.memory_space<vmem>>, vector<16x3xf32>
    %c0_15 = arith.constant 0 : index
    %c0_16 = arith.constant 0 : index
    %31 = vector.load %arg6[%c0_15, %c0_16] : memref<3x32xf32, #tpu.memory_space<vmem>>, vector<3x32xf32>
    %cst_17 = arith.constant 0.000000e+00 : f32
    %32 = vector.broadcast %cst_17 : f32 to vector<16x32xf32>
    %33 = vector.extract_strided_slice %30 {offsets = [0, 0], sizes = [16, 1], strides = [1, 1]} : vector<16x3xf32> to vector<16x1xf32>
    %34 = vector.extract_strided_slice %31 {offsets = [0, 0], sizes = [1, 32], strides = [1, 1]} : vector<3x32xf32> to vector<1x32xf32>
    %35 = vector.broadcast %33 : vector<16x1xf32> to vector<16x32xf32>
    %36 = vector.broadcast %34 : vector<1x32xf32> to vector<16x32xf32>
    %37 = arith.subf %35, %36 : vector<16x32xf32>
    %38 = arith.mulf %37, %37 : vector<16x32xf32>
    %39 = arith.addf %32, %38 : vector<16x32xf32>
    %40 = vector.extract_strided_slice %30 {offsets = [0, 1], sizes = [16, 1], strides = [1, 1]} : vector<16x3xf32> to vector<16x1xf32>
    %41 = vector.extract_strided_slice %31 {offsets = [1, 0], sizes = [1, 32], strides = [1, 1]} : vector<3x32xf32> to vector<1x32xf32>
    %42 = vector.broadcast %40 : vector<16x1xf32> to vector<16x32xf32>
    %43 = vector.broadcast %41 : vector<1x32xf32> to vector<16x32xf32>
    %44 = arith.subf %42, %43 : vector<16x32xf32>
    %45 = arith.mulf %44, %44 : vector<16x32xf32>
    %46 = arith.addf %39, %45 : vector<16x32xf32>
    %47 = vector.extract_strided_slice %30 {offsets = [0, 2], sizes = [16, 1], strides = [1, 1]} : vector<16x3xf32> to vector<16x1xf32>
    %48 = vector.extract_strided_slice %31 {offsets = [2, 0], sizes = [1, 32], strides = [1, 1]} : vector<3x32xf32> to vector<1x32xf32>
    %49 = vector.broadcast %47 : vector<16x1xf32> to vector<16x32xf32>
    %50 = vector.broadcast %48 : vector<1x32xf32> to vector<16x32xf32>
    %51 = arith.subf %49, %50 : vector<16x32xf32>
    %52 = arith.mulf %51, %51 : vector<16x32xf32>
    %53 = arith.addf %46, %52 : vector<16x32xf32>
    %54 = math.sqrt %53 : vector<16x32xf32>
    %55 = vector.shape_cast %54 : vector<16x32xf32> to vector<16x32x1xf32>
    %c0_18 = arith.constant 0 : index
    %c0_19 = arith.constant 0 : index
    %56 = vector.load %arg7[%c0_18, %c0_19] : memref<1x16xf32, #tpu.memory_space<vmem>>, vector<1x16xf32>
    %57 = vector.shape_cast %56 : vector<1x16xf32> to vector<1x1x16xf32>
    %58 = vector.broadcast %55 : vector<16x32x1xf32> to vector<16x32x16xf32>
    %59 = vector.broadcast %57 : vector<1x1x16xf32> to vector<16x32x16xf32>
    %60 = arith.cmpf ogt, %58, %59 : vector<16x32x16xf32>
    %c0_20 = arith.constant 0 : index
    %c0_21 = arith.constant 0 : index
    %61 = vector.load %arg8[%c0_20, %c0_21] : memref<1x16xf32, #tpu.memory_space<vmem>>, vector<1x16xf32>
    %62 = vector.shape_cast %61 : vector<1x16xf32> to vector<1x1x16xf32>
    %63 = vector.broadcast %55 : vector<16x32x1xf32> to vector<16x32x16xf32>
    %64 = vector.broadcast %62 : vector<1x1x16xf32> to vector<16x32x16xf32>
    %65 = arith.cmpf ole, %63, %64 : vector<16x32x16xf32>
    %66 = arith.andi %60, %65 : vector<16x32x16xi1>
    %cst_22 = arith.constant 0.000000e+00 : f32
    %67 = vector.broadcast %cst_22 : f32 to vector<16x32x16xf32>
    %68 = arith.select %66, %29, %67 : vector<16x32x16xi1>, vector<16x32x16xf32>
    %cst_23 = arith.constant dense<0.000000e+00> : vector<32x16xf32>
    %69 = vector.multi_reduction <add>, %68, %cst_23 [0] : vector<16x32x16xf32> to vector<32x16xf32>
    %cst_24 = arith.constant dense<0.000000e+00> : vector<16xf32>
    %70 = vector.multi_reduction <add>, %69, %cst_24 [0] : vector<32x16xf32> to vector<16xf32>
    %71 = vector.shape_cast %70 : vector<16xf32> to vector<1x16xf32>
    %72 = tpu.iota {dimensions = array<i32: 0>} : vector<8x16xi32>
    %c0_i32 = arith.constant 0 : i32
    %73 = vector.broadcast %c0_i32 : i32 to vector<8x16xi32>
    %74 = arith.cmpi eq, %72, %73 : vector<8x16xi32>
    %cst_25 = arith.constant 0.000000e+00 : f32
    %75 = vector.shape_cast %71 : vector<1x16xf32> to vector<1x16xf32>
    %76 = vector.broadcast %75 : vector<1x16xf32> to vector<8x16xf32>
    %77 = vector.broadcast %cst_25 : f32 to vector<8x16xf32>
    %78 = arith.select %74, %76, %77 : vector<8x16xi1>, vector<8x16xf32>
    %c0_26 = arith.constant 0 : index
    %c0_27 = arith.constant 0 : index
    %79 = vector.load %arg9[%c0_26, %c0_27] : memref<8x16xf32, #tpu.memory_space<vmem>>, vector<8x16xf32>
    tpu.vector_store %arg9[%c0_26, %c0_27], %78 {strides = array<i32>} : memref<8x16xf32, #tpu.memory_space<vmem>>, vector<8x16xf32>,
    return
  }
  func.func @transform_0(%arg0: i32) -> (i32, i32, i32) {
    %c0_i32 = arith.constant 0 : i32
    %c0_i32_0 = arith.constant 0 : i32
    %c0_i32_1 = arith.constant 0 : i32
    return %arg0, %c0_i32, %c0_i32_0 : i32, i32, i32
  }
  func.func @transform_1(%arg0: i32) -> (i32, i32, i32) {
    %c0_i32 = arith.constant 0 : i32
    %c0_i32_0 = arith.constant 0 : i32
    %c0_i32_1 = arith.constant 0 : i32
    return %c0_i32, %arg0, %c0_i32_0 : i32, i32, i32
  }
  func.func @transform_2(%arg0: i32) -> (i32, i32) {
    %c0_i32 = arith.constant 0 : i32
    %c0_i32_0 = arith.constant 0 : i32
    %c0_i32_1 = arith.constant 0 : i32
    return %c0_i32, %c0_i32_0 : i32, i32
  }
  func.func @transform_3(%arg0: i32) -> (i32, i32) {
    %c0_i32 = arith.constant 0 : i32
    %c0_i32_0 = arith.constant 0 : i32
    %c0_i32_1 = arith.constant 0 : i32
    return %c0_i32, %c0_i32_0 : i32, i32
  }
  func.func @transform_4(%arg0: i32) -> (i32, i32) {
    %c0_i32 = arith.constant 0 : i32
    %c0_i32_0 = arith.constant 0 : i32
    return %arg0, %c0_i32 : i32, i32
  }
  func.func @transform_5(%arg0: i32) -> (i32, i32) {
    %c0_i32 = arith.constant 0 : i32
    %c0_i32_0 = arith.constant 0 : i32
    %c0_i32_1 = arith.constant 0 : i32
    return %c0_i32, %c0_i32_0 : i32, i32
  }
  func.func @transform_6(%arg0: i32) -> (i32, i32) {
    %c0_i32 = arith.constant 0 : i32
    %c0_i32_0 = arith.constant 0 : i32
    %c0_i32_1 = arith.constant 0 : i32
    return %c0_i32, %c0_i32_0 : i32, i32
  }
  func.func @transform_7(%arg0: i32) -> (i32, i32) {
    %c0_i32 = arith.constant 0 : i32
    %c0_i32_0 = arith.constant 0 : i32
    %c0_i32_1 = arith.constant 0 : i32
    return %c0_i32, %c0_i32_0 : i32, i32
  }
  func.func @transform_8(%arg0: i32) -> (i32, i32) {
    %c0_i32 = arith.constant 0 : i32
    %c0_i32_0 = arith.constant 0 : i32
    return %arg0, %c0_i32 : i32, i32
  }
}

</mosaic_0001>

<bundles_post_ra>
// kernel: distogram_head.1
= control target key start
LH: loop header
LB: loop body
LE: loop exit
PB: predicated region body
PF: predicated region fallthrough
CT: control target
= control target key end

     0   :  { %s6619_s27 = smov 0   ;;  %s6621_s28 = smov 0   ;;  %s12290_s0 = inlined_call_operand.vmem [shape: bf16[32,32,32], index: 0, kind: input, shape index: {}, may-alias: {0,1}]   ;;  %s12291_s1 = inlined_call_operand.vmem [shape: bf16[32,32,32], index: 1, kind: input, shape index: {}, may-alias: {0,1}]   ;;  %s12292_s2 = inlined_call_operand.vmem [shape: bf16[32,16], index: 2, kind: input, shape index: {}]   ;;  %s12293_s3 = inlined_call_operand.vmem [shape: f32[1,16], index: 3, kind: input, shape index: {}]   ;;  %s12294_s4 = inlined_call_operand.vmem [shape: f32[32,3], index: 4, kind: input, shape index: {}]   ;;  %s12295_s5 = inlined_call_operand.vmem [shape: f32[3,32], index: 5, kind: input, shape index: {}]   ;;  %s12296_s6 = inlined_call_operand.vmem [shape: f32[1,16], index: 6, kind: input, shape index: {}]   ;;  %s12297_s7 = inlined_call_operand.vmem [shape: f32[1,16], index: 7, kind: input, shape index: {}]   ;;  %s12298_s8 = inlined_call_operand.vmem [shape: f32[16,16], index: 8, kind: output, shape index: {}]  }
   0x1   :  { %s6623_s29 = smov 0  }
   0x2 LB: > { %s6635_s30 = sadd.s32 4294967295, %s6567_s29   ;;  %s6638_s9 = sadd.s32 1, %s6567_s29   ;;  %s6567_s29 = sphi %s6623_s29, %s13435_s29   ;;  %s6563_s28 = sphi %s6621_s28, %s13434_s28   ;;  %s6559_s27 = sphi %s6619_s27, %s13433_s27  }
   0x3   : > { %s48_s10 = ssub.s32 %s6567_s29, %s6638_s9  ;;  %s51_s11 = sadd.s32 1, %s6563_s28 }
   0x4   : > { %p49_p0 = scmp.eq.s32.totalorder %s48_s10, 0  ;;  %p58_p1 = scmp.ne.s32.totalorder %s6563_s28, %s6559_s27 }
   0x5   : > { %p59_p2 = scmp.eq.s32.totalorder %s6567_s29, 0  ;;  %p5608_p4 = scmp.ge.s32.totalorder %s6567_s29, 2 }
   0x6   : > { %s6647_s12 = scalar_select %p49_p0, %s6563_s28, %s51_s11  }
   0x7   : > { %p60_p3 = por %p59_p2, %p58_p1  ;;  %256 = sbr.rel (%p5608_p4) target bundleno = 48 (0x30), region = 36 }
   0xc   : > { %269 = sbr.rel (!%p60_p3) target bundleno = 48 (0x30), region = 44  ;;  %s271_s13 = sand.u32 (%p60_p3), 1, %s6563_s28  }
   0xd   : > { %s5950_s14 = sshll.u32 (%p60_p3), %s6567_s29, 3  ;;  %s5609_s15 = sshll.u32 (%p60_p3), %s271_s13, 8 }
   0xe   : > { %s6655_s18 = scalar_lea.vmem (%p60_p3), %s12291_s1, %s5950_s14  ;;  %s6660_s19 = scalar_lea.vmem (%p60_p3), [#allocation2], %s5609_s15 }
   0xf   : > { %v293_v0 = vld [vmem:[%s6655_s18] sm:$0xff] (%p60_p3)   ;;  %v297_v1 = vld [vmem:[%s6655_s18 + $0x10] sm:$0xff] (%p60_p3)  }
  0x10   : > { %v301_v2 = vld [vmem:[%s6655_s18 + $0x20] sm:$0xff] (%p60_p3)   ;;  %294 = vst [vmem:[%s6660_s19] sm:$0xff] (%p60_p3), %v293_v0   ;;  %v305_v3 = vld [vmem:[%s6655_s18 + $0x30] sm:$0xff] (%p60_p3)  }
  0x11   : > { %298 = vst [vmem:[%s6660_s19 + $0x8] sm:$0xff] %v297_v1   ;;  %v309_v4 = vld [vmem:[%s6655_s18 + $0x40] sm:$0xff]   ;;  %v313_v5 = vld [vmem:[%s6655_s18 + $0x50] sm:$0xff]  }
  0x12   : > { %302 = vst [vmem:[%s6660_s19 + $0x10] sm:$0xff] %v301_v2   ;;  %v317_v6 = vld [vmem:[%s6655_s18 + $0x60] sm:$0xff]   ;;  %v321_v7 = vld [vmem:[%s6655_s18 + $0x70] sm:$0xff]  }
  0x13   : > { %306 = vst [vmem:[%s6660_s19 + $0x18] sm:$0xff] %v305_v3   ;;  %v325_v8 = vld [vmem:[%s6655_s18 + $0x80] sm:$0xff]   ;;  %v329_v9 = vld [vmem:[%s6655_s18 + $0x90] sm:$0xff]  }
  0x14   : > { %310 = vst [vmem:[%s6660_s19 + $0x20] sm:$0xff] %v309_v4   ;;  %v333_v10 = vld [vmem:[%s6655_s18 + $0xa0] sm:$0xff]   ;;  %v337_v11 = vld [vmem:[%s6655_s18 + $0xb0] sm:$0xff]  }
  0x15   : > { %314 = vst [vmem:[%s6660_s19 + $0x28] sm:$0xff] %v313_v5   ;;  %v341_v12 = vld [vmem:[%s6655_s18 + $0xc0] sm:$0xff]   ;;  %v345_v13 = vld [vmem:[%s6655_s18 + $0xd0] sm:$0xff]  }
  0x16   : > { %318 = vst [vmem:[%s6660_s19 + $0x30] sm:$0xff] %v317_v6   ;;  %v349_v14 = vld [vmem:[%s6655_s18 + $0xe0] sm:$0xff]   ;;  %v353_v15 = vld [vmem:[%s6655_s18 + $0xf0] sm:$0xff]  }
  0x17   : > { %322 = vst [vmem:[%s6660_s19 + $0x38] sm:$0xff] %v321_v7   ;;  %v357_v16 = vld [vmem:[%s6655_s18 + $0x100] sm:$0xff]   ;;  %v361_v17 = vld [vmem:[%s6655_s18 + $0x110] sm:$0xff]  }
  0x18   : > { %326 = vst [vmem:[%s6660_s19 + $0x40] sm:$0xff] %v325_v8   ;;  %v365_v18 = vld [vmem:[%s6655_s18 + $0x120] sm:$0xff]   ;;  %v369_v19 = vld [vmem:[%s6655_s18 + $0x130] sm:$0xff]  }
  0x19   : > { %330 = vst [vmem:[%s6660_s19 + $0x48] sm:$0xff] %v329_v9   ;;  %v373_v20 = vld [vmem:[%s6655_s18 + $0x140] sm:$0xff]   ;;  %v377_v21 = vld [vmem:[%s6655_s18 + $0x150] sm:$0xff]  }
  0x1a   : > { %334 = vst [vmem:[%s6660_s19 + $0x50] sm:$0xff] %v333_v10   ;;  %v381_v22 = vld [vmem:[%s6655_s18 + $0x160] sm:$0xff]   ;;  %v385_v23 = vld [vmem:[%s6655_s18 + $0x170] sm:$0xff]  }
  0x1b   : > { %338 = vst [vmem:[%s6660_s19 + $0x58] sm:$0xff] %v337_v11   ;;  %v389_v24 = vld [vmem:[%s6655_s18 + $0x180] sm:$0xff]   ;;  %v393_v25 = vld [vmem:[%s6655_s18 + $0x190] sm:$0xff]  }
  0x1c   : > { %342 = vst [vmem:[%s6660_s19 + $0x60] sm:$0xff] %v341_v12   ;;  %v397_v26 = vld [vmem:[%s6655_s18 + $0x1a0] sm:$0xff]   ;;  %v401_v27 = vld [vmem:[%s6655_s18 + $0x1b0] sm:$0xff]  }
  0x1d   : > { %346 = vst [vmem:[%s6660_s19 + $0x68] sm:$0xff] %v345_v13   ;;  %v405_v28 = vld [vmem:[%s6655_s18 + $0x1c0] sm:$0xff]   ;;  %v409_v29 = vld [vmem:[%s6655_s18 + $0x1d0] sm:$0xff]  }
  0x1e   : > { %350 = vst [vmem:[%s6660_s19 + $0x70] sm:$0xff] %v349_v14   ;;  %v413_v30 = vld [vmem:[%s6655_s18 + $0x1e0] sm:$0xff]   ;;  %v417_v31 = vld [vmem:[%s6655_s18 + $0x1f0] sm:$0xff]  }
  0x1f   : > { %354 = vst [vmem:[%s6660_s19 + $0x78] sm:$0xff] %v353_v15  }
  0x20   : > { %358 = vst [vmem:[%s6660_s19 + $0x80] sm:$0xff] %v357_v16  }
  0x21   : > { %362 = vst [vmem:[%s6660_s19 + $0x88] sm:$0xff] %v361_v17  }
  0x22   : > { %366 = vst [vmem:[%s6660_s19 + $0x90] sm:$0xff] %v365_v18  }
  0x23   : > { %370 = vst [vmem:[%s6660_s19 + $0x98] sm:$0xff] %v369_v19  }
  0x24   : > { %374 = vst [vmem:[%s6660_s19 + $0xa0] sm:$0xff] %v373_v20  }
  0x25   : > { %378 = vst [vmem:[%s6660_s19 + $0xa8] sm:$0xff] %v377_v21  }
  0x26   : > { %382 = vst [vmem:[%s6660_s19 + $0xb0] sm:$0xff] %v381_v22  }
  0x27   : > { %386 = vst [vmem:[%s6660_s19 + $0xb8] sm:$0xff] %v385_v23  }
  0x28   : > { %390 = vst [vmem:[%s6660_s19 + $0xc0] sm:$0xff] %v389_v24  }
  0x29   : > { %394 = vst [vmem:[%s6660_s19 + $0xc8] sm:$0xff] %v393_v25  }
  0x2a   : > { %398 = vst [vmem:[%s6660_s19 + $0xd0] sm:$0xff] %v397_v26  }
  0x2b   : > { %402 = vst [vmem:[%s6660_s19 + $0xd8] sm:$0xff] %v401_v27  }
  0x2c   : > { %406 = vst [vmem:[%s6660_s19 + $0xe0] sm:$0xff] %v405_v28  }
  0x2d   : > { %410 = vst [vmem:[%s6660_s19 + $0xe8] sm:$0xff] %v409_v29  }
  0x2e   : > { %414 = vst [vmem:[%s6660_s19 + $0xf0] sm:$0xff] %v413_v30  }
  0x2f   : > { %418 = vst [vmem:[%s6660_s19 + $0xf8] sm:$0xff] %v417_v31  }
  0x30 PF: > { %p5612_p5 = scmp.ge.s32.totalorder %s6567_s29, 1  ;;  %p580_p6 = scmp.lt.s32.totalorder %s6567_s29, 3 }
  0x32   : > { %p581_p7 = pnand %p5612_p5, %p580_p6 }
  0x34   : > { %584 = sbr.rel (%p581_p7) target bundleno = 1319 (0x527), region = 89 }
  0x39   : > { %v5953_v32 = vld [vmem:[%s12292_s2 + $0x8] sm:$0xff]  ;;  %s5617_s22 = sshll.u32 %s6635_s30, 1  ;;  %s5614_s23 = sshll.u32 %s6635_s30, 4  ;;  %v6569_v33 = vmov 1   ;;  %v6570_v34 = vmov 0   ;;  %v5952_v35 = vld [vmem:[%s12292_s2] sm:$0xff]  ;;  %v4717_v5 = vlaneseq }
  0x3a   : > { %6053 = vset.pattern.permute.xlu1 %v6569_v33  ;;  %6052 = vset.pattern.permute.xlu0 %v6570_v34  ;;  %p639_p8 = scmp.lt.s32.totalorder %s5617_s22, 3  ;;  %p631_p9 = scmp.lt.s32.totalorder %s5614_s23, 31  ;;  %vm889_vm0 = vcmask 261120   ;;  %v6571_v42 = vmov 2   ;;  %v4644_v7 = vld [vmem:[%s12295_s5] sm:$0x7] }
  0x3b   : > { %992 = vmatpush.bf16.msra.mxu0 %v5953_v32  ;;  %6018 = vmatpush.bf16.msra.mxu2 %v5953_v32  ;;  %s587_s26 = sand.u32 1, %s6559_s27   ;;  %v6800_v6 = vshrl.u32 %v4717_v5, 7  ;;  %v4655_v10 = vperm.slane %v4644_v7, 0  ;;  %v4670_v11 = vperm.slane %v4644_v7, 1  ;;  %v4685_v12 = vperm.slane %v4644_v7, 2  ;;  %p644_p10 = scmp.lt.s32.totalorder %s6635_s30, 1 }
  0x3c   : > { %1481 = vmatpush.bf16.msra.mxu1 %v5953_v32  ;;  %6020 = vmatpush.bf16.msra.mxu3 %v5953_v32  ;;  %s13437_s22 = smov (!%p639_p8, %s5617_s22), 3  ;;  %s13439_s23 = smov (!%p631_p9, %s5614_s23), 31  ;;  %vm1645_vm3 = vcmask 1047556   ;;  %vm2673_vm6 = vcmask 130048  }
  0x3d   : > { %6051 = vset.pattern.permute.xlu2 %v6570_v34  ;;  %s5618_s29 = sshll.u32 %s13437_s22, 3  ;;  %s5613_s10 = sshll.u32 %s587_s26, 8  ;;  %12553 = vst [vmem:[#allocation3_spill] sm:$0xff] %v6800_v6  ;;  %v6806_v8 = vadd.s32 16, %v6800_v6  ;;  %v6809_v9 = vadd.s32 8, %v6800_v6  ;;  %v6870_v5 = vadd.s32 24, %v6800_v6 }
  0x3e   : > { %s642_s14 = scalar_lea.vmem %s12294_s4, %s5618_s29  ;;  %s5951_s15 = sshll.u32 %s13439_s23, 4 }
  0x3f   : > { %993 = vmatpush.bf16.msra.mxu0 %v5952_v35  ;;  %6019 = vmatpush.bf16.msra.mxu2 %v5952_v35  ;;  %v4643_v36 = vld [vmem:[%s642_s14 + $0x8] sm:$0xff]  ;;  %v4642_v37 = vld [vmem:[%s642_s14] sm:$0xff]  ;;  %s6740_s17 = scalar_lea.vmem %s12290_s0, %s5951_s15  ;;  %s6744_s18 = scalar_lea.vmem [#allocation2], %s5613_s10  ;;  %12554 = vst [vmem:[#allocation4_spill] sm:$0xff] %v6806_v8 }
  0x40   : > { %1482 = vmatpush.bf16.msra.mxu1 %v5952_v35  ;;  %6021 = vmatpush.bf16.msra.mxu3 %v5952_v35  ;;  %v5954_v38 = vld [vmem:[%s6740_s17] sm:$0xff]  ;;  %v5955_v43 = vld [vmem:[%s6740_s17 + $0x8] sm:$0xff]  ;;  %v5956_v47 = vld [vmem:[%s6740_s17 + $0x10] sm:$0xff]  ;;  %12555 = vst [vmem:[#allocation5_spill] sm:$0xff] %v6809_v9  ;;  %s13441_s30 = smov (!%p644_p10, %s6635_s30), 1 }
  0x41   : > { %4652 = vperm.xlu0 %6052, %v4643_v36   ;;  %4663 = vperm.xlu1 %6053, %v4642_v37   ;;  %v5970_v39 = vld [vmem:[%s6740_s17 + $0x80] sm:$0xff]  ;;  %v5971_v44 = vld [vmem:[%s6740_s17 + $0x88] sm:$0xff]  ;;  %v5972_v48 = vld [vmem:[%s6740_s17 + $0x90] sm:$0xff]  ;;  %12562 = vst [vmem:[#allocation12_spill] sm:$0xff] %v6870_v5  ;;  %s5619_s16 = sshll.u32 %s13441_s30, 3 }
  0x42   : > { %v5986_v40 = vld [vmem:[%s6744_s18] sm:$0xff]  ;;  %4647 = vperm.xlu2 %6051, %v4642_v37   ;;  %5756 = vmatmul.msk.bf16.vlgmr.msra.gmra.mxu0 %vm889_vm0, %v5954_v38  ;;  %v5987_v45 = vld [vmem:[%s6744_s18 + $0x8] sm:$0xff]  ;;  %v5988_v49 = vld [vmem:[%s6744_s18 + $0x10] sm:$0xff] }
  0x43   : > { %v6002_v41 = vld [vmem:[%s6744_s18 + $0x80] sm:$0xff]  ;;  %5772 = vmatmul.msk.bf16.vlgmr.msra.gmra.mxu2 %vm889_vm0, %v5970_v39  ;;  %5916 = vmatmul.msk.bf16.vlgmr.msra.gmra.mxu1 %vm889_vm0, %v5986_v40  ;;  %v6003_v46 = vld [vmem:[%s6744_s18 + $0x88] sm:$0xff]  ;;  %v6004_v50 = vld [vmem:[%s6744_s18 + $0x90] sm:$0xff] }
  0x44   : > { %5932 = vmatmul.msk.bf16.vlgmr.msra.gmra.mxu3 %vm889_vm0, %v6002_v41  ;;  %v5957_v51 = vld [vmem:[%s6740_s17 + $0x18] sm:$0xff]  ;;  %v5958_v55 = vld [vmem:[%s6740_s17 + $0x20] sm:$0xff]  ;;  %v5959_v59 = vld [vmem:[%s6740_s17 + $0x28] sm:$0xff] }
  0x45   : > { %v5973_v52 = vld [vmem:[%s6740_s17 + $0x98] sm:$0xff]  ;;  %v5974_v56 = vld [vmem:[%s6740_s17 + $0xa0] sm:$0xff]  ;;  %v5975_v60 = vld [vmem:[%s6740_s17 + $0xa8] sm:$0xff] }
  0x46   : > { %v5989_v53 = vld [vmem:[%s6744_s18 + $0x18] sm:$0xff]  ;;  %v5990_v57 = vld [vmem:[%s6744_s18 + $0x20] sm:$0xff]  ;;  %v5991_v61 = vld [vmem:[%s6744_s18 + $0x28] sm:$0xff] }
  0x47   : > { %v6005_v54 = vld [vmem:[%s6744_s18 + $0x98] sm:$0xff]  ;;  %v6006_v58 = vld [vmem:[%s6744_s18 + $0xa0] sm:$0xff]  ;;  %v6007_v62 = vld [vmem:[%s6744_s18 + $0xa8] sm:$0xff] }
  0x48   : > { %v5960_v0 = vld [vmem:[%s6740_s17 + $0x30] sm:$0xff]  ;;  %v5961_v13 = vld [vmem:[%s6740_s17 + $0x38] sm:$0xff]  ;;  %v5994_v39 = vld [vmem:[%s6744_s18 + $0x40] sm:$0xff] }
  0x49   : > { %6056 = vset.pattern.permute.xlu1 %v6571_v42  ;;  %v5976_v1 = vld [vmem:[%s6740_s17 + $0xb0] sm:$0xff]  ;;  %6059 = vset.pattern.permute.xlu0 %v6806_v8  ;;  %v5977_v14 = vld [vmem:[%s6740_s17 + $0xb8] sm:$0xff]  ;;  %v6010_v40 = vld [vmem:[%s6744_s18 + $0xc0] sm:$0xff] }
  0x4a   : > { %4682 = vperm.xlu1 %6056, %v4643_v36   ;;  %6054 = vset.pattern.permute.xlu2 %v6569_v33  ;;  %v5992_v2 = vld [vmem:[%s6744_s18 + $0x30] sm:$0xff]  ;;  %v5993_v15 = vld [vmem:[%s6744_s18 + $0x38] sm:$0xff] }
  0x4b   : > { %4667 = vperm.xlu2 %6054, %v4643_v36   ;;  %v6008_v3 = vld [vmem:[%s6744_s18 + $0xb0] sm:$0xff]  ;;  %v6009_v16 = vld [vmem:[%s6744_s18 + $0xb8] sm:$0xff]  ;;  %v5962_v36 = vld [vmem:[%s6740_s17 + $0x40] sm:$0xff] }
  0x52   : > { %5757 = vmatmul.msk.bf16.gmra.mxu0 %vm889_vm0, %v5955_v43  ;;  %6058 = vset.pattern.permute.xlu1 %v6809_v9 }
  0x53   : > { %5773 = vmatmul.msk.bf16.gmra.mxu2 %vm889_vm0, %v5971_v44  ;;  %5917 = vmatmul.msk.bf16.gmra.mxu1 %vm889_vm0, %v5987_v45 }
  0x54   : > { %5933 = vmatmul.msk.bf16.gmra.mxu3 %vm889_vm0, %v6003_v46  ;;  %6055 = vset.pattern.permute.xlu2 %v6571_v42 }
  0x55   : > { %4678 = vperm.xlu2 %6055, %v4642_v37   ;;  %v5978_v37 = vld [vmem:[%s6740_s17 + $0xc0] sm:$0xff] }
  0x5d   : > { %6057 = vset.pattern.permute.xlu2 %v6800_v6 }
  0x62   : > { %5758 = vmatmul.msk.bf16.gmra.mxu0 %vm889_vm0, %v5956_v47 }
  0x63   : > { %5774 = vmatmul.msk.bf16.gmra.mxu2 %vm889_vm0, %v5972_v48  ;;  %5918 = vmatmul.msk.bf16.gmra.mxu1 %vm889_vm0, %v5988_v49 }
  0x64   : > { %5934 = vmatmul.msk.bf16.gmra.mxu3 %vm889_vm0, %v6004_v50 }
  0x72   : > { %5759 = vmatmul.msk.bf16.gmra.mxu0 %vm889_vm0, %v5957_v51 }
  0x73   : > { %5775 = vmatmul.msk.bf16.gmra.mxu2 %vm889_vm0, %v5973_v52  ;;  %5919 = vmatmul.msk.bf16.gmra.mxu1 %vm889_vm0, %v5989_v53 }
  0x74   : > { %5935 = vmatmul.msk.bf16.gmra.mxu3 %vm889_vm0, %v6005_v54 }
  0x82   : > { %5760 = vmatmul.msk.bf16.gmra.mxu0 %vm889_vm0, %v5958_v55 }
  0x83   : > { %5776 = vmatmul.msk.bf16.gmra.mxu2 %vm889_vm0, %v5974_v56  ;;  %5920 = vmatmul.msk.bf16.gmra.mxu1 %vm889_vm0, %v5990_v57 }
  0x84   : > { %5936 = vmatmul.msk.bf16.gmra.mxu3 %vm889_vm0, %v6006_v58 }
  0x92   : > { %5761 = vmatmul.msk.bf16.gmra.mxu0 %vm889_vm0, %v5959_v59 }
  0x93   : > { %5777 = vmatmul.msk.bf16.gmra.mxu2 %vm889_vm0, %v5975_v60  ;;  %5921 = vmatmul.msk.bf16.gmra.mxu1 %vm889_vm0, %v5991_v61  ;;  %v5963_v60 = vld [vmem:[%s6740_s17 + $0x48] sm:$0xff] }
  0x94   : > { %5937 = vmatmul.msk.bf16.gmra.mxu3 %vm889_vm0, %v6007_v62 }
  0x9c   : > { %v4648_v63 = vpop.permute.xlu2 %4647 }
  0x9d   : > { %v4656_v18 = vsub.f32 %v4648_v63, %v4655_v10  ;;  %v5979_v63 = vld [vmem:[%s6740_s17 + $0xc8] sm:$0xff] }
  0x9f   : > { %v4658_v25 = vmul.f32 %v4656_v18, %v4656_v18  ;;  %v5980_v18 = vld [vmem:[%s6740_s17 + $0xd0] sm:$0xff] }
  0xa2   : > { %5762 = vmatmul.msk.bf16.gmra.mxu0 %vm889_vm0, %v5960_v0  ;;  %v5995_v0 = vld [vmem:[%s6744_s18 + $0x48] sm:$0xff] }
  0xa3   : > { %5778 = vmatmul.msk.bf16.gmra.mxu2 %vm889_vm0, %v5976_v1  ;;  %5922 = vmatmul.msk.bf16.gmra.mxu1 %vm889_vm0, %v5992_v2  ;;  %v6011_v1 = vld [vmem:[%s6744_s18 + $0xc8] sm:$0xff] }
  0xa4   : > { %5938 = vmatmul.msk.bf16.gmra.mxu3 %vm889_vm0, %v6008_v3 }
  0xa5   : > { %v4668_v4 = vpop.permute.xlu2 %4667 }
  0xa6   : > { %v4672_v19 = vsub.f32 %v4668_v4, %v4670_v11 }
  0xa8   : > { %v4674_v26 = vmul.f32 %v4672_v19, %v4672_v19  ;;  %v5996_v19 = vld [vmem:[%s6744_s18 + $0x50] sm:$0xff] }
  0xaf   : > { %v4679_v17 = vpop.permute.xlu2 %4678 }
  0xb0   : > { %v4686_v20 = vsub.f32 %v4679_v17, %v4685_v12 }
  0xb2   : > { %5763 = vmatmul.msk.bf16.gmra.mxu0 %vm889_vm0, %v5961_v13  ;;  %v4688_v29 = vmul.f32 %v4686_v20, %v4686_v20 }
  0xb3   : > { %v4653_v21 = vpop.permute.xlu0 %4652  ;;  %v4664_v22 = vpop.permute.xlu1 %4663  ;;  %5779 = vmatmul.msk.bf16.gmra.mxu2 %vm889_vm0, %v5977_v14  ;;  %5923 = vmatmul.msk.bf16.gmra.mxu1 %vm889_vm0, %v5993_v15  ;;  %v5964_v14 = vld [vmem:[%s6740_s17 + $0x50] sm:$0xff] }
  0xb4   : > { %v4657_v23 = vsub.f32 %v4653_v21, %v4655_v10  ;;  %v4671_v24 = vsub.f32 %v4664_v22, %v4670_v11  ;;  %5939 = vmatmul.msk.bf16.gmra.mxu3 %vm889_vm0, %v6009_v16  ;;  %v6012_v22 = vld [vmem:[%s6744_s18 + $0xd0] sm:$0xff] }
  0xb6   : > { %v4659_v27 = vmul.f32 %v4657_v23, %v4657_v23  ;;  %v4673_v28 = vmul.f32 %v4671_v24, %v4671_v24 }
  0xb8   : > { %v4676_v30 = vadd.f32 %v4674_v26, %v4659_v27  ;;  %v4675_v31 = vadd.f32 %v4673_v28, %v4658_v25  ;;  %v6572_v27 = vmov 1983009808  }
  0xb9   : > { %v1650_v28 = vunpack.c.l.s4 %v6572_v27 }
  0xba   : > { %v4690_v32 = vadd.f32 %v4688_v29, %v4675_v31 }
  0xbc   : > { %6122 = vrsqrt.f32 %v4690_v32  ;;  %v4683_v33 = vpop.permute.xlu1 %4682  ;;  %vm4699_vm1 = vcmp.eq.f32.partialorder %v4690_v32, inf  ;;  %v4702_v55 = vand.u32 2147483648, %v4690_v32  ;;  %vm4701_vm2 = vcmp.eq.f32.partialorder %v4690_v32, 0.0 }
  0xbd   : > { %v4687_v34 = vsub.f32 %v4683_v33, %v4685_v12 }
  0xbf   : > { %v4689_v35 = vmul.f32 %v4687_v34, %v4687_v34  ;;  %v6824_v38 = vpop.f32.mrf.mxu0 }
  0xc0   : > { %v6830_v42 = vpop.f32.mrf.mxu1 }
  0xc1   : > { %v6828_v41 = vadd.f32 %v4689_v35, %v4676_v30  ;;  %v1647_v10 = vrot.slane %v6830_v42, 4 }
  0xc2   : > { %v6123_v43 = vpop.eup %6122  ;;  %5764 = vmatmul.msk.bf16.gmra.mxu0 %vm889_vm0, %v5962_v36 }
  0xc3   : > { %v4693_v44 = vmul.f32 %v6123_v43, %v4690_v32  ;;  %5780 = vmatmul.msk.bf16.gmra.mxu2 %vm889_vm0, %v5978_v37  ;;  %5924 = vmatmul.msk.bf16.gmra.mxu1 %vm889_vm0, %v5994_v39  ;;  %6124 = vrsqrt.f32 %v6828_v41  ;;  %v6922_v37 = vunpack.c.0.s8 %v1650_v28  ;;  %vm4711_vm4 = vcmp.eq.f32.partialorder %v6828_v41, inf }
  0xc4   : > { %5940 = vmatmul.msk.bf16.gmra.mxu3 %vm889_vm0, %v6010_v40  ;;  %vm4713_vm5 = vcmp.eq.f32.partialorder %v6828_v41, 0.0 }
  0xc5   : > { %v4694_v45 = vmul.f32 %v6123_v43, %v4693_v44 }
  0xc6   : > { %v6836_v46 = vpop.f32.mrf.mxu2 }
  0xc7   : > { %12556 = vst [vmem:[#allocation6_spill] sm:$0xff] %v6836_v46  ;;  %v4695_v47 = vmul.f32 0.5, %v4694_v45  ;;  %v6838_v48 = vpop.f32.mrf.mxu3  ;;  %v6840_v49 = vpop.f32.mrf.mxu0 }
  0xc8   : > { %12557 = vst [vmem:[#allocation7_spill] sm:$0xff] %v6840_v49  ;;  %v6842_v51 = vpop.f32.mrf.mxu1  ;;  %v1871_v23 = vrot.slane %v6838_v48, 4 }
  0xc9   : > { %v4696_v50 = vsub.f32 1.5, %v4695_v47  ;;  %v2095_v25 = vrot.slane %v6842_v51, 4  ;;  %v6125_v47 = vpop.eup %6124 }
  0xcb   : > { %v4697_v52 = vmul.f32 %v6123_v43, %v4696_v50 }
  0xcd   : > { %v4698_v53 = vmul.f32 %v4697_v52, %v4690_v32 }
  0xce   : > { %v6844_v54 = vpop.f32.mrf.mxu2 }
  0xcf   : > { %12558 = vst [vmem:[#allocation8_spill] sm:$0xff] %v6844_v54  ;;  %v6846_v56 = vpop.f32.mrf.mxu3  ;;  %v4700_v57 = vsel %vm4699_vm1, %v4690_v32, %v4698_v53  ;;  %v6848_v58 = vpop.f32.mrf.mxu0 }
  0xd0   : > { %12559 = vst [vmem:[#allocation9_spill] sm:$0xff] %v6848_v58  ;;  %v6850_v59 = vsel %vm4701_vm2, %v4702_v55, %v4700_v57  ;;  %v6853_v61 = vpop.f32.mrf.mxu1  ;;  %v2319_v39 = vrot.slane %v6846_v56, 4  ;;  %v5981_v57 = vld [vmem:[%s6740_s17 + $0xd8] sm:$0xff] }
  0xd1   : > { %v4716_v62 = vperm.slane %v6850_v59, 0  ;;  %v6886_v16 = vperm.slane %v6850_v59, 3  ;;  %v6889_v17 = vperm.slane %v6850_v59, 1  ;;  %v6945_v55 = vperm.slane %v6850_v59, 4 }
  0xd2   : > { %5765 = vmatmul.msk.bf16.gmra.mxu0 %vm889_vm0, %v5963_v60  ;;  %v5997_v60 = vld [vmem:[%s6744_s18 + $0x58] sm:$0xff] }
  0xd3   : > { %4733 = vperm.xlu0 %6059, %v4716_v62   ;;  %4727 = vperm.xlu1 %6058, %v4716_v62   ;;  %12565 = vst [vmem:[#allocation15_spill] sm:$0xff] %v6889_v17 }
  0xd4   : > { %4721 = vperm.xlu2 %6057, %v4716_v62   ;;  %5781 = vmatmul.msk.bf16.gmra.mxu2 %vm889_vm0, %v5979_v63 }
  0xd5   : > { %5925 = vmatmul.msk.bf16.gmra.mxu1 %vm889_vm0, %v5995_v0  ;;  %5941 = vmatmul.msk.bf16.gmra.mxu3 %vm889_vm0, %v6011_v1  ;;  %v6013_v1 = vld [vmem:[%s6744_s18 + $0xd8] sm:$0xff] }
  0xd6   : > { %v6863_v2 = vpop.f32.mrf.mxu2 }
  0xd7   : > { %12560 = vst [vmem:[#allocation10_spill] sm:$0xff] %v6863_v2  ;;  %v6865_v3 = vpop.f32.mrf.mxu3  ;;  %v6867_v4 = vpop.f32.mrf.mxu0 }
  0xd8   : > { %12561 = vst [vmem:[#allocation11_spill] sm:$0xff] %v6867_v4  ;;  %v6872_v7 = vpop.f32.mrf.mxu1 }
  0xdb   : > { %6068 = vset.pattern.permute.xlu0 %v6800_v6  ;;  %6061 = vset.pattern.permute.xlu1 %v6800_v6 }
  0xdc   : > { %6060 = vset.pattern.permute.xlu2 %v6870_v5 }
  0xde   : > { %v6878_v11 = vpop.f32.mrf.mxu2 }
  0xdf   : > { %12563 = vst [vmem:[#allocation13_spill] sm:$0xff] %v6878_v11  ;;  %v6880_v12 = vpop.f32.mrf.mxu3  ;;  %v6882_v13 = vpop.f32.mrf.mxu0 }
  0xe0   : > { %12564 = vst [vmem:[#allocation14_spill] sm:$0xff] %v6882_v13  ;;  %v1494_v15 = vpop.f32.mrf.mxu1 }
  0xe1   : > { %v1644_v20 = vrot.slane %v1494_v15, 4  ;;  %v6894_v21 = vsel %vm1645_vm3, %v1494_v15, %v1647_v10  ;;  %v4705_v10 = vmul.f32 %v6125_v47, %v6828_v41  ;;  %v1883_v15 = vrot.slane %v6865_v3, 4 }
  0xe2   : > { %5766 = vmatmul.msk.bf16.gmra.mxu0 %vm889_vm0, %v5964_v14 }
  0xe3   : > { %4796 = vperm.xlu0 %6068, %v6886_v16   ;;  %4746 = vperm.xlu1 %6061, %v6889_v17   ;;  %v1646_v24 = vsel %vm1645_vm3, %v1644_v20, %v6830_v42  ;;  %v1659_v42 = vrot.slane %v6853_v61, 4 }
  0xe4   : > { %4739 = vperm.xlu2 %6060, %v4716_v62   ;;  %5782 = vmatmul.msk.bf16.gmra.mxu2 %vm889_vm0, %v5980_v18  ;;  %v6936_v44 = vperm.slane %v1646_v24, %v6922_v37 }
  0xe5   : > { %5926 = vmatmul.msk.bf16.gmra.mxu1 %vm889_vm0, %v5996_v19  ;;  %5942 = vmatmul.msk.bf16.gmra.mxu3 %vm889_vm0, %v6012_v22  ;;  %v2107_v19 = vrot.slane %v6872_v7, 4  ;;  %v4706_v22 = vmul.f32 %v6125_v47, %v4705_v10  ;;  %v5998_v10 = vld [vmem:[%s6744_s18 + $0x60] sm:$0xff] }
  0xe6   : > { %v6907_v26 = vpop.f32.mrf.mxu2  ;;  %v1695_v14 = vrot.slane %v6936_v44, 4 }
  0xe7   : > { %v1574_v29 = vpop.f32.mrf.mxu3  ;;  %v6912_v32 = vpop.f32.mrf.mxu0 }
  0xe8   : > { %v1869_v30 = vrot.slane %v1574_v29, 4  ;;  %v6910_v31 = vsel %vm1645_vm3, %v1574_v29, %v1871_v23  ;;  %12566 = vst [vmem:[#allocation16_spill] sm:$0xff] %v6912_v32  ;;  %v1496_v33 = vpop.f32.mrf.mxu1 }
  0xe9   : > { %v2093_v35 = vrot.slane %v1496_v33, 4  ;;  %v6920_v36 = vsel %vm1645_vm3, %v1496_v33, %v2095_v25  ;;  %v2331_v33 = vrot.slane %v6880_v12, 4 }
  0xea   : > { %v6917_v34 = vsel %vm1645_vm3, %v1869_v30, %v6838_v48  ;;  %v4707_v30 = vmul.f32 0.5, %v4706_v22 }
  0xeb   : > { %6073 = vset.pattern.permute.xlu0 %v6809_v9  ;;  %6063 = vset.pattern.permute.xlu1 %v6806_v8  ;;  %v6929_v40 = vsel %vm1645_vm3, %v2093_v35, %v6842_v51  ;;  %v5965_v51 = vld [vmem:[%s6740_s17 + $0x58] sm:$0xff] }
  0xec   : > { %6062 = vset.pattern.permute.xlu2 %v6809_v9 }
  0xee   : > { %v6933_v43 = vpop.f32.mrf.mxu2 }
  0xef   : > { %12567 = vst [vmem:[#allocation17_spill] sm:$0xff] %v6933_v43  ;;  %v1576_v45 = vpop.f32.mrf.mxu3  ;;  %v6941_v52 = vpop.f32.mrf.mxu0  ;;  %v6000_v43 = vld [vmem:[%s6744_s18 + $0x70] sm:$0xff] }
  0xf0   : > { %v2317_v48 = vrot.slane %v1576_v45, 4  ;;  %v6939_v50 = vsel %vm1645_vm3, %v1576_v45, %v2319_v39  ;;  %v1499_v53 = vpop.f32.mrf.mxu1 }
  0xf1   : > { %v1657_v63 = vrot.slane %v1499_v53, 4  ;;  %v6954_v0 = vsel %vm1645_vm3, %v1499_v53, %v1659_v42  ;;  %v4708_v42 = vsub.f32 1.5, %v4707_v30  ;;  %v4714_v30 = vand.u32 2147483648, %v6828_v41 }
  0xf2   : > { %v6951_v62 = vsel %vm1645_vm3, %v2317_v48, %v6846_v56  ;;  %5767 = vmatmul.msk.bf16.gmra.mxu0 %vm889_vm0, %v5965_v51  ;;  %v7138_v2 = vperm.slane %v6954_v0, %v6922_v37 }
  0xf3   : > { %4827 = vperm.xlu0 %6073, %v6945_v55   ;;  %4758 = vperm.xlu1 %6063, %v6889_v17   ;;  %v1658_v18 = vsel %vm1645_vm3, %v1657_v63, %v6853_v61  ;;  %v7009_v63 = vperm.slane %v6850_v59, 5 }
  0xf4   : > { %4752 = vperm.xlu2 %6062, %v6889_v17   ;;  %v6967_v56 = vperm.slane %v1658_v18, %v6922_v37  ;;  %5783 = vmatmul.msk.bf16.gmra.mxu2 %vm889_vm0, %v5981_v57  ;;  %v5966_v57 = vld [vmem:[%s6740_s17 + $0x60] sm:$0xff]  ;;  %v4709_v18 = vmul.f32 %v6125_v47, %v4708_v42 }
  0xf5   : > { %5927 = vmatmul.msk.bf16.gmra.mxu1 %vm889_vm0, %v5997_v60  ;;  %5943 = vmatmul.msk.bf16.gmra.mxu3 %vm889_vm0, %v6013_v1  ;;  %v5982_v1 = vld [vmem:[%s6740_s17 + $0xe0] sm:$0xff] }
  0xf6   : > { %v6973_v20 = vpop.f32.mrf.mxu2  ;;  %v6977_v61 = vsel %vm1645_vm3, %v6967_v56, %v1695_v14 }
  0xf7   : > { %12568 = vst [vmem:[#allocation18_spill] sm:$0xff] %v6973_v20  ;;  %v6979_v23 = vpop.f32.mrf.mxu3  ;;  %v6985_v25 = vpop.f32.mrf.mxu0 }
  0xf8   : > { %v6983_v24 = vsel %vm1645_vm3, %v6979_v23, %v1883_v15  ;;  %12569 = vst [vmem:[#allocation19_spill] sm:$0xff] %v6985_v25  ;;  %v1501_v27 = vpop.f32.mrf.mxu1  ;;  %v6014_v15 = vld [vmem:[%s6744_s18 + $0xe0] sm:$0xff] }
  0xf9   : > { %v2105_v28 = vrot.slane %v1501_v27, 4  ;;  %v6988_v29 = vsel %vm1645_vm3, %v1501_v27, %v2107_v19 }
  0xfb   : > { %6078 = vset.pattern.permute.xlu0 %v6806_v8  ;;  %6065 = vset.pattern.permute.xlu1 %v6809_v9  ;;  %v6995_v35 = vsel %vm1645_vm3, %v2105_v28, %v6872_v7  ;;  %v4766_v7 = vperm.slane %v6850_v59, 2 }
  0xfc   : > { %6064 = vset.pattern.permute.xlu2 %v6800_v6 }
  0xfe   : > { %v6998_v39 = vpop.f32.mrf.mxu2 }
  0xff   : > { %12570 = vst [vmem:[#allocation20_spill] sm:$0xff] %v6998_v39  ;;  %v1581_v45 = vpop.f32.mrf.mxu3  ;;  %v7003_v53 = vpop.f32.mrf.mxu0  ;;  %v5968_v39 = vld [vmem:[%s6740_s17 + $0x70] sm:$0xff] }
 0x100   : > { %v2329_v48 = vrot.slane %v1581_v45, 4  ;;  %v7001_v51 = vsel %vm1645_vm3, %v1581_v45, %v2331_v33  ;;  %12571 = vst [vmem:[#allocation21_spill] sm:$0xff] %v7003_v53  ;;  %v7006_v60 = vpop.f32.mrf.mxu1  ;;  %v6001_v53 = vld [vmem:[%s6744_s18 + $0x78] sm:$0xff] }
 0x102   : > { %v7016_v14 = vsel %vm1645_vm3, %v2329_v48, %v6880_v12  ;;  %5768 = vmatmul.msk.bf16.gmra.mxu0 %vm889_vm0, %v5966_v57  ;;  %v4710_v12 = vmul.f32 %v4709_v18, %v6828_v41  ;;  %v5967_v57 = vld [vmem:[%s6740_s17 + $0x68] sm:$0xff] }
 0x103   : > { %4858 = vperm.xlu0 %6078, %v7009_v63   ;;  %4777 = vperm.xlu1 %6065, %v4766_v7   ;;  %v5999_v18 = vld [vmem:[%s6744_s18 + $0x68] sm:$0xff] }
 0x104   : > { %4771 = vperm.xlu2 %6064, %v4766_v7   ;;  %5784 = vmatmul.msk.bf16.gmra.mxu2 %vm889_vm0, %v5982_v1  ;;  %v4712_v28 = vsel %vm4711_vm4, %v6828_v41, %v4710_v12  ;;  %v6015_v12 = vld [vmem:[%s6744_s18 + $0xe8] sm:$0xff] }
 0x105   : > { %5928 = vmatmul.msk.bf16.gmra.mxu1 %vm889_vm0, %v5998_v10  ;;  %5944 = vmatmul.msk.bf16.gmra.mxu3 %vm889_vm0, %v6014_v15  ;;  %v7042_v42 = vsel %vm4713_vm5, %v4714_v30, %v4712_v28  ;;  %v5983_v15 = vld [vmem:[%s6740_s17 + $0xe8] sm:$0xff] }
 0x106   : > { %v7024_v19 = vpop.f32.mrf.mxu2  ;;  %12575 = vst [vmem:[#allocation25_spill] sm:$0xff] %v7042_v42  ;;  %v7052_v10 = vperm.slane %v7042_v42, 0  ;;  %v7088_v54 = vperm.slane %v7042_v42, 1 }
 0x107   : > { %12572 = vst [vmem:[#allocation22_spill] sm:$0xff] %v7024_v19  ;;  %v7027_v22 = vpop.f32.mrf.mxu3  ;;  %v7029_v47 = vpop.f32.mrf.mxu0  ;;  %v1705_v19 = vrot.slane %v7138_v2, 4 }
 0x108   : > { %12573 = vst [vmem:[#allocation23_spill] sm:$0xff] %v7029_v47  ;;  %v7031_v27 = vpop.f32.mrf.mxu1  ;;  %v1895_v13 = vrot.slane %v7027_v22, 4  ;;  %v6017_v47 = vld [vmem:[%s6744_s18 + $0xf8] sm:$0xff] }
 0x109   : > { %12577 = vst [vmem:[#allocation27_spill] sm:$0xff] %v7052_v10 }
 0x10a   : > { %12581 = vst [vmem:[#allocation31_spill] sm:$0xff] %v7088_v54 }
 0x10b   : > { %6087 = vset.pattern.permute.xlu0 %v6800_v6  ;;  %6067 = vset.pattern.permute.xlu1 %v6870_v5 }
 0x10c   : > { %6066 = vset.pattern.permute.xlu2 %v6806_v8 }
 0x10e   : > { %v7040_v33 = vpop.f32.mrf.mxu2 }
 0x10f   : > { %12574 = vst [vmem:[#allocation24_spill] sm:$0xff] %v7040_v33  ;;  %v7044_v45 = vpop.f32.mrf.mxu3  ;;  %v7046_v48 = vpop.f32.mrf.mxu0  ;;  %v5984_v33 = vld [vmem:[%s6740_s17 + $0xf0] sm:$0xff] }
 0x110   : > { %12576 = vst [vmem:[#allocation26_spill] sm:$0xff] %v7046_v48  ;;  %v7049_v1 = vpop.f32.mrf.mxu1 }
 0x112   : > { %5769 = vmatmul.msk.bf16.gmra.mxu0 %vm889_vm0, %v5967_v57 }
 0x113   : > { %4921 = vperm.xlu0 %6087, %v7052_v10   ;;  %4789 = vperm.xlu1 %6067, %v4766_v7  }
 0x114   : > { %4783 = vperm.xlu2 %6066, %v4766_v7   ;;  %5785 = vmatmul.msk.bf16.gmra.mxu2 %vm889_vm0, %v5983_v15  ;;  %v1671_v7 = vrot.slane %v7006_v60, 4 }
 0x115   : > { %5929 = vmatmul.msk.bf16.gmra.mxu1 %vm889_vm0, %v5999_v18  ;;  %5945 = vmatmul.msk.bf16.gmra.mxu3 %vm889_vm0, %v6015_v12  ;;  %v7080_v18 = vperm.slane %v6988_v29, %v6922_v37  ;;  %v7099_v29 = vperm.slane %v6920_v36, %v6922_v37 }
 0x116   : > { %v7062_v41 = vpop.f32.mrf.mxu2 }
 0x117   : > { %12578 = vst [vmem:[#allocation28_spill] sm:$0xff] %v7062_v41  ;;  %v7064_v28 = vpop.f32.mrf.mxu3  ;;  %v7066_v30 = vpop.f32.mrf.mxu0  ;;  %v7163_v41 = vperm.slane %v6894_v21, %v6922_v37  ;;  %v2343_v21 = vrot.slane %v7044_v45, 4 }
 0x118   : > { %12579 = vst [vmem:[#allocation29_spill] sm:$0xff] %v7066_v30  ;;  %v7068_v17 = vpop.f32.mrf.mxu1  ;;  %v2153_v30 = vrot.slane %v7080_v18, 4 }
 0x11a   : > { %v7114_v36 = vsel %vm1645_vm3, %v2153_v30, %v7099_v29  ;;  %v7129_v30 = vperm.slane %v6910_v31, %v6922_v37  ;;  %v5969_v31 = vld [vmem:[%s6740_s17 + $0x78] sm:$0xff] }
 0x11b   : > { %6092 = vset.pattern.permute.xlu0 %v6809_v9  ;;  %6070 = vset.pattern.permute.xlu1 %v6806_v8 }
 0x11c   : > { %6069 = vset.pattern.permute.xlu2 %v6809_v9  ;;  %12585 = vst [vmem:[#allocation35_spill] sm:$0xff] %v7129_v30 }
 0x11e   : > { %v7074_v57 = vpop.f32.mrf.mxu2 }
 0x11f   : > { %12580 = vst [vmem:[#allocation30_spill] sm:$0xff] %v7074_v57  ;;  %v7076_v15 = vpop.f32.mrf.mxu3  ;;  %v7082_v12 = vpop.f32.mrf.mxu0  ;;  %v6016_v57 = vld [vmem:[%s6744_s18 + $0xf0] sm:$0xff]  ;;  %s647_s18 = scalar_lea.vmem %s12298_s8, %s5619_s16 }
 0x120   : > { %v7085_v11 = vpop.f32.mrf.mxu1 }
 0x121   : > { %v1672_v4 = vsel %vm1645_vm3, %v7085_v11, %v1671_v7  ;;  %v2119_v7 = vrot.slane %v7031_v27, 4 }
 0x122   : > { %5770 = vmatmul.msk.bf16.gmra.mxu0 %vm889_vm0, %v5968_v39  ;;  %v7118_v39 = vperm.slane %v6983_v24, %v6922_v37 }
 0x123   : > { %4952 = vperm.xlu0 %6092, %v7088_v54   ;;  %4808 = vperm.xlu1 %6070, %v6886_v16   ;;  %v6573_v54 = vmov 1934713408  }
 0x124   : > { %4802 = vperm.xlu2 %6069, %v6886_v16   ;;  %5786 = vmatmul.msk.bf16.gmra.mxu2 %vm889_vm0, %v5984_v33  ;;  %12584 = vst [vmem:[#allocation34_spill] sm:$0xff] %v7118_v39  ;;  %v1929_v24 = vrot.slane %v7118_v39, 4  ;;  %v1698_v10 = vunpack.c.l.s4 %v6573_v54 }
 0x125   : > { %5930 = vmatmul.msk.bf16.gmra.mxu1 %vm889_vm0, %v6000_v43  ;;  %5946 = vmatmul.msk.bf16.gmra.mxu3 %vm889_vm0, %v6016_v57  ;;  %v1680_v57 = vperm.slane %v1672_v4, %v6922_v37  ;;  %v7149_v4 = vperm.slane %v7042_v42, 2 }
 0x126   : > { %v7108_v49 = vpop.f32.mrf.mxu2  ;;  %v7155_v0 = vsel %vm1645_vm3, %v1929_v24, %v7129_v30  ;;  %v1907_v24 = vrot.slane %v7064_v28, 4 }
 0x127   : > { %12582 = vst [vmem:[#allocation32_spill] sm:$0xff] %v7108_v49  ;;  %v1594_v25 = vpop.f32.mrf.mxu3  ;;  %v7110_v32 = vpop.f32.mrf.mxu0  ;;  %v1731_v58 = vrot.slane %v1680_v57, 4 }
 0x128   : > { %12583 = vst [vmem:[#allocation33_spill] sm:$0xff] %v7110_v32  ;;  %v7120_v33 = vpop.f32.mrf.mxu1  ;;  %v1683_v32 = vrot.slane %v7049_v1, 4  ;;  %v1893_v46 = vrot.slane %v1594_v25, 4 }
 0x129   : > { %v2120_v43 = vsel %vm1645_vm3, %v7120_v33, %v2119_v7  ;;  %12588 = vst [vmem:[#allocation38_spill] sm:$0xff] %v7149_v4 }
 0x12a   : > { %v1894_v39 = vsel %vm1645_vm3, %v1893_v46, %v7027_v22  ;;  %v1896_v46 = vsel %vm1645_vm3, %v1594_v25, %v1895_v13  ;;  %v7186_v22 = vunpack.c.0.s8 %v1698_v10 }
 0x12b   : > { %6097 = vset.pattern.permute.xlu0 %v6806_v8  ;;  %6072 = vset.pattern.permute.xlu1 %v6800_v6 }
 0x12c   : > { %6071 = vset.pattern.permute.xlu2 %v6870_v5 }
 0x12e   : > { %v7134_v7 = vpop.f32.mrf.mxu2 }
 0x12f   : > { %12586 = vst [vmem:[#allocation36_spill] sm:$0xff] %v7134_v7  ;;  %v7140_v20 = vpop.f32.mrf.mxu3  ;;  %v7142_v49 = vpop.f32.mrf.mxu0  ;;  %v5985_v7 = vld [vmem:[%s6740_s17 + $0xf8] sm:$0xff] }
 0x130   : > { %12587 = vst [vmem:[#allocation37_spill] sm:$0xff] %v7142_v49  ;;  %v7146_v48 = vpop.f32.mrf.mxu1 }
 0x131   : > { %v1684_v49 = vsel %vm1645_vm3, %v7146_v48, %v1683_v32 }
 0x132   : > { %v1692_v42 = vperm.slane %v1684_v49, %v6922_v37  ;;  %5771 = vmatmul.msk.bf16.gmra.mxu0 %vm889_vm0, %v5969_v31  ;;  %v1706_v49 = vsel %vm1645_vm3, %v1705_v19, %v7163_v41  ;;  %v2128_v19 = vperm.slane %v2120_v43, %v6922_v37 }
 0x133   : > { %4983 = vperm.xlu0 %6097, %v7149_v4   ;;  %4821 = vperm.xlu1 %6072, %v6945_v55   ;;  %v2131_v4 = vrot.slane %v7068_v17, 4  ;;  %v7198_v25 = vperm.slane %v1706_v49, %v7186_v22 }
 0x134   : > { %4814 = vperm.xlu2 %6071, %v6886_v16   ;;  %v1729_v54 = vrot.slane %v1692_v42, 4  ;;  %v7174_v32 = vsel %vm1645_vm3, %v1692_v42, %v1731_v58  ;;  %5787 = vmatmul.msk.bf16.gmra.mxu2 %vm889_vm0, %v5985_v7  ;;  %v1669_v58 = vrot.slane %v7085_v11, 4  ;;  %v7204_v11 = vperm.slane %v1896_v46, %v6922_v37 }
 0x135   : > { %5931 = vmatmul.msk.bf16.gmra.mxu1 %vm889_vm0, %v6001_v53  ;;  %5947 = vmatmul.msk.bf16.gmra.mxu3 %vm889_vm0, %v6017_v47  ;;  %v7190_v53 = vperm.slane %v1894_v39, %v6922_v37  ;;  %v2179_v39 = vrot.slane %v2128_v19, 4 }
 0x136   : > { %v7184_v16 = vpop.f32.mrf.mxu2  ;;  %v1730_v7 = vsel %vm1645_vm3, %v1729_v54, %v1680_v57  ;;  %12591 = vst [vmem:[#allocation41_spill] sm:$0xff] %v7204_v11 }
 0x137   : > { %12589 = vst [vmem:[#allocation39_spill] sm:$0xff] %v7184_v16  ;;  %v1599_v42 = vpop.f32.mrf.mxu3  ;;  %v7195_v13 = vpop.f32.mrf.mxu0  ;;  %v7201_v47 = vperm.slane %v1730_v7, %v7186_v22  ;;  %v1943_v10 = vrot.slane %v7190_v53, 4 }
 0x138   : > { %v1905_v31 = vrot.slane %v1599_v42, 4  ;;  %v1908_v30 = vsel %vm1645_vm3, %v1599_v42, %v1907_v24  ;;  %12590 = vst [vmem:[#allocation40_spill] sm:$0xff] %v7195_v13  ;;  %v7210_v57 = vpop.f32.mrf.mxu1  ;;  %v2344_v24 = vsel %vm1645_vm3, %v7140_v20, %v2343_v21  ;;  %v1670_v42 = vsel %vm1645_vm3, %v1669_v58, %v7006_v60 }
 0x139   : > { %v7208_v43 = vperm.slane %v1908_v30, %v6922_v37  ;;  %v2132_v49 = vsel %vm1645_vm3, %v7210_v57, %v2131_v4  ;;  %v1749_v46 = vrot.slane %v7201_v47, 4  ;;  %v1681_v4 = vrot.slane %v7146_v48, 4 }
 0x13a   : > { %v1906_v54 = vsel %vm1645_vm3, %v1905_v31, %v7064_v28  ;;  %v2140_v13 = vperm.slane %v2132_v49, %v6922_v37  ;;  %v2355_v28 = vrot.slane %v7076_v15, 4  ;;  %v1693_v21 = vrot.slane %v6967_v56, 4 }
 0x13b   : > { %12592 = vst [vmem:[#allocation42_spill] sm:$0xff] %v7208_v43  ;;  %v7222_v7 = vperm.slane %v1906_v54, %v6922_v37  ;;  %v1953_v30 = vrot.slane %v7208_v43, 4  ;;  %6075 = vset.pattern.permute.xlu1 %v6870_v5  ;;  %6106 = vset.pattern.permute.xlu0 %v6800_v6  ;;  %v1750_v60 = vsel %vm1645_vm3, %v1749_v46, %v7198_v25 }
 0x13c   : > { %6074 = vset.pattern.permute.xlu2 %v6806_v8  ;;  %v2352_v58 = vperm.slane %v2344_v24, %v6922_v37  ;;  %v2177_v54 = vrot.slane %v2140_v13, 4  ;;  %v7241_v49 = vperm.slane %v7001_v51, %v6922_v37  ;;  %v1676_v48 = vperm.slane %v1670_v42, %v6922_v37 }
 0x13d   : > { %v7237_v31 = vsel %vm1645_vm3, %v7222_v7, %v1943_v10  ;;  %v7245_v16 = vsel %vm1645_vm3, %v2140_v13, %v2179_v39  ;;  %v1954_v56 = vsel %vm1645_vm3, %v1953_v30, %v7204_v11  ;;  %v2160_v10 = vperm.slane %v7114_v36, %v7186_v22 }
 0x13e   : > { %12593 = vst [vmem:[#allocation43_spill] sm:$0xff] %v7237_v31  ;;  %v7247_v43 = vpop.f32.mrf.mxu2  ;;  %v2403_v24 = vrot.slane %v2352_v58, 4  ;;  %v2178_v31 = vsel %vm1645_vm3, %v2177_v54, %v2128_v19  ;;  %v7258_v51 = vperm.slane %v7155_v0, %v7186_v22  ;;  %v1682_v13 = vsel %vm1645_vm3, %v1681_v4, %v7049_v1 }
 0x13f   : > { %12594 = vst [vmem:[#allocation44_spill] sm:$0xff] %v7247_v43  ;;  %v7251_v46 = vpop.f32.mrf.mxu3  ;;  %v1035_v42 = vpop.f32.mrf.mxu0  ;;  %v2184_v30 = vperm.slane %v2178_v31, %v7186_v22  ;;  %v7266_v43 = vperm.slane %v1954_v56, %v7186_v22  ;;  %v7270_v36 = vperm.slane %v6939_v50, %v6922_v37  ;;  %v1881_v1 = vrot.slane %v6979_v23, 4 }
 0x140   : > { %v2356_v39 = vsel %vm1645_vm3, %v7251_v46, %v2355_v28  ;;  %v7273_v0 = vadd.f32 %v1750_v60, %v1035_v42  ;;  %v7275_v54 = vpop.f32.mrf.mxu1  ;;  %v2377_v28 = vrot.slane %v7241_v49, 4  ;;  %v1719_v11 = vrot.slane %v1676_v48, 4 }
 0x141   : > { %v2364_v19 = vperm.slane %v2356_v39, %v6922_v37  ;;  %v2197_v4 = vrot.slane %v2184_v30, 4  ;;  %v1973_v31 = vrot.slane %v7266_v43, 4  ;;  %v1688_v56 = vperm.slane %v1682_v13, %v6922_v37 }
 0x142   : > { %12595 = vst [vmem:[#allocation45_spill] sm:$0xff] %v7273_v0  ;;  %v1751_v39 = vrot.slane %v7198_v25, 4  ;;  %v1694_v13 = vsel %vm1645_vm3, %v1693_v21, %v6936_v44 }
 0x143   : > { %v2401_v8 = vrot.slane %v2364_v19, 4  ;;  %v7282_v50 = vsel %vm1645_vm3, %v2364_v19, %v2403_v24  ;;  %4839 = vperm.xlu1 %6075, %v6945_v55   ;;  %v7287_v60 = vsel %vm1645_vm3, %v2197_v4, %v2160_v10  ;;  %v7291_v23 = vsel %vm1645_vm3, %v1973_v31, %v7258_v51 }
 0x144   : > { %12596 = vst [vmem:[#allocation46_spill] sm:$0xff] %v7282_v50  ;;  %4833 = vperm.xlu2 %6074, %v6945_v55   ;;  %v2378_v19 = vsel %vm1645_vm3, %v2377_v28, %v7270_v36  ;;  %v7308_v31 = vperm.slane %v6977_v61, %v7186_v22  ;;  %v7312_v25 = vsel %vm1645_vm3, %v7201_v47, %v1751_v39  ;;  %v1717_v44 = vrot.slane %v1688_v56, 4 }
 0x145   : > { %v2402_v42 = vsel %vm1645_vm3, %v2401_v8, %v2352_v58  ;;  %v1882_v8 = vsel %vm1645_vm3, %v1881_v1, %v6865_v3  ;;  %v1720_v58 = vsel %vm1645_vm3, %v1688_v56, %v1719_v11  ;;  %v2199_v28 = vrot.slane %v2160_v10, 4 }
 0x146   : > { %v7297_v24 = vpop.f32.mrf.mxu2  ;;  %v7304_v4 = vperm.slane %v2402_v42, %v7186_v22  ;;  %12597 = vst [vmem:[#allocation47_spill] sm:$0xff] %v7308_v31  ;;  %v7322_v42 = vperm.slane %v2378_v19, %v7186_v22  ;;  %v7329_v47 = vperm.slane %v1882_v8, %v6922_v37  ;;  %v7335_v11 = vperm.slane %v1720_v58, %v7186_v22 }
 0x147   : > { %v7301_v55 = vpop.f32.mrf.mxu3  ;;  %v7316_v21 = vpop.f32.mrf.mxu0  ;;  %v7326_v50 = vsel %vm1645_vm3, %v2184_v30, %v2199_v28  ;;  %v1747_v10 = vrot.slane %v7308_v31, 4  ;;  %v1718_v1 = vsel %vm1645_vm3, %v1717_v44, %v1676_v48  ;;  %v2129_v30 = vrot.slane %v7210_v57, 4 }
 0x148   : > { %12598 = vst [vmem:[#allocation48_spill] sm:$0xff] %v7316_v21  ;;  %v7319_v0 = vpop.f32.mrf.mxu1  ;;  %v2421_v61 = vrot.slane %v7304_v4, 4  ;;  %v7345_v39 = vperm.slane %v6917_v34, %v6922_v37  ;;  %v1917_v19 = vrot.slane %v7329_v47, 4  ;;  %v7353_v28 = vperm.slane %v1718_v1, %v7186_v22 }
 0x149   : > { %12599 = vst [vmem:[#allocation49_spill] sm:$0xff] %v7329_v47  ;;  %v1748_v58 = vsel %vm1645_vm3, %v7335_v11, %v1747_v10  ;;  %v7359_v57 = vperm.slane %v6995_v35, %v6922_v37  ;;  %v2130_v34 = vsel %vm1645_vm3, %v2129_v30, %v7068_v17  ;;  %v7369_v10 = vld [vmem:[%s12293_s3] ss:$0 sm:$0xff]  ;;  %v1941_v1 = vrot.slane %v7222_v7, 4 }
 0x14a   : > { %v2422_v3 = vsel %vm1645_vm3, %v2421_v61, %v7322_v42  ;;  %12600 = vst [vmem:[#allocation50_spill] sm:$0xff] %v7335_v11  ;;  %v2553_v44 = vadd.f32 %v1748_v58, %v7082_v12  ;;  %v1741_v35 = vrot.slane %v7353_v28, 4  ;;  %v1918_v17 = vsel %vm1645_vm3, %v1917_v19, %v7345_v39 }
 0x14b   : > { %6077 = vset.pattern.permute.xlu1 %v6809_v9  ;;  %12602 = vst [vmem:[#allocation52_spill] sm:$0xff] %v7359_v57  ;;  %v2117_v30 = vrot.slane %v7120_v33, 4  ;;  %v7383_v12 = vperm.slane %v6929_v40, %v6922_v37  ;;  %v2141_v7 = vrot.slane %v7359_v57, 4  ;;  %v7387_v58 = vperm.slane %v2130_v34, %v6922_v37 }
 0x14c   : > { %6076 = vset.pattern.permute.xlu2 %v6800_v6  ;;  %v7393_v21 = vperm.slane %v1918_v17, %v7186_v22  ;;  %v1942_v19 = vsel %vm1645_vm3, %v1941_v1, %v7190_v53  ;;  %v1975_v40 = vrot.slane %v7258_v51, 4  ;;  %v2341_v31 = vrot.slane %v7140_v20, 4 }
 0x14d   : > { %12603 = vst [vmem:[#allocation53_spill] sm:$0xff] %v7387_v58  ;;  %v2118_v57 = vsel %vm1645_vm3, %v2117_v30, %v7031_v27  ;;  %v7419_v51 = vperm.slane %v1942_v19, %v7186_v22  ;;  %v2165_v1 = vrot.slane %v7387_v58, 4  ;;  %v2353_v30 = vrot.slane %v7251_v46, 4 }
 0x14e   : > { %v7341_v56 = vpop.f32.mrf.mxu2  ;;  %12605 = vst [vmem:[#allocation55_spill] sm:$0xff] %v7393_v21  ;;  %v1967_v20 = vrot.slane %v7393_v21, 4  ;;  %v12627_v21 = vld [vmem:[#allocation42_spill] sm:$0xff] }
 0x14f   : > { %12601 = vst [vmem:[#allocation51_spill] sm:$0xff] %v7341_v56  ;;  %v7348_v8 = vpop.f32.mrf.mxu3  ;;  %v7355_v61 = vpop.f32.mrf.mxu0  ;;  %v7374_v56 = vperm.slane %v1694_v13, %v7186_v22  ;;  %v7390_v13 = vadd.f32 %v7369_v10, %v2553_v44  ;;  %v2354_v46 = vsel %vm1645_vm3, %v2353_v30, %v7076_v15  ;;  %v7468_v30 = vperm.slane %v6951_v62, %v6922_v37 }
 0x150   : > { %12608 = vst [vmem:[#allocation58_spill] sm:$0xff] %v7419_v51 }
 0x151   : > { %12604 = vst [vmem:[#allocation54_spill] sm:$0xff] %v7390_v13  ;;  %v1742_v33 = vsel %vm1645_vm3, %v1741_v35, %v7374_v56  ;;  %v7411_v35 = vsel %vm1645_vm3, %v7266_v43, %v1975_v40  ;;  %v2710_v53 = vsel %vm2673_vm6, %v7390_v13, -inf  ;;  %v2142_v43 = vsel %vm1645_vm3, %v2141_v7, %v7383_v12 }
 0x152   : > { %v7363_v48 = vpop.f32.mrf.mxu1  ;;  %v2541_v27 = vadd.f32 %v1742_v33, %v6824_v38  ;;  %v2342_v38 = vsel %vm1645_vm3, %v2341_v31, %v7044_v45  ;;  %v7439_v19 = vperm.slane %v2142_v43, %v7186_v22  ;;  %v1759_v40 = vrot.slane %v7275_v54, 4  ;;  %12614 = vst [vmem:[#allocation64_spill] sm:$0xff] %v7468_v30 }
 0x153   : > { %4852 = vperm.xlu1 %6077, %v7009_v63  }
 0x154   : > { %4846 = vperm.xlu2 %6076, %v7009_v63   ;;  %v7434_v33 = vadd.f32 %v7369_v10, %v2541_v27  ;;  %v7454_v27 = vperm.slane %v6850_v59, 6  ;;  %v2191_v15 = vrot.slane %v7439_v19, 4 }
 0x156   : > { %12609 = vst [vmem:[#allocation59_spill] sm:$0xff] %v7434_v33 }
 0x157   : > { %v1120_v34 = vpop.f32.mrf.mxu2  ;;  %v7407_v17 = vpop.f32.mrf.mxu0  ;;  %12612 = vst [vmem:[#allocation62_spill] sm:$0xff] %v7454_v27 }
 0x158   : > { %v7403_v44 = vadd.f32 %v2422_v3, %v1120_v34  ;;  %v7405_v11 = vpop.f32.mrf.mxu3  ;;  %12607 = vst [vmem:[#allocation57_spill] sm:$0xff] %v7407_v17  ;;  %v7423_v3 = vperm.slane %v2118_v57, %v6922_v37  ;;  %v1968_v57 = vsel %vm1645_vm3, %v7419_v51, %v1967_v20  ;;  %v7445_v34 = vperm.slane %v2342_v38, %v6922_v37 }
 0x159   : > { %v2547_v20 = vadd.f32 %v1968_v57, %v6941_v52  ;;  %v2674_v38 = vsel %vm2673_vm6, %v7434_v33, -inf  ;;  %v1707_v52 = vrot.slane %v7163_v41, 4 }
 0x15a   : > { %12606 = vst [vmem:[#allocation56_spill] sm:$0xff] %v7403_v44  ;;  %v7413_v47 = vpop.f32.mrf.mxu1  ;;  %v2166_v7 = vsel %vm1645_vm3, %v2165_v1, %v7423_v3  ;;  %v2391_v57 = vrot.slane %v7445_v34, 4 }
 0x15b   : > { %6080 = vset.pattern.permute.xlu1 %v6800_v6  ;;  %12610 = vst [vmem:[#allocation60_spill] sm:$0xff] %v7445_v34 }
 0x15c   : > { %6079 = vset.pattern.permute.xlu2 %v6870_v5 }
 0x15d   : > { %2711 = vmax.xlane.f32.xlu0 %v2710_v53 }
 0x15f   : > { %v7447_v45 = vpop.f32.mrf.mxu2  ;;  %v1045_v53 = vpop.f32.mrf.mxu0 }
 0x160   : > { %12611 = vst [vmem:[#allocation61_spill] sm:$0xff] %v7447_v45  ;;  %v7451_v31 = vpop.f32.mrf.mxu3  ;;  %v7458_v43 = vadd.f32 %v7312_v25, %v1045_v53  ;;  %v7463_v45 = vperm.slane %v2166_v7, %v7186_v22  ;;  %v2155_v25 = vrot.slane %v7099_v29, 4  ;;  %v7476_v7 = vperm.slane %v2354_v46, %v6922_v37 }
 0x161   : > { %v1983_v53 = vrot.slane %v7301_v55, 4  ;;  %v2367_v29 = vrot.slane %v7468_v30, 4  ;;  %v7492_v46 = vperm.slane %v7016_v14, %v6922_v37 }
 0x162   : > { %12613 = vst [vmem:[#allocation63_spill] sm:$0xff] %v7458_v43  ;;  %v1534_v1 = vpop.f32.mrf.mxu1  ;;  %v2192_v41 = vsel %vm1645_vm3, %v7463_v45, %v2191_v15 }
 0x163   : > { %v1757_v17 = vrot.slane %v1534_v1, 4  ;;  %v1760_v13 = vsel %vm1645_vm3, %v1534_v1, %v1759_v40  ;;  %4871 = vperm.xlu1 %6080, %v7454_v27   ;;  %12615 = vst [vmem:[#allocation65_spill] sm:$0xff] %v7476_v7  ;;  %v7484_v40 = vadd.f32 %v7369_v10, %v2547_v20  ;;  %v1708_v20 = vsel %vm1645_vm3, %v7138_v2, %v1707_v52 }
 0x164   : > { %4864 = vperm.xlu2 %6079, %v7009_v63   ;;  %12617 = vst [vmem:[#allocation67_spill] sm:$0xff] %v7492_v46  ;;  %v2207_v63 = vrot.slane %v7319_v0, 4  ;;  %v7501_v1 = vperm.slane %v7174_v32, %v7186_v22  ;;  %v2577_v43 = vadd.f32 %v2192_v41, %v6907_v26  ;;  %v7514_v2 = vperm.slane %v1708_v20, %v7186_v22  ;;  %v12622_v20 = vld [vmem:[#allocation35_spill] sm:$0xff] }
 0x165   : > { %v7481_v62 = vsel %vm1645_vm3, %v1757_v17, %v7275_v54  ;;  %2675 = vmax.xlane.f32.xlu0 %v2674_v38  ;;  %12616 = vst [vmem:[#allocation66_spill] sm:$0xff] %v7484_v40  ;;  %v2392_v54 = vsel %vm1645_vm3, %v7476_v7, %v2391_v57  ;;  %v2156_v38 = vsel %vm1645_vm3, %v7080_v18, %v2155_v25  ;;  %v2692_v57 = vsel %vm2673_vm6, %v7484_v40, -inf  ;;  %v12623_v40 = vld [vmem:[#allocation41_spill] sm:$0xff] }
 0x166   : > { %v1753_v18 = vrot.slane %v7501_v1, 4  ;;  %v7534_v41 = vperm.slane %v2156_v38, %v7186_v22  ;;  %v2368_v38 = vsel %vm1645_vm3, %v7492_v46, %v2367_v29 }
 0x167   : > { %v1125_v17 = vpop.f32.mrf.mxu2  ;;  %v7508_v33 = vpop.f32.mrf.mxu0 }
 0x168   : > { %v7506_v15 = vadd.f32 %v7326_v50, %v1125_v17  ;;  %v1614_v14 = vpop.f32.mrf.mxu3  ;;  %v7520_v50 = vperm.slane %v7245_v16, %v7186_v22 }
 0x169   : > { %v1981_v52 = vrot.slane %v1614_v14, 4  ;;  %v1984_v32 = vsel %vm1645_vm3, %v1614_v14, %v1983_v53  ;;  %v7531_v53 = vsel %vm1645_vm3, %v1753_v18, %v7514_v2  ;;  %v1931_v14 = vrot.slane %v12622_v20, 4 }
 0x16a   : > { %12618 = vst [vmem:[#allocation68_spill] sm:$0xff] %v7506_v15  ;;  %v1536_v44 = vpop.f32.mrf.mxu1  ;;  %v12619_v15 = vld [vmem:[#allocation4_spill] sm:$0xff]  ;;  %v2201_v16 = vrot.slane %v7520_v50, 4 }
 0x16b   : > { %v2205_v25 = vrot.slane %v1536_v44, 4  ;;  %v2208_v17 = vsel %vm1645_vm3, %v1536_v44, %v2207_v63  ;;  %6082 = vset.pattern.permute.xlu1 %v12619_v15  ;;  %v7526_v26 = vsel %vm1645_vm3, %v1981_v52, %v7301_v55  ;;  %v7540_v63 = vadd.f32 %v7369_v10, %v2577_v43 }
 0x16c   : > { %6081 = vset.pattern.permute.xlu2 %v6809_v9  ;;  %v7543_v55 = vperm.slane %v2392_v54, %v7186_v22  ;;  %v2431_v52 = vrot.slane %v7348_v8, 4  ;;  %v7551_v18 = vsel %vm1645_vm3, %v2201_v16, %v7534_v41  ;;  %v1768_v43 = vperm.slane %v1760_v13, %v6922_v37 }
 0x16d   : > { %v2206_v44 = vsel %vm1645_vm3, %v2205_v25, %v7319_v0  ;;  %2693 = vmax.xlane.f32.xlu0 %v2692_v57  ;;  %12620 = vst [vmem:[#allocation69_spill] sm:$0xff] %v7540_v63  ;;  %v1955_v0 = vrot.slane %v12623_v40, 4  ;;  %v1771_v57 = vrot.slane %v7363_v48, 4  ;;  %v2589_v54 = vadd.f32 %v7287_v60, %v7297_v24  ;;  %v12626_v24 = vld [vmem:[#allocation34_spill] sm:$0xff] }
 0x16e   : > { %12621 = vst [vmem:[#allocation70_spill] sm:$0xff] %v7543_v55  ;;  %v1819_v20 = vrot.slane %v1768_v43, 4  ;;  %v2782_v29 = vsel %vm2673_vm6, %v7540_v63, -inf  ;;  %v7563_v16 = vperm.slane %v2368_v38, %v7186_v22  ;;  %v2417_v40 = vrot.slane %v7543_v55, 4 }
 0x16f   : > { %v7558_v25 = vpop.f32.mrf.mxu2  ;;  %v1050_v34 = vpop.f32.mrf.mxu0  ;;  %v1956_v51 = vsel %vm1645_vm3, %v12627_v21, %v1955_v0  ;;  %v7586_v21 = vadd.f32 %v7369_v10, %v2589_v54  ;;  %v2219_v0 = vrot.slane %v7413_v47, 4 }
 0x170   : > { %12624 = vst [vmem:[#allocation35_spill] sm:$0xff] %v7558_v25  ;;  %v1616_v30 = vpop.f32.mrf.mxu3  ;;  %v7568_v13 = vadd.f32 %v7411_v35, %v1050_v34  ;;  %v1932_v25 = vsel %vm1645_vm3, %v12626_v24, %v1931_v14  ;;  %v1995_v35 = vrot.slane %v7405_v11, 4  ;;  %v2418_v14 = vsel %vm1645_vm3, %v2417_v40, %v7563_v16 }
 0x171   : > { %v2429_v46 = vrot.slane %v1616_v30, 4  ;;  %v2432_v7 = vsel %vm1645_vm3, %v1616_v30, %v2431_v52  ;;  %12628 = vst [vmem:[#allocation34_spill] sm:$0xff] %v7586_v21  ;;  %v2216_v52 = vperm.slane %v2208_v17, %v6922_v37  ;;  %v7605_v54 = vperm.slane %v1932_v25, %v7186_v22 }
 0x172   : > { %12625 = vst [vmem:[#allocation41_spill] sm:$0xff] %v7568_v13  ;;  %v1539_v60 = vpop.f32.mrf.mxu1 }
 0x173   : > { %v1769_v58 = vrot.slane %v1539_v60, 4  ;;  %v1772_v63 = vsel %vm1645_vm3, %v1539_v60, %v1771_v57  ;;  %4883 = vperm.xlu1 %6082, %v7454_v27   ;;  %v2430_v38 = vsel %vm1645_vm3, %v2429_v46, %v7348_v8  ;;  %v12630_v60 = vld [vmem:[#allocation28_spill] sm:$0xff]  ;;  %v2267_v24 = vrot.slane %v2216_v52, 4 }
 0x174   : > { %v1780_v30 = vperm.slane %v1772_v63, %v6922_v37  ;;  %4877 = vperm.xlu2 %6081, %v7454_v27   ;;  %v7595_v63 = vperm.slane %v1956_v51, %v7186_v22 }
 0x175   : > { %v7583_v34 = vsel %vm1645_vm3, %v1769_v58, %v7363_v48  ;;  %2783 = vmax.xlane.f32.xlu0 %v2782_v29  ;;  %v1992_v48 = vperm.slane %v1984_v32, %v6922_v37  ;;  %v2818_v32 = vsel %vm2673_vm6, %v7586_v21, -inf }
 0x176   : > { %v1817_v8 = vrot.slane %v1780_v30, 4  ;;  %v7592_v46 = vsel %vm1645_vm3, %v1780_v30, %v1819_v20  ;;  %v1977_v17 = vrot.slane %v7595_v63, 4  ;;  %v7609_v20 = vperm.slane %v2206_v44, %v6922_v37 }
 0x177   : > { %v7602_v57 = vpop.f32.mrf.mxu2  ;;  %v2043_v29 = vrot.slane %v1992_v48, 4  ;;  %v7611_v40 = vpop.f32.mrf.mxu0 }
 0x178   : > { %v7600_v58 = vsel %vm1645_vm3, %v1817_v8, %v1768_v43  ;;  %v1619_v51 = vpop.f32.mrf.mxu3  ;;  %12629 = vst [vmem:[#allocation42_spill] sm:$0xff] %v7611_v40  ;;  %v2583_v43 = vadd.f32 %v2418_v14, %v12630_v60  ;;  %v7619_v27 = vsel %vm1645_vm3, %v1977_v17, %v7605_v54  ;;  %v2255_v21 = vrot.slane %v7609_v20, 4 }
 0x179   : > { %v1993_v30 = vrot.slane %v1619_v51, 4  ;;  %v1996_v8 = vsel %vm1645_vm3, %v1619_v51, %v1995_v35  ;;  %v2443_v17 = vrot.slane %v7451_v31, 4 }
 0x17a   : > { %v1541_v25 = vpop.f32.mrf.mxu1  ;;  %v2004_v44 = vperm.slane %v1996_v8, %v6922_v37 }
 0x17b   : > { %v2217_v13 = vrot.slane %v1541_v25, 4  ;;  %v2220_v55 = vsel %vm1645_vm3, %v1541_v25, %v2219_v0  ;;  %6084 = vset.pattern.permute.xlu1 %v6809_v9  ;;  %v7627_v14 = vsel %vm1645_vm3, %v1993_v30, %v7405_v11  ;;  %v2440_v30 = vperm.slane %v2432_v7, %v6922_v37 }
 0x17c   : > { %v2228_v35 = vperm.slane %v2220_v55, %v6922_v37  ;;  %6083 = vset.pattern.permute.xlu2 %v6800_v6  ;;  %v2041_v51 = vrot.slane %v2004_v44, 4  ;;  %v7633_v60 = vsel %vm1645_vm3, %v2004_v44, %v2043_v29  ;;  %v7644_v55 = vadd.f32 %v7369_v10, %v2583_v43 }
 0x17d   : > { %12631 = vst [vmem:[#allocation28_spill] sm:$0xff] %v7633_v60  ;;  %v2218_v0 = vsel %vm1645_vm3, %v2217_v13, %v7413_v47  ;;  %2819 = vmax.xlane.f32.xlu0 %v2818_v32  ;;  %v2559_v32 = vadd.f32 %v7291_v23, %v7355_v61  ;;  %v7662_v43 = vperm.slane %v2430_v38, %v6922_v37  ;;  %v2423_v61 = vrot.slane %v7322_v42, 4 }
 0x17e   : > { %v7638_v8 = vperm.slane %v2218_v0, %v6922_v37  ;;  %v2265_v25 = vrot.slane %v2228_v35, 4  ;;  %v7641_v11 = vsel %vm1645_vm3, %v2228_v35, %v2267_v24  ;;  %12633 = vst [vmem:[#allocation72_spill] sm:$0xff] %v7644_v55  ;;  %v7648_v40 = vsel %vm1645_vm3, %v2041_v51, %v1992_v48 }
 0x17f   : > { %12632 = vst [vmem:[#allocation71_spill] sm:$0xff] %v7641_v11  ;;  %v7657_v13 = vpop.f32.mrf.mxu2  ;;  %v2491_v24 = vrot.slane %v2440_v30, 4  ;;  %v1055_v44 = vpop.f32.mrf.mxu0  ;;  %v4891_v48 = vperm.slane %v6850_v59, 7  ;;  %v1755_v0 = vrot.slane %v7514_v2, 4  ;;  %v2479_v23 = vrot.slane %v7662_v43, 4 }
 0x180   : > { %12634 = vst [vmem:[#allocation73_spill] sm:$0xff] %v7648_v40  ;;  %v7652_v29 = vsel %vm1645_vm3, %v7638_v8, %v2255_v21  ;;  %v7655_v47 = vsel %vm1645_vm3, %v2265_v25, %v2216_v52  ;;  %v1621_v7 = vpop.f32.mrf.mxu3  ;;  %v2800_v52 = vsel %vm2673_vm6, %v7644_v55, -inf  ;;  %v7685_v42 = vadd.f32 %v7369_v10, %v2559_v32 }
 0x181   : > { %12635 = vst [vmem:[#allocation74_spill] sm:$0xff] %v7657_v13  ;;  %v2441_v35 = vrot.slane %v1621_v7, 4  ;;  %v2444_v21 = vsel %vm1645_vm3, %v1621_v7, %v2443_v17  ;;  %v1756_v17 = vsel %vm1645_vm3, %v7501_v1, %v1755_v0  ;;  %v2203_v0 = vrot.slane %v7534_v41, 4 }
 0x182   : > { %v7666_v51 = vpop.f32.mrf.mxu1  ;;  %v2452_v38 = vperm.slane %v2444_v21, %v6922_v37  ;;  %12636 = vst [vmem:[#allocation75_spill] sm:$0xff] %v7685_v42  ;;  %v2424_v21 = vsel %vm1645_vm3, %v7304_v4, %v2423_v61 }
 0x183   : > { %4902 = vperm.xlu1 %6084, %v4891_v48   ;;  %v2442_v59 = vsel %vm1645_vm3, %v2441_v35, %v7451_v31  ;;  %v2595_v4 = vadd.f32 %v2424_v21, %v7602_v57 }
 0x184   : > { %4896 = vperm.xlu2 %6083, %v4891_v48   ;;  %v7679_v25 = vperm.slane %v2442_v59, %v6922_v37  ;;  %v2489_v7 = vrot.slane %v2452_v38, 4  ;;  %v7682_v2 = vsel %vm1645_vm3, %v2452_v38, %v2491_v24  ;;  %v2379_v38 = vrot.slane %v7270_v36, 4 }
 0x185   : > { %2801 = vmax.xlane.f32.xlu0 %v2800_v52  ;;  %v7715_v41 = vadd.f32 %v7369_v10, %v2595_v4  ;;  %v2189_v59 = vrot.slane %v7463_v45, 4 }
 0x186   : > { %v7691_v31 = vsel %vm1645_vm3, %v7679_v25, %v2479_v23  ;;  %v7694_v1 = vsel %vm1645_vm3, %v2489_v7, %v2440_v30  ;;  %v2728_v30 = vsel %vm2673_vm6, %v7685_v42, -inf  ;;  %v2204_v23 = vsel %vm1645_vm3, %v7520_v50, %v2203_v0 }
 0x187   : > { %v1135_v35 = vpop.f32.mrf.mxu2  ;;  %v7702_v32 = vpop.f32.mrf.mxu0  ;;  %12638 = vst [vmem:[#allocation77_spill] sm:$0xff] %v7715_v41  ;;  %v2380_v36 = vsel %vm1645_vm3, %v7241_v49, %v2379_v38  ;;  %v1979_v0 = vrot.slane %v7605_v54, 4  ;;  %v7734_v4 = vsel %vm1645_vm3, %v2189_v59, %v7439_v19  ;;  %v2565_v49 = vadd.f32 %v7531_v53, %v1055_v44 }
 0x188   : > { %v7698_v24 = vadd.f32 %v7551_v18, %v1135_v35  ;;  %v7700_v52 = vpop.f32.mrf.mxu3  ;;  %12637 = vst [vmem:[#allocation76_spill] sm:$0xff] %v7702_v32  ;;  %v12639_v18 = vld [vmem:[#allocation46_spill] sm:$0xff]  ;;  %v7729_v35 = vperm.slane %v2380_v36, %v7186_v22  ;;  %v1776_v19 = vperm.slane %v7583_v34, %v6922_v37  ;;  %v1764_v36 = vperm.slane %v7481_v62, %v6922_v37 }
 0x189   : > { %v7721_v57 = vperm.slane %v12639_v18, %v7186_v22  ;;  %v1980_v54 = vsel %vm1645_vm3, %v7595_v63, %v1979_v0  ;;  %v7752_v53 = vadd.f32 %v7369_v10, %v2565_v49 }
 0x18a   : > { %v7706_v61 = vpop.f32.mrf.mxu1  ;;  %v1805_v59 = vrot.slane %v1776_v19, 4  ;;  %v1807_v0 = vrot.slane %v1764_v36, 4 }
 0x18b   : > { %6086 = vset.pattern.permute.xlu1 %v6870_v5  ;;  %12640 = vst [vmem:[#allocation46_spill] sm:$0xff] %v7721_v57  ;;  %v2425_v18 = vrot.slane %v7721_v57, 4  ;;  %v2746_v34 = vsel %vm2673_vm6, %v7752_v53, -inf  ;;  %v2231_v55 = vrot.slane %v7706_v61, 4 }
 0x18c   : > { %6085 = vset.pattern.permute.xlu2 %v12619_v15  ;;  %12642 = vst [vmem:[#allocation79_spill] sm:$0xff] %v7752_v53  ;;  %v7769_v62 = vsel %vm1645_vm3, %v1805_v59, %v1764_v36  ;;  %v12646_v53 = vld [vmem:[#allocation27_spill] sm:$0xff]  ;;  %v1783_v36 = vrot.slane %v7666_v51, 4 }
 0x18d   : > { %2729 = vmax.xlane.f32.xlu0 %v2728_v30  ;;  %v2836_v30 = vsel %vm2673_vm6, %v7715_v41, -inf }
 0x18f   : > { %v7724_v7 = vpop.f32.mrf.mxu2  ;;  %v1060_v21 = vpop.f32.mrf.mxu0 }
 0x190   : > { %12641 = vst [vmem:[#allocation78_spill] sm:$0xff] %v7724_v7  ;;  %v7726_v50 = vpop.f32.mrf.mxu3  ;;  %v7738_v38 = vadd.f32 %v7619_v27, %v1060_v21  ;;  %v2426_v27 = vsel %vm1645_vm3, %v2425_v18, %v7729_v35 }
 0x191   : > { %v2455_v40 = vrot.slane %v7726_v50, 4 }
 0x192   : > { %v7740_v45 = vpop.f32.mrf.mxu1 }
 0x193   : > { %4914 = vperm.xlu1 %6086, %v4891_v48  }
 0x194   : > { %4908 = vperm.xlu2 %6085, %v4891_v48  }
 0x195   : > { %2837 = vmax.xlane.f32.xlu0 %v2836_v30 }
 0x197   : > { %v1140_v44 = vpop.f32.mrf.mxu2  ;;  %v7760_v63 = vpop.f32.mrf.mxu0 }
 0x198   : > { %v7756_v21 = vadd.f32 %v2426_v27, %v1140_v44  ;;  %v7758_v41 = vpop.f32.mrf.mxu3  ;;  %12643 = vst [vmem:[#allocation80_spill] sm:$0xff] %v7760_v63  ;;  %v1808_v27 = vsel %vm1645_vm3, %v1776_v19, %v1807_v0 }
 0x19a   : > { %v7762_v48 = vpop.f32.mrf.mxu1 }
 0x19b   : > { %6089 = vset.pattern.permute.xlu1 %v12619_v15 }
 0x19c   : > { %6088 = vset.pattern.permute.xlu2 %v6809_v9 }
 0x19d   : > { %2747 = vmax.xlane.f32.xlu0 %v2746_v34 }
 0x19f   : > { %v7771_v49 = vpop.f32.mrf.mxu2  ;;  %v1065_v18 = vpop.f32.mrf.mxu0 }
 0x1a0   : > { %12644 = vst [vmem:[#allocation81_spill] sm:$0xff] %v7771_v49  ;;  %v7773_v30 = vpop.f32.mrf.mxu3  ;;  %v7776_v44 = vadd.f32 %v1756_v17, %v1065_v18 }
 0x1a2   : > { %12645 = vst [vmem:[#allocation82_spill] sm:$0xff] %v7776_v44  ;;  %v1554_v42 = vpop.f32.mrf.mxu1 }
 0x1a3   : > { %4933 = vperm.xlu1 %6089, %v12646_v53   ;;  %v1781_v7 = vrot.slane %v1554_v42, 4  ;;  %v1784_v18 = vsel %vm1645_vm3, %v1554_v42, %v1783_v36 }
 0x1a4   : > { %4927 = vperm.xlu2 %6088, %v12646_v53  }
 0x1a7   : > { %v1145_v34 = vpop.f32.mrf.mxu2  ;;  %v7784_v49 = vpop.f32.mrf.mxu0 }
 0x1a8   : > { %v2601_v59 = vadd.f32 %v2204_v23, %v1145_v34  ;;  %v7782_v13 = vpop.f32.mrf.mxu3  ;;  %12648 = vst [vmem:[#allocation83_spill] sm:$0xff] %v7784_v49  ;;  %v7808_v49 = vperm.slane %v7600_v58, %v7186_v22 }
 0x1a9   : > { %12647 = vst [vmem:[#allocation27_spill] sm:$0xff] %v7782_v13 }
 0x1aa   : > { %v1556_v63 = vpop.f32.mrf.mxu1  ;;  %v7789_v0 = vadd.f32 %v7369_v10, %v2601_v59  ;;  %v1792_v59 = vperm.slane %v1784_v18, %v6922_v37  ;;  %12650 = vst [vmem:[#allocation85_spill] sm:$0xff] %v7808_v49 }
 0x1ab   : > { %v2229_v19 = vrot.slane %v1556_v63, 4  ;;  %v2232_v17 = vsel %vm1645_vm3, %v1556_v63, %v2231_v55  ;;  %6091 = vset.pattern.permute.xlu1 %v6800_v6  ;;  %v1782_v55 = vsel %vm1645_vm3, %v1781_v7, %v7666_v51  ;;  %v1795_v63 = vrot.slane %v7740_v45, 4 }
 0x1ac   : > { %12649 = vst [vmem:[#allocation84_spill] sm:$0xff] %v7789_v0  ;;  %6090 = vset.pattern.permute.xlu2 %v6870_v5  ;;  %v2854_v34 = vsel %vm2673_vm6, %v7789_v0, -inf  ;;  %v7803_v11 = vperm.slane %v1782_v55, %v6922_v37  ;;  %v1843_v60 = vrot.slane %v1792_v59, 4 }
 0x1ad   : > { %v2230_v23 = vsel %vm1645_vm3, %v2229_v19, %v7706_v61  ;;  %2855 = vmax.xlane.f32.xlu0 %v2854_v34  ;;  %v12651_v34 = vld [vmem:[#allocation31_spill] sm:$0xff] }
 0x1ae   : > { %v1831_v18 = vrot.slane %v7803_v11, 4 }
 0x1af   : > { %v1070_v36 = vpop.f32.mrf.mxu0 }
 0x1b0   : > { %v1636_v42 = vpop.f32.mrf.mxu3  ;;  %v2571_v0 = vadd.f32 %v1980_v54, %v1070_v36 }
 0x1b1   : > { %v2453_v61 = vrot.slane %v1636_v42, 4  ;;  %v2456_v19 = vsel %vm1645_vm3, %v1636_v42, %v2455_v40  ;;  %v2243_v42 = vrot.slane %v7762_v48, 4 }
 0x1b2   : > { %v1559_v32 = vpop.f32.mrf.mxu1  ;;  %v7818_v40 = vadd.f32 %v7369_v10, %v2571_v0 }
 0x1b3   : > { %v1793_v51 = vrot.slane %v1559_v32, 4  ;;  %v1796_v7 = vsel %vm1645_vm3, %v1559_v32, %v1795_v63  ;;  %4946 = vperm.xlu1 %6091, %v12651_v34   ;;  %v2454_v55 = vsel %vm1645_vm3, %v2453_v61, %v7726_v50 }
 0x1b4   : > { %v1804_v57 = vperm.slane %v1796_v7, %v6922_v37  ;;  %4939 = vperm.xlu2 %6090, %v12646_v53   ;;  %12652 = vst [vmem:[#allocation31_spill] sm:$0xff] %v7818_v40  ;;  %v2764_v50 = vsel %vm2673_vm6, %v7818_v40, -inf  ;;  %v1863_v53 = vrot.slane %v7808_v49, 4 }
 0x1b5   : > { %v1794_v58 = vsel %vm1645_vm3, %v1793_v51, %v7740_v45  ;;  %2765 = vmax.xlane.f32.xlu0 %v2764_v50  ;;  %v2240_v45 = vperm.slane %v2232_v17, %v6922_v37  ;;  %v7845_v51 = vperm.slane %v2230_v23, %v6922_v37 }
 0x1b6   : > { %v7823_v54 = vperm.slane %v1794_v58, %v6922_v37  ;;  %v1841_v32 = vrot.slane %v1804_v57, 4  ;;  %v7826_v63 = vsel %vm1645_vm3, %v1804_v57, %v1843_v60  ;;  %v7848_v58 = vperm.slane %v1808_v27, %v7186_v22 }
 0x1b7   : > { %v2467_v27 = vrot.slane %v7773_v30, 4 }
 0x1b8   : > { %v1832_v0 = vsel %vm1645_vm3, %v7823_v54, %v1831_v18  ;;  %v1842_v36 = vsel %vm1645_vm3, %v1841_v32, %v1792_v59  ;;  %v7836_v61 = vpop.f32.mrf.mxu3  ;;  %v2279_v32 = vrot.slane %v7845_v51, 4 }
 0x1b9   : > { %12653 = vst [vmem:[#allocation86_spill] sm:$0xff] %v7836_v61  ;;  %v7839_v60 = vperm.slane %v1842_v36, %v7186_v22  ;;  %v7842_v57 = vperm.slane %v1832_v0, %v7186_v22  ;;  %v2291_v36 = vrot.slane %v2240_v45, 4 }
 0x1ba   : > { %v1561_v7 = vpop.f32.mrf.mxu1 }
 0x1bb   : > { %12654 = vst [vmem:[#allocation87_spill] sm:$0xff] %v7839_v60  ;;  %v2241_v18 = vrot.slane %v1561_v7, 4  ;;  %v2244_v59 = vsel %vm1645_vm3, %v1561_v7, %v2243_v42  ;;  %6094 = vset.pattern.permute.xlu1 %v6870_v5  ;;  %v1864_v17 = vsel %vm1645_vm3, %v7839_v60, %v1863_v53  ;;  %v1857_v0 = vrot.slane %v7842_v57, 4 }
 0x1bc   : > { %v2252_v50 = vperm.slane %v2244_v59, %v6922_v37  ;;  %6093 = vset.pattern.permute.xlu2 %v12619_v15  ;;  %v2562_v23 = vadd.f32 %v1864_v17, %v7508_v33  ;;  %v2017_v42 = vrot.slane %v7836_v61, 4  ;;  %v2005_v33 = vrot.slane %v7782_v13, 4 }
 0x1bd   : > { %v2242_v7 = vsel %vm1645_vm3, %v2241_v18, %v7762_v48  ;;  %v1858_v59 = vsel %vm1645_vm3, %v1857_v0, %v7848_v58  ;;  %v2460_v17 = vperm.slane %v2454_v55, %v6922_v37 }
 0x1be   : > { %v2248_v53 = vperm.slane %v2242_v7, %v6922_v37  ;;  %v2289_v40 = vrot.slane %v2252_v50, 4  ;;  %v7865_v49 = vadd.f32 %v7369_v10, %v2562_v23  ;;  %v2018_v48 = vsel %vm1645_vm3, %v2017_v42, %v7758_v41  ;;  %v12655_v7 = vld [vmem:[#allocation23_spill] sm:$0xff] }
 0x1bf   : > { %v2550_v44 = vadd.f32 %v1858_v59, %v12655_v7  ;;  %v7883_v0 = vsel %vm1645_vm3, %v2252_v50, %v2291_v36  ;;  %v7898_v50 = vperm.slane %v7627_v14, %v6922_v37  ;;  %v7901_v36 = vperm.slane %v2018_v48, %v6922_v37 }
 0x1c0   : > { %v7872_v60 = vsel %vm1645_vm3, %v2248_v53, %v2279_v32  ;;  %v7875_v61 = vsel %vm1645_vm3, %v2289_v40, %v2240_v45  ;;  %v1641_v18 = vpop.f32.mrf.mxu3  ;;  %v2737_v23 = vsel %vm2673_vm6, %v7865_v49, -inf  ;;  %v7887_v32 = vperm.slane %v2456_v19, %v6922_v37 }
 0x1c1   : > { %v2465_v13 = vrot.slane %v1641_v18, 4  ;;  %v2468_v55 = vsel %vm1645_vm3, %v1641_v18, %v2467_v27  ;;  %2738 = vmax.xlane.f32.xlu0 %v2737_v23  ;;  %v2503_v40 = vrot.slane %v2460_v17, 4  ;;  %v7894_v42 = vadd.f32 %v7369_v10, %v2550_v44 }
 0x1c2   : > { %v7890_v45 = vperm.slane %v2468_v55, %v6922_v37  ;;  %v2006_v27 = vsel %vm1645_vm3, %v2005_v33, %v7700_v52  ;;  %v7912_v18 = vperm.slane %v7526_v26, %v6922_v37  ;;  %v1829_v14 = vrot.slane %v7823_v54, 4 }
 0x1c3   : > { %4964 = vperm.xlu1 %6094, %v12651_v34   ;;  %12656 = vst [vmem:[#allocation23_spill] sm:$0xff] %v7894_v42  ;;  %v2466_v19 = vsel %vm1645_vm3, %v2465_v13, %v7773_v30  ;;  %v2701_v30 = vsel %vm2673_vm6, %v7894_v42, -inf  ;;  %v2253_v33 = vrot.slane %v7638_v8, 4  ;;  %v2012_v26 = vperm.slane %v2006_v27, %v6922_v37 }
 0x1c4   : > { %4958 = vperm.xlu2 %6093, %v12651_v34   ;;  %v2472_v59 = vperm.slane %v2466_v19, %v6922_v37  ;;  %v2513_v44 = vrot.slane %v7890_v45, 4  ;;  %v2029_v34 = vrot.slane %v7898_v50, 4  ;;  %v2053_v7 = vrot.slane %v7901_v36, 4 }
 0x1c5   : > { %v2477_v55 = vrot.slane %v7679_v25, 4  ;;  %v1812_v19 = vperm.slane %v7769_v62, %v7186_v22 }
 0x1c6   : > { %v2501_v48 = vrot.slane %v2472_v59, 4  ;;  %v7916_v23 = vsel %vm1645_vm3, %v2472_v59, %v2503_v40  ;;  %v7920_v13 = vsel %vm1645_vm3, %v2513_v44, %v7887_v32  ;;  %v2277_v40 = vrot.slane %v2248_v53, 4 }
 0x1c7   : > { %v1830_v59 = vsel %vm1645_vm3, %v1829_v14, %v7803_v11  ;;  %v1855_v27 = vrot.slane %v1812_v19, 4  ;;  %v2054_v25 = vsel %vm1645_vm3, %v2053_v7, %v2012_v26  ;;  %v2254_v53 = vsel %vm1645_vm3, %v2253_v33, %v7609_v20 }
 0x1c8   : > { %v2502_v54 = vsel %vm1645_vm3, %v2501_v48, %v2460_v17  ;;  %v1836_v8 = vperm.slane %v1830_v59, %v7186_v22  ;;  %v2030_v17 = vsel %vm1645_vm3, %v2029_v34, %v7912_v18  ;;  %v2060_v44 = vperm.slane %v2054_v25, %v7186_v22 }
 0x1c9   : > { %2702 = vmax.xlane.f32.xlu0 %v2701_v30  ;;  %v2036_v62 = vperm.slane %v2030_v17, %v7186_v22  ;;  %v2260_v48 = vperm.slane %v2254_v53, %v7186_v22  ;;  %v2278_v30 = vsel %vm1645_vm3, %v2277_v40, %v7845_v51  ;;  %v2478_v34 = vsel %vm1645_vm3, %v2477_v55, %v7662_v43  ;;  %v12657_v40 = vld [vmem:[#allocation38_spill] sm:$0xff] }
 0x1ca   : > { %v1853_v11 = vrot.slane %v1836_v8, 4  ;;  %v7945_v14 = vsel %vm1645_vm3, %v1836_v8, %v1855_v27  ;;  %v2077_v20 = vrot.slane %v2060_v44, 4  ;;  %v2284_v33 = vperm.slane %v2278_v30, %v7186_v22 }
 0x1cb   : > { %6096 = vset.pattern.permute.xlu1 %v6809_v9  ;;  %v2079_v7 = vrot.slane %v2036_v62, 4  ;;  %v2303_v17 = vrot.slane %v2260_v48, 4  ;;  %v2508_v43 = vperm.slane %v2502_v54, %v7186_v22  ;;  %v2288_v54 = vperm.slane %v7872_v60, %v7186_v22 }
 0x1cc   : > { %6095 = vset.pattern.permute.xlu2 %v6800_v6  ;;  %v7953_v59 = vsel %vm1645_vm3, %v1853_v11, %v1812_v19  ;;  %v7960_v8 = vsel %vm1645_vm3, %v2077_v20, %v2036_v62  ;;  %v2301_v51 = vrot.slane %v2284_v33, 4  ;;  %v2484_v19 = vperm.slane %v2478_v34, %v7186_v22 }
 0x1cd   : > { %v7957_v25 = vsel %vm1645_vm3, %v2060_v44, %v2079_v7  ;;  %v7963_v27 = vsel %vm1645_vm3, %v2284_v33, %v2303_v17  ;;  %v2525_v53 = vrot.slane %v2508_v43, 4  ;;  %v2055_v30 = vrot.slane %v2012_v26, 4  ;;  %v12658_v7 = vld [vmem:[#allocation25_spill] sm:$0xff] }
 0x1ce   : > { %v7969_v55 = vsel %vm1645_vm3, %v2301_v51, %v2260_v48  ;;  %v2527_v44 = vrot.slane %v2484_v19, 4  ;;  %v2264_v48 = vperm.slane %v7652_v29, %v7186_v22  ;;  %v2305_v34 = vrot.slane %v2288_v54, 4 }
 0x1cf   : > { %v7973_v62 = vsel %vm1645_vm3, %v2525_v53, %v2484_v19  ;;  %v7985_v20 = vperm.slane %v12658_v7, 3  ;;  %v2031_v17 = vrot.slane %v7912_v18, 4  ;;  %v2056_v51 = vsel %vm1645_vm3, %v7901_v36, %v2055_v30 }
 0x1d0   : > { %v7976_v11 = vsel %vm1645_vm3, %v2508_v43, %v2527_v44  ;;  %v7988_v33 = vsel %vm1645_vm3, %v2305_v34, %v2264_v48  ;;  %v2064_v60 = vperm.slane %v2056_v51, %v7186_v22  ;;  %v1859_v26 = vrot.slane %v7848_v58, 4  ;;  %v8022_v44 = vpop.permute.xlu1 %4727 }
 0x1d1   : > { %12659 = vst [vmem:[#allocation38_spill] sm:$0xff] %v7985_v20  ;;  %v2032_v29 = vsel %vm1645_vm3, %v7898_v50, %v2031_v17  ;;  %v2488_v58 = vperm.slane %v7691_v31, %v7186_v22  ;;  %v8025_v30 = vperm.slane %v12658_v7, 4 }
 0x1d2   : > { %v2040_v43 = vperm.slane %v2032_v29, %v7186_v22  ;;  %v2081_v19 = vrot.slane %v2064_v60, 4  ;;  %v8002_v18 = vsel %vm1645_vm3, %v7842_v57, %v1859_v26  ;;  %v8020_v57 = vpop.permute.xlu2 %4721  ;;  %12661 = vst [vmem:[#allocation89_spill] sm:$0xff] %v8022_v44  ;;  %v12673_v44 = vld [vmem:[#allocation14_spill] sm:$0xff] }
 0x1d3   : > { %4977 = vperm.xlu1 %6096, %v12657_v40   ;;  %12660 = vst [vmem:[#allocation88_spill] sm:$0xff] %v8020_v57 }
 0x1d4   : > { %4971 = vperm.xlu2 %6095, %v12657_v40   ;;  %v8005_v36 = vsel %vm1645_vm3, %v2081_v19, %v2040_v43  ;;  %12662 = vst [vmem:[#allocation90_spill] sm:$0xff] %v8025_v30  ;;  %v2083_v51 = vrot.slane %v2040_v43, 4  ;;  %v1828_v19 = vperm.slane %v7592_v46, %v7186_v22  ;;  %v1919_v46 = vrot.slane %v7345_v39, 4 }
 0x1d6   : > { %v8037_v29 = vsel %vm1645_vm3, %v2064_v60, %v2083_v51  ;;  %v1867_v60 = vrot.slane %v1828_v19, 4 }
 0x1d8   : > { %v8034_v17 = vpop.permute.xlu1 %4746 }
 0x1d9   : > { %12664 = vst [vmem:[#allocation92_spill] sm:$0xff] %v8034_v17 }
 0x1da   : > { %v8032_v34 = vpop.permute.xlu2 %4739 }
 0x1db   : > { %6099 = vset.pattern.permute.xlu1 %v6800_v6  ;;  %12663 = vst [vmem:[#allocation91_spill] sm:$0xff] %v8032_v34  ;;  %v12674_v34 = vld [vmem:[#allocation50_spill] sm:$0xff] }
 0x1dc   : > { %6098 = vset.pattern.permute.xlu2 %v6870_v5 }
 0x1e0   : > { %v8045_v26 = vpop.permute.xlu1 %4758 }
 0x1e1   : > { %12666 = vst [vmem:[#allocation94_spill] sm:$0xff] %v8045_v26  ;;  %v1743_v26 = vrot.slane %v7374_v56, 4  ;;  %v12672_v56 = vld [vmem:[#allocation49_spill] sm:$0xff] }
 0x1e2   : > { %v1920_v39 = vsel %vm1645_vm3, %v12672_v56, %v1919_v46 }
 0x1e3   : > { %4996 = vperm.xlu1 %6099, %v7985_v20   ;;  %v1928_v57 = vperm.slane %v1920_v39, %v7186_v22 }
 0x1e4   : > { %4989 = vperm.xlu2 %6098, %v12657_v40   ;;  %v2512_v40 = vperm.slane %v7916_v23, %v7186_v22  ;;  %v2307_v23 = vrot.slane %v2264_v48, 4  ;;  %v8043_v48 = vpop.permute.xlu2 %4752 }
 0x1e5   : > { %12665 = vst [vmem:[#allocation93_spill] sm:$0xff] %v8043_v48 }
 0x1e6   : > { %v2529_v50 = vrot.slane %v2512_v40, 4  ;;  %v8028_v31 = vsel %vm1645_vm3, %v2288_v54, %v2307_v23  ;;  %v1852_v54 = vperm.slane %v7826_v63, %v7186_v22 }
 0x1e8   : > { %v8014_v53 = vsel %vm1645_vm3, %v2529_v50, %v2488_v58  ;;  %v2531_v50 = vrot.slane %v2488_v58, 4  ;;  %v1865_v23 = vrot.slane %v1852_v54, 4  ;;  %v8056_v17 = vsel %vm1645_vm3, %v1852_v54, %v1867_v60  ;;  %v8060_v48 = vpop.permute.xlu1 %4777  ;;  %v12671_v60 = vld [vmem:[#allocation43_spill] sm:$0xff] }
 0x1e9   : > { %12668 = vst [vmem:[#allocation96_spill] sm:$0xff] %v8060_v48  ;;  %v2272_v58 = vperm.slane %v7655_v47, %v7186_v22  ;;  %v1952_v48 = vperm.slane %v12671_v60, %v7186_v22 }
 0x1ea   : > { %v8050_v43 = vsel %vm1645_vm3, %v2512_v40, %v2531_v50  ;;  %v8053_v51 = vsel %vm1645_vm3, %v1865_v23, %v1828_v19  ;;  %v2296_v40 = vperm.slane %v7875_v61, %v7186_v22  ;;  %v1744_v23 = vsel %vm1645_vm3, %v7353_v28, %v1743_v26 }
 0x1eb   : > { %6101 = vset.pattern.permute.xlu1 %v12619_v15  ;;  %v2545_v61 = vadd.f32 %v1744_v23, %v12673_v44  ;;  %v1969_v28 = vrot.slane %v1952_v48, 4  ;;  %v2167_v26 = vrot.slane %v7423_v3, 4  ;;  %v2515_v3 = vrot.slane %v7887_v32, 4  ;;  %v12679_v23 = vld [vmem:[#allocation21_spill] sm:$0xff] }
 0x1ec   : > { %6100 = vset.pattern.permute.xlu2 %v6809_v9  ;;  %v8058_v63 = vpop.permute.xlu2 %4771  ;;  %v2309_v54 = vrot.slane %v2296_v40, 4 }
 0x1ed   : > { %12667 = vst [vmem:[#allocation95_spill] sm:$0xff] %v8058_v63  ;;  %v2311_v63 = vrot.slane %v2272_v58, 4  ;;  %v8093_v46 = vadd.f32 %v7369_v10, %v2545_v61 }
 0x1ee   : > { %v8079_v47 = vsel %vm1645_vm3, %v2309_v54, %v2272_v58  ;;  %v12677_v58 = vld [vmem:[#allocation45_spill] sm:$0xff]  ;;  %v2143_v54 = vrot.slane %v7383_v12, 4 }
 0x1ef   : > { %v8097_v44 = vadd.f32 %v7369_v10, %v12677_v58  ;;  %v2686_v39 = vsel %vm2673_vm6, %v8093_v46, -inf }
 0x1f0   : > { %v8070_v19 = vpop.permute.xlu1 %4789 }
 0x1f1   : > { %12670 = vst [vmem:[#allocation98_spill] sm:$0xff] %v8070_v19  ;;  %v8084_v19 = vsel %vm1645_vm3, %v2296_v40, %v2311_v63  ;;  %v1970_v40 = vsel %vm1645_vm3, %v1969_v28, %v1928_v57  ;;  %v2722_v61 = vsel %vm2673_vm6, %v8097_v44, -inf  ;;  %v12682_v28 = vld [vmem:[#allocation58_spill] sm:$0xff] }
 0x1f2   : > { %v1965_v12 = vrot.slane %v12682_v28, 4 }
 0x1f3   : > { %5008 = vperm.xlu1 %6101, %v7985_v20  }
 0x1f4   : > { %5002 = vperm.xlu2 %6100, %v7985_v20   ;;  %v8068_v50 = vpop.permute.xlu2 %4783 }
 0x1f5   : > { %12669 = vst [vmem:[#allocation97_spill] sm:$0xff] %v8068_v50  ;;  %v1745_v50 = vrot.slane %v12674_v34, 4  ;;  %v12678_v34 = vld [vmem:[#allocation47_spill] sm:$0xff] }
 0x1f7   : > { %v1746_v63 = vsel %vm1645_vm3, %v1745_v50, %v12678_v34  ;;  %v1971_v50 = vrot.slane %v1928_v57, 4  ;;  %v12683_v34 = vld [vmem:[#allocation52_spill] sm:$0xff] }
 0x1f8   : > { %v8090_v20 = vpop.permute.xlu1 %4808  ;;  %v2549_v56 = vadd.f32 %v1746_v63, %v12679_v23  ;;  %v2144_v32 = vsel %vm1645_vm3, %v12683_v34, %v2143_v54  ;;  %v2520_v63 = vperm.slane %v7920_v13, %v7186_v22  ;;  %v2496_v23 = vperm.slane %v7694_v1, %v7186_v22  ;;  %v12686_v54 = vld [vmem:[#allocation55_spill] sm:$0xff] }
 0x1f9   : > { %12676 = vst [vmem:[#allocation49_spill] sm:$0xff] %v8090_v20  ;;  %v12680_v20 = vld [vmem:[#allocation26_spill] sm:$0xff]  ;;  %v2500_v13 = vperm.slane %v7682_v2, %v7186_v22  ;;  %v1972_v1 = vsel %vm1645_vm3, %v1952_v48, %v1971_v50  ;;  %v12687_v48 = vld [vmem:[#allocation37_spill] sm:$0xff] }
 0x1fa   : > { %v2551_v58 = vadd.f32 %v1970_v40, %v12680_v20  ;;  %v12688_v50 = vld [vmem:[#allocation9_spill] sm:$0xff] }
 0x1fb   : > { %6103 = vset.pattern.permute.xlu1 %v6809_v9 }
 0x1fc   : > { %6102 = vset.pattern.permute.xlu2 %v6800_v6  ;;  %v8088_v60 = vpop.permute.xlu2 %4802  ;;  %v8120_v6 = vadd.f32 %v7369_v10, %v2549_v56  ;;  %v8130_v40 = vadd.f32 %v7369_v10, %v2551_v58  ;;  %v1966_v56 = vsel %vm1645_vm3, %v1965_v12, %v12686_v54  ;;  %v2555_v58 = vadd.f32 %v1972_v1, %v12687_v48  ;;  %v12692_v48 = vld [vmem:[#allocation22_spill] sm:$0xff] }
 0x1fd   : > { %12675 = vst [vmem:[#allocation43_spill] sm:$0xff] %v8088_v60  ;;  %v12681_v60 = vld [vmem:[#allocation53_spill] sm:$0xff]  ;;  %v2543_v12 = vadd.f32 %v1966_v56, %v12688_v50 }
 0x1fe   : > { %v2704_v2 = vsel %vm2673_vm6, %v8130_v40, -inf }
 0x203   : > { %5027 = vperm.xlu1 %6103, %v8025_v30  }
 0x204   : > { %5021 = vperm.xlu2 %6102, %v8025_v30   ;;  %v8125_v57 = vpop.permute.xlu2 %4814  ;;  %v12730_v30 = vld [vmem:[#allocation46_spill] sm:$0xff] }
 0x205   : > { %12684 = vst [vmem:[#allocation14_spill] sm:$0xff] %v8125_v57 }
 0x20b   : > { %6105 = vset.pattern.permute.xlu1 %v6870_v5  ;;  %v12694_v5 = vld [vmem:[#allocation32_spill] sm:$0xff] }
 0x20c   : > { %6104 = vset.pattern.permute.xlu2 %v12619_v15  ;;  %v2168_v15 = vsel %vm1645_vm3, %v12681_v60, %v2167_v26  ;;  %v2516_v26 = vsel %vm1645_vm3, %v7890_v45, %v2515_v3  ;;  %v8127_v60 = vpop.permute.xlu1 %4821  ;;  %v2539_v3 = vrot.slane %v2500_v13, 4 }
 0x20d   : > { %v2176_v20 = vperm.slane %v2168_v15, %v7186_v22  ;;  %12685 = vst [vmem:[#allocation50_spill] sm:$0xff] %v8127_v60  ;;  %v2152_v15 = vperm.slane %v2144_v32, %v7186_v22  ;;  %v2524_v45 = vperm.slane %v2516_v26, %v7186_v22  ;;  %v8151_v26 = vpop.permute.xlu2 %4833 }
 0x20e   : > { %12689 = vst [vmem:[#allocation45_spill] sm:$0xff] %v8151_v26  ;;  %v12693_v26 = vld [vmem:[#allocation67_spill] sm:$0xff] }
 0x20f   : > { %v2193_v28 = vrot.slane %v2176_v20, 4  ;;  %v8149_v34 = vsel %vm1645_vm3, %v2524_v45, %v2539_v3  ;;  %v2195_v32 = vrot.slane %v2152_v15, 4 }
 0x211   : > { %v2194_v56 = vsel %vm1645_vm3, %v2193_v28, %v2152_v15  ;;  %v2196_v3 = vsel %vm1645_vm3, %v2176_v20, %v2195_v32  ;;  %v2419_v15 = vrot.slane %v7563_v16, 4  ;;  %v12695_v28 = vld [vmem:[#allocation60_spill] sm:$0xff]  ;;  %v12700_v16 = vld [vmem:[#allocation70_spill] sm:$0xff] }
 0x212   : > { %v2581_v50 = vadd.f32 %v2194_v56, %v12692_v48  ;;  %v2585_v9 = vadd.f32 %v2196_v3, %v12694_v5  ;;  %v2537_v5 = vrot.slane %v2524_v45, 4  ;;  %v12702_v45 = vld [vmem:[#allocation39_spill] sm:$0xff] }
 0x213   : > { %v2420_v48 = vsel %vm1645_vm3, %v12700_v16, %v2419_v15 }
 0x214   : > { %v8153_v54 = vpop.permute.xlu1 %4839  ;;  %v8208_v15 = vsel %vm1645_vm3, %v2537_v5, %v2500_v13 }
 0x215   : > { %12690 = vst [vmem:[#allocation47_spill] sm:$0xff] %v8153_v54  ;;  %v2365_v54 = vrot.slane %v12693_v26, 4  ;;  %v8184_v26 = vpop.permute.xlu2 %4846 }
 0x216   : > { %12697 = vst [vmem:[#allocation26_spill] sm:$0xff] %v8184_v26 }
 0x21c   : > { %v8186_v56 = vpop.permute.xlu1 %4852 }
 0x21d   : > { %12698 = vst [vmem:[#allocation53_spill] sm:$0xff] %v8186_v56 }
 0x22d   : > { %2687 = vmax.xlane.f32.xlu2 %v2686_v39  ;;  %2723 = vmax.xlane.f32.xlu1 %v2722_v61  ;;  %v2533_v39 = vrot.slane %v2520_v63, 4  ;;  %v2698_v61 = vsel %vm2673_vm6, %v8120_v6, -inf }
 0x22f   : > { %v8142_v10 = vsel %vm1645_vm3, %v2533_v39, %v2496_v23  ;;  %v8158_v39 = vld [vmem:[%s12293_s3] ss:$0 sm:$0xff] }
 0x230   : > { %v8161_v60 = vadd.f32 %v8158_v39, %v2555_v58  ;;  %v8164_v1 = vadd.f32 %v8158_v39, %v2543_v12  ;;  %v8179_v12 = vpop.permute.xlu0 %4733  ;;  %v8182_v32 = vadd.f32 %v8158_v39, %v2581_v50 }
 0x231   : > { %12696 = vst [vmem:[#allocation21_spill] sm:$0xff] %v8179_v12  ;;  %v2587_v12 = vadd.f32 %v2420_v48, %v12702_v45 }
 0x232   : > { %v2716_v57 = vsel %vm2673_vm6, %v8161_v60, -inf  ;;  %v2680_v58 = vsel %vm2673_vm6, %v8164_v1, -inf  ;;  %v2794_v50 = vsel %vm2673_vm6, %v8182_v32, -inf }
 0x233   : > { %v8220_v48 = vadd.f32 %v8158_v39, %v2587_v12 }
 0x235   : > { %2699 = vmax.xlane.f32.xlu2 %v2698_v61  ;;  %2705 = vmax.xlane.f32.xlu1 %v2704_v2  ;;  %v12691_v61 = vld [vmem:[#allocation65_spill] sm:$0xff] }
 0x236   : > { %v2389_v2 = vrot.slane %v12691_v61, 4  ;;  %v8189_v61 = vadd.f32 %v8158_v39, %v2585_v9 }
 0x238   : > { %v2390_v20 = vsel %vm1645_vm3, %v2389_v2, %v12695_v28  ;;  %v12701_v28 = vld [vmem:[#allocation6_spill] sm:$0xff]  ;;  %v2806_v9 = vsel %vm2673_vm6, %v8189_v61, -inf }
 0x239   : > { %v2396_v2 = vperm.slane %v2390_v20, %v7186_v22  ;;  %v2573_v26 = vadd.f32 %v7734_v4, %v12701_v28  ;;  %v8212_v4 = vpop.permute.xlu2 %4864 }
 0x23a   : > { %12704 = vst [vmem:[#allocation52_spill] sm:$0xff] %v8212_v4 }
 0x23b   : > { %v2413_v20 = vrot.slane %v2396_v2, 4  ;;  %v8217_v16 = vadd.f32 %v8158_v39, %v2573_v26 }
 0x23d   : > { %2717 = vmax.xlane.f32.xlu2 %v2716_v57  ;;  %2681 = vmax.xlane.f32.xlu1 %v2680_v58  ;;  %v12699_v57 = vld [vmem:[#allocation64_spill] sm:$0xff]  ;;  %v2535_v58 = vrot.slane %v2496_v23, 4  ;;  %v2770_v5 = vsel %vm2673_vm6, %v8217_v16, -inf }
 0x23e   : > { %v2366_v3 = vsel %vm1645_vm3, %v2365_v54, %v12699_v57  ;;  %v8210_v57 = vpop.permute.xlu0 %4796 }
 0x23f   : > { %v2372_v56 = vperm.slane %v2366_v3, %v7186_v22  ;;  %v8205_v54 = vsel %vm1645_vm3, %v2520_v63, %v2535_v58  ;;  %12703 = vst [vmem:[#allocation58_spill] sm:$0xff] %v8210_v57  ;;  %v8214_v3 = vpop.permute.xlu1 %4871  ;;  %v2812_v58 = vsel %vm2673_vm6, %v8220_v48, -inf  ;;  %v12729_v57 = vld [vmem:[#allocation82_spill] sm:$0xff] }
 0x240   : > { %12705 = vst [vmem:[#allocation55_spill] sm:$0xff] %v8214_v3 }
 0x241   : > { %v2415_v23 = vrot.slane %v2372_v56, 4  ;;  %v2414_v13 = vsel %vm1645_vm3, %v2413_v20, %v2372_v56  ;;  %v8232_v12 = vpop.permute.xlu2 %4877 }
 0x242   : > { %12709 = vst [vmem:[#allocation9_spill] sm:$0xff] %v8232_v12 }
 0x243   : > { %v2416_v63 = vsel %vm1645_vm3, %v2396_v2, %v2415_v23 }
 0x245   : > { %2807 = vmax.xlane.f32.xlu2 %v2806_v9  ;;  %2795 = vmax.xlane.f32.xlu1 %v2794_v50  ;;  %v12706_v50 = vld [vmem:[#allocation18_spill] sm:$0xff] }
 0x246   : > { %v2579_v28 = vadd.f32 %v2416_v63, %v12706_v50  ;;  %v12707_v9 = vld [vmem:[#allocation10_spill] sm:$0xff]  ;;  %v8230_v26 = vpop.permute.xlu0 %4827 }
 0x247   : > { %v2575_v45 = vadd.f32 %v2414_v13, %v12707_v9  ;;  %12708 = vst [vmem:[#allocation37_spill] sm:$0xff] %v8230_v26  ;;  %v8234_v4 = vpop.permute.xlu1 %4883 }
 0x248   : > { %12710 = vst [vmem:[#allocation65_spill] sm:$0xff] %v8234_v4  ;;  %v8237_v56 = vadd.f32 %v8158_v39, %v2579_v28  ;;  %v12715_v28 = vld [vmem:[#allocation68_spill] sm:$0xff] }
 0x249   : > { %v8240_v2 = vadd.f32 %v8158_v39, %v2575_v45  ;;  %v8248_v13 = vpop.permute.xlu2 %4896  ;;  %v8258_v9 = vadd.f32 %v8158_v39, %v12715_v28  ;;  %v12720_v28 = vld [vmem:[#allocation41_spill] sm:$0xff] }
 0x24a   : > { %v2788_v23 = vsel %vm2673_vm6, %v8237_v56, -inf  ;;  %12712 = vst [vmem:[#allocation67_spill] sm:$0xff] %v8248_v13  ;;  %v8276_v13 = vadd.f32 %v8158_v39, %v12720_v28  ;;  %v8292_v28 = vadd.f32 %v8158_v39, %v7698_v24 }
 0x24b   : > { %v2776_v20 = vsel %vm2673_vm6, %v8240_v2, -inf }
 0x24c   : > { %12724 = vst [vmem:[#allocation10_spill] sm:$0xff] %v8292_v28 }
 0x24d   : > { %2771 = vmax.xlane.f32.xlu2 %v2770_v5  ;;  %2813 = vmax.xlane.f32.xlu1 %v2812_v58  ;;  %v12714_v58 = vld [vmem:[#allocation56_spill] sm:$0xff] }
 0x24e   : > { %v8246_v63 = vpop.permute.xlu0 %4858  ;;  %v8254_v50 = vadd.f32 %v8158_v39, %v12714_v58  ;;  %v12719_v58 = vld [vmem:[#allocation63_spill] sm:$0xff] }
 0x24f   : > { %12711 = vst [vmem:[#allocation22_spill] sm:$0xff] %v8246_v63  ;;  %v8250_v5 = vpop.permute.xlu1 %4902  ;;  %v8272_v12 = vadd.f32 %v8158_v39, %v12719_v58 }
 0x250   : > { %12713 = vst [vmem:[#allocation32_spill] sm:$0xff] %v8250_v5  ;;  %v2824_v45 = vsel %vm2673_vm6, %v8254_v50, -inf  ;;  %v8315_v5 = vadd.f32 %v8158_v39, %v12729_v57 }
 0x251   : > { %v8266_v4 = vpop.permute.xlu2 %4908  ;;  %v2734_v3 = vsel %vm2673_vm6, %v8272_v12, -inf }
 0x252   : > { %12717 = vst [vmem:[#allocation64_spill] sm:$0xff] %v8266_v4 }
 0x255   : > { %2789 = vmax.xlane.f32.xlu2 %v2788_v23  ;;  %2777 = vmax.xlane.f32.xlu1 %v2776_v20  ;;  %v2830_v23 = vsel %vm2673_vm6, %v8258_v9, -inf }
 0x256   : > { %v8264_v20 = vpop.permute.xlu0 %4921 }
 0x257   : > { %12716 = vst [vmem:[#allocation60_spill] sm:$0xff] %v8264_v20  ;;  %v8268_v63 = vpop.permute.xlu1 %4914  ;;  %v8284_v20 = vpop.f32.mrf.mxu2 }
 0x258   : > { %12718 = vst [vmem:[#allocation70_spill] sm:$0xff] %v8268_v63  ;;  %v8296_v63 = vadd.f32 %v8158_v39, %v7756_v21  ;;  %v8311_v21 = vadd.f32 %v8158_v39, %v7738_v38  ;;  %v2007_v38 = vrot.slane %v7700_v52, 4 }
 0x259   : > { %v8286_v4 = vpop.permute.xlu2 %4927 }
 0x25a   : > { %12722 = vst [vmem:[#allocation39_spill] sm:$0xff] %v8286_v4 }
 0x25b   : > { %12728 = vst [vmem:[#allocation41_spill] sm:$0xff] %v8311_v21 }
 0x25d   : > { %2825 = vmax.xlane.f32.xlu2 %v2824_v45  ;;  %2831 = vmax.xlane.f32.xlu1 %v2830_v23  ;;  %v2740_v45 = vsel %vm2673_vm6, %v8276_v13, -inf }
 0x25e   : > { %v8282_v23 = vpop.permute.xlu0 %4952 }
 0x25f   : > { %12721 = vst [vmem:[#allocation6_spill] sm:$0xff] %v8282_v23  ;;  %v8288_v58 = vpop.permute.xlu1 %4933  ;;  %v2427_v23 = vrot.slane %v7729_v35, 4  ;;  %v1150_v26 = vpop.f32.mrf.mxu2 }
 0x260   : > { %12723 = vst [vmem:[#allocation18_spill] sm:$0xff] %v8288_v58 }
 0x261   : > { %v8305_v58 = vpop.permute.xlu2 %4939  ;;  %v2428_v35 = vsel %vm1645_vm3, %v12730_v30, %v2427_v23  ;;  %v2019_v23 = vrot.slane %v7758_v41, 4 }
 0x262   : > { %12726 = vst [vmem:[#allocation68_spill] sm:$0xff] %v8305_v58  ;;  %v12731_v58 = vld [vmem:[#allocation33_spill] sm:$0xff] }
 0x265   : > { %2735 = vmax.xlane.f32.xlu2 %v2734_v3  ;;  %2741 = vmax.xlane.f32.xlu1 %v2740_v45  ;;  %v2842_v3 = vsel %vm2673_vm6, %v8292_v28, -inf  ;;  %v2848_v45 = vsel %vm2673_vm6, %v8296_v63, -inf }
 0x266   : > { %v8303_v4 = vpop.permute.xlu0 %4983 }
 0x267   : > { %12725 = vst [vmem:[#allocation56_spill] sm:$0xff] %v8303_v4  ;;  %v8307_v24 = vpop.permute.xlu1 %4946  ;;  %v2758_v4 = vsel %vm2673_vm6, %v8315_v5, -inf }
 0x268   : > { %12727 = vst [vmem:[#allocation63_spill] sm:$0xff] %v8307_v24  ;;  %v2554_v24 = vadd.f32 %v8002_v18, %v12731_v58  ;;  %v12737_v58 = vld [vmem:[#allocation54_spill] sm:$0xff] }
 0x269   : > { %v8326_v7 = vpop.permute.xlu2 %4958 }
 0x26a   : > { %12732 = vst [vmem:[#allocation82_spill] sm:$0xff] %v8326_v7  ;;  %v12738_v7 = vld [vmem:[#allocation83_spill] sm:$0xff] }
 0x26d   : > { %2843 = vmax.xlane.f32.xlu2 %v2842_v3  ;;  %2849 = vmax.xlane.f32.xlu1 %v2848_v45  ;;  %v2603_v3 = vadd.f32 %v2428_v35, %v1150_v26  ;;  %v2752_v45 = vsel %vm2673_vm6, %v8311_v21, -inf  ;;  %v8334_v26 = vadd.f32 %v8158_v39, %v2554_v24  ;;  %v12736_v35 = vld [vmem:[#allocation27_spill] sm:$0xff]  ;;  %v12740_v21 = vld [vmem:[#allocation86_spill] sm:$0xff] }
 0x26e   : > { %v2712_v57 = vpop.xlane.xlu0 %2711  ;;  %v2008_v18 = vsel %vm1645_vm3, %v12736_v35, %v2007_v38  ;;  %v2020_v38 = vsel %vm1645_vm3, %v12740_v21, %v2019_v23 }
 0x26f   : > { %v8328_v28 = vpop.permute.xlu1 %4964  ;;  %v8331_v30 = vadd.f32 %v8158_v39, %v2603_v3  ;;  %12735 = vst [vmem:[#allocation99_spill] sm:$0xff] %v8334_v26  ;;  %v2570_v3 = vadd.f32 %v8056_v17, %v12738_v7  ;;  %v2016_v41 = vperm.slane %v2008_v18, %v6922_v37  ;;  %v12745_v17 = vld [vmem:[#allocation28_spill] sm:$0xff] }
 0x270   : > { %12733 = vst [vmem:[#allocation46_spill] sm:$0xff] %v8328_v28  ;;  %v12739_v28 = vld [vmem:[#allocation76_spill] sm:$0xff] }
 0x271   : > { %12734 = vst [vmem:[#allocation33_spill] sm:$0xff] %v8331_v30  ;;  %v2860_v52 = vsel %vm2673_vm6, %v8331_v30, -inf  ;;  %v2566_v24 = vadd.f32 %v8053_v51, %v12739_v28  ;;  %v2067_v35 = vrot.slane %v2016_v41, 4  ;;  %v8356_v42 = vadd.f32 %v8158_v39, %v2570_v3  ;;  %v12747_v3 = vld [vmem:[#allocation87_spill] sm:$0xff] }
 0x272   : > { %v8363_v51 = vperm.slane %v12745_v17, %v7186_v22  ;;  %v2028_v28 = vperm.slane %v2020_v38, %v6922_v37 }
 0x273   : > { %12743 = vst [vmem:[#allocation83_spill] sm:$0xff] %v8356_v42  ;;  %v8359_v7 = vadd.f32 %v8158_v39, %v2566_v24  ;;  %v2761_v23 = vsel %vm2673_vm6, %v8356_v42, -inf  ;;  %v1861_v24 = vrot.slane %v12747_v3, 4  ;;  %v12753_v3 = vld [vmem:[#allocation59_spill] sm:$0xff] }
 0x274   : > { %v2068_v21 = vsel %vm1645_vm3, %v2028_v28, %v2067_v35 }
 0x275   : > { %2753 = vmax.xlane.f32.xlu2 %v2752_v45  ;;  %2759 = vmax.xlane.f32.xlu1 %v2758_v4  ;;  %v2878_v4 = vsub.f32 %v12737_v58, %v2712_v57  ;;  %v2713_v45 = vsel %vm2673_vm6, %v8334_v26, -inf  ;;  %v8351_v58 = vpop.permute.xlu2 %4971  ;;  %12744 = vst [vmem:[#allocation76_spill] sm:$0xff] %v8359_v7  ;;  %v2749_v18 = vsel %vm2673_vm6, %v8359_v7, -inf  ;;  %v8376_v37 = vperm.slane %v2068_v21, %v7186_v22 }
 0x276   : > { %12741 = vst [vmem:[#allocation27_spill] sm:$0xff] %v8351_v58  ;;  %v2676_v17 = vpop.xlane.xlu0 %2675 }
 0x277   : > { %v2954_v57 = vmul.f32 1.442695, %v2878_v4  ;;  %v8353_v30 = vpop.permute.xlu1 %4977  ;;  %v12746_v4 = vld [vmem:[#allocation16_spill] sm:$0xff] }
 0x278   : > { %12742 = vst [vmem:[#allocation54_spill] sm:$0xff] %v8353_v30  ;;  %v2866_v30 = vsub.f32 %v12753_v3, %v2676_v17 }
 0x279   : > { %6126 = vpow2.f32 %v2954_v57 }
 0x27a   : > { %v2930_v7 = vmul.f32 1.442695, %v2866_v30 }
 0x27c   : > { %6128 = vpow2.f32 %v2930_v7 }
 0x27d   : > { %2861 = vmax.xlane.f32.xlu2 %v2860_v52  ;;  %2714 = vmax.xlane.f32.xlu1 %v2713_v45  ;;  %v2546_v52 = vadd.f32 %v7945_v14, %v12746_v4  ;;  %v2091_v45 = vrot.slane %v8363_v51, 4  ;;  %v8378_v38 = vpop.permute.xlu2 %4989  ;;  %v1072_v14 = vpop.f32.mrf.mxu0 }
 0x27e   : > { %12748 = vst [vmem:[#allocation86_spill] sm:$0xff] %v8378_v38 }
 0x27f   : > { %v8380_v57 = vpop.permute.xlu1 %4996  ;;  %v8383_v35 = vadd.f32 %v8158_v39, %v2546_v52  ;;  %v8385_v58 = vpop.eup %6126  ;;  %v12754_v52 = vld [vmem:[#allocation48_spill] sm:$0xff] }
 0x280   : > { %12749 = vst [vmem:[#allocation28_spill] sm:$0xff] %v8380_v57  ;;  %v3094_v57 = vsel %vm2673_vm6, %v8385_v58, 0.0 }
 0x281   : > { %12750 = vst [vmem:[#allocation16_spill] sm:$0xff] %v8383_v35  ;;  %v2689_v38 = vsel %vm2673_vm6, %v8383_v35, -inf }
 0x282   : > { %12751 = vst [vmem:[#allocation87_spill] sm:$0xff] %v8385_v58  ;;  %v8424_v3 = vpop.eup %6128 }
 0x283   : > { %12761 = vst [vmem:[#allocation101_spill] sm:$0xff] %v8424_v3 }
 0x285   : > { %2762 = vmax.xlane.f32.xlu2 %v2761_v23  ;;  %2750 = vmax.xlane.f32.xlu1 %v2749_v18  ;;  %v2092_v23 = vsel %vm1645_vm3, %v8376_v37, %v2091_v45  ;;  %v12752_v18 = vld [vmem:[#allocation85_spill] sm:$0xff]  ;;  %v8397_v26 = vpop.permute.xlu2 %5002 }
 0x286   : > { %v1862_v4 = vsel %vm1645_vm3, %v1861_v24, %v12752_v18  ;;  %v2572_v21 = vadd.f32 %v2092_v23, %v1072_v14  ;;  %12755 = vst [vmem:[#allocation85_spill] sm:$0xff] %v8397_v26  ;;  %v12758_v14 = vld [vmem:[#allocation71_spill] sm:$0xff] }
 0x287   : > { %v2558_v42 = vadd.f32 %v1862_v4, %v12754_v52  ;;  %v8399_v45 = vpop.permute.xlu1 %5008  ;;  %v8409_v23 = vperm.slane %v12758_v14, %v7186_v22  ;;  %v3058_v14 = vsel %vm2673_vm6, %v8424_v3, 0.0 }
 0x288   : > { %12756 = vst [vmem:[#allocation59_spill] sm:$0xff] %v8399_v45  ;;  %v8405_v17 = vadd.f32 %v8158_v39, %v2572_v21  ;;  %v2065_v21 = vrot.slane %v2028_v28, 4 }
 0x289   : > { %v8402_v24 = vadd.f32 %v8158_v39, %v2558_v42  ;;  %v8418_v42 = vperm.slane %v7883_v0, %v7186_v22 }
 0x28a   : > { %v2767_v30 = vsel %vm2673_vm6, %v8405_v17, -inf }
 0x28b   : > { %12757 = vst [vmem:[#allocation48_spill] sm:$0xff] %v8402_v24 }
 0x28d   : > { %2690 = vmax.xlane.f32.xlu2 %v2689_v38  ;;  %3095 = vadd.xlane.f32.xlu1 %v3094_v57  ;;  %v2725_v38 = vsel %vm2673_vm6, %v8402_v24, -inf  ;;  %v2315_v57 = vrot.slane %v8409_v23, 4  ;;  %v8420_v18 = vpop.permute.xlu2 %5021  ;;  %v12766_v24 = vld [vmem:[#allocation42_spill] sm:$0xff] }
 0x28e   : > { %12759 = vst [vmem:[#allocation71_spill] sm:$0xff] %v8420_v18 }
 0x28f   : > { %v8422_v4 = vpop.permute.xlu1 %5027  ;;  %v2316_v7 = vsel %vm1645_vm3, %v8418_v42, %v2315_v57  ;;  %v12762_v57 = vld [vmem:[#allocation73_spill] sm:$0xff] }
 0x290   : > { %12760 = vst [vmem:[#allocation100_spill] sm:$0xff] %v8422_v4  ;;  %v2602_v52 = vadd.f32 %v2316_v7, %v8284_v20  ;;  %v2048_v28 = vperm.slane %v12762_v57, %v7186_v22  ;;  %v12763_v7 = vld [vmem:[#allocation19_spill] sm:$0xff] }
 0x292   : > { %v8433_v45 = vadd.f32 %v8158_v39, %v2602_v52 }
 0x294   : > { %v2857_v20 = vsel %vm2673_vm6, %v8433_v45, -inf }
 0x295   : > { %2726 = vmax.xlane.f32.xlu2 %v2725_v38  ;;  %2768 = vmax.xlane.f32.xlu1 %v2767_v30  ;;  %v2066_v38 = vsel %vm1645_vm3, %v2065_v21, %v2016_v41  ;;  %v2087_v41 = vrot.slane %v2048_v28, 4 }
 0x296   : > { %v2072_v18 = vperm.slane %v2066_v38, %v7186_v22  ;;  %v2694_v38 = vpop.xlane.xlu0 %2693 }
 0x298   : > { %v2085_v21 = vrot.slane %v2072_v18, 4 }
 0x29d   : > { %3059 = vadd.xlane.f32.xlu1 %v3058_v14  ;;  %v2548_v14 = vadd.f32 %v7957_v25, %v12763_v7 }
 0x2a0   : > { %v2688_v0 = vpop.xlane.xlu2 %2687  ;;  %v2724_v30 = vpop.xlane.xlu1 %2723 }
 0x2a1   : > { %v2870_v26 = vsub.f32 %v8093_v46, %v2688_v0  ;;  %v8446_v46 = vadd.f32 %v8158_v39, %v2548_v14  ;;  %v2086_v0 = vsel %vm1645_vm3, %v2085_v21, %v2048_v28  ;;  %v2882_v25 = vsub.f32 %v8097_v44, %v2724_v30 }
 0x2a3   : > { %v2938_v4 = vmul.f32 1.442695, %v2870_v26  ;;  %v2088_v26 = vsel %vm1645_vm3, %v2072_v18, %v2087_v41  ;;  %v2695_v14 = vsel %vm2673_vm6, %v8446_v46, -inf  ;;  %v2962_v28 = vmul.f32 1.442695, %v2882_v25 }
 0x2a4   : > { %v2564_v35 = vadd.f32 %v2088_v26, %v12766_v24 }
 0x2a5   : > { %6130 = vpow2.f32 %v2938_v4  ;;  %2858 = vmax.xlane.f32.xlu1 %v2857_v20  ;;  %v12765_v20 = vld [vmem:[#allocation66_spill] sm:$0xff] }
 0x2a6   : > { %v2872_v7 = vsub.f32 %v12765_v20, %v2694_v38  ;;  %v8464_v30 = vadd.f32 %v8158_v39, %v2564_v35 }
 0x2a8   : > { %v2700_v52 = vpop.xlane.xlu2 %2699  ;;  %v8443_v3 = vpop.xlane.xlu1 %2705  ;;  %v2942_v41 = vmul.f32 1.442695, %v2872_v7  ;;  %v2743_v24 = vsel %vm2673_vm6, %v8464_v30, -inf }
 0x2a9   : > { %v2874_v22 = vsub.f32 %v8120_v6, %v2700_v52  ;;  %v12767_v6 = vld [vmem:[#allocation57_spill] sm:$0xff] }
 0x2aa   : > { %v2560_v18 = vadd.f32 %v2086_v0, %v12767_v6  ;;  %v12772_v6 = vld [vmem:[#allocation29_spill] sm:$0xff] }
 0x2ab   : > { %v8451_v57 = vpop.eup %6130  ;;  %v2946_v4 = vmul.f32 1.442695, %v2874_v22  ;;  %v12769_v22 = vld [vmem:[#allocation7_spill] sm:$0xff] }
 0x2ac   : > { %12764 = vst [vmem:[#allocation73_spill] sm:$0xff] %v8451_v57  ;;  %v3070_v58 = vsel %vm2673_vm6, %v8451_v57, 0.0  ;;  %v8467_v52 = vadd.f32 %v8158_v39, %v2560_v18  ;;  %v2542_v26 = vadd.f32 %v7953_v59, %v12769_v22  ;;  %v2552_v18 = vadd.f32 %v8005_v36, %v12772_v6  ;;  %v12774_v22 = vld [vmem:[#allocation11_spill] sm:$0xff] }
 0x2ad   : > { %6132 = vpow2.f32 %v2946_v4  ;;  %3071 = vadd.xlane.f32.xlu2 %v3070_v58  ;;  %2696 = vmax.xlane.f32.xlu1 %v2695_v14  ;;  %v2313_v57 = vrot.slane %v8418_v42, 4 }
 0x2ae   : > { %6134 = vpow2.f32 %v2962_v28  ;;  %v2731_v35 = vsel %vm2673_vm6, %v8467_v52, -inf  ;;  %v8484_v4 = vadd.f32 %v8158_v39, %v2542_v26  ;;  %v12773_v28 = vld [vmem:[#allocation40_spill] sm:$0xff]  ;;  %v2544_v26 = vadd.f32 %v7960_v8, %v12774_v22 }
 0x2af   : > { %6136 = vpow2.f32 %v2942_v41  ;;  %v2556_v41 = vadd.f32 %v8037_v29, %v12773_v28  ;;  %v8508_v36 = vadd.f32 %v8158_v39, %v2552_v18  ;;  %v2876_v8 = vsub.f32 %v8130_v40, %v8443_v3  ;;  %v12775_v28 = vld [vmem:[#allocation80_spill] sm:$0xff]  ;;  %v2784_v3 = vpop.xlane.xlu0 %2783 }
 0x2b0   : > { %v2718_v21 = vpop.xlane.xlu2 %2717  ;;  %v8461_v44 = vpop.xlane.xlu1 %2681  ;;  %v2677_v14 = vsel %vm2673_vm6, %v8484_v4, -inf }
 0x2b1   : > { %v8511_v29 = vadd.f32 %v8158_v39, %v2556_v41  ;;  %v2707_v6 = vsel %vm2673_vm6, %v8508_v36, -inf }
 0x2b3   : > { %v8469_v38 = vpop.eup %6132  ;;  %v2719_v18 = vsel %vm2673_vm6, %v8511_v29, -inf }
 0x2b4   : > { %12768 = vst [vmem:[#allocation19_spill] sm:$0xff] %v8469_v38  ;;  %v3082_v58 = vsel %vm2673_vm6, %v8469_v38, 0.0  ;;  %v8486_v20 = vpop.eup %6134  ;;  %v12784_v38 = vld [vmem:[#allocation36_spill] sm:$0xff] }
 0x2b5   : > { %3083 = vadd.xlane.f32.xlu0 %v3082_v58  ;;  %2744 = vmax.xlane.f32.xlu2 %v2743_v24  ;;  %12770 = vst [vmem:[#allocation66_spill] sm:$0xff] %v8486_v20  ;;  %v8488_v7 = vpop.eup %6136  ;;  %v3106_v59 = vsel %vm2673_vm6, %v8486_v20, 0.0  ;;  %v2089_v58 = vrot.slane %v8376_v37, 4  ;;  %v8514_v37 = vadd.f32 %v8158_v39, %v2544_v26 }
 0x2b6   : > { %2732 = vmax.xlane.f32.xlu1 %v2731_v35  ;;  %12771 = vst [vmem:[#allocation42_spill] sm:$0xff] %v8488_v7  ;;  %v3076_v24 = vsel %vm2673_vm6, %v8488_v7, 0.0 }
 0x2b8   : > { %v8479_v0 = vpop.xlane.xlu2 %2807  ;;  %v8481_v25 = vpop.xlane.xlu1 %2795 }
 0x2b9   : > { %v2910_v42 = vsub.f32 %v8189_v61, %v8479_v0 }
 0x2bb   : > { %v3018_v61 = vmul.f32 1.442695, %v2910_v42  ;;  %v12789_v42 = vld [vmem:[#allocation44_spill] sm:$0xff] }
 0x2bd   : > { %3107 = vadd.xlane.f32.xlu2 %v3106_v59  ;;  %2678 = vmax.xlane.f32.xlu0 %v2677_v14  ;;  %v2090_v59 = vsel %vm1645_vm3, %v2089_v58, %v8363_v51  ;;  %v2880_v14 = vsub.f32 %v8161_v60, %v2718_v21  ;;  %v2683_v51 = vsel %vm2673_vm6, %v8514_v37, -inf  ;;  %v12777_v58 = vld [vmem:[#allocation17_spill] sm:$0xff]  ;;  %v2950_v60 = vmul.f32 1.442695, %v2876_v8 }
 0x2be   : > { %3077 = vadd.xlane.f32.xlu1 %v3076_v24  ;;  %v2568_v41 = vadd.f32 %v2090_v59, %v12775_v28  ;;  %v12776_v24 = vld [vmem:[#allocation35_spill] sm:$0xff]  ;;  %v2578_v40 = vadd.f32 %v7963_v27, %v12777_v58 }
 0x2bf   : > { %v2594_v22 = vadd.f32 %v8084_v19, %v12776_v24  ;;  %v2958_v21 = vmul.f32 1.442695, %v2880_v14  ;;  %6138 = vpow2.f32 %v2950_v60  ;;  %v2820_v60 = vpop.xlane.xlu0 %2819 }
 0x2c0   : > { %v8503_v35 = vpop.xlane.xlu2 %2771  ;;  %v8505_v20 = vpop.xlane.xlu1 %2813  ;;  %v8537_v59 = vadd.f32 %v8158_v39, %v2568_v41  ;;  %v12779_v41 = vld [vmem:[#allocation51_spill] sm:$0xff] }
 0x2c1   : > { %v8540_v19 = vadd.f32 %v8158_v39, %v2594_v22  ;;  %6140 = vpow2.f32 %v2958_v21  ;;  %v2590_v24 = vadd.f32 %v8079_v47, %v12779_v41 }
 0x2c2   : > { %v2755_v8 = vsel %vm2673_vm6, %v8537_v59, -inf }
 0x2c3   : > { %v2833_v14 = vsel %vm2673_vm6, %v8540_v19, -inf }
 0x2c5   : > { %2708 = vmax.xlane.f32.xlu2 %v2707_v6  ;;  %2720 = vmax.xlane.f32.xlu0 %v2719_v18  ;;  %v8543_v6 = vadd.f32 %v8158_v39, %v2578_v40  ;;  %v12778_v18 = vld [vmem:[#allocation69_spill] sm:$0xff] }
 0x2c6   : > { %2684 = vmax.xlane.f32.xlu1 %v2683_v51  ;;  %v2902_v27 = vsub.f32 %v12778_v18, %v2784_v3  ;;  %v8554_v51 = vpop.eup %6138  ;;  %v8561_v3 = vadd.f32 %v8158_v39, %v2590_v24  ;;  %v2906_v18 = vsub.f32 %v8182_v32, %v8481_v25  ;;  %v2586_v24 = vadd.f32 %v8028_v31, %v12784_v38 }
 0x2c7   : > { %v2785_v28 = vsel %vm2673_vm6, %v8543_v6, -inf  ;;  %12780 = vst [vmem:[#allocation57_spill] sm:$0xff] %v8554_v51  ;;  %v8558_v40 = vpop.eup %6140  ;;  %v3088_v41 = vsel %vm2673_vm6, %v8554_v51, 0.0  ;;  %v2314_v31 = vsel %vm1645_vm3, %v2313_v57, %v8409_v23 }
 0x2c8   : > { %v8532_v26 = vpop.xlane.xlu2 %2789  ;;  %v8534_v7 = vpop.xlane.xlu1 %2777  ;;  %v3002_v22 = vmul.f32 1.442695, %v2902_v27  ;;  %12781 = vst [vmem:[#allocation7_spill] sm:$0xff] %v8558_v40  ;;  %v12783_v27 = vld [vmem:[#allocation34_spill] sm:$0xff]  ;;  %v2821_v32 = vsel %vm2673_vm6, %v8561_v3, -inf }
 0x2ca   : > { %6142 = vpow2.f32 %v3002_v22 }
 0x2cd   : > { %2756 = vmax.xlane.f32.xlu0 %v2755_v8  ;;  %2834 = vmax.xlane.f32.xlu2 %v2833_v14  ;;  %v12782_v8 = vld [vmem:[#allocation24_spill] sm:$0xff]  ;;  %v2914_v14 = vsub.f32 %v12783_v27, %v2820_v60  ;;  %v8582_v60 = vadd.f32 %v8158_v39, %v2586_v24 }
 0x2ce   : > { %2786 = vmax.xlane.f32.xlu1 %v2785_v28  ;;  %v2582_v47 = vadd.f32 %v7988_v33, %v12782_v8  ;;  %v3100_v28 = vsel %vm2673_vm6, %v8558_v40, 0.0  ;;  %v3010_v33 = vmul.f32 1.442695, %v2906_v18 }
 0x2cf   : > { %v3026_v25 = vmul.f32 1.442695, %v2914_v14  ;;  %v2809_v18 = vsel %vm2673_vm6, %v8582_v60, -inf }
 0x2d0   : > { %v8556_v58 = vpop.xlane.xlu1 %2831  ;;  %v8563_v21 = vpop.xlane.xlu2 %2825  ;;  %v8585_v8 = vadd.f32 %v8158_v39, %v2582_v47  ;;  %6144 = vpow2.f32 %v3010_v33  ;;  %v12786_v47 = vld [vmem:[#allocation78_spill] sm:$0xff]  ;;  %v2868_v33 = vsub.f32 %v8164_v1, %v8461_v44 }
 0x2d1   : > { %v8587_v27 = vpop.eup %6142  ;;  %6146 = vpow2.f32 %v3026_v25 }
 0x2d2   : > { %12785 = vst [vmem:[#allocation29_spill] sm:$0xff] %v8587_v27  ;;  %v2797_v14 = vsel %vm2673_vm6, %v8585_v8, -inf  ;;  %v3166_v23 = vsel %vm2673_vm6, %v8587_v27, 0.0  ;;  %6148 = vpow2.f32 %v3018_v61  ;;  %v2934_v44 = vmul.f32 1.442695, %v2868_v33 }
 0x2d4   : > { %6150 = vpow2.f32 %v2934_v44 }
 0x2d5   : > { %3101 = vadd.xlane.f32.xlu0 %v3100_v28  ;;  %3089 = vadd.xlane.f32.xlu2 %v3088_v41  ;;  %v2598_v28 = vadd.f32 %v2314_v31, %v12786_v47  ;;  %v2802_v41 = vpop.xlane.xlu0 %2801  ;;  %v12790_v47 = vld [vmem:[#allocation74_spill] sm:$0xff] }
 0x2d6   : > { %2822 = vmax.xlane.f32.xlu1 %v2821_v32  ;;  %v8607_v24 = vpop.eup %6144 }
 0x2d7   : > { %v8605_v0 = vadd.f32 %v8158_v39, %v2598_v28  ;;  %12787 = vst [vmem:[#allocation40_spill] sm:$0xff] %v8607_v24  ;;  %v8609_v32 = vpop.eup %6146  ;;  %v3178_v31 = vsel %vm2673_vm6, %v8607_v24, 0.0  ;;  %v2596_v28 = vadd.f32 %v8205_v54, %v12790_v47  ;;  %v12793_v54 = vld [vmem:[#allocation72_spill] sm:$0xff] }
 0x2d8   : > { %v8579_v22 = vpop.xlane.xlu1 %2741  ;;  %v8593_v38 = vpop.xlane.xlu2 %2735  ;;  %12788 = vst [vmem:[#allocation11_spill] sm:$0xff] %v8609_v32 }
 0x2d9   : > { %v2845_v25 = vsel %vm2673_vm6, %v8605_v0, -inf  ;;  %v8630_v27 = vpop.eup %6148 }
 0x2da   : > { %12792 = vst [vmem:[#allocation35_spill] sm:$0xff] %v8630_v27 }
 0x2dd   : > { %2810 = vmax.xlane.f32.xlu0 %v2809_v18  ;;  %2798 = vmax.xlane.f32.xlu2 %v2797_v14  ;;  %v2588_v18 = vadd.f32 %v8050_v43, %v12789_v42  ;;  %v3202_v14 = vsel %vm2673_vm6, %v8609_v32, 0.0  ;;  %v2730_v1 = vpop.xlane.xlu0 %2729  ;;  %v8633_v43 = vadd.f32 %v8158_v39, %v2596_v28  ;;  %v3190_v42 = vsel %vm2673_vm6, %v8630_v27, 0.0  ;;  %v12795_v28 = vld [vmem:[#allocation30_spill] sm:$0xff]  ;;  %v8655_v32 = vpop.eup %6150 }
 0x2de   : > { %3167 = vadd.xlane.f32.xlu1 %v3166_v23  ;;  %v2584_v44 = vadd.f32 %v8014_v53, %v12795_v28  ;;  %12797 = vst [vmem:[#allocation69_spill] sm:$0xff] %v8655_v32 }
 0x2df   : > { %v8628_v24 = vadd.f32 %v8158_v39, %v2588_v18  ;;  %v2839_v47 = vsel %vm2673_vm6, %v8633_v43, -inf }
 0x2e0   : > { %v8602_v57 = vpop.xlane.xlu1 %2849  ;;  %v8623_v23 = vpop.xlane.xlu2 %2843 }
 0x2e1   : > { %12791 = vst [vmem:[#allocation80_spill] sm:$0xff] %v8628_v24  ;;  %v2815_v33 = vsel %vm2673_vm6, %v8628_v24, -inf }
 0x2e5   : > { %2846 = vmax.xlane.f32.xlu0 %v2845_v25  ;;  %3179 = vadd.xlane.f32.xlu2 %v3178_v31  ;;  %v2912_v25 = vsub.f32 %v8220_v48, %v8505_v20  ;;  %v2908_v31 = vsub.f32 %v12793_v54, %v2802_v41 }
 0x2e6   : > { %3203 = vadd.xlane.f32.xlu1 %v3202_v14  ;;  %v12794_v14 = vld [vmem:[#allocation81_spill] sm:$0xff] }
 0x2e7   : > { %v2600_v18 = vadd.f32 %v8208_v15, %v12794_v14  ;;  %v3022_v48 = vmul.f32 1.442695, %v2912_v25  ;;  %v3014_v20 = vmul.f32 1.442695, %v2908_v31  ;;  %v2838_v15 = vpop.xlane.xlu0 %2837  ;;  %v12799_v25 = vld [vmem:[#allocation75_spill] sm:$0xff]  ;;  %v3064_v14 = vsel %vm2673_vm6, %v8655_v32, 0.0 }
 0x2e8   : > { %v8625_v61 = vpop.xlane.xlu1 %2759  ;;  %v8648_v41 = vpop.xlane.xlu2 %2753  ;;  %v2884_v31 = vsub.f32 %v12799_v25, %v2730_v1  ;;  %v12801_v32 = vld [vmem:[#allocation77_spill] sm:$0xff] }
 0x2e9   : > { %v8653_v27 = vadd.f32 %v8158_v39, %v2600_v18  ;;  %6152 = vpow2.f32 %v3022_v48  ;;  %v1152_v1 = vpop.f32.mrf.mxu2  ;;  %v2920_v51 = vsub.f32 %v12801_v32, %v2838_v15 }
 0x2ea   : > { %6154 = vpow2.f32 %v3014_v20  ;;  %v2604_v40 = vadd.f32 %v8149_v34, %v1152_v1  ;;  %v12803_v1 = vld [vmem:[#allocation79_spill] sm:$0xff] }
 0x2eb   : > { %12796 = vst [vmem:[#allocation17_spill] sm:$0xff] %v8653_v27  ;;  %v2851_v18 = vsel %vm2673_vm6, %v8653_v27, -inf  ;;  %v3038_v27 = vmul.f32 1.442695, %v2920_v51 }
 0x2ec   : > { %v8700_v32 = vadd.f32 %v8158_v39, %v2604_v40 }
 0x2ed   : > { %3191 = vadd.xlane.f32.xlu0 %v3190_v42  ;;  %2816 = vmax.xlane.f32.xlu2 %v2815_v33  ;;  %v8658_v42 = vadd.f32 %v8158_v39, %v2584_v44  ;;  %v12798_v33 = vld [vmem:[#allocation8_spill] sm:$0xff]  ;;  %v2966_v44 = vmul.f32 1.442695, %v2884_v31  ;;  %v12800_v31 = vld [vmem:[#allocation13_spill] sm:$0xff] }
 0x2ee   : > { %2840 = vmax.xlane.f32.xlu1 %v2839_v47  ;;  %v2574_v53 = vadd.f32 %v7969_v55, %v12798_v33  ;;  %v2898_v33 = vsub.f32 %v8217_v16, %v8503_v35  ;;  %v2863_v40 = vsel %vm2673_vm6, %v8700_v32, -inf }
 0x2ef   : > { %v2803_v47 = vsel %vm2673_vm6, %v8658_v42, -inf  ;;  %v8674_v48 = vpop.eup %6152  ;;  %6156 = vpow2.f32 %v2966_v44  ;;  %v2918_v44 = vsub.f32 %v8258_v9, %v8556_v58 }
 0x2f0   : > { %v8650_v54 = vpop.xlane.xlu1 %2714  ;;  %v8670_v28 = vadd.f32 %v8158_v39, %v2574_v53  ;;  %v8676_v20 = vpop.eup %6154  ;;  %v3196_v16 = vsel %vm2673_vm6, %v8674_v48, 0.0 }
 0x2f1   : > { %v8680_v25 = vpop.xlane.xlu2 %2861  ;;  %v3184_v35 = vsel %vm2673_vm6, %v8676_v20, 0.0 }
 0x2f2   : > { %v2773_v53 = vsel %vm2673_vm6, %v8670_v28, -inf }
 0x2f5   : > { %3065 = vadd.xlane.f32.xlu0 %v3064_v14  ;;  %2852 = vmax.xlane.f32.xlu2 %v2851_v18  ;;  %v2748_v14 = vpop.xlane.xlu0 %2747  ;;  %v2900_v18 = vsub.f32 %v8240_v2, %v8534_v7  ;;  %v2994_v2 = vmul.f32 1.442695, %v2898_v33  ;;  %v8702_v34 = vpop.eup %6156 }
 0x2f6   : > { %2804 = vmax.xlane.f32.xlu1 %v2803_v47  ;;  %v2576_v47 = vadd.f32 %v7973_v62, %v12800_v31  ;;  %12802 = vst [vmem:[#allocation51_spill] sm:$0xff] %v8702_v34  ;;  %v2890_v33 = vsub.f32 %v12803_v1, %v2748_v14  ;;  %v3034_v31 = vmul.f32 1.442695, %v2918_v44  ;;  %v12808_v1 = vld [vmem:[#allocation84_spill] sm:$0xff] }
 0x2f7   : > { %v2998_v7 = vmul.f32 1.442695, %v2900_v18  ;;  %6158 = vpow2.f32 %v2994_v2  ;;  %v12807_v2 = vld [vmem:[#allocation20_spill] sm:$0xff] }
 0x2f8   : > { %v8672_v55 = vpop.xlane.xlu1 %2750  ;;  %v8697_v62 = vadd.f32 %v8158_v39, %v2576_v47  ;;  %v2978_v9 = vmul.f32 1.442695, %v2890_v33 }
 0x2f9   : > { %6160 = vpow2.f32 %v2998_v7  ;;  %v8707_v51 = vpop.xlane.xlu2 %2762  ;;  %v2580_v7 = vadd.f32 %v7976_v11, %v12807_v2  ;;  %v2904_v2 = vsub.f32 %v8237_v56, %v8532_v26 }
 0x2fa   : > { %6162 = vpow2.f32 %v3038_v27  ;;  %v2779_v18 = vsel %vm2673_vm6, %v8697_v62, -inf }
 0x2fb   : > { %6164 = vpow2.f32 %v3034_v31  ;;  %v8737_v11 = vadd.f32 %v8158_v39, %v2580_v7  ;;  %v12810_v7 = vld [vmem:[#allocation31_spill] sm:$0xff]  ;;  %v3006_v26 = vmul.f32 1.442695, %v2904_v2  ;;  %v2894_v2 = vsub.f32 %v8315_v5, %v8625_v61 }
 0x2fc   : > { %6166 = vpow2.f32 %v2978_v9 }
 0x2fd   : > { %3197 = vadd.xlane.f32.xlu2 %v3196_v16  ;;  %2774 = vmax.xlane.f32.xlu0 %v2773_v53  ;;  %v2856_v15 = vpop.xlane.xlu0 %2855  ;;  %v3112_v53 = vsel %vm2673_vm6, %v8702_v34, 0.0  ;;  %v8715_v47 = vpop.eup %6158 }
 0x2fe   : > { %3185 = vadd.xlane.f32.xlu1 %v3184_v35  ;;  %12804 = vst [vmem:[#allocation24_spill] sm:$0xff] %v8715_v47  ;;  %v2888_v35 = vsub.f32 %v8276_v13, %v8579_v22  ;;  %v2926_v44 = vsub.f32 %v12808_v1, %v2856_v15  ;;  %v2924_v1 = vsub.f32 %v8296_v63, %v8602_v57 }
 0x2ff   : > { %v8719_v27 = vpop.eup %6160 }
 0x300   : > { %v8694_v24 = vpop.xlane.xlu1 %3095  ;;  %12805 = vst [vmem:[#allocation34_spill] sm:$0xff] %v8719_v27  ;;  %v8721_v14 = vpop.eup %6162  ;;  %v3160_v33 = vsel %vm2673_vm6, %v8719_v27, 0.0  ;;  %v2974_v13 = vmul.f32 1.442695, %v2888_v35  ;;  %v3050_v22 = vmul.f32 1.442695, %v2926_v44 }
 0x301   : > { %12806 = vst [vmem:[#allocation36_spill] sm:$0xff] %v8721_v14  ;;  %v8741_v31 = vpop.eup %6164  ;;  %v2791_v35 = vsel %vm2673_vm6, %v8737_v11, -inf  ;;  %v3046_v63 = vmul.f32 1.442695, %v2924_v1  ;;  %vm3435_vm8 = vweird.f32 %v8694_v24 }
 0x302   : > { %12809 = vst [vmem:[#allocation78_spill] sm:$0xff] %v8741_v31  ;;  %v8743_v9 = vpop.eup %6166  ;;  %6168 = vpow2.f32 %v2974_v13  ;;  %v3214_v44 = vsel %vm2673_vm6, %v8741_v31, 0.0 }
 0x303   : > { %6170 = vpow2.f32 %v3050_v22  ;;  %v3130_v56 = vsel %vm2673_vm6, %v8743_v9, 0.0 }
 0x304   : > { %6172 = vpow2.f32 %v3006_v26  ;;  %v2886_v26 = vsub.f32 %v8272_v12, %v8593_v38 }
 0x305   : > { %2780 = vmax.xlane.f32.xlu2 %v2779_v18  ;;  %2864 = vmax.xlane.f32.xlu0 %v2863_v40  ;;  %v2766_v16 = vpop.xlane.xlu0 %2765  ;;  %v3154_v18 = vsel %vm2673_vm6, %v8715_v47, 0.0  ;;  %v3220_v40 = vsel %vm2673_vm6, %v8721_v14, 0.0  ;;  %6174 = vpow2.f32 %v3046_v63  ;;  %v12817_v63 = vld [vmem:[#allocation99_spill] sm:$0xff] }
 0x306   : > { %3113 = vadd.xlane.f32.xlu1 %v3112_v53  ;;  %v8734_v53 = vpop.xlane.xlu2 %2690 }
 0x308   : > { %v8717_v58 = vpop.xlane.xlu1 %2768 }
 0x30d   : > { %3161 = vadd.xlane.f32.xlu2 %v3160_v33  ;;  %3155 = vadd.xlane.f32.xlu0 %v3154_v18  ;;  %v2896_v33 = vsub.f32 %v12810_v7, %v2766_v16  ;;  %v12811_v18 = vld [vmem:[#allocation61_spill] sm:$0xff]  ;;  %v2739_v47 = vpop.xlane.xlu0 %2738  ;;  %v8765_v7 = vpop.eup %6168 }
 0x30e   : > { %3221 = vadd.xlane.f32.xlu1 %v3220_v40  ;;  %v2592_v40 = vadd.f32 %v8142_v10, %v12811_v18  ;;  %v8758_v13 = vpop.xlane.xlu2 %2726  ;;  %12812 = vst [vmem:[#allocation44_spill] sm:$0xff] %v8765_v7  ;;  %v8767_v10 = vpop.eup %6170  ;;  %v2887_v1 = vsub.f32 %v7865_v49, %v2739_v47 }
 0x30f   : > { %v2990_v57 = vmul.f32 1.442695, %v2896_v33  ;;  %12813 = vst [vmem:[#allocation74_spill] sm:$0xff] %v8767_v10  ;;  %v3124_v33 = vsel %vm2673_vm6, %v8765_v7, 0.0 }
 0x310   : > { %v8739_v15 = vpop.xlane.xlu1 %3059  ;;  %v8763_v16 = vadd.f32 %v8158_v39, %v2592_v40  ;;  %v8780_v40 = vpop.eup %6172  ;;  %v2972_v5 = vmul.f32 1.442695, %v2887_v1 }
 0x311   : > { %6176 = vpow2.f32 %v2990_v57  ;;  %12814 = vst [vmem:[#allocation72_spill] sm:$0xff] %v8780_v40  ;;  %v8786_v47 = vpop.eup %6174  ;;  %v2879_v57 = vsub.f32 %v12817_v63, %v8650_v54  ;;  %vm3255_vm12 = vweird.f32 %v8739_v15 }
 0x312   : > { %v2827_v39 = vsel %vm2673_vm6, %v8763_v16, -inf  ;;  %12815 = vst [vmem:[#allocation81_spill] sm:$0xff] %v8786_v47  ;;  %v3232_v1 = vsel %vm2673_vm6, %v8786_v47, 0.0 }
 0x313   : > { %v2956_v12 = vmul.f32 1.442695, %v2879_v57 }
 0x315   : > { %3215 = vadd.xlane.f32.xlu2 %v3214_v44  ;;  %2792 = vmax.xlane.f32.xlu0 %v2791_v35  ;;  %v2916_v35 = vsub.f32 %v8254_v50, %v8563_v21  ;;  %v3238_v44 = vsel %vm2673_vm6, %v8767_v10, 0.0  ;;  %v2703_v50 = vpop.xlane.xlu0 %2702  ;;  %v2986_v21 = vmul.f32 1.442695, %v2894_v2 }
 0x316   : > { %3131 = vadd.xlane.f32.xlu1 %v3130_v56 }
 0x317   : > { %v3030_v18 = vmul.f32 1.442695, %v2916_v35  ;;  %v8788_v56 = vpop.eup %6176  ;;  %v12818_v35 = vld [vmem:[#allocation23_spill] sm:$0xff] }
 0x318   : > { %v8760_v22 = vpop.xlane.xlu1 %2858  ;;  %12816 = vst [vmem:[#allocation30_spill] sm:$0xff] %v8788_v56  ;;  %v2875_v2 = vsub.f32 %v12818_v35, %v2703_v50  ;;  %v12821_v35 = vld [vmem:[#allocation10_spill] sm:$0xff] }
 0x319   : > { %6178 = vpow2.f32 %v3030_v18 }
 0x31a   : > { %6180 = vpow2.f32 %v2986_v21  ;;  %v2948_v54 = vmul.f32 1.442695, %v2875_v2 }
 0x31b   : > { %6182 = vpow2.f32 %v2972_v5 }
 0x31d   : > { %3125 = vadd.xlane.f32.xlu2 %v3124_v33  ;;  %2828 = vmax.xlane.f32.xlu0 %v2827_v39  ;;  %v3172_v33 = vsel %vm2673_vm6, %v8780_v40, 0.0  ;;  %v3148_v39 = vsel %vm2673_vm6, %v8788_v56, 0.0 }
 0x31e   : > { %3239 = vadd.xlane.f32.xlu1 %v3238_v44  ;;  %v2970_v44 = vmul.f32 1.442695, %v2886_v26  ;;  %v12822_v26 = vld [vmem:[#allocation76_spill] sm:$0xff] }
 0x31f   : > { %v8801_v38 = vpop.eup %6178  ;;  %v2891_v57 = vsub.f32 %v12822_v26, %v8672_v55 }
 0x320   : > { %v8782_v61 = vpop.xlane.xlu2 %3071  ;;  %v8784_v49 = vpop.xlane.xlu1 %2696  ;;  %12819 = vst [vmem:[#allocation8_spill] sm:$0xff] %v8801_v38  ;;  %6184 = vpow2.f32 %v2970_v44 }
 0x321   : > { %v8807_v21 = vpop.eup %6180  ;;  %6186 = vpow2.f32 %v2956_v12  ;;  %v2980_v47 = vmul.f32 1.442695, %v2891_v57  ;;  %vm3315_vm0 = vweird.f32 %v8782_v61 }
 0x322   : > { %12820 = vst [vmem:[#allocation75_spill] sm:$0xff] %v8807_v21  ;;  %v8811_v63 = vpop.eup %6182  ;;  %6188 = vpow2.f32 %v2948_v54  ;;  %v3142_v2 = vsel %vm2673_vm6, %v8807_v21, 0.0 }
 0x325   : > { %3233 = vadd.xlane.f32.xlu2 %v3232_v1  ;;  %3173 = vadd.xlane.f32.xlu0 %v3172_v33  ;;  %v2922_v1 = vsub.f32 %v12821_v35, %v8623_v23  ;;  %v3208_v33 = vsel %vm2673_vm6, %v8801_v38, 0.0 }
 0x326   : > { %3149 = vadd.xlane.f32.xlu1 %v3148_v39  ;;  %v3121_v39 = vsel %vm2673_vm6, %v8811_v63, 0.0  ;;  %v8823_v23 = vpop.eup %6184 }
 0x327   : > { %v3042_v44 = vmul.f32 1.442695, %v2922_v1  ;;  %v8827_v54 = vpop.eup %6186 }
 0x328   : > { %v8803_v18 = vpop.xlane.xlu0 %3083  ;;  %v8805_v50 = vpop.xlane.xlu2 %2744  ;;  %v3097_v57 = vsel %vm2673_vm6, %v8827_v54, 0.0 }
 0x329   : > { %v8809_v5 = vpop.xlane.xlu1 %2732  ;;  %v8831_v26 = vpop.eup %6188  ;;  %6190 = vpow2.f32 %v3042_v44  ;;  %vm3375_vm4 = vweird.f32 %v8803_v18 }
 0x32a   : > { %12823 = vst [vmem:[#allocation13_spill] sm:$0xff] %v8831_v26  ;;  %6192 = vpow2.f32 %v2980_v47  ;;  %v3085_v38 = vsel %vm2673_vm6, %v8831_v26, 0.0 }
 0x32d   : > { %3143 = vadd.xlane.f32.xlu2 %v3142_v2  ;;  %3209 = vadd.xlane.f32.xlu0 %v3208_v33  ;;  %v12824_v2 = vld [vmem:[#allocation41_spill] sm:$0xff] }
 0x32e   : > { %3122 = vadd.xlane.f32.xlu1 %v3121_v39  ;;  %v2892_v33 = vsub.f32 %v12824_v2, %v8648_v41  ;;  %v3118_v39 = vsel %vm2673_vm6, %v8823_v23, 0.0 }
 0x32f   : > { %v8842_v40 = vpop.eup %6190 }
 0x330   : > { %v8825_v12 = vpop.xlane.xlu2 %3107  ;;  %v2679_v55 = vpop.xlane.xlu0 %2678  ;;  %v2982_v10 = vmul.f32 1.442695, %v2892_v33  ;;  %12825 = vst [vmem:[#allocation77_spill] sm:$0xff] %v8842_v40  ;;  %v2897_v33 = vsub.f32 %v8405_v17, %v8717_v58  ;;  %v3226_v26 = vsel %vm2673_vm6, %v8842_v40, 0.0 }
 0x331   : > { %v8829_v35 = vpop.xlane.xlu1 %3077  ;;  %v2867_v1 = vsub.f32 %v8484_v4, %v2679_v55  ;;  %v8846_v4 = vpop.eup %6192 }
 0x332   : > { %12826 = vst [vmem:[#allocation79_spill] sm:$0xff] %v8846_v4  ;;  %6194 = vpow2.f32 %v2982_v10 }
 0x333   : > { %v2932_v44 = vmul.f32 1.442695, %v2867_v1  ;;  %v3133_v1 = vsel %vm2673_vm6, %v8846_v4, 0.0 }
 0x335   : > { %3098 = vadd.xlane.f32.xlu2 %v3097_v57  ;;  %3119 = vadd.xlane.f32.xlu0 %v3118_v39  ;;  %v12827_v57 = vld [vmem:[#allocation33_spill] sm:$0xff]  ;;  %6196 = vpow2.f32 %v2932_v44  ;;  %v12830_v44 = vld [vmem:[#allocation83_spill] sm:$0xff] }
 0x336   : > { %3086 = vadd.xlane.f32.xlu1 %v3085_v38  ;;  %v2928_v39 = vsub.f32 %v12827_v57, %v8680_v25 }
 0x338   : > { %v8844_v41 = vpop.xlane.xlu2 %2708  ;;  %v2721_v47 = vpop.xlane.xlu0 %2720 }
 0x339   : > { %v2881_v55 = vsub.f32 %v8511_v29, %v2721_v47  ;;  %v8849_v2 = vpop.xlane.xlu1 %2684  ;;  %v3054_v29 = vmul.f32 1.442695, %v2928_v39  ;;  %v2992_v47 = vmul.f32 1.442695, %v2897_v33  ;;  %v8859_v10 = vpop.eup %6194 }
 0x33a   : > { %12828 = vst [vmem:[#allocation20_spill] sm:$0xff] %v8859_v10 }
 0x33b   : > { %v2960_v38 = vmul.f32 1.442695, %v2881_v55  ;;  %v8863_v57 = vpop.eup %6196  ;;  %v2895_v55 = vsub.f32 %v12830_v44, %v8707_v51  ;;  %v12834_v44 = vld [vmem:[#allocation16_spill] sm:$0xff] }
 0x33c   : > { %12829 = vst [vmem:[#allocation84_spill] sm:$0xff] %v8863_v57  ;;  %v3061_v33 = vsel %vm2673_vm6, %v8863_v57, 0.0 }
 0x33d   : > { %3134 = vadd.xlane.f32.xlu2 %v3133_v1  ;;  %3227 = vadd.xlane.f32.xlu0 %v3226_v26  ;;  %6198 = vpow2.f32 %v2960_v38  ;;  %v2927_v26 = vsub.f32 %v8433_v45, %v8760_v22  ;;  %v3136_v38 = vsel %vm2673_vm6, %v8859_v10, 0.0 }
 0x33e   : > { %6200 = vpow2.f32 %v3054_v29 }
 0x33f   : > { %6202 = vpow2.f32 %v2992_v47 }
 0x340   : > { %v2757_v31 = vpop.xlane.xlu0 %2756  ;;  %v8861_v25 = vpop.xlane.xlu2 %2834 }
 0x341   : > { %v2893_v17 = vsub.f32 %v8537_v59, %v2757_v31  ;;  %v8866_v58 = vpop.xlane.xlu1 %2786  ;;  %v2988_v59 = vmul.f32 1.442695, %v2895_v55  ;;  %v3052_v31 = vmul.f32 1.442695, %v2927_v26  ;;  %v2873_v26 = vsub.f32 %v8446_v46, %v8784_v49 }
 0x343   : > { %v2984_v39 = vmul.f32 1.442695, %v2893_v17  ;;  %v8876_v1 = vpop.eup %6198  ;;  %v2944_v40 = vmul.f32 1.442695, %v2873_v26 }
 0x344   : > { %12831 = vst [vmem:[#allocation31_spill] sm:$0xff] %v8876_v1  ;;  %v3103_v51 = vsel %vm2673_vm6, %v8876_v1, 0.0  ;;  %v8880_v29 = vpop.eup %6200 }
 0x345   : > { %6204 = vpow2.f32 %v2984_v39  ;;  %3062 = vadd.xlane.f32.xlu2 %v3061_v33  ;;  %3137 = vadd.xlane.f32.xlu0 %v3136_v38  ;;  %12832 = vst [vmem:[#allocation61_spill] sm:$0xff] %v8880_v29  ;;  %v8886_v47 = vpop.eup %6202  ;;  %v2871_v39 = vsub.f32 %v12834_v44, %v8734_v53 }
 0x346   : > { %3104 = vadd.xlane.f32.xlu1 %v3103_v51  ;;  %12833 = vst [vmem:[#allocation99_spill] sm:$0xff] %v8886_v47  ;;  %6206 = vpow2.f32 %v2988_v59  ;;  %v3151_v33 = vsel %vm2673_vm6, %v8886_v47, 0.0  ;;  %v3244_v51 = vsel %vm2673_vm6, %v8880_v29, 0.0 }
 0x347   : > { %6208 = vpow2.f32 %v3052_v31  ;;  %v2940_v59 = vmul.f32 1.442695, %v2871_v39  ;;  %v2885_v39 = vsub.f32 %v8467_v52, %v8809_v5 }
 0x348   : > { %v8882_v45 = vpop.xlane.xlu0 %3101  ;;  %v8884_v22 = vpop.xlane.xlu2 %3089 }
 0x349   : > { %v8888_v17 = vpop.xlane.xlu1 %2822  ;;  %6210 = vpow2.f32 %v2940_v59 }
 0x34a   : > { %6212 = vpow2.f32 %v2944_v40 }
 0x34b   : > { %v8892_v55 = vpop.eup %6204 }
 0x34c   : > { %12835 = vst [vmem:[#allocation23_spill] sm:$0xff] %v8892_v55  ;;  %v3139_v38 = vsel %vm2673_vm6, %v8892_v55, 0.0  ;;  %v8902_v53 = vpop.eup %6206  ;;  %v12838_v55 = vld [vmem:[#allocation48_spill] sm:$0xff] }
 0x34d   : > { %3152 = vadd.xlane.f32.xlu2 %v3151_v33  ;;  %3245 = vadd.xlane.f32.xlu0 %v3244_v51  ;;  %12836 = vst [vmem:[#allocation10_spill] sm:$0xff] %v8902_v53  ;;  %v8906_v46 = vpop.eup %6208  ;;  %v2883_v29 = vsub.f32 %v12838_v55, %v8758_v13  ;;  %v2968_v51 = vmul.f32 1.442695, %v2885_v39  ;;  %v2889_v55 = vsub.f32 %v8464_v30, %v8805_v50 }
 0x34e   : > { %3140 = vadd.xlane.f32.xlu1 %v3139_v38  ;;  %12837 = vst [vmem:[#allocation76_spill] sm:$0xff] %v8906_v46  ;;  %v3241_v33 = vsel %vm2673_vm6, %v8906_v46, 0.0  ;;  %v3145_v38 = vsel %vm2673_vm6, %v8902_v53, 0.0  ;;  %v2869_v30 = vsub.f32 %v8514_v37, %v8849_v2  ;;  %v2915_v2 = vsub.f32 %v8561_v3, %v8888_v17 }
 0x34f   : > { %v8919_v59 = vpop.eup %6210 }
 0x350   : > { %v2811_v31 = vpop.xlane.xlu0 %2810  ;;  %v8904_v44 = vpop.xlane.xlu2 %2798  ;;  %12839 = vst [vmem:[#allocation41_spill] sm:$0xff] %v8919_v59  ;;  %v3028_v17 = vmul.f32 1.442695, %v2915_v2 }
 0x351   : > { %v2911_v49 = vsub.f32 %v8582_v60, %v2811_v31  ;;  %v8909_v1 = vpop.xlane.xlu1 %3167  ;;  %v2964_v60 = vmul.f32 1.442695, %v2883_v29  ;;  %v8923_v40 = vpop.eup %6212  ;;  %v2903_v29 = vsub.f32 %v8543_v6, %v8866_v58 }
 0x352   : > { %12840 = vst [vmem:[#allocation33_spill] sm:$0xff] %v8923_v40  ;;  %v3799_v34 = vand.u32 2147483647, %v8909_v1 }
 0x353   : > { %v3020_v26 = vmul.f32 1.442695, %v2911_v49  ;;  %v3004_v50 = vmul.f32 1.442695, %v2903_v29 }
 0x355   : > { %3242 = vadd.xlane.f32.xlu2 %v3241_v33  ;;  %3146 = vadd.xlane.f32.xlu0 %v3145_v38  ;;  %6214 = vpow2.f32 %v3020_v26  ;;  %v3079_v26 = vsel %vm2673_vm6, %v8923_v40, 0.0  ;;  %v3073_v33 = vsel %vm2673_vm6, %v8919_v59, 0.0 }
 0x356   : > { %6216 = vpow2.f32 %v2964_v60 }
 0x357   : > { %6218 = vpow2.f32 %v2968_v51 }
 0x358   : > { %v2847_v31 = vpop.xlane.xlu0 %2846  ;;  %v8921_v13 = vpop.xlane.xlu2 %3179 }
 0x359   : > { %v2923_v52 = vsub.f32 %v8605_v0, %v2847_v31  ;;  %v8926_v5 = vpop.xlane.xlu1 %3203  ;;  %v2976_v0 = vmul.f32 1.442695, %v2889_v55  ;;  %v2936_v55 = vmul.f32 1.442695, %v2869_v30 }
 0x35b   : > { %v3044_v49 = vmul.f32 1.442695, %v2923_v52  ;;  %v8932_v39 = vpop.eup %6214  ;;  %v2877_v52 = vsub.f32 %v8508_v36, %v8844_v41 }
 0x35c   : > { %12841 = vst [vmem:[#allocation83_spill] sm:$0xff] %v8932_v39  ;;  %v3193_v6 = vsel %vm2673_vm6, %v8932_v39, 0.0  ;;  %v8943_v58 = vpop.eup %6216 }
 0x35d   : > { %6220 = vpow2.f32 %v3044_v49  ;;  %3080 = vadd.xlane.f32.xlu2 %v3079_v26  ;;  %3074 = vadd.xlane.f32.xlu0 %v3073_v33  ;;  %12842 = vst [vmem:[#allocation16_spill] sm:$0xff] %v8943_v58  ;;  %v8949_v51 = vpop.eup %6218  ;;  %v3109_v26 = vsel %vm2673_vm6, %v8943_v58, 0.0  ;;  %v2952_v41 = vmul.f32 1.442695, %v2877_v52  ;;  %v2919_v52 = vsub.f32 %v8540_v19, %v8861_v25 }
 0x35e   : > { %6222 = vrcp.f32 %v8694_v24  ;;  %3194 = vadd.xlane.f32.xlu1 %v3193_v6  ;;  %12843 = vst [vmem:[#allocation48_spill] sm:$0xff] %v8949_v51  ;;  %v3115_v49 = vsel %vm2673_vm6, %v8949_v51, 0.0 }
 0x35f   : > { %6224 = vpow2.f32 %v2976_v0 }
 0x360   : > { %v8945_v38 = vpop.xlane.xlu0 %3191  ;;  %v8947_v60 = vpop.xlane.xlu2 %2816  ;;  %6226 = vpow2.f32 %v3004_v50 }
 0x361   : > { %v2841_v31 = vpop.xlane.xlu1 %2840  ;;  %6228 = vrcp.f32 %v8739_v15 }
 0x362   : > { %6230 = vpow2.f32 %v2936_v55  ;;  %v2921_v2 = vsub.f32 %v8633_v43, %v2841_v31 }
 0x363   : > { %v8953_v37 = vpop.eup %6220  ;;  %6232 = vrcp.f32 %v8782_v61 }
 0x364   : > { %12844 = vst [vmem:[#allocation102_spill] sm:$0xff] %v8953_v37  ;;  %v8957_v29 = vpop.eup %6222  ;;  %v3229_v36 = vsel %vm2673_vm6, %v8953_v37, 0.0  ;;  %6234 = vpow2.f32 %v2952_v41  ;;  %v3036_v41 = vmul.f32 1.442695, %v2919_v52  ;;  %v3040_v43 = vmul.f32 1.442695, %v2921_v2 }
 0x365   : > { %3116 = vadd.xlane.f32.xlu2 %v3115_v49  ;;  %3110 = vadd.xlane.f32.xlu0 %v3109_v26  ;;  %v3431_v3 = vmul.f32 %v8957_v29, %v8694_v24  ;;  %v8968_v33 = vpop.eup %6224  ;;  %6236 = vpow2.f32 %v3028_v17  ;;  %v3441_v52 = vand.u32 2147483648, %v8694_v24  ;;  %v2907_v2 = vsub.f32 %v8585_v8, %v8904_v44 }
 0x366   : > { %12845 = vst [vmem:[#allocation103_spill] sm:$0xff] %v8968_v33  ;;  %3230 = vadd.xlane.f32.xlu1 %v3229_v36  ;;  %v8974_v50 = vpop.eup %6226  ;;  %v3127_v46 = vsel %vm2673_vm6, %v8968_v33, 0.0  ;;  %6238 = vrcp.f32 %v8803_v18  ;;  %vm3436_vm7 = vweird.f32 %v8957_v29  ;;  %v3439_v44 = vand.u32 2147483647, %v8694_v24 }
 0x367   : > { %12846 = vst [vmem:[#allocation104_spill] sm:$0xff] %v8974_v50  ;;  %v8977_v6 = vpop.eup %6228  ;;  %v3432_v49 = vsub.f32 1.0, %v3431_v3  ;;  %v3169_v36 = vsel %vm2673_vm6, %v8974_v50, 0.0  ;;  %6240 = vpow2.f32 %v3036_v41  ;;  %vm9023_vm9 = vmor %vm3435_vm8, %vm3436_vm7  ;;  %v3442_v39 = vor.u32 1.1754944e-38, %v3441_v52 }
 0x368   : > { %v8970_v0 = vpop.xlane.xlu0 %3065  ;;  %v8972_v30 = vpop.xlane.xlu2 %2852  ;;  %v3251_v40 = vmul.f32 %v8977_v6, %v8739_v15  ;;  %6242 = vpow2.f32 %v3040_v43  ;;  %vm3440_vm10 = vcmp.eq.f32.partialorder %v3439_v44, 8.507059e+37  ;;  %vm3256_vm11 = vweird.f32 %v8977_v6 }
 0x369   : > { %v2805_v55 = vpop.xlane.xlu1 %2804  ;;  %v8982_v26 = vpop.eup %6230  ;;  %v3433_v25 = vmul.f32 %v8957_v29, %v3432_v49  ;;  %6244 = vrcp.f32 %v8825_v12  ;;  %vm9048_vm13 = vmor %vm3255_vm12, %vm3256_vm11  ;;  %vm3345_vm12 = vweird.f32 %v8829_v35 }
 0x36a   : > { %12847 = vst [vmem:[#allocation105_spill] sm:$0xff] %v8982_v26  ;;  %v8990_v19 = vpop.eup %6232  ;;  %v3067_v31 = vsel %vm2673_vm6, %v8982_v26, 0.0 }
 0x36b   : > { %v8996_v3 = vpop.eup %6234  ;;  %v3311_v49 = vmul.f32 %v8990_v19, %v8782_v61  ;;  %vm3316_vm14 = vweird.f32 %v8990_v19 }
 0x36c   : > { %12848 = vst [vmem:[#allocation106_spill] sm:$0xff] %v8996_v3  ;;  %v9000_v50 = vpop.eup %6236  ;;  %v3091_v41 = vsel %vm2673_vm6, %v8996_v3, 0.0  ;;  %vm9086_vm1 = vmor %vm3315_vm0, %vm3316_vm14 }
 0x36d   : > { %3170 = vadd.xlane.f32.xlu2 %v3169_v36  ;;  %3128 = vadd.xlane.f32.xlu0 %v3127_v46  ;;  %12849 = vst [vmem:[#allocation107_spill] sm:$0xff] %v9000_v50  ;;  %v3252_v46 = vsub.f32 1.0, %v3251_v40  ;;  %v3434_v36 = vadd.f32 %v8957_v29, %v3433_v25  ;;  %v3205_v59 = vsel %vm2673_vm6, %v9000_v50, 0.0  ;;  %v9018_v8 = vpop.eup %6238 }
 0x36e   : > { %3068 = vadd.xlane.f32.xlu1 %v3067_v31  ;;  %v2909_v31 = vsub.f32 %v8658_v42, %v2805_v55  ;;  %v3012_v55 = vmul.f32 1.442695, %v2907_v2  ;;  %v9030_v50 = vpop.eup %6240  ;;  %v3371_v24 = vmul.f32 %v9018_v8, %v8803_v18  ;;  %vm3376_vm3 = vweird.f32 %v9018_v8 }
 0x36f   : > { %v3253_v42 = vmul.f32 %v8977_v6, %v3252_v46  ;;  %v3438_v43 = vsel %vm9023_vm9, %v8957_v29, %v3434_v36  ;;  %12852 = vst [vmem:[#allocation108_spill] sm:$0xff] %v9030_v50  ;;  %vm9120_vm5 = vmor %vm3375_vm4, %vm3376_vm3  ;;  %vm3495_vm9 = vweird.f32 %v8825_v12  ;;  %vm3405_vm3 = vweird.f32 %v8884_v22 }
 0x370   : > { %v8998_v17 = vpop.xlane.xlu2 %3197  ;;  %v2775_v37 = vpop.xlane.xlu0 %2774  ;;  %v3016_v3 = vmul.f32 1.442695, %v2909_v31  ;;  %v3443_v29 = vsel %vm3440_vm10, %v3442_v39, %v3438_v43  ;;  %v3261_v31 = vand.u32 2147483648, %v8739_v15  ;;  %v3372_v39 = vsub.f32 1.0, %v3371_v24 }
 0x371   : > { %v2899_v40 = vsub.f32 %v8670_v28, %v2775_v37  ;;  %v9012_v26 = vpop.xlane.xlu1 %3185  ;;  %v3312_v37 = vsub.f32 1.0, %v3311_v49  ;;  %v3254_v49 = vadd.f32 %v8977_v6, %v3253_v42  ;;  %v3259_v42 = vand.u32 2147483647, %v8739_v15 }
 0x373   : > { %v2996_v25 = vmul.f32 1.442695, %v2899_v40  ;;  %v3313_v36 = vmul.f32 %v8990_v19, %v3312_v37  ;;  %v12854_v40 = vld [vmem:[#allocation80_spill] sm:$0xff]  ;;  %vm3260_vm15 = vcmp.eq.f32.partialorder %v3259_v42, 8.507059e+37 }
 0x374   : > { %v2913_v28 = vsub.f32 %v12854_v40, %v8947_v60  ;;  %v3319_v60 = vand.u32 2147483647, %v8782_v61 }
 0x375   : > { %3206 = vadd.xlane.f32.xlu2 %v3205_v59  ;;  %3092 = vadd.xlane.f32.xlu0 %v3091_v41  ;;  %6246 = vpow2.f32 %v2996_v25  ;;  %v9036_v41 = vpop.eup %6242  ;;  %v3314_v43 = vadd.f32 %v8990_v19, %v3313_v36  ;;  %v3373_v36 = vmul.f32 %v9018_v8, %v3372_v39 }
 0x376   : > { %12853 = vst [vmem:[#allocation109_spill] sm:$0xff] %v9036_v41  ;;  %v9040_v2 = vpop.eup %6244  ;;  %6248 = vpow2.f32 %v3012_v55  ;;  %v3223_v37 = vsel %vm2673_vm6, %v9036_v41, 0.0  ;;  %v3258_v55 = vsel %vm9048_vm13, %v8977_v6, %v3254_v49  ;;  %v3262_v6 = vor.u32 1.1754944e-38, %v3261_v31 }
 0x377   : > { %6250 = vpow2.f32 %v3016_v3  ;;  %v3321_v3 = vand.u32 2147483648, %v8782_v61  ;;  %v3491_v25 = vmul.f32 %v9040_v2, %v8825_v12  ;;  %v3024_v49 = vmul.f32 1.442695, %v2913_v28 }
 0x378   : > { %v9034_v59 = vpop.xlane.xlu2 %2780  ;;  %v2865_v46 = vpop.xlane.xlu0 %2864  ;;  %6252 = vrcp.f32 %v8829_v35  ;;  %v3318_v61 = vsel %vm9086_vm1, %v8990_v19, %v3314_v43  ;;  %vm3320_vm2 = vcmp.eq.f32.partialorder %v3319_v60, 8.507059e+37  ;;  %vm3496_vm8 = vweird.f32 %v9040_v2 }
 0x379   : > { %v2929_v52 = vsub.f32 %v8700_v32, %v2865_v46  ;;  %v3217_v32 = vsel %vm2673_vm6, %v9030_v50, 0.0  ;;  %v9069_v46 = vpop.xlane.xlu1 %3113  ;;  %6254 = vrcp.f32 %v8882_v45  ;;  %v3492_v42 = vsub.f32 1.0, %v3491_v25  ;;  %vm9163_vm10 = vmor %vm3495_vm9, %vm3496_vm8 }
 0x37a   : > { %6256 = vrcp.f32 %v8884_v22  ;;  %v3322_v39 = vor.u32 1.1754944e-38, %v3321_v3  ;;  %v3374_v50 = vadd.f32 %v9018_v8, %v3373_v36  ;;  %v12865_v36 = vld [vmem:[#allocation101_spill] sm:$0xff]  ;;  %vm3465_vm1 = vweird.f32 %v8882_v45 }
 0x37b   : > { %v9064_v15 = vpop.eup %6246  ;;  %v3056_v24 = vmul.f32 1.442695, %v2929_v52  ;;  %vm3795_vm8 = vweird.f32 %v8909_v1 }
 0x37c   : > { %12857 = vst [vmem:[#allocation80_spill] sm:$0xff] %v9064_v15  ;;  %v3157_v40 = vsel %vm2673_vm6, %v9064_v15, 0.0  ;;  %v9074_v44 = vpop.eup %6248  ;;  %v3323_v43 = vsel %vm3320_vm2, %v3322_v39, %v3318_v61 }
 0x37d   : > { %3224 = vadd.xlane.f32.xlu2 %v3223_v37  ;;  %3218 = vadd.xlane.f32.xlu0 %v3217_v32  ;;  %12858 = vst [vmem:[#allocation110_spill] sm:$0xff] %v9074_v44  ;;  %v9079_v52 = vpop.eup %6250  ;;  %v12860_v37 = vld [vmem:[#allocation87_spill] sm:$0xff]  ;;  %v3263_v32 = vsel %vm3260_vm15, %v3262_v6, %v3258_v55  ;;  %6258 = vpow2.f32 %v3056_v24  ;;  %v3381_v55 = vand.u32 2147483648, %v8803_v18  ;;  %v12864_v6 = vld [vmem:[#allocation17_spill] sm:$0xff]  ;;  %v3181_v60 = vsel %vm2673_vm6, %v9074_v44, 0.0 }
 0x37e   : > { %3158 = vadd.xlane.f32.xlu1 %v3157_v40  ;;  %12859 = vst [vmem:[#allocation111_spill] sm:$0xff] %v9079_v52  ;;  %v9082_v31 = vmul.f32 %v12860_v37, %v3443_v29  ;;  %v3379_v29 = vand.u32 2147483647, %v8803_v18  ;;  %6260 = vpow2.f32 %v3024_v49  ;;  %v2925_v37 = vsub.f32 %v12864_v6, %v8972_v30  ;;  %v9101_v25 = vpop.eup %6252  ;;  %v12872_v18 = vld [vmem:[#allocation73_spill] sm:$0xff] }
 0x37f   : > { %v3187_v19 = vsel %vm2673_vm6, %v9079_v52, 0.0  ;;  %v9109_v3 = vpop.eup %6254  ;;  %v3493_v24 = vmul.f32 %v9040_v2, %v3492_v42  ;;  %6262 = vrcp.f32 %v8909_v1  ;;  %v9118_v28 = vmul.f32 %v12865_v36, %v3263_v32 }
 0x380   : > { %12861 = vst [vmem:[#allocation87_spill] sm:$0xff] %v9082_v31  ;;  %v9090_v15 = vpop.xlane.xlu0 %3155  ;;  %v9095_v40 = vpop.xlane.xlu2 %3161  ;;  %v4234_v49 = vmul.f32 1.442695, %v9082_v31  ;;  %vm9124_vm7 = vcmp.eq.f32.partialorder %v3379_v29, 8.507059e+37  ;;  %v3341_v42 = vmul.f32 %v9101_v25, %v8829_v35  ;;  %v3048_v39 = vmul.f32 1.442695, %v2925_v37 }
 0x381   : > { %v9112_v30 = vpop.eup %6256  ;;  %12866 = vst [vmem:[#allocation17_spill] sm:$0xff] %v9118_v28  ;;  %v3378_v32 = vsel %vm9120_vm5, %v9018_v8, %v3374_v50  ;;  %v3382_v36 = vor.u32 1.1754944e-38, %v3381_v55  ;;  %6264 = vrcp.f32 %v8921_v13  ;;  %v9139_v29 = vpop.xlane.xlu1 %3221  ;;  %v3494_v52 = vadd.f32 %v9040_v2, %v3493_v24 }
 0x382   : > { %v3461_v37 = vmul.f32 %v9109_v3, %v8882_v45  ;;  %v3499_v50 = vand.u32 2147483647, %v8825_v12  ;;  %v3501_v8 = vand.u32 2147483648, %v8825_v12  ;;  %6266 = vrcp.f32 %v8926_v5 }
 0x383   : > { %v3383_v55 = vsel %vm9124_vm7, %v3382_v36, %v3378_v32  ;;  %v3342_v24 = vsub.f32 1.0, %v3341_v42  ;;  %6268 = vpow2.f32 %v3048_v39  ;;  %v4210_v44 = vmul.f32 1.442695, %v9118_v28  ;;  %v12877_v39 = vld [vmem:[#allocation25_spill] sm:$0xff] }
 0x384   : > { %v9172_v32 = vperm.slane %v12877_v39, 5  ;;  %v3498_v36 = vsel %vm9163_vm10, %v9040_v2, %v3494_v52  ;;  %6270 = vrcp.f32 %v8945_v38  ;;  %v3502_v58 = vor.u32 1.1754944e-38, %v3501_v8 }
 0x385   : > { %3188 = vadd.xlane.f32.xlu2 %v3187_v19  ;;  %3182 = vadd.xlane.f32.xlu0 %v3181_v60  ;;  %v9130_v19 = vpop.eup %6258  ;;  %v9133_v60 = vmul.f32 %v12872_v18, %v3323_v43  ;;  %v3401_v43 = vmul.f32 %v9112_v30, %v8884_v22  ;;  %6272 = vpow2.f32 %v4234_v49  ;;  %vm3500_vm11 = vcmp.eq.f32.partialorder %v3499_v50, 8.507059e+37 }
 0x386   : > { %12871 = vst [vmem:[#allocation101_spill] sm:$0xff] %v9130_v19  ;;  %v9141_v31 = vpop.eup %6260  ;;  %v3247_v6 = vsel %vm2673_vm6, %v9130_v19, 0.0  ;;  %v3343_v12 = vmul.f32 %v9101_v25, %v3342_v24  ;;  %6274 = vpow2.f32 %v4210_v44  ;;  %vm3346_vm13 = vweird.f32 %v9101_v25 }
 0x387   : > { %12873 = vst [vmem:[#allocation73_spill] sm:$0xff] %v9133_v60  ;;  %v9157_v41 = vpop.eup %6262  ;;  %v4218_v57 = vmul.f32 1.442695, %v9133_v60  ;;  %3248 = vadd.xlane.f32.xlu1 %v3247_v6  ;;  %v3199_v42 = vsel %vm2673_vm6, %v9141_v31, 0.0  ;;  %v3462_v60 = vsub.f32 1.0, %v3461_v37  ;;  %v3402_v28 = vsub.f32 1.0, %v3401_v43  ;;  %vm9231_vm0 = vmor %vm3345_vm12, %vm3346_vm13 }
 0x388   : > { %12874 = vst [vmem:[#allocation112_spill] sm:$0xff] %v9141_v31  ;;  %v2793_v18 = vpop.xlane.xlu0 %2792  ;;  %v9167_v61 = vpop.xlane.xlu2 %3215  ;;  %v12878_v6 = vld [vmem:[#allocation19_spill] sm:$0xff]  ;;  %v3351_v31 = vand.u32 2147483648, %v8829_v35  ;;  %v3791_v2 = vmul.f32 %v9157_v41, %v8909_v1  ;;  %v3503_v37 = vsel %vm3500_vm11, %v3502_v58, %v3498_v36  ;;  %v3349_v43 = vand.u32 2147483647, %v8829_v35 }
 0x389   : > { %v9178_v19 = vpop.eup %6264  ;;  %v9181_v33 = vmul.f32 %v12878_v6, %v3383_v55  ;;  %v2905_v51 = vsub.f32 %v8737_v11, %v2793_v18  ;;  %v3463_v55 = vmul.f32 %v9109_v3, %v3462_v60  ;;  %v3403_v11 = vmul.f32 %v9112_v30, %v3402_v28  ;;  %v9204_v44 = vpop.xlane.xlu1 %3131 }
 0x38a   : > { %v9188_v52 = vpop.eup %6266  ;;  %v3851_v49 = vmul.f32 %v9178_v19, %v8921_v13  ;;  %6276 = vpow2.f32 %v4218_v57  ;;  %v9202_v58 = vor.u32 1.1754944e-38, %v3351_v31  ;;  %v9212_v28 = vadd.f32 %v9101_v25, %v3343_v12 }
 0x38b   : > { %12879 = vst [vmem:[#allocation25_spill] sm:$0xff] %v9181_v33  ;;  %v9192_v8 = vpop.eup %6268  ;;  %v3008_v50 = vmul.f32 1.442695, %v2905_v51  ;;  %v9199_v24 = vmul.f32 1.442695, %v9181_v33  ;;  %v3792_v57 = vsub.f32 1.0, %v3791_v2  ;;  %vm3466_vm14 = vweird.f32 %v9109_v3 }
 0x38c   : > { %12880 = vst [vmem:[#allocation19_spill] sm:$0xff] %v9192_v8  ;;  %v9206_v18 = vpop.eup %6270  ;;  %v3469_v51 = vand.u32 2147483647, %v8882_v45  ;;  %vm3406_vm15 = vweird.f32 %v9112_v30  ;;  %v3971_v31 = vmul.f32 %v9188_v52, %v8926_v5  ;;  %v3235_v36 = vsel %vm2673_vm6, %v9192_v8, 0.0  ;;  %vm9244_vm2 = vmor %vm3465_vm1, %vm3466_vm14 }
 0x38d   : > { %3200 = vadd.xlane.f32.xlu0 %v3199_v42  ;;  %v12881_v42 = vld [vmem:[#allocation66_spill] sm:$0xff]  ;;  %v9221_v6 = vpop.eup %6272  ;;  %v3404_v12 = vadd.f32 %v9112_v30, %v3403_v11  ;;  %6278 = vpow2.f32 %v3008_v50  ;;  %v3471_v8 = vand.u32 2147483648, %v8882_v45  ;;  %v3911_v11 = vmul.f32 %v9206_v18, %v8945_v38  ;;  %vm9264_vm5 = vmor %vm3405_vm3, %vm3406_vm15 }
 0x38e   : > { %v9209_v60 = vmul.f32 %v12881_v42, %v3503_v37  ;;  %v3464_v37 = vadd.f32 %v9109_v3, %v3463_v55  ;;  %v3852_v42 = vsub.f32 1.0, %v3851_v49  ;;  %v9225_v2 = vpop.eup %6274  ;;  %v3411_v55 = vand.u32 2147483648, %v8884_v22 }
 0x38f   : > { %v3793_v45 = vmul.f32 %v9157_v41, %v3792_v57  ;;  %6280 = vrcp.f32 %v8970_v0  ;;  %vm9258_vm4 = vcmp.eq.f32.partialorder %v3469_v51, 8.507059e+37  ;;  %v3972_v57 = vsub.f32 1.0, %v3971_v31 }
 0x390   : > { %12882 = vst [vmem:[#allocation66_spill] sm:$0xff] %v9209_v60  ;;  %v9240_v49 = vpop.xlane.xlu2 %3125  ;;  %v2829_v50 = vpop.xlane.xlu0 %2828  ;;  %v3468_v56 = vsel %vm9244_vm2, %v9109_v3, %v3464_v37  ;;  %v3408_v51 = vsel %vm9264_vm5, %v9112_v30, %v3404_v12  ;;  %v3853_v7 = vmul.f32 %v9178_v19, %v3852_v42  ;;  %v3472_v10 = vor.u32 1.1754944e-38, %v3471_v8 }
 0x391   : > { %12885 = vst [vmem:[#allocation113_spill] sm:$0xff] %v9240_v49  ;;  %v9252_v53 = vpop.eup %6276  ;;  %v2917_v21 = vsub.f32 %v8763_v16, %v2829_v50  ;;  %v3412_v27 = vor.u32 1.1754944e-38, %v3411_v55  ;;  %v3912_v4 = vsub.f32 1.0, %v3911_v11  ;;  %v3794_v31 = vadd.f32 %v9157_v41, %v3793_v45  ;;  %v9290_v37 = vpop.xlane.xlu1 %3239  ;;  %v12895_v55 = vld [vmem:[#allocation90_spill] sm:$0xff]  ;;  %v12902_v11 = vld [vmem:[#allocation57_spill] sm:$0xff] }
 0x392   : > { %vm3796_vm9 = vweird.f32 %v9157_v41  ;;  %vm9283_vm10 = vcmp.eq.f32.partialorder %v3349_v43, 8.507059e+37  ;;  %v3473_v16 = vsel %vm9258_vm4, %v3472_v10, %v3468_v56  ;;  %v3973_v30 = vmul.f32 %v9188_v52, %v3972_v57 }
 0x393   : > { %v9278_v49 = vpop.eup %6278  ;;  %v3032_v8 = vmul.f32 1.442695, %v2917_v21  ;;  %vm3856_vm11 = vweird.f32 %v9178_v19  ;;  %v3861_v43 = vand.u32 2147483648, %v8921_v13  ;;  %vm9298_vm12 = vmor %vm3795_vm8, %vm3796_vm9  ;;  %vm9302_vm13 = vcmp.eq.f32.partialorder %v3799_v34, 8.507059e+37  ;;  %v12900_v21 = vld [vmem:[#allocation7_spill] sm:$0xff] }
 0x394   : > { %12892 = vst [vmem:[#allocation114_spill] sm:$0xff] %v9278_v49  ;;  %vm3855_vm14 = vweird.f32 %v8921_v13  ;;  %v3913_v56 = vmul.f32 %v9206_v18, %v3912_v4  ;;  %v9311_v10 = vmul.f32 %v12900_v21, %v3473_v16  ;;  %v3798_v34 = vsel %vm9298_vm12, %v9157_v41, %v3794_v31  ;;  %v12913_v21 = vld [vmem:[#allocation5_spill] sm:$0xff] }
 0x395   : > { %3236 = vadd.xlane.f32.xlu0 %v3235_v36  ;;  %v3409_v36 = vand.u32 2147483647, %v8884_v22  ;;  %v3801_v22 = vand.u32 2147483648, %v8909_v1  ;;  %v9292_v12 = vpop.eup %6280  ;;  %v3854_v1 = vadd.f32 %v9178_v19, %v3853_v7  ;;  %v3175_v7 = vsel %vm2673_vm6, %v9278_v49, 0.0  ;;  %vm9320_vm15 = vmor %vm3855_vm14, %vm3856_vm11 }
 0x396   : > { %12901 = vst [vmem:[#allocation90_spill] sm:$0xff] %v9311_v10  ;;  %v3859_v35 = vand.u32 2147483647, %v8921_v13  ;;  %3176 = vadd.xlane.f32.xlu1 %v3175_v7  ;;  %v3974_v4 = vadd.f32 %v9188_v52, %v3973_v30  ;;  %vm3976_vm1 = vweird.f32 %v9188_v52  ;;  %v3281_v45 = vmul.f32 %v9292_v12, %v8970_v0 }
 0x397   : > { %vm3410_vm7 = vcmp.eq.f32.partialorder %v3409_v36, 8.507059e+37  ;;  %v3802_v42 = vor.u32 1.1754944e-38, %v3801_v22  ;;  %6282 = vpow2.f32 %v3032_v8  ;;  %v3858_v41 = vsel %vm9320_vm15, %v9178_v19, %v3854_v1 }
 0x398   : > { %v3413_v3 = vsel %vm3410_vm7, %v3412_v27, %v3408_v51  ;;  %v9328_v22 = vpop.xlane.xlu2 %3233  ;;  %v3862_v13 = vor.u32 1.1754944e-38, %v3861_v43  ;;  %vm3975_vm2 = vweird.f32 %v8926_v5  ;;  %v3981_v57 = vand.u32 2147483648, %v8926_v5  ;;  %v9351_v1 = vpop.xlane.xlu0 %3173 }
 0x399   : > { %v9314_v50 = vmul.f32 %v12902_v11, %v3413_v3  ;;  %v3803_v51 = vsel %vm9302_vm13, %v3802_v42, %v3798_v34  ;;  %v3979_v31 = vand.u32 2147483647, %v8926_v5  ;;  %v3914_v16 = vadd.f32 %v9206_v18, %v3913_v56  ;;  %vm9340_vm5 = vmor %vm3975_vm2, %vm3976_vm1  ;;  %v12909_v56 = vld [vmem:[#allocation29_spill] sm:$0xff]  ;;  %v12915_v11 = vld [vmem:[#allocation40_spill] sm:$0xff] }
 0x39a   : > { %vm3916_vm3 = vweird.f32 %v9206_v18  ;;  %vm3860_vm4 = vcmp.eq.f32.partialorder %v3859_v35, 8.507059e+37  ;;  %vm3915_vm7 = vweird.f32 %v8945_v38  ;;  %v3921_v19 = vand.u32 2147483648, %v8945_v38 }
 0x39b   : > { %12903 = vst [vmem:[#allocation7_spill] sm:$0xff] %v9314_v50  ;;  %6284 = vrcp.f32 %v8998_v17  ;;  %v3863_v30 = vsel %vm3860_vm4, %v3862_v13, %v3858_v41  ;;  %v3978_v5 = vsel %vm9340_vm5, %v9188_v52, %v3974_v4  ;;  %v3919_v8 = vand.u32 2147483647, %v8945_v38  ;;  %vm9367_vm8 = vmor %vm3915_vm7, %vm3916_vm3  ;;  %v12917_v4 = vld [vmem:[#allocation42_spill] sm:$0xff] }
 0x39c   : > { %v3282_v42 = vsub.f32 1.0, %v3281_v45  ;;  %v4242_v43 = vmul.f32 1.442695, %v9209_v60  ;;  %v12908_v14 = vsel %vm9231_vm0, %v9101_v25, %v9212_v28  ;;  %v9363_v7 = vmul.f32 %v12909_v56, %v3803_v51  ;;  %v9379_v28 = vpop.xlane.xlu1 %3149  ;;  %v12919_v51 = vld [vmem:[#allocation11_spill] sm:$0xff] }
 0x39d   : > { %5033 = vperm.xlu2 %6104, %v12895_v55   ;;  %v3353_v27 = vsel %vm9283_vm10, %v9202_v58, %v12908_v14  ;;  %v3982_v52 = vor.u32 1.1754944e-38, %v3981_v57  ;;  %v9372_v33 = vpop.eup %6282  ;;  %6286 = vpow2.f32 %v9199_v24  ;;  %v4238_v25 = vmul.f32 1.442695, %v9311_v10 }
 0x39e   : > { %12910 = vst [vmem:[#allocation57_spill] sm:$0xff] %v9363_v7  ;;  %vm3980_vm0 = vcmp.eq.f32.partialorder %v3979_v31, 8.507059e+37  ;;  %v3918_v58 = vsel %vm9367_vm8, %v9206_v18, %v3914_v16  ;;  %v4230_v47 = vmul.f32 1.442695, %v9314_v50  ;;  %v9383_v34 = vmul.f32 %v12915_v11, %v3863_v30  ;;  %v12921_v30 = vld [vmem:[#allocation35_spill] sm:$0xff] }
 0x39f   : > { %12914 = vst [vmem:[#allocation29_spill] sm:$0xff] %v9372_v33  ;;  %v3983_v35 = vsel %vm3980_vm0, %v3982_v52, %v3978_v5  ;;  %v3922_v36 = vor.u32 1.1754944e-38, %v3921_v19  ;;  %v9386_v45 = vmul.f32 %v12917_v4, %v3353_v27  ;;  %vm3920_vm9 = vcmp.eq.f32.partialorder %v3919_v8, 8.507059e+37 }
 0x3a0   : > { %12916 = vst [vmem:[#allocation5_spill] sm:$0xff] %v9383_v34  ;;  %v3283_v24 = vmul.f32 %v9292_v12, %v3282_v42  ;;  %6288 = vrcp.f32 %v9012_v26  ;;  %v4282_v18 = vmul.f32 1.442695, %v9363_v7  ;;  %v3211_v57 = vsel %vm2673_vm6, %v9372_v33, 0.0  ;;  %v9399_v16 = vpop.xlane.xlu2 %3143  ;;  %v9418_v38 = vpop.xlane.xlu0 %3209 }
 0x3a1   : > { %12918 = vst [vmem:[#allocation40_spill] sm:$0xff] %v9386_v45  ;;  %v9390_v41 = vpop.eup %6284  ;;  %6290 = vpow2.f32 %v4242_v43  ;;  %v3923_v13 = vsel %vm3920_vm9, %v3922_v36, %v3918_v58  ;;  %v9397_v31 = vmul.f32 %v12919_v51, %v3983_v35  ;;  %3212 = vadd.xlane.f32.xlu1 %v3211_v57  ;;  %v4290_v3 = vmul.f32 1.442695, %v9383_v34  ;;  %v12925_v51 = vld [vmem:[#allocation12_spill] sm:$0xff]  ;;  %v12928_v58 = vld [vmem:[#allocation3_spill] sm:$0xff] }
 0x3a2   : > { %6292 = vpow2.f32 %v4238_v25  ;;  %v9403_v5 = vmul.f32 %v12921_v30, %v3923_v13  ;;  %v3284_v8 = vadd.f32 %v9292_v12, %v3283_v24  ;;  %vm3286_vm10 = vweird.f32 %v9292_v12 }
 0x3a3   : > { %12920 = vst [vmem:[#allocation42_spill] sm:$0xff] %v9397_v31  ;;  %6294 = vpow2.f32 %v4230_v47  ;;  %v6287_v19 = vpop.eup %6286  ;;  %v3941_v42 = vmul.f32 %v9390_v41, %v8998_v17  ;;  %v4222_v43 = vmul.f32 1.442695, %v9386_v45  ;;  %v3291_v14 = vand.u32 2147483648, %v8970_v0 }
 0x3a4   : > { %12922 = vst [vmem:[#allocation11_spill] sm:$0xff] %v9403_v5  ;;  %6296 = vpow2.f32 %v4282_v18  ;;  %v4306_v56 = vmul.f32 1.442695, %v9397_v31  ;;  %vm3285_vm11 = vweird.f32 %v8970_v0  ;;  %v3289_v52 = vand.u32 2147483647, %v8970_v0  ;;  %v9434_v24 = vpop.xlane.xlu1 %3122 }
 0x3a5   : > { %6108 = vset.pattern.permute.xlu2 %v12913_v21  ;;  %6298 = vrcp.f32 %v9204_v44  ;;  %vm9420_vm12 = vmor %vm3285_vm11, %vm3286_vm10  ;;  %v9425_v47 = vperm.slane %v12877_v39, 6  ;;  %v9428_v11 = vperm.slane %v12877_v39, 7  ;;  %v4298_v36 = vmul.f32 1.442695, %v9403_v5 }
 0x3a6   : > { %v9412_v27 = vpop.eup %6288  ;;  %6300 = vpow2.f32 %v4290_v3  ;;  %v3288_v0 = vsel %vm9420_vm12, %v9292_v12, %v3284_v8  ;;  %v3942_v4 = vsub.f32 1.0, %v3941_v42  ;;  %v9438_v13 = vsel %vm2673_vm6, %v9221_v6, 0.0 }
 0x3a7   : > { %v6291_v25 = vpop.eup %6290  ;;  %6302 = vpow2.f32 %v4222_v43  ;;  %v3292_v57 = vor.u32 1.1754944e-38, %v3291_v14  ;;  %v3881_v39 = vmul.f32 %v9412_v27, %v9012_v26  ;;  %v9445_v3 = vsel %vm2673_vm6, %v9225_v2, 0.0 }
 0x3a8   : > { %v6293_v35 = vpop.eup %6292  ;;  %12926 = vst [vmem:[#allocation35_spill] sm:$0xff] %v9445_v3  ;;  %6304 = vpow2.f32 %v4306_v56  ;;  %vm3290_vm13 = vcmp.eq.f32.partialorder %v3289_v52, 8.507059e+37  ;;  %v2901_v12 = vsub.f32 %v8697_v62, %v9034_v59  ;;  %v9451_v6 = vsel %vm2673_vm6, %v9252_v53, 0.0  ;;  %v9464_v59 = vpop.xlane.xlu2 %3098 }
 0x3a9   : > { %5046 = vperm.xlu0 %6106, %v9172_v32   ;;  %v6295_v18 = vpop.eup %6294  ;;  %12927 = vst [vmem:[#allocation12_spill] sm:$0xff] %v9451_v6  ;;  %v9454_v8 = vsel %vm2673_vm6, %v6287_v19, 0.0  ;;  %v3293_v42 = vsel %vm3290_vm13, %v3292_v57, %v3288_v0  ;;  %6306 = vrcp.f32 %v9434_v24  ;;  %v9460_v2 = vsel %vm2673_vm6, %v6291_v25, 0.0  ;;  %v12929_v0 = vld [vmem:[#allocation69_spill] sm:$0xff] }
 0x3aa   : > { %v6297_v30 = vpop.eup %6296  ;;  %6308 = vpow2.f32 %v4298_v36  ;;  %v3943_v14 = vmul.f32 %v9390_v41, %v3942_v4  ;;  %v3949_v62 = vand.u32 2147483647, %v8998_v17  ;;  %v9467_v53 = vsel %vm2673_vm6, %v6293_v35, 0.0 }
 0x3ab   : > { %v9457_v43 = vpop.eup %6298  ;;  %v9470_v19 = vsel %vm2673_vm6, %v6295_v18, 0.0  ;;  %v3951_v56 = vand.u32 2147483648, %v8998_v17  ;;  %v3882_v52 = vsub.f32 1.0, %v3881_v39  ;;  %v9475_v36 = vmul.f32 %v12929_v0, %v3293_v42 }
 0x3ac   : > { %v6301_v25 = vpop.eup %6300  ;;  %v3891_v4 = vand.u32 2147483648, %v9012_v26  ;;  %v3000_v57 = vmul.f32 1.442695, %v2901_v12  ;;  %6310 = vrcp.f32 %v9069_v46  ;;  %v9482_v35 = vsel %vm2673_vm6, %v6297_v30, 0.0  ;;  %v9495_v30 = vpop.xlane.xlu0 %3119 }
 0x3ad   : > { %5052 = vperm.xlu2 %6108, %v9172_v32   ;;  %12930 = vst [vmem:[#allocation69_spill] sm:$0xff] %v9475_v36  ;;  %v9479_v5 = vpop.eup %6302  ;;  %vm3945_vm14 = vweird.f32 %v8998_v17  ;;  %v3611_v18 = vmul.f32 %v9457_v43, %v9204_v44  ;;  %6312 = vrcp.f32 %v9464_v59  ;;  %v3944_v42 = vadd.f32 %v9390_v41, %v3943_v14  ;;  %v12936_v14 = vld [vmem:[#allocation15_spill] sm:$0xff] }
 0x3ae   : > { %12931 = vst [vmem:[#allocation115_spill] sm:$0xff] %v9479_v5  ;;  %v6305_v39 = vpop.eup %6304  ;;  %vm3946_vm15 = vweird.f32 %v9390_v41  ;;  %vm9490_vm1 = vcmp.eq.f32.partialorder %v3949_v62, 8.507059e+37  ;;  %vm3885_vm2 = vweird.f32 %v9012_v26  ;;  %v9498_v31 = vsel %vm2673_vm6, %v6301_v25, 0.0 }
 0x3af   : > { %12932 = vst [vmem:[#allocation116_spill] sm:$0xff] %v9482_v35  ;;  %v6307_v0 = vpop.eup %6306  ;;  %v3952_v34 = vor.u32 1.1754944e-38, %v3951_v56  ;;  %v3883_v7 = vmul.f32 %v9412_v27, %v3882_v52  ;;  %v3889_v45 = vand.u32 2147483647, %v9012_v26  ;;  %v4214_v62 = vmul.f32 1.442695, %v9475_v36  ;;  %vm9514_vm3 = vmor %vm3945_vm14, %vm3946_vm15 }
 0x3b0   : > { %12935 = vst [vmem:[#allocation117_spill] sm:$0xff] %v9498_v31  ;;  %v6309_v50 = vpop.eup %6308  ;;  %v9504_v10 = vor.u32 1.1754944e-38, %v3891_v4  ;;  %6314 = vpow2.f32 %v3000_v57  ;;  %v3566_v5 = vmul.f32 %v6307_v0, %v9434_v24  ;;  %v9508_v33 = vsel %vm2673_vm6, %v6305_v39, 0.0 }
 0x3b1   : > { %6107 = vset.pattern.permute.xlu0 %v12925_v51  ;;  %12937 = vst [vmem:[#allocation15_spill] sm:$0xff] %v9508_v33  ;;  %vm3886_vm4 = vweird.f32 %v9412_v27  ;;  %v3612_v52 = vsub.f32 1.0, %v3611_v18  ;;  %6316 = vrcp.f32 %v9495_v30  ;;  %v3948_v4 = vsel %vm9514_vm3, %v9390_v41, %v3944_v42 }
 0x3b2   : > { %v9520_v25 = vpop.eup %6310  ;;  %v3567_v17 = vsub.f32 1.0, %v3566_v5  ;;  %v9528_v36 = vsel %vm2673_vm6, %v6309_v50, 0.0  ;;  %v3884_v49 = vadd.f32 %v9412_v27, %v3883_v7  ;;  %v3574_v18 = vand.u32 2147483647, %v9434_v24  ;;  %vm9555_vm8 = vmor %vm3885_vm2, %vm3886_vm4 }
 0x3b3   : > { %12940 = vst [vmem:[#allocation118_spill] sm:$0xff] %v9528_v36  ;;  %v3576_v33 = vand.u32 2147483648, %v9434_v24  ;;  %6318 = vpow2.f32 %v4214_v62  ;;  %vm3571_vm5 = vweird.f32 %v6307_v0  ;;  %v9537_v5 = vsel %vm9490_vm1, %v3952_v34, %v3948_v4 }
 0x3b4   : > { %v3568_v56 = vmul.f32 %v6307_v0, %v3567_v17  ;;  %vm9539_vm7 = vcmp.eq.f32.partialorder %v3889_v45, 8.507059e+37  ;;  %v9545_v7 = vmul.f32 %v9520_v25, %v9069_v46  ;;  %6320 = vrcp.f32 %v9095_v40 }
 0x3b5   : > { %6110 = vset.pattern.permute.xlu2 %v12928_v58  ;;  %v3613_v42 = vmul.f32 %v9457_v43, %v3612_v52  ;;  %vm3570_vm0 = vweird.f32 %v9434_v24  ;;  %v3454_v4 = vand.u32 2147483647, %v9464_v59  ;;  %v3888_v52 = vsel %vm9555_vm8, %v9412_v27, %v3884_v49  ;;  %v9567_v24 = vpop.xlane.xlu2 %3134 }
 0x3b6   : > { %v3569_v45 = vadd.f32 %v6307_v0, %v3568_v56  ;;  %vm3572_vm9 = vmor %vm3570_vm0, %vm3571_vm5  ;;  %vm3575_vm10 = vcmp.eq.f32.partialorder %v3574_v18, 8.507059e+37  ;;  %v3577_v57 = vor.u32 1.1754944e-38, %v3576_v33  ;;  %v3456_v26 = vand.u32 2147483648, %v9464_v59 }
 0x3b7   : > { %vm3616_vm12 = vweird.f32 %v9457_v43  ;;  %v3621_v34 = vand.u32 2147483648, %v9204_v44  ;;  %vm3450_vm13 = vweird.f32 %v9464_v59  ;;  %vm9576_vm14 = vcmp.eq.f32.partialorder %v3454_v4, 8.507059e+37  ;;  %v9589_v4 = vpop.xlane.xlu0 %3227 }
 0x3b8   : > { %v3573_v39 = vsel %vm3572_vm9, %v6307_v0, %v3569_v45  ;;  %6322 = vrcp.f32 %v9567_v24  ;;  %vm3615_vm2 = vweird.f32 %v9204_v44  ;;  %v3893_v31 = vsel %vm9539_vm7, %v9504_v10, %v3888_v52 }
 0x3b9   : > { %4764 = vperm.xlu0 %6107, %v12936_v14   ;;  %v6313_v14 = vpop.eup %6312  ;;  %v3578_v49 = vsel %vm3575_vm10, %v3577_v57, %v3573_v39  ;;  %v3561_v57 = vand.u32 2147483648, %v9495_v30  ;;  %vm9601_vm3 = vmor %vm3615_vm2, %vm3616_vm12  ;;  %vm3555_vm4 = vweird.f32 %v9495_v30  ;;  %v3622_v10 = vor.u32 1.1754944e-38, %v3621_v34 }
 0x3ba   : > { %v3446_v41 = vmul.f32 %v6313_v14, %v9464_v59  ;;  %v9549_v62 = vpop.eup %6314  ;;  %vm3451_vm11 = vweird.f32 %v6313_v14  ;;  %5039 = vperm.xlu1 %6105, %v12895_v55   ;;  %v12948_v55 = vld [vmem:[#allocation4_spill] sm:$0xff]  ;;  %vm3525_vm8 = vweird.f32 %v9069_v46  ;;  %6324 = vrcp.f32 %v9090_v15 }
 0x3bb   : > { %12943 = vst [vmem:[#allocation119_spill] sm:$0xff] %v9549_v62  ;;  %v6317_v17 = vpop.eup %6316  ;;  %vm3452_vm15 = vmor %vm3450_vm13, %vm3451_vm11  ;;  %v3562_v52 = vor.u32 1.1754944e-38, %v3561_v57  ;;  %vm3526_vm9 = vweird.f32 %v9520_v25  ;;  %vm3630_vm12 = vweird.f32 %v9567_v24  ;;  %vm3765_vm2 = vweird.f32 %v9095_v40 }
 0x3bc   : > { %v3447_v12 = vsub.f32 1.0, %v3446_v41  ;;  %v3551_v56 = vmul.f32 %v6317_v17, %v9495_v30  ;;  %v3614_v41 = vadd.f32 %v9457_v43, %v3613_v42  ;;  %v9573_v27 = vpop.eup %6318  ;;  %v3457_v42 = vor.u32 1.1754944e-38, %v3456_v26 }
 0x3bd   : > { %5071 = vperm.xlu2 %6110, %v9425_v47   ;;  %v9580_v45 = vpop.eup %6320  ;;  %vm3556_vm1 = vweird.f32 %v6317_v17  ;;  %v3619_v26 = vand.u32 2147483647, %v9204_v44 }
 0x3be   : > { %v3448_v35 = vmul.f32 %v6313_v14, %v3447_v12  ;;  %v3552_v18 = vsub.f32 1.0, %v3551_v56  ;;  %v3559_v12 = vand.u32 2147483647, %v9495_v30  ;;  %v3522_v56 = vsub.f32 1.0, %v9545_v7  ;;  %vm3557_vm5 = vmor %vm3555_vm4, %vm3556_vm1 }
 0x3bf   : > { %v3761_v44 = vmul.f32 %v9580_v45, %v9095_v40  ;;  %v3618_v50 = vsel %vm9601_vm3, %v9457_v43, %v3614_v41  ;;  %vm3620_vm0 = vcmp.eq.f32.partialorder %v3619_v26, 8.507059e+37  ;;  %v3769_v26 = vand.u32 2147483647, %v9095_v40 }
 0x3c0   : > { %v3449_v33 = vadd.f32 %v6313_v14, %v3448_v35  ;;  %v9587_v35 = vmul.f32 %v8811_v63, %v3578_v49  ;;  %v3553_v39 = vmul.f32 %v6317_v17, %v3552_v18  ;;  %vm3560_vm7 = vcmp.eq.f32.partialorder %v3559_v12, 8.507059e+37  ;;  %v9627_v18 = vpop.xlane.xlu2 %3062 }
 0x3c1   : > { %v3623_v41 = vsel %vm3620_vm0, %v3622_v10, %v3618_v50  ;;  %v9634_v12 = vmul.f32 %v8676_v20, %v3893_v31  ;;  %v3523_v57 = vmul.f32 %v9520_v25, %v3522_v56  ;;  %v3636_v20 = vand.u32 2147483648, %v9567_v24  ;;  %v9647_v56 = vpop.xlane.xlu0 %3137 }
 0x3c2   : > { %12949 = vst [vmem:[#allocation120_spill] sm:$0xff] %v9587_v35  ;;  %v3453_v59 = vsel %vm3452_vm15, %v6313_v14, %v3449_v33  ;;  %v3554_v7 = vadd.f32 %v6317_v17, %v3553_v39  ;;  %v4252_v49 = vmul.f32 1.442695, %v9587_v35  ;;  %6109 = vset.pattern.permute.xlu1 %v12948_v55  ;;  %v3771_v50 = vand.u32 2147483648, %v9095_v40 }
 0x3c3   : > { %v3458_v6 = vsel %vm9576_vm14, %v3457_v42, %v3453_v59  ;;  %v9631_v42 = vmul.f32 %v8674_v48, %v9537_v5  ;;  %12956 = vst [vmem:[#allocation124_spill] sm:$0xff] %v9634_v12  ;;  %v3762_v59 = vsub.f32 1.0, %v3761_v44  ;;  %v9643_v48 = vmul.f32 %v8743_v9, %v3623_v41  ;;  %vm9675_vm14 = vmor %vm3525_vm8, %vm3526_vm9 }
 0x3c4   : > { %v9606_v14 = vmul.f32 %v8827_v54, %v3458_v6  ;;  %v3558_v0 = vsel %vm3557_vm5, %v6317_v17, %v3554_v7  ;;  %v6323_v54 = vpop.eup %6322  ;;  %v12953_v6 = vand.u32 2147483648, %v9069_v46  ;;  %v3634_v5 = vand.u32 2147483647, %v9567_v24 }
 0x3c5   : > { %6112 = vset.pattern.permute.xlu2 %v12948_v55  ;;  %v3563_v43 = vsel %vm3560_vm7, %v3562_v52, %v3558_v0  ;;  %v3626_v17 = vmul.f32 %v6323_v54, %v9567_v24  ;;  %12955 = vst [vmem:[#allocation123_spill] sm:$0xff] %v9631_v42  ;;  %vm3631_vm10 = vweird.f32 %v6323_v54  ;;  %v9649_v63 = vpop.eup %6324  ;;  %v4302_v7 = vmul.f32 1.442695, %v9631_v42 }
 0x3c6   : > { %12952 = vst [vmem:[#allocation121_spill] sm:$0xff] %v9606_v14  ;;  %v4236_v33 = vmul.f32 1.442695, %v9606_v14  ;;  %v9619_v30 = vor.u32 1.1754944e-38, %v12953_v6  ;;  %v9624_v34 = vmul.f32 %v8823_v23, %v3563_v43  ;;  %v3524_v44 = vadd.f32 %v9520_v25, %v3523_v57  ;;  %vm3632_vm13 = vmor %vm3630_vm12, %vm3631_vm10 }
 0x3c7   : > { %v3627_v39 = vsub.f32 1.0, %v3626_v17  ;;  %12957 = vst [vmem:[#allocation125_spill] sm:$0xff] %v9643_v48  ;;  %v3741_v9 = vand.u32 2147483648, %v9090_v15  ;;  %v4294_v52 = vmul.f32 1.442695, %v9634_v12  ;;  %v3763_v0 = vmul.f32 %v9580_v45, %v3762_v59 }
 0x3c8   : > { %6326 = vpow2.f32 %v4236_v33  ;;  %12954 = vst [vmem:[#allocation122_spill] sm:$0xff] %v9624_v34  ;;  %v4250_v23 = vmul.f32 1.442695, %v9624_v34  ;;  %v4258_v41 = vmul.f32 1.442695, %v9643_v48  ;;  %v3637_v57 = vor.u32 1.1754944e-38, %v3636_v20 }
 0x3c9   : > { %6328 = vrcp.f32 %v9139_v29  ;;  %v3628_v31 = vmul.f32 %v6323_v54, %v3627_v39  ;;  %vm3635_vm15 = vcmp.eq.f32.partialorder %v3634_v5, 8.507059e+37  ;;  %v3528_v20 = vsel %vm9675_vm14, %v9520_v25, %v3524_v44  ;;  %v9696_v25 = vpop.xlane.xlu2 %3152 }
 0x3ca   : > { %6330 = vpow2.f32 %v4252_v49  ;;  %v12958_v49 = vand.u32 2147483647, %v9069_v46  ;;  %5058 = vperm.xlu1 %6109, %v9172_v32   ;;  %vm3766_vm1 = vweird.f32 %v9580_v45  ;;  %vm9710_vm3 = vcmp.eq.f32.partialorder %v3769_v26, 8.507059e+37 }
 0x3cb   : > { %6332 = vpow2.f32 %v4250_v23  ;;  %v3629_v6 = vadd.f32 %v6323_v54, %v3628_v31  ;;  %vm9731_vm4 = vmor %vm3765_vm2, %vm3766_vm1  ;;  %vm3735_vm5 = vweird.f32 %v9090_v15  ;;  %vm4065_vm8 = vweird.f32 %v9139_v29 }
 0x3cc   : > { %vm9658_vm11 = vcmp.eq.f32.partialorder %v12958_v49, 8.507059e+37  ;;  %6334 = vrcp.f32 %v9647_v56  ;;  %v12963_v49 = vld [vmem:[#allocation113_spill] sm:$0xff]  ;;  %vm3645_vm0 = vweird.f32 %v9647_v56 }
 0x3cd   : > { %5083 = vperm.xlu2 %6112, %v9425_v47   ;;  %6336 = vrcp.f32 %v9399_v16  ;;  %v3633_v39 = vsel %vm3632_vm13, %v6323_v54, %v3629_v6  ;;  %v3533_v26 = vsel %vm9658_vm11, %v9619_v30, %v3528_v20  ;;  %vm3736_vm11 = vweird.f32 %v9649_v63 }
 0x3ce   : > { %v6327_v10 = vpop.eup %6326  ;;  %6338 = vrcp.f32 %v9167_v61  ;;  %v3638_v31 = vsel %vm3635_vm15, %v3637_v57, %v3633_v39  ;;  %v3764_v57 = vadd.f32 %v9580_v45, %v3763_v0  ;;  %v9719_v0 = vsel %vm2673_vm6, %v9573_v27, 0.0  ;;  %vm9817_vm13 = vmor %vm3735_vm5, %vm3736_vm11 }
 0x3cf   : > { %v9664_v43 = vpop.eup %6328  ;;  %v4378_v17 = vsel %vm2673_vm6, %v6327_v10, 0.0  ;;  %v3731_v10 = vmul.f32 %v9649_v63, %v9090_v15  ;;  %6340 = vrcp.f32 %v12963_v49  ;;  %12969 = vst [vmem:[#allocation126_spill] sm:$0xff] %v9719_v0  ;;  %vm3585_vm1 = vweird.f32 %v12963_v49 }
 0x3d0   : > { %v6331_v23 = vpop.eup %6330  ;;  %v4379_v59 = vadd.f32 %v4378_v17, %v9438_v13  ;;  %v12964_v13 = vld [vmem:[#allocation79_spill] sm:$0xff]  ;;  %v4061_v44 = vmul.f32 %v9664_v43, %v9139_v29  ;;  %6342 = vrcp.f32 %v9379_v28  ;;  %vm4066_vm12 = vweird.f32 %v9664_v43 }
 0x3d1   : > { %v6333_v46 = vpop.eup %6332  ;;  %v9691_v54 = vmul.f32 %v12964_v13, %v3638_v31  ;;  %v4404_v6 = vsel %vm2673_vm6, %v6331_v23, 0.0  ;;  %6344 = vpow2.f32 %v4258_v41  ;;  %v3772_v31 = vor.u32 1.1754944e-38, %v3771_v50  ;;  %v9779_v34 = vpop.xlane.xlu2 %3242  ;;  %vm9837_vm14 = vmor %vm4065_vm8, %vm4066_vm12 }
 0x3d2   : > { %v9694_v5 = vadd.f32 %v9467_v53, %v4379_v59  ;;  %v4403_v17 = vsel %vm2673_vm6, %v6333_v46, 0.0  ;;  %v9707_v53 = vpop.eup %6334  ;;  %6346 = vrcp.f32 %v9696_v25  ;;  %v3732_v27 = vsub.f32 1.0, %v3731_v10  ;;  %6111 = vset.pattern.permute.xlu1 %v12913_v21 }
 0x3d3   : > { %12965 = vst [vmem:[#allocation113_spill] sm:$0xff] %v9691_v54  ;;  %v9704_v24 = vadd.f32 %v4404_v6, %v4403_v17  ;;  %v4260_v39 = vmul.f32 1.442695, %v9691_v54  ;;  %v9715_v23 = vpop.eup %6336  ;;  %v3641_v46 = vmul.f32 %v9707_v53, %v9647_v56  ;;  %v4062_v13 = vsub.f32 1.0, %v4061_v44  ;;  %v9750_v44 = vpop.xlane.xlu0 %3245 }
 0x3d4   : > { %12966 = vst [vmem:[#allocation79_spill] sm:$0xff] %v9694_v5  ;;  %v9724_v40 = vpop.eup %6338  ;;  %v9741_v17 = vor.u32 1.1754944e-38, %v3741_v9  ;;  %v3671_v10 = vmul.f32 %v9715_v23, %v9399_v16  ;;  %vm3646_vm7 = vweird.f32 %v9707_v53  ;;  %v3733_v20 = vmul.f32 %v9649_v63, %v3732_v27 }
 0x3d5   : > { %6114 = vset.pattern.permute.xlu2 %v12913_v21  ;;  %6348 = vpow2.f32 %v4260_v39  ;;  %v9736_v6 = vpop.eup %6340  ;;  %v3642_v30 = vsub.f32 1.0, %v3641_v46  ;;  %v4071_v39 = vand.u32 2147483648, %v9139_v29  ;;  %v3651_v21 = vand.u32 2147483648, %v9647_v56  ;;  %vm3647_vm9 = vmor %vm3645_vm0, %vm3646_vm7 }
 0x3d6   : > { %6350 = vpow2.f32 %v4302_v7  ;;  %v3768_v7 = vsel %vm9731_vm4, %v9580_v45, %v3764_v57  ;;  %v9743_v33 = vpop.eup %6342  ;;  %v12972_v45 = vld [vmem:[#allocation51_spill] sm:$0xff]  ;;  %v3649_v46 = vand.u32 2147483647, %v9647_v56  ;;  %v4063_v42 = vmul.f32 %v9664_v43, %v4062_v13 }
 0x3d7   : > { %6352 = vpow2.f32 %v4294_v52  ;;  %v6345_v52 = vpop.eup %6344  ;;  %v9754_v9 = vmul.f32 %v12972_v45, %v3533_v26  ;;  %v3643_v57 = vmul.f32 %v9707_v53, %v3642_v30  ;;  %v3773_v41 = vsel %vm9710_vm3, %v3772_v31, %v3768_v7 }
 0x3d8   : > { %v9760_v50 = vpop.eup %6346  ;;  %v4031_v26 = vmul.f32 %v9724_v40, %v9167_v61  ;;  %v3581_v30 = vmul.f32 %v9736_v6, %v12963_v49  ;;  %v3701_v12 = vmul.f32 %v9743_v33, %v9379_v28  ;;  %v4416_v31 = vsel %vm2673_vm6, %v6345_v52, 0.0 }
 0x3d9   : > { %12973 = vst [vmem:[#allocation51_spill] sm:$0xff] %v9754_v9  ;;  %v3644_v35 = vadd.f32 %v9707_v53, %v3643_v57  ;;  %v3672_v27 = vsub.f32 1.0, %v3671_v10  ;;  %v3652_v7 = vor.u32 1.1754944e-38, %v3651_v21  ;;  %vm3650_vm10 = vcmp.eq.f32.partialorder %v3649_v46, 8.507059e+37  ;;  %v12974_v21 = vld [vmem:[#allocation34_spill] sm:$0xff] }
 0x3da   : > { %v3716_v56 = vmul.f32 %v9760_v50, %v9696_v25  ;;  %v4246_v10 = vmul.f32 1.442695, %v9754_v9  ;;  %v4041_v52 = vand.u32 2147483648, %v9167_v61  ;;  %5077 = vperm.xlu1 %6111, %v9425_v47   ;;  %v9793_v14 = vmul.f32 %v12974_v21, %v3773_v41 }
 0x3db   : > { %v6349_v45 = vpop.eup %6348  ;;  %v3648_v57 = vsel %vm3647_vm9, %v9707_v53, %v3644_v35  ;;  %v3702_v35 = vsub.f32 1.0, %v3701_v12  ;;  %v12976_v53 = vld [vmem:[#allocation20_spill] sm:$0xff]  ;;  %v4032_v36 = vsub.f32 1.0, %v4031_v26  ;;  %v3582_v0 = vsub.f32 1.0, %v3581_v30  ;;  %v9824_v30 = vpop.xlane.xlu0 %3146 }
 0x3dc   : > { %v6351_v59 = vpop.eup %6350  ;;  %v4417_v13 = vsel %vm2673_vm6, %v6349_v45, 0.0  ;;  %v3653_v45 = vsel %vm3650_vm10, %v3652_v7, %v3648_v57  ;;  %12975 = vst [vmem:[#allocation34_spill] sm:$0xff] %v9793_v14  ;;  %v9806_v7 = vor.u32 1.1754944e-38, %v4071_v39  ;;  %v3673_v41 = vmul.f32 %v9715_v23, %v3672_v27 }
 0x3dd   : > { %5102 = vperm.xlu2 %6114, %v9428_v11   ;;  %v9781_v54 = vpop.eup %6352  ;;  %v9783_v48 = vadd.f32 %v4417_v13, %v4416_v31  ;;  %v9796_v31 = vadd.f32 %v9649_v63, %v3733_v20  ;;  %v9799_v46 = vmul.f32 %v12976_v53, %v3653_v45  ;;  %v9802_v13 = vadd.f32 %v9664_v43, %v4063_v42 }
 0x3de   : > { %v3717_v57 = vsub.f32 1.0, %v3716_v56  ;;  %v9811_v12 = vsel %vm2673_vm6, %v6351_v59, 0.0  ;;  %6354 = vpow2.f32 %v4246_v10  ;;  %v9822_v26 = vor.u32 1.1754944e-38, %v4041_v52 }
 0x3df   : > { %12977 = vst [vmem:[#allocation20_spill] sm:$0xff] %v9799_v46  ;;  %v4262_v20 = vmul.f32 1.442695, %v9799_v46  ;;  %v9827_v27 = vmul.f32 1.442695, %v9793_v14  ;;  %v3703_v10 = vmul.f32 %v9743_v33, %v3702_v35  ;;  %v9847_v45 = vmul.f32 %v9724_v40, %v4032_v36 }
 0x3e0   : > { %12978 = vst [vmem:[#allocation127_spill] sm:$0xff] %v9811_v12  ;;  %v3583_v21 = vmul.f32 %v9736_v6, %v3582_v0  ;;  %v3679_v53 = vand.u32 2147483647, %v9399_v16  ;;  %v3674_v59 = vadd.f32 %v9715_v23, %v3673_v41  ;;  %vm3676_vm15 = vweird.f32 %v9715_v23  ;;  %v9866_v41 = vpop.xlane.xlu1 %3086 }
 0x3e1   : > { %6356 = vpow2.f32 %v4262_v20  ;;  %v3718_v39 = vmul.f32 %v9760_v50, %v3717_v57  ;;  %v3591_v35 = vand.u32 2147483648, %v12963_v49  ;;  %v3681_v36 = vand.u32 2147483648, %v9399_v16  ;;  %v9859_v20 = vpop.xlane.xlu2 %3080 }
 0x3e2   : > { %6358 = vrcp.f32 %v9824_v30  ;;  %12983 = vst [vmem:[#allocation128_spill] sm:$0xff] %v9859_v20  ;;  %6113 = vset.pattern.permute.xlu1 %v12928_v58  ;;  %vm3586_vm2 = vweird.f32 %v9736_v6  ;;  %v3704_v0 = vadd.f32 %v9743_v33, %v3703_v10  ;;  %vm3706_vm3 = vweird.f32 %v9743_v33 }
 0x3e3   : > { %6360 = vrcp.f32 %v9290_v37  ;;  %vm3675_vm4 = vweird.f32 %v9399_v16  ;;  %v12984_v52 = vand.u32 2147483647, %v9139_v29  ;;  %v3584_v58 = vadd.f32 %v9736_v6, %v3583_v21 }
 0x3e4   : > { %v9868_v57 = vpop.eup %6354  ;;  %vm3705_vm7 = vweird.f32 %v9379_v28  ;;  %v3709_v10 = vand.u32 2147483647, %v9379_v28  ;;  %v3711_v46 = vand.u32 2147483648, %v9379_v28  ;;  %vm9882_vm8 = vmor %vm3675_vm4, %vm3676_vm15  ;;  %vm4036_vm0 = vweird.f32 %v9724_v40 }
 0x3e5   : > { %6117 = vset.pattern.permute.xlu2 %v12925_v51  ;;  %vm9872_vm5 = vcmp.eq.f32.partialorder %v12984_v52, 8.507059e+37  ;;  %v3678_v52 = vsel %vm9882_vm8, %v9715_v23, %v3674_v59  ;;  %vm9891_vm9 = vcmp.eq.f32.partialorder %v3679_v53, 8.507059e+37  ;;  %v3719_v28 = vadd.f32 %v9760_v50, %v3718_v39  ;;  %vm9899_vm11 = vmor %vm3705_vm7, %vm3706_vm3 }
 0x3e6   : > { %vm3721_vm10 = vweird.f32 %v9760_v50  ;;  %v3682_v3 = vor.u32 1.1754944e-38, %v3681_v36  ;;  %6362 = vrcp.f32 %v9866_v41  ;;  %v3726_v23 = vand.u32 2147483648, %v9696_v25  ;;  %vm9935_vm7 = vmor %vm3585_vm1, %vm3586_vm2 }
 0x3e7   : > { %v6357_v29 = vpop.eup %6356  ;;  %vm4035_vm12 = vweird.f32 %v9167_v61  ;;  %v3708_v39 = vsel %vm9899_vm11, %v9743_v33, %v3704_v0  ;;  %vm3720_vm15 = vweird.f32 %v9696_v25  ;;  %v3724_v36 = vand.u32 2147483647, %v9696_v25 }
 0x3e8   : > { %v4419_v16 = vsel %vm2673_vm6, %v6357_v29, 0.0  ;;  %v6359_v59 = vpop.eup %6358  ;;  %v3589_v29 = vand.u32 2147483647, %v12963_v49  ;;  %v3712_v20 = vor.u32 1.1754944e-38, %v3711_v46  ;;  %v3683_v5 = vsel %vm9891_vm9, %v3682_v3, %v3678_v52  ;;  %vm9922_vm3 = vmor %vm3720_vm15, %vm3721_vm10 }
 0x3e9   : > { %v9911_v53 = vadd.f32 %v4419_v16, %v9783_v48  ;;  %v9915_v55 = vpop.eup %6360  ;;  %v3686_v48 = vmul.f32 %v6359_v59, %v9824_v30  ;;  %v3592_v33 = vor.u32 1.1754944e-38, %v3591_v35  ;;  %6364 = vrcp.f32 %v9328_v22 }
 0x3ea   : > { %vm3710_vm4 = vcmp.eq.f32.partialorder %v3709_v10, 8.507059e+37  ;;  %v3723_v25 = vsel %vm9922_vm3, %v9760_v50, %v3719_v28  ;;  %6366 = vrcp.f32 %v9351_v1  ;;  %v3727_v0 = vor.u32 1.1754944e-38, %v3726_v23  ;;  %5096 = vperm.xlu1 %6113, %v9428_v11   ;;  %v13000_v50 = vld [vmem:[#allocation75_spill] sm:$0xff]  ;;  %v9954_v28 = vpop.xlane.xlu0 %3074  ;;  %v13018_v23 = vld [vmem:[#allocation78_spill] sm:$0xff] }
 0x3eb   : > { %v3713_v46 = vsel %vm3710_vm4, %v3712_v20, %v3708_v39  ;;  %v3687_v35 = vsub.f32 1.0, %v3686_v48  ;;  %v12997_v10 = vand.u32 2147483647, %v9090_v15  ;;  %v3588_v49 = vsel %vm9935_vm7, %v9736_v6, %v3584_v58 }
 0x3ec   : > { %v9951_v21 = vmul.f32 %v13000_v50, %v3683_v5  ;;  %vm3725_vm1 = vcmp.eq.f32.partialorder %v3724_v36, 8.507059e+37  ;;  %v3696_v20 = vand.u32 2147483648, %v9824_v30  ;;  %v9956_v16 = vpop.eup %6362  ;;  %v13002_v15 = vand.u32 2147483647, %v9167_v61  ;;  %v9965_v5 = vpop.xlane.xlu2 %3116 }
 0x3ed   : > { %5114 = vperm.xlu2 %6117, %v9428_v11   ;;  %vm9943_vm8 = vcmp.eq.f32.partialorder %v12997_v10, 8.507059e+37  ;;  %v3728_v39 = vsel %vm3725_vm1, %v3727_v0, %v3723_v25  ;;  %v3688_v12 = vmul.f32 %v6359_v59, %v3687_v35  ;;  %vm3691_vm9 = vweird.f32 %v6359_v59  ;;  %v13006_v25 = vld [vmem:[#allocation30_spill] sm:$0xff] }
 0x3ee   : > { %13001 = vst [vmem:[#allocation75_spill] sm:$0xff] %v9951_v21  ;;  %vm9960_vm2 = vcmp.eq.f32.partialorder %v13002_v15, 8.507059e+37  ;;  %v3694_v58 = vand.u32 2147483647, %v9824_v30  ;;  %v13005_v6 = vsel %vm9837_vm14, %v9664_v43, %v9802_v13  ;;  %v4034_v48 = vadd.f32 %v9724_v40, %v9847_v45  ;;  %v13008_v43 = vld [vmem:[#allocation99_spill] sm:$0xff]  ;;  %v13013_v15 = vld [vmem:[#allocation44_spill] sm:$0xff] }
 0x3ef   : > { %v4073_v36 = vsel %vm9872_vm5, %v9806_v7, %v13005_v6  ;;  %vm3590_vm10 = vcmp.eq.f32.partialorder %v3589_v29, 8.507059e+37  ;;  %v9978_v3 = vmul.f32 %v13006_v25, %v3713_v46  ;;  %v4151_v35 = vmul.f32 %v9915_v55, %v9290_v37  ;;  %v9983_v56 = vpop.eup %6364  ;;  %vm9998_vm5 = vmor %vm4035_vm12, %vm4036_vm0  ;;  %v13012_v46 = vld [vmem:[#allocation36_spill] sm:$0xff]  ;;  %v13015_v6 = vld [vmem:[#allocation10_spill] sm:$0xff] }
 0x3f0   : > { %v3593_v0 = vsel %vm3590_vm10, %v3592_v33, %v3588_v49  ;;  %v3689_v10 = vadd.f32 %v6359_v59, %v3688_v12  ;;  %vm3690_vm11 = vweird.f32 %v9824_v30  ;;  %v3386_v14 = vmul.f32 %v9956_v16, %v9866_v41  ;;  %v9991_v45 = vpop.eup %6366 }
 0x3f1   : > { %13007 = vst [vmem:[#allocation30_spill] sm:$0xff] %v9978_v3  ;;  %v9988_v13 = vmul.f32 %v13008_v43, %v3728_v39  ;;  %vm3692_vm14 = vmor %vm3690_vm11, %vm3691_vm9  ;;  %v3697_v7 = vor.u32 1.1754944e-38, %v3696_v20  ;;  %6368 = vrcp.f32 %v9965_v5  ;;  %v4266_v29 = vmul.f32 1.442695, %v9951_v21 }
 0x3f2   : > { %6370 = vpow2.f32 %v9827_v27  ;;  %v3693_v33 = vsel %vm3692_vm14, %v6359_v59, %v3689_v10  ;;  %vm3695_vm15 = vcmp.eq.f32.partialorder %v3694_v58, 8.507059e+37  ;;  %v10004_v49 = vmul.f32 %v13012_v46, %v4073_v36  ;;  %6115 = vset.pattern.permute.xlu1 %v12925_v51 }
 0x3f3   : > { %13009 = vst [vmem:[#allocation99_spill] sm:$0xff] %v9988_v13  ;;  %v4038_v50 = vsel %vm9998_vm5, %v9724_v40, %v4034_v48  ;;  %v4270_v27 = vmul.f32 1.442695, %v9978_v3  ;;  %v3698_v20 = vsel %vm3695_vm15, %v3697_v7, %v3693_v33  ;;  %v10011_v61 = vmul.f32 %v13013_v15, %v3593_v0 }
 0x3f4   : > { %v4152_v39 = vsub.f32 1.0, %v4151_v35  ;;  %v4121_v12 = vmul.f32 %v9983_v56, %v9328_v22  ;;  %v10016_v59 = vmul.f32 %v13015_v6, %v3698_v20  ;;  %v3821_v58 = vmul.f32 %v9991_v45, %v9351_v1 }
 0x3f5   : > { %13014 = vst [vmem:[#allocation36_spill] sm:$0xff] %v10011_v61  ;;  %6372 = vrcp.f32 %v9418_v38  ;;  %v3387_v40 = vsub.f32 1.0, %v3386_v14  ;;  %v4272_v36 = vmul.f32 1.442695, %v9988_v13  ;;  %v13017_v48 = vsel %vm9817_vm13, %v9649_v63, %v9796_v31 }
 0x3f6   : > { %13016 = vst [vmem:[#allocation44_spill] sm:$0xff] %v10016_v59  ;;  %v10031_v25 = vsel %vm9943_vm8, %v9741_v17, %v13017_v48  ;;  %v4161_v0 = vand.u32 2147483648, %v9290_v37  ;;  %6374 = vpow2.f32 %v4266_v29  ;;  %v4268_v35 = vmul.f32 1.442695, %v10016_v59  ;;  %v10047_v17 = vpop.xlane.xlu0 %3110 }
 0x3f7   : > { %v10035_v10 = vpop.eup %6368  ;;  %v10039_v14 = vsel %vm2673_vm6, %v9868_v57, 0.0  ;;  %v10042_v42 = vmul.f32 1.442695, %v10004_v49  ;;  %v4043_v63 = vsel %vm9960_vm2, %v9822_v26, %v4038_v50  ;;  %6376 = vpow2.f32 %v4270_v27 }
 0x3f8   : > { %v10049_v31 = vpop.eup %6370  ;;  %v4254_v52 = vmul.f32 1.442695, %v10011_v61  ;;  %v4153_v43 = vmul.f32 %v9915_v55, %v4152_v39  ;;  %v4122_v7 = vsub.f32 1.0, %v4121_v12  ;;  %6378 = vpow2.f32 %v4268_v35 }
 0x3f9   : > { %v3822_v57 = vsub.f32 1.0, %v3821_v58  ;;  %v3388_v30 = vmul.f32 %v9956_v16, %v3387_v40  ;;  %6380 = vpow2.f32 %v4272_v36  ;;  %v3536_v29 = vmul.f32 %v10035_v10, %v9965_v5 }
 0x3fa   : > { %v10057_v26 = vmul.f32 %v13018_v23, %v4043_v63  ;;  %v10060_v46 = vor.u32 1.1754944e-38, %v4161_v0  ;;  %6382 = vrcp.f32 %v10047_v17  ;;  %vm4156_vm13 = vweird.f32 %v9915_v55  ;;  %5089 = vperm.xlu1 %6115, %v9425_v47  }
 0x3fb   : > { %v10063_v50 = vpop.eup %6372  ;;  %v3829_v15 = vand.u32 2147483647, %v9351_v1  ;;  %v3537_v39 = vsub.f32 1.0, %v3536_v29  ;;  %6384 = vpow2.f32 %v4254_v52  ;;  %v10070_v6 = vadd.f32 %v9915_v55, %v4153_v43 }
 0x3fc   : > { %v6375_v12 = vpop.eup %6374  ;;  %v4123_v58 = vmul.f32 %v9983_v56, %v4122_v7  ;;  %v3831_v40 = vand.u32 2147483648, %v9351_v1  ;;  %vm4155_vm0 = vweird.f32 %v9290_v37  ;;  %v3823_v48 = vmul.f32 %v9991_v45, %v3822_v57  ;;  %v10086_v7 = vpop.xlane.xlu1 %3104 }
 0x3fd   : > { %v6377_v36 = vpop.eup %6376  ;;  %v3389_v0 = vadd.f32 %v9956_v16, %v3388_v30  ;;  %vm3391_vm12 = vweird.f32 %v9956_v16  ;;  %v3538_v35 = vmul.f32 %v10035_v10, %v3537_v39  ;;  %vm3825_vm3 = vweird.f32 %v9351_v1  ;;  %vm10136_vm15 = vmor %vm4155_vm0, %vm4156_vm13 }
 0x3fe   : > { %v6379_v63 = vpop.eup %6378  ;;  %v4001_v52 = vmul.f32 %v10063_v50, %v9418_v38  ;;  %vm3390_vm4 = vweird.f32 %v9866_v41  ;;  %v3394_v47 = vand.u32 2147483647, %v9866_v41  ;;  %v3396_v43 = vand.u32 2147483648, %v9866_v41 }
 0x3ff   : > { %v6381_v57 = vpop.eup %6380  ;;  %v4429_v30 = vsel %vm2673_vm6, %v6375_v12, 0.0  ;;  %v4430_v29 = vsel %vm2673_vm6, %v6379_v63, 0.0  ;;  %v3539_v23 = vadd.f32 %v10035_v10, %v3538_v35  ;;  %vm3541_vm7 = vweird.f32 %v10035_v10  ;;  %vm10097_vm8 = vmor %vm3390_vm4, %vm3391_vm12 }
 0x400   : > { %v10092_v39 = vpop.eup %6382  ;;  %v4432_v20 = vsel %vm2673_vm6, %v6377_v36, 0.0  ;;  %6386 = vrcp.f32 %v9627_v18  ;;  %v4431_v41 = vadd.f32 %v4430_v29, %v4429_v30  ;;  %v3546_v12 = vand.u32 2147483648, %v9965_v5 }
 0x401   : > { %v3393_v35 = vsel %vm10097_vm8, %v9956_v16, %v3389_v0  ;;  %vm3540_vm1 = vweird.f32 %v9965_v5  ;;  %v3544_v63 = vand.u32 2147483647, %v9965_v5  ;;  %v3506_v36 = vmul.f32 %v10092_v39, %v10047_v17  ;;  %v6385_v33 = vpop.eup %6384 }
 0x402   : > { %v3824_v13 = vadd.f32 %v9991_v45, %v3823_v48  ;;  %vm3826_vm2 = vweird.f32 %v9991_v45  ;;  %v3397_v3 = vor.u32 1.1754944e-38, %v3396_v43  ;;  %v4433_v30 = vadd.f32 %v4432_v20, %v4431_v41  ;;  %vm10114_vm9 = vmor %vm3540_vm1, %vm3541_vm7 }
 0x403   : > { %vm10118_vm10 = vcmp.eq.f32.partialorder %v3829_v15, 8.507059e+37  ;;  %v4002_v5 = vsub.f32 1.0, %v4001_v52  ;;  %vm3395_vm11 = vcmp.eq.f32.partialorder %v3394_v47, 8.507059e+37  ;;  %v4434_v27 = vsel %vm2673_vm6, %v6381_v57, 0.0  ;;  %vm10158_vm13 = vmor %vm3825_vm3, %vm3826_vm2 }
 0x404   : > { %v3543_v48 = vsel %vm10114_vm9, %v10035_v10, %v3539_v23  ;;  %vm4126_vm14 = vweird.f32 %v9983_v56  ;;  %v3398_v20 = vsel %vm3395_vm11, %v3397_v3, %v3393_v35  ;;  %v4435_v0 = vadd.f32 %v4434_v27, %v4433_v30  ;;  %v13032_v27 = vld [vmem:[#allocation13_spill] sm:$0xff]  ;;  %v13039_v30 = vld [vmem:[#allocation16_spill] sm:$0xff] }
 0x405   : > { %v3547_v43 = vor.u32 1.1754944e-38, %v3546_v12  ;;  %v3507_v41 = vsub.f32 1.0, %v3506_v36  ;;  %6388 = vrcp.f32 %v10086_v7  ;;  %vm3545_vm5 = vcmp.eq.f32.partialorder %v3544_v63, 8.507059e+37 }
 0x406   : > { %v3514_v15 = vand.u32 2147483647, %v10047_v17  ;;  %v3516_v52 = vand.u32 2147483648, %v10047_v17  ;;  %v10130_v47 = vpop.eup %6386  ;;  %vm4125_vm12 = vweird.f32 %v9328_v22  ;;  %v4436_v3 = vrot.slane %v4435_v0, 4 }
 0x407   : > { %v3548_v57 = vsel %vm3545_vm5, %v3547_v43, %v3543_v48  ;;  %v3508_v23 = vmul.f32 %v10092_v39, %v3507_v41  ;;  %vm3511_vm4 = vweird.f32 %v10092_v39  ;;  %v4158_v12 = vsel %vm10136_vm15, %v9915_v55, %v10070_v6  ;;  %v10168_v55 = vpop.xlane.xlu1 %3140  ;;  %vm10214_vm9 = vmor %vm4125_vm12, %vm4126_vm14 }
 0x408   : > { %v13027_v35 = vand.u32 2147483647, %v9290_v37  ;;  %v4124_v36 = vadd.f32 %v9983_v56, %v4123_v58  ;;  %v3832_v29 = vor.u32 1.1754944e-38, %v3831_v40  ;;  %v10163_v48 = vmul.f32 %v13032_v27, %v3398_v20  ;;  %v13034_v40 = vld [vmem:[#allocation48_spill] sm:$0xff] }
 0x409   : > { %v3828_v37 = vsel %vm10158_vm13, %v9991_v45, %v3824_v13  ;;  %v4437_v6 = vadd.f32 %v4436_v3, %v4435_v0  ;;  %v3509_v58 = vadd.f32 %v10092_v39, %v3508_v23  ;;  %vm3510_vm0 = vweird.f32 %v10047_v17 }
 0x40a   : > { %vm10149_vm7 = vcmp.eq.f32.partialorder %v13027_v35, 8.507059e+37  ;;  %13033 = vst [vmem:[#allocation10_spill] sm:$0xff] %v10163_v48  ;;  %v4003_v1 = vmul.f32 %v10063_v50, %v4002_v5  ;;  %v3266_v43 = vmul.f32 %v10130_v47, %v9627_v18  ;;  %v10176_v41 = vmul.f32 %v13034_v40, %v3548_v57  ;;  %vm3512_vm3 = vmor %vm3510_vm0, %vm3511_vm4 }
 0x40b   : > { %v3517_v20 = vor.u32 1.1754944e-38, %v3516_v52  ;;  %v4406_v13 = vsel %vm2673_vm6, %v6385_v33, 0.0  ;;  %v13036_v45 = vand.u32 2147483647, %v9328_v22  ;;  %v4438_v17 = vrot.slane %v4437_v6, 2  ;;  %v10188_v10 = vpop.eup %6388  ;;  %v10193_v33 = vpop.xlane.xlu0 %3128 }
 0x40c   : > { %13035 = vst [vmem:[#allocation78_spill] sm:$0xff] %v10176_v41  ;;  %v3513_v5 = vsel %vm3512_vm3, %v10092_v39, %v3509_v58  ;;  %vm3515_vm1 = vcmp.eq.f32.partialorder %v3514_v15, 8.507059e+37  ;;  %v4011_v3 = vand.u32 2147483648, %v9418_v38  ;;  %v4228_v57 = vmul.f32 1.442695, %v10163_v48  ;;  %v13102_v48 = vld [vmem:[#allocation118_spill] sm:$0xff] }
 0x40d   : > { %vm10183_vm8 = vcmp.eq.f32.partialorder %v13036_v45, 8.507059e+37  ;;  %6390 = vrcp.f32 %v10168_v55  ;;  %v3518_v52 = vsel %vm3515_vm1, %v3517_v20, %v3513_v5  ;;  %v3833_v23 = vsel %vm10118_vm10, %v3832_v29, %v3828_v37  ;;  %v13042_v37 = vld [vmem:[#allocation72_spill] sm:$0xff] }
 0x40e   : > { %vm4006_vm2 = vweird.f32 %v10063_v50  ;;  %v4439_v35 = vadd.f32 %v4438_v17, %v4437_v6  ;;  %v10199_v39 = vmul.f32 %v13039_v30, %v3518_v52  ;;  %v4004_v15 = vadd.f32 %v10063_v50, %v4003_v1  ;;  %v13047_v52 = vld [vmem:[#allocation74_spill] sm:$0xff] }
 0x40f   : > { %v3267_v27 = vsub.f32 1.0, %v3266_v43  ;;  %v4248_v58 = vmul.f32 1.442695, %v10176_v41  ;;  %v10204_v40 = vadd.f32 %v4406_v13, %v9704_v24  ;;  %v3476_v20 = vmul.f32 %v10188_v10, %v10086_v7 }
 0x410   : > { %v4440_v45 = vrot.slane %v4439_v35, 1  ;;  %v4244_v16 = vmul.f32 1.442695, %v10199_v39  ;;  %6392 = vrcp.f32 %v10193_v33  ;;  %v10219_v6 = vmul.f32 %v13042_v37, %v3833_v23 }
 0x411   : > { %vm4005_vm10 = vweird.f32 %v9418_v38  ;;  %v4009_v24 = vand.u32 2147483647, %v9418_v38  ;;  %6394 = vpow2.f32 %v4228_v57  ;;  %v4163_v1 = vsel %vm10149_vm7, %v10060_v46, %v4158_v12 }
 0x412   : > { %13043 = vst [vmem:[#allocation13_spill] sm:$0xff] %v10219_v6  ;;  %v4128_v43 = vsel %vm10214_vm9, %v9983_v56, %v4124_v36  ;;  %vm10231_vm11 = vmor %vm4005_vm10, %vm4006_vm2  ;;  %v4441_v17 = vadd.f32 %v4440_v45, %v4439_v35  ;;  %6396 = vpow2.f32 %v4244_v16  ;;  %v13046_v38 = vand.u32 2147483648, %v9328_v22 }
 0x413   : > { %v10235_v5 = vpop.eup %6390  ;;  %v4008_v46 = vsel %vm10231_vm11, %v10063_v50, %v4004_v15  ;;  %6398 = vpow2.f32 %v4248_v58  ;;  %v3163_v56 = vsel %vm2673_vm6, %v9549_v62, 0.0  ;;  %v4012_v12 = vor.u32 1.1754944e-38, %v4011_v3 }
 0x414   : > { %v4132_v57 = vor.u32 1.1754944e-38, %v13046_v38  ;;  %v3268_v63 = vmul.f32 %v10130_v47, %v3267_v27  ;;  %v3477_v36 = vsub.f32 1.0, %v3476_v20  ;;  %6400 = vlog2.f32 %v4441_v17  ;;  %3164 = vadd.xlane.f32.xlu0 %v3163_v56 }
 0x415   : > { %v10246_v23 = vmul.f32 %v13047_v52, %v4163_v1  ;;  %v10253_v35 = vmul.f32 1.442695, %v10219_v6  ;;  %vm4010_vm14 = vcmp.eq.f32.partialorder %v4009_v24, 8.507059e+37  ;;  %6402 = vrcp.f32 %v9589_v4  ;;  %v10271_v1 = vpop.xlane.xlu1 %3194 }
 0x416   : > { %v10250_v22 = vsel %vm10183_vm8, %v4132_v57, %v4128_v43  ;;  %v6393_v50 = vpop.eup %6392  ;;  %v10255_v30 = vsel %vm4010_vm14, %v4012_v12, %v4008_v46  ;;  %vm3270_vm5 = vweird.f32 %v9627_v18  ;;  %v3656_v3 = vmul.f32 %v10235_v5, %v10168_v55 }
 0x417   : > { %13048 = vst [vmem:[#allocation48_spill] sm:$0xff] %v10246_v23  ;;  %v6395_v15 = vpop.eup %6394  ;;  %v3274_v27 = vand.u32 2147483647, %v9627_v18  ;;  %v3276_v0 = vand.u32 2147483648, %v9627_v18  ;;  %vm3480_vm15 = vweird.f32 %v10086_v7  ;;  %v3596_v58 = vmul.f32 %v6393_v50, %v10193_v33 }
 0x418   : > { %v6397_v20 = vpop.eup %6396  ;;  %v3269_v45 = vadd.f32 %v10130_v47, %v3268_v63  ;;  %vm3271_vm12 = vweird.f32 %v10130_v47  ;;  %v3478_v16 = vmul.f32 %v10188_v10, %v3477_v36  ;;  %v3484_v29 = vand.u32 2147483647, %v10086_v7 }
 0x419   : > { %v6399_v37 = vpop.eup %6398  ;;  %vm3481_vm4 = vweird.f32 %v10188_v10  ;;  %v3486_v24 = vand.u32 2147483648, %v10086_v7  ;;  %v4391_v43 = vsel %vm2673_vm6, %v6397_v20, 0.0  ;;  %v3597_v13 = vsub.f32 1.0, %v3596_v58  ;;  %vm10279_vm7 = vmor %vm3270_vm5, %vm3271_vm12  ;;  %v13054_v7 = vld [vmem:[#allocation103_spill] sm:$0xff] }
 0x41a   : > { %v6401_v17 = vpop.eup %6400  ;;  %v4365_v38 = vsel %vm2673_vm6, %v6395_v15, 0.0  ;;  %v3657_v57 = vsub.f32 1.0, %v3656_v3  ;;  %v4392_v46 = vadd.f32 %v4391_v43, %v9460_v2  ;;  %v3606_v56 = vand.u32 2147483648, %v10193_v33  ;;  %vm10304_vm1 = vmor %vm3480_vm15, %vm3481_vm4 }
 0x41b   : > { %v10283_v63 = vmul.f32 0.6931472, %v6401_v17  ;;  %v3598_v36 = vmul.f32 %v6393_v50, %v3597_v13  ;;  %vm3601_vm13 = vweird.f32 %v6393_v50  ;;  %v3604_v52 = vand.u32 2147483647, %v10193_v33  ;;  %v10286_v58 = vpop.eup %6402 }
 0x41c   : > { %v3273_v2 = vsel %vm10279_vm7, %v10130_v47, %v3269_v45  ;;  %v3479_v3 = vadd.f32 %v10188_v10, %v3478_v16  ;;  %6404 = vrcp.f32 %v10271_v1  ;;  %v4394_v18 = vadd.f32 %v10039_v14, %v4392_v46  ;;  %v13061_v14 = vld [vmem:[#allocation8_spill] sm:$0xff] }
 0x41d   : > { %13051 = vst [vmem:[#allocation16_spill] sm:$0xff] %v10283_v63  ;;  %v4395_v20 = vsel %vm2673_vm6, %v6399_v37, 0.0  ;;  %v3599_v43 = vadd.f32 %v6393_v50, %v3598_v36  ;;  %vm3600_vm0 = vweird.f32 %v10193_v33  ;;  %v4366_v13 = vadd.f32 %v4365_v38, %v9454_v8 }
 0x41e   : > { %v3658_v17 = vmul.f32 %v10235_v5, %v3657_v57  ;;  %v4396_v12 = vadd.f32 %v4395_v20, %v4394_v18  ;;  %vm3602_vm3 = vmor %vm3600_vm0, %vm3601_vm13  ;;  %v3607_v47 = vor.u32 1.1754944e-38, %v3606_v56  ;;  %vm3275_vm8 = vcmp.eq.f32.partialorder %v3274_v27, 8.507059e+37  ;;  %v13056_v18 = vld [vmem:[#allocation81_spill] sm:$0xff]  ;;  %v13058_v20 = vld [vmem:[#allocation84_spill] sm:$0xff] }
 0x41f   : > { %v3277_v45 = vor.u32 1.1754944e-38, %v3276_v0  ;;  %v3603_v16 = vsel %vm3602_vm3, %v6393_v50, %v3599_v43  ;;  %vm3605_vm2 = vcmp.eq.f32.partialorder %v3604_v52, 8.507059e+37  ;;  %v3483_v8 = vsel %vm10304_vm1, %v10188_v10, %v3479_v3  ;;  %v10312_v0 = vpop.xlane.xlu2 %3170 }
 0x420   : > { %vm3485_vm9 = vcmp.eq.f32.partialorder %v3484_v29, 8.507059e+37  ;;  %v4397_v33 = vrot.slane %v4396_v12, 4  ;;  %v3608_v37 = vsel %vm3605_vm2, %v3607_v47, %v3603_v16  ;;  %v3487_v27 = vor.u32 1.1754944e-38, %v3486_v24 }
 0x421   : > { %v3278_v38 = vsel %vm3275_vm8, %v3277_v45, %v3273_v2  ;;  %6406 = vrcp.f32 %v9750_v44  ;;  %v10315_v57 = vmul.f32 %v13054_v7, %v3608_v37  ;;  %v3659_v50 = vadd.f32 %v10235_v5, %v3658_v17  ;;  %v10342_v17 = vpop.xlane.xlu1 %3230  ;;  %v13064_v37 = vld [vmem:[#allocation24_spill] sm:$0xff] }
 0x422   : > { %v10317_v46 = vpop.eup %6404  ;;  %vm3661_vm10 = vweird.f32 %v10235_v5  ;;  %v4398_v56 = vadd.f32 %v4397_v33, %v4396_v12  ;;  %v10322_v10 = vadd.f32 %v9470_v19, %v4366_v13  ;;  %v3488_v29 = vsel %vm3485_vm9, %v3487_v27, %v3483_v8  ;;  %v13063_v8 = vld [vmem:[#allocation31_spill] sm:$0xff]  ;;  %v13066_v27 = vld [vmem:[#allocation62_spill] sm:$0xff] }
 0x423   : > { %13055 = vst [vmem:[#allocation72_spill] sm:$0xff] %v10315_v57  ;;  %v3666_v24 = vand.u32 2147483648, %v10168_v55  ;;  %6408 = vrcp.f32 %v9954_v28  ;;  %v4256_v36 = vmul.f32 1.442695, %v10315_v57  ;;  %vm3660_vm11 = vweird.f32 %v10168_v55 }
 0x424   : > { %v3664_v52 = vand.u32 2147483647, %v10168_v55  ;;  %v4399_v2 = vrot.slane %v4398_v56, 2  ;;  %6410 = vrcp.f32 %v10312_v0  ;;  %v4314_v3 = vmul.f32 1.442695, %v10057_v26  ;;  %vm10338_vm14 = vmor %vm3660_vm11, %vm3661_vm10 }
 0x425   : > { %v10333_v19 = vmul.f32 %v13056_v18, %v10250_v22  ;;  %v10336_v43 = vmul.f32 %v13058_v20, %v3278_v38  ;;  %6412 = vpow2.f32 %v4256_v36  ;;  %v3663_v55 = vsel %vm10338_vm14, %v10235_v5, %v3659_v50 }
 0x426   : > { %6414 = vpow2.f32 %v10253_v35  ;;  %v3926_v22 = vmul.f32 %v10317_v46, %v10271_v1  ;;  %v4400_v12 = vadd.f32 %v4399_v2, %v4398_v56  ;;  %v4330_v45 = vmul.f32 1.442695, %v10246_v23 }
 0x427   : > { %13057 = vst [vmem:[#allocation74_spill] sm:$0xff] %v10333_v19  ;;  %v10350_v47 = vpop.eup %6406  ;;  %v10355_v16 = vmul.f32 %v13061_v14, %v10255_v30  ;;  %v10358_v33 = vmul.f32 %v13063_v8, %v3488_v29  ;;  %v3667_v35 = vor.u32 1.1754944e-38, %v3666_v24  ;;  %v10362_v38 = vmul.f32 %v13064_v37, %v10031_v25  ;;  %v10456_v61 = vpop.xlane.xlu2 %3206 }
 0x428   : > { %vm3665_vm5 = vcmp.eq.f32.partialorder %v3664_v52, 8.507059e+37  ;;  %6416 = vrcp.f32 %v10342_v17  ;;  %v4401_v5 = vrot.slane %v4400_v12, 1  ;;  %4889 = vperm.xlu0 %6107, %v13066_v27   ;;  %v4091_v30 = vmul.f32 %v10286_v58, %v9589_v4  ;;  %v10375_v52 = vpop.xlane.xlu0 %3092 }
 0x429   : > { %13062 = vst [vmem:[#allocation103_spill] sm:$0xff] %v10355_v16  ;;  %v10366_v7 = vpop.eup %6408  ;;  %6418 = vpow2.f32 %v10042_v42  ;;  %v4212_v50 = vmul.f32 1.442695, %v10336_v43  ;;  %v3668_v56 = vsel %vm3665_vm5, %v3667_v35, %v3663_v55  ;;  %v4326_v25 = vmul.f32 1.442695, %v10333_v19  ;;  %v13067_v55 = vld [vmem:[#allocation23_spill] sm:$0xff]  ;;  %v10460_v9 = vpop.xlane.xlu1 %3068 }
 0x42a   : > { %13065 = vst [vmem:[#allocation81_spill] sm:$0xff] %v10362_v38  ;;  %v10372_v29 = vpop.eup %6410  ;;  %6420 = vpow2.f32 %v4314_v3  ;;  %v3927_v24 = vsub.f32 1.0, %v3926_v22  ;;  %v4402_v36 = vadd.f32 %v4401_v5, %v4400_v12  ;;  %v4310_v18 = vmul.f32 1.442695, %v10355_v16 }
 0x42b   : > { %v6413_v2 = vpop.eup %6412  ;;  %6422 = vpow2.f32 %v4330_v45  ;;  %v4240_v42 = vmul.f32 1.442695, %v10358_v33  ;;  %v4181_v20 = vmul.f32 %v10350_v47, %v9750_v44  ;;  %v10382_v14 = vmul.f32 %v13067_v55, %v3668_v56 }
 0x42c   : > { %v6415_v13 = vpop.eup %6414  ;;  %v3326_v3 = vmul.f32 %v10366_v7, %v9954_v28  ;;  %6424 = vlog2.f32 %v4402_v36  ;;  %v4408_v22 = vsel %vm2673_vm6, %v6413_v2, 0.0  ;;  %v4092_v12 = vsub.f32 1.0, %v4091_v30  ;;  %v13069_v2 = vld [vmem:[#allocation38_spill] sm:$0xff] }
 0x42d   : > { %13068 = vst [vmem:[#allocation84_spill] sm:$0xff] %v10382_v14  ;;  %v4101_v45 = vand.u32 2147483648, %v9589_v4  ;;  %6426 = vpow2.f32 %v4212_v50  ;;  %v10389_v8 = vadd.f32 %v4408_v22, %v10204_v40  ;;  %v10395_v37 = vsel %vm2673_vm6, %v9781_v54, 0.0 }
 0x42e   : > { %v10391_v35 = vpop.eup %6416  ;;  %6428 = vpow2.f32 %v4326_v25  ;;  %v3928_v5 = vmul.f32 %v10317_v46, %v3927_v24  ;;  %v3806_v27 = vmul.f32 %v10372_v29, %v10312_v0  ;;  %v10403_v30 = vmul.f32 1.442695, %v10362_v38 }
 0x42f   : > { %v10400_v56 = vpop.eup %6418  ;;  %v10406_v40 = vsel %vm2673_vm6, %v6415_v13, 0.0  ;;  %6430 = vpow2.f32 %v4240_v42  ;;  %v4182_v50 = vsub.f32 1.0, %v4181_v20  ;;  %v4264_v25 = vmul.f32 1.442695, %v10382_v14 }
 0x430   : > { %v10408_v36 = vpop.eup %6420  ;;  %6432 = vpow2.f32 %v4310_v18  ;;  %v3327_v24 = vsub.f32 1.0, %v3326_v3  ;;  %5014 = vperm.xlu0 %6107, %v13069_v2   ;;  %v10416_v22 = vmul.f32 %v10286_v58, %v4092_v12  ;;  %v10418_v15 = vor.u32 1.1754944e-38, %v4101_v45  ;;  %v10436_v14 = vpop.xlane.xlu0 %3218 }
 0x431   : > { %v10413_v55 = vpop.eup %6422  ;;  %v4189_v42 = vand.u32 2147483647, %v9750_v44  ;;  %v4106_v20 = vmul.f32 %v10391_v35, %v10342_v17  ;;  %6434 = vrcp.f32 %v9779_v34  ;;  %v3929_v13 = vadd.f32 %v10317_v46, %v3928_v5 }
 0x432   : > { %v6425_v18 = vpop.eup %6424  ;;  %vm3931_vm15 = vweird.f32 %v10317_v46  ;;  %v3807_v3 = vsub.f32 1.0, %v3806_v27  ;;  %v4183_v54 = vmul.f32 %v10350_v47, %v4182_v50  ;;  %v4191_v12 = vand.u32 2147483648, %v9750_v44 }
 0x433   : > { %v6427_v2 = vpop.eup %6426  ;;  %v3936_v45 = vand.u32 2147483648, %v10271_v1  ;;  %v10429_v38 = vmul.f32 0.6931472, %v6425_v18  ;;  %6436 = vpow2.f32 %v4264_v25  ;;  %vm3930_vm12 = vweird.f32 %v10271_v1 }
 0x434   : > { %v10431_v16 = vpop.eup %6428  ;;  %v3934_v6 = vand.u32 2147483647, %v10271_v1  ;;  %v3328_v5 = vmul.f32 %v10366_v7, %v3327_v24  ;;  %vm10438_vm4 = vmor %vm3930_vm12, %vm3931_vm15  ;;  %v4107_v41 = vsub.f32 1.0, %v4106_v20  ;;  %v4339_v24 = vsel %vm2673_vm6, %v6427_v2, 0.0 }
 0x435   : > { %v6431_v27 = vpop.eup %6430  ;;  %vm4185_vm7 = vweird.f32 %v9750_v44  ;;  %v3933_v62 = vsel %vm10438_vm4, %v10317_v46, %v3929_v13  ;;  %v3808_v20 = vmul.f32 %v10372_v29, %v3807_v3  ;;  %v4184_v18 = vadd.f32 %v10350_v47, %v4183_v54  ;;  %v13090_v46 = vld [vmem:[#allocation104_spill] sm:$0xff] }
 0x436   : > { %v10448_v1 = vpop.eup %6432  ;;  %vm4186_vm13 = vweird.f32 %v10350_v47  ;;  %v4192_v25 = vor.u32 1.1754944e-38, %v4191_v12  ;;  %v3937_v23 = vor.u32 1.1754944e-38, %v3936_v45  ;;  %v4382_v2 = vsel %vm2673_vm6, %v6431_v27, 0.0 }
 0x437   : > { %v10462_v60 = vpop.eup %6434  ;;  %vm3935_vm0 = vcmp.eq.f32.partialorder %v3934_v6, 8.507059e+37  ;;  %v3329_v50 = vadd.f32 %v10366_v7, %v3328_v5  ;;  %vm3331_vm3 = vweird.f32 %v10366_v7  ;;  %vm10468_vm8 = vcmp.eq.f32.partialorder %v4189_v42, 8.507059e+37  ;;  %vm10479_vm2 = vmor %vm4185_vm7, %vm4186_vm13  ;;  %v13079_v5 = vld [vmem:[#allocation83_spill] sm:$0xff] }
 0x438   : > { %5064 = vperm.xlu0 %6107, %v9172_v32   ;;  %v3938_v54 = vsel %vm3935_vm0, %v3937_v23, %v3933_v62  ;;  %vm3330_vm1 = vweird.f32 %v9954_v28  ;;  %v3336_v13 = vand.u32 2147483648, %v9954_v28  ;;  %v4108_v3 = vmul.f32 %v10391_v35, %v4107_v41  ;;  %v13076_v62 = vld [vmem:[#allocation79_spill] sm:$0xff] }
 0x439   : > { %v6437_v12 = vpop.eup %6436  ;;  %v3334_v32 = vand.u32 2147483647, %v9954_v28  ;;  %v3809_v42 = vadd.f32 %v10372_v29, %v3808_v20  ;;  %vm3811_vm9 = vweird.f32 %v10372_v29  ;;  %6438 = vrcp.f32 %v10460_v9  ;;  %vm10497_vm10 = vmor %vm3330_vm1, %vm3331_vm3 }
 0x43a   : > { %v4383_v23 = vadd.f32 %v4382_v2, %v13076_v62  ;;  %v4188_v41 = vsel %vm10479_vm2, %v10350_v47, %v4184_v18  ;;  %v10493_v44 = vmul.f32 %v10462_v60, %v9779_v34  ;;  %v3816_v45 = vand.u32 2147483648, %v10312_v0  ;;  %v13081_v18 = vld [vmem:[#allocation128_spill] sm:$0xff] }
 0x43b   : > { %v10503_v27 = vmul.f32 %v13079_v5, %v3938_v54  ;;  %v3333_v20 = vsel %vm10497_vm10, %v10366_v7, %v3329_v50  ;;  %vm3810_vm11 = vweird.f32 %v10312_v0  ;;  %v3814_v47 = vand.u32 2147483647, %v10312_v0  ;;  %v10524_v50 = vpop.xlane.xlu0 %3182 }
 0x43c   : > { %6440 = vrcp.f32 %v13081_v18  ;;  %v3337_v2 = vor.u32 1.1754944e-38, %v3336_v13  ;;  %v4109_v6 = vadd.f32 %v10391_v35, %v4108_v3  ;;  %vm4111_vm14 = vweird.f32 %v10391_v35  ;;  %vm10515_vm5 = vmor %vm3810_vm11, %vm3811_vm9 }
 0x43d   : > { %13080 = vst [vmem:[#allocation8_spill] sm:$0xff] %v10503_v27  ;;  %v4421_v62 = vsel %vm2673_vm6, %v6437_v12, 0.0  ;;  %vm3335_vm15 = vcmp.eq.f32.partialorder %v3334_v32, 8.507059e+37  ;;  %v4116_v7 = vand.u32 2147483648, %v10342_v17  ;;  %v3813_v0 = vsel %vm10515_vm5, %v10372_v29, %v3809_v42  ;;  %v10536_v29 = vpop.xlane.xlu2 %3224  ;;  %v13086_v42 = vld [vmem:[#allocation4_spill] sm:$0xff] }
 0x43e   : > { %v3338_v13 = vsel %vm3335_vm15, %v3337_v2, %v3333_v20  ;;  %vm4110_vm12 = vweird.f32 %v10342_v17  ;;  %v4114_v3 = vand.u32 2147483647, %v10342_v17  ;;  %v3817_v28 = vor.u32 1.1754944e-38, %v3816_v45  ;;  %v13087_v20 = vld [vmem:[#allocation35_spill] sm:$0xff] }
 0x43f   : > { %v10528_v5 = vpop.eup %6438  ;;  %v4384_v57 = vrot.slane %v4383_v23, 4  ;;  %v4300_v12 = vmul.f32 1.442695, %v10503_v27  ;;  %vm10531_vm4 = vmor %vm4110_vm12, %vm4111_vm14  ;;  %vm3815_vm7 = vcmp.eq.f32.partialorder %v3814_v47, 8.507059e+37  ;;  %6442 = vrcp.f32 %v10456_v61  ;;  %v13088_v27 = vld [vmem:[#allocation41_spill] sm:$0xff] }
 0x440   : > { %6116 = vset.pattern.permute.xlu0 %v13086_v42  ;;  %v4340_v2 = vadd.f32 %v4339_v24, %v13087_v20  ;;  %v4113_v17 = vsel %vm10531_vm4, %v10391_v35, %v4109_v6  ;;  %v3818_v45 = vsel %vm3815_vm7, %v3817_v28, %v3813_v0  ;;  %6444 = vrcp.f32 %v10524_v50  ;;  %v13094_v28 = vld [vmem:[#allocation102_spill] sm:$0xff] }
 0x441   : > { %vm4096_vm13 = vweird.f32 %v10286_v58  ;;  %v4422_v54 = vadd.f32 %v4421_v62, %v9911_v53  ;;  %v4193_v47 = vsel %vm10468_vm8, %v4192_v25, %v4188_v41  ;;  %v10549_v59 = vmul.f32 %v13088_v27, %v3338_v13  ;;  %v13096_v20 = vld [vmem:[#allocation126_spill] sm:$0xff] }
 0x442   : > { %v4117_v42 = vor.u32 1.1754944e-38, %v4116_v7  ;;  %v10551_v21 = vpop.eup %6440  ;;  %v4167_v24 = vsub.f32 1.0, %v10493_v44  ;;  %v4176_v35 = vand.u32 2147483648, %v9779_v34  ;;  %vm4115_vm0 = vcmp.eq.f32.partialorder %v4114_v3, 8.507059e+37  ;;  %v13092_v44 = vld [vmem:[#allocation61_spill] sm:$0xff] }
 0x443   : > { %13089 = vst [vmem:[#allocation31_spill] sm:$0xff] %v10549_v59  ;;  %v3296_v6 = vmul.f32 %v10528_v5, %v10460_v9  ;;  %vm4095_vm3 = vweird.f32 %v9589_v4  ;;  %v10558_v53 = vadd.f32 %v4384_v57, %v4383_v23  ;;  %6446 = vpow2.f32 %v4300_v12 }
 0x444   : > { %v4118_v25 = vsel %vm4115_vm0, %v4117_v42, %v4113_v17  ;;  %v10561_v41 = vmul.f32 %v13090_v46, %v3818_v45  ;;  %v10565_v27 = vadd.f32 %v10286_v58, %v10416_v22  ;;  %v10568_v62 = vmul.f32 %v13092_v44, %v4193_v47  ;;  %vm10626_vm2 = vmor %vm4095_vm3, %vm4096_vm13 }
 0x445   : > { %6448 = vrcp.f32 %v10536_v29  ;;  %v10572_v0 = vpop.eup %6442  ;;  %v4423_v57 = vrot.slane %v4422_v54, 4  ;;  %v10576_v23 = vmul.f32 %v10551_v21, %v13081_v18  ;;  %v4220_v13 = vmul.f32 1.442695, %v10549_v59  ;;  %v10611_v42 = vpop.xlane.xlu2 %3188 }
 0x446   : > { %13091 = vst [vmem:[#allocation24_spill] sm:$0xff] %v10561_v41  ;;  %6450 = vrcp.f32 %v10375_v52  ;;  %v6445_v22 = vpop.eup %6444  ;;  %v10580_v3 = vor.u32 1.1754944e-38, %v4176_v35  ;;  %v10583_v12 = vmul.f32 %v13094_v28, %v4118_v25  ;;  %v3297_v32 = vsub.f32 1.0, %v3296_v6 }
 0x447   : > { %13093 = vst [vmem:[#allocation62_spill] sm:$0xff] %v10568_v62  ;;  %v10586_v17 = vadd.f32 %v13096_v20, %v4340_v2  ;;  %v13097_v45 = vand.u32 2147483647, %v9589_v4  ;;  %v10596_v46 = vmul.f32 %v10462_v60, %v4167_v24  ;;  %v4284_v35 = vmul.f32 1.442695, %v10561_v41 }
 0x448   : > { %13095 = vst [vmem:[#allocation23_spill] sm:$0xff] %v10583_v12  ;;  %v3866_v25 = vmul.f32 %v6445_v22, %v10524_v50  ;;  %5108 = vperm.xlu0 %6116, %v9428_v11   ;;  %v10602_v2 = vmul.f32 1.442695, %v10568_v62  ;;  %v3986_v28 = vmul.f32 %v10572_v0, %v10456_v61  ;;  %6452 = vpow2.f32 %v4220_v13 }
 0x449   : > { %vm10590_vm8 = vcmp.eq.f32.partialorder %v13097_v45, 8.507059e+37  ;;  %v6447_v20 = vpop.eup %6446  ;;  %v10608_v45 = vadd.f32 %v4423_v57, %v4422_v54  ;;  %v4324_v62 = vmul.f32 1.442695, %v10583_v12  ;;  %v3298_v6 = vmul.f32 %v10528_v5, %v3297_v32  ;;  %v10632_v12 = vpop.xlane.xlu1 %3158 }
 0x44a   : > { %v3867_v7 = vsub.f32 1.0, %v3866_v25  ;;  %6454 = vrcp.f32 %v10436_v14  ;;  %v3876_v44 = vand.u32 2147483648, %v10524_v50  ;;  %vm3871_vm1 = vweird.f32 %v6445_v22 }
 0x44b   : > { %v10613_v11 = vpop.eup %6448  ;;  %6456 = vpow2.f32 %v4284_v35  ;;  %v3874_v57 = vand.u32 2147483647, %v10524_v50  ;;  %v4482_v32 = vsel %vm2673_vm6, %v6447_v20, 0.0  ;;  %v3306_v25 = vand.u32 2147483648, %v10460_v9 }
 0x44c   : > { %v10619_v41 = vpop.eup %6450  ;;  %v3868_v54 = vmul.f32 %v6445_v22, %v3867_v7  ;;  %v3987_v24 = vsub.f32 1.0, %v3986_v28  ;;  %6458 = vrcp.f32 %v10611_v42  ;;  %v4076_v7 = vmul.f32 %v10613_v11, %v10536_v29 }
 0x44d   : > { %vm3870_vm9 = vweird.f32 %v10524_v50  ;;  %v4098_v4 = vsel %vm10626_vm2, %v10286_v58, %v10565_v27  ;;  %v3299_v20 = vadd.f32 %v10528_v5, %v3298_v6  ;;  %vm3301_vm10 = vweird.f32 %v10528_v5 }
 0x44e   : > { %v3869_v35 = vadd.f32 %v6445_v22, %v3868_v54  ;;  %v3416_v28 = vmul.f32 %v10619_v41, %v10375_v52  ;;  %vm3872_vm11 = vmor %vm3870_vm9, %vm3871_vm1  ;;  %v3877_v63 = vor.u32 1.1754944e-38, %v3876_v44  ;;  %v6453_v59 = vpop.eup %6452  ;;  %vm3300_vm14 = vweird.f32 %v10460_v9 }
 0x44f   : > { %vm3875_vm5 = vcmp.eq.f32.partialorder %v3874_v57, 8.507059e+37  ;;  %v3304_v27 = vand.u32 2147483647, %v10460_v9  ;;  %v3988_v6 = vmul.f32 %v10572_v0, %v3987_v24  ;;  %v4103_v44 = vsel %vm10590_vm8, %v10418_v15, %v4098_v4  ;;  %vm10660_vm15 = vmor %vm3300_vm14, %vm3301_vm10  ;;  %v13105_v57 = vld [vmem:[#allocation110_spill] sm:$0xff] }
 0x450   : > { %v3873_v50 = vsel %vm3872_vm11, %v6445_v22, %v3869_v35  ;;  %6118 = vset.pattern.permute.xlu0 %v12925_v51  ;;  %v10650_v58 = vpop.eup %6454  ;;  %v4483_v54 = vadd.f32 %v4482_v32, %v13102_v48  ;;  %6460 = vpow2.f32 %v4324_v62  ;;  %v4077_v51 = vsub.f32 1.0, %v4076_v7  ;;  %v13107_v35 = vld [vmem:[#allocation77_spill] sm:$0xff] }
 0x451   : > { %v3878_v13 = vsel %vm3875_vm5, %v3877_v63, %v3873_v50  ;;  %v6457_v19 = vpop.eup %6456  ;;  %v3303_v63 = vsel %vm10660_vm15, %v10528_v5, %v3299_v20  ;;  %v3307_v15 = vor.u32 1.1754944e-38, %v3306_v25  ;;  %v3994_v48 = vand.u32 2147483647, %v10456_v61 }
 0x452   : > { %v10665_v9 = vmul.f32 %v13105_v57, %v3878_v13  ;;  %v10667_v24 = vpop.eup %6458  ;;  %v3417_v62 = vsub.f32 1.0, %v3416_v28  ;;  %v3996_v47 = vand.u32 2147483648, %v10456_v61  ;;  %v4046_v32 = vmul.f32 %v10650_v58, %v10436_v14 }
 0x453   : > { %v10678_v4 = vmul.f32 %v13107_v35, %v4103_v44  ;;  %v4352_v50 = vsel %vm2673_vm6, %v6453_v59, 0.0  ;;  %vm3305_vm12 = vcmp.eq.f32.partialorder %v3304_v27, 8.507059e+37  ;;  %v3989_v13 = vadd.f32 %v10572_v0, %v3988_v6  ;;  %v10697_v6 = vpop.xlane.xlu1 %3248 }
 0x454   : > { %13106 = vst [vmem:[#allocation38_spill] sm:$0xff] %v10665_v9  ;;  %v4292_v7 = vmul.f32 1.442695, %v10665_v9  ;;  %vm3991_vm4 = vweird.f32 %v10572_v0  ;;  %v10683_v5 = vsel %vm3305_vm12, %v3307_v15, %v3303_v63  ;;  %v4078_v25 = vmul.f32 %v10613_v11, %v4077_v51 }
 0x455   : > { %13108 = vst [vmem:[#allocation79_spill] sm:$0xff] %v10678_v4  ;;  %v3896_v20 = vmul.f32 %v10667_v24, %v10611_v42  ;;  %v10689_v28 = vsel %vm2673_vm6, %v6457_v19, 0.0  ;;  %vm3990_vm7 = vweird.f32 %v10456_v61  ;;  %vm10692_vm13 = vcmp.eq.f32.partialorder %v3994_v48, 8.507059e+37 }
 0x456   : > { %6462 = vpow2.f32 %v4292_v7  ;;  %v3418_v27 = vmul.f32 %v10619_v41, %v3417_v62  ;;  %v10699_v44 = vpop.eup %6460  ;;  %vm10701_vm0 = vmor %vm3990_vm7, %vm3991_vm4  ;;  %v3997_v51 = vor.u32 1.1754944e-38, %v3996_v47  ;;  %vm3420_vm3 = vweird.f32 %v10375_v52 }
 0x457   : > { %v4047_v19 = vsub.f32 1.0, %v4046_v32  ;;  %v4322_v61 = vmul.f32 1.442695, %v10678_v4  ;;  %v3993_v57 = vsel %vm10701_vm0, %v10572_v0, %v3989_v13  ;;  %v3424_v63 = vand.u32 2147483647, %v10375_v52 }
 0x458   : > { %v3426_v15 = vand.u32 2147483648, %v10375_v52  ;;  %v4086_v48 = vand.u32 2147483648, %v10536_v29  ;;  %v4079_v62 = vadd.f32 %v10613_v11, %v4078_v25  ;;  %vm4081_vm8 = vweird.f32 %v10613_v11  ;;  %v13113_v25 = vld [vmem:[#allocation127_spill] sm:$0xff] }
 0x459   : > { %v3897_v47 = vsub.f32 1.0, %v3896_v20  ;;  %6464 = vrcp.f32 %v10697_v6  ;;  %v3419_v32 = vadd.f32 %v10619_v41, %v3418_v27  ;;  %vm3421_vm1 = vweird.f32 %v10619_v41 }
 0x45a   : > { %vm4080_vm2 = vweird.f32 %v10536_v29  ;;  %v4084_v0 = vand.u32 2147483647, %v10536_v29  ;;  %v3998_v35 = vsel %vm10692_vm13, %v3997_v51, %v3993_v57  ;;  %v4048_v13 = vmul.f32 %v10650_v58, %v4047_v19  ;;  %vm10734_vm10 = vmor %vm3420_vm3, %vm3421_vm1 }
 0x45b   : > { %v10724_v22 = vadd.f32 %v13113_v25, %v4483_v54  ;;  %6466 = vpow2.f32 %v4322_v61  ;;  %v3427_v20 = vor.u32 1.1754944e-38, %v3426_v15  ;;  %vm10726_vm9 = vmor %vm4080_vm2, %vm4081_vm8  ;;  %v4087_v27 = vor.u32 1.1754944e-38, %v4086_v48  ;;  %v13118_v61 = vld [vmem:[#allocation117_spill] sm:$0xff]  ;;  %v13119_v15 = vld [vmem:[#allocation107_spill] sm:$0xff] }
 0x45c   : > { %v6463_v7 = vpop.eup %6462  ;;  %6468 = vrcp.f32 %v10632_v12  ;;  %v4083_v54 = vsel %vm10726_vm9, %v10613_v11, %v4079_v62  ;;  %v4054_v51 = vand.u32 2147483647, %v10436_v14  ;;  %v3898_v19 = vmul.f32 %v10667_v24, %v3897_v47  ;;  %v13120_v25 = vld [vmem:[#allocation12_spill] sm:$0xff] }
 0x45d   : > { %v4469_v29 = vsel %vm2673_vm6, %v6463_v7, 0.0  ;;  %v10745_v48 = vmul.f32 %v13119_v15, %v3998_v35  ;;  %v3423_v52 = vsel %vm10734_vm10, %v10619_v41, %v3419_v32  ;;  %v4056_v7 = vand.u32 2147483648, %v10436_v14 }
 0x45e   : > { %v4470_v57 = vadd.f32 %v4469_v29, %v13118_v61  ;;  %v10752_v4 = vadd.f32 %v4352_v50, %v13120_v25  ;;  %vm4085_vm11 = vcmp.eq.f32.partialorder %v4084_v0, 8.507059e+37  ;;  %v4049_v11 = vadd.f32 %v10650_v58, %v4048_v13  ;;  %v10770_v13 = vpop.xlane.xlu0 %3200  ;;  %v13128_v25 = vld [vmem:[#allocation106_spill] sm:$0xff] }
 0x45f   : > { %v10754_v9 = vpop.eup %6464  ;;  %vm4051_vm14 = vweird.f32 %v10650_v58  ;;  %vm3425_vm5 = vcmp.eq.f32.partialorder %v3424_v63, 8.507059e+37  ;;  %v4088_v47 = vsel %vm4085_vm11, %v4087_v27, %v4083_v54  ;;  %vm4050_vm15 = vweird.f32 %v10436_v14  ;;  %v13123_v27 = vld [vmem:[#allocation109_spill] sm:$0xff] }
 0x460   : > { %v10759_v62 = vadd.f32 %v10395_v37, %v4470_v57  ;;  %v4523_v41 = vsel %vm2673_vm6, %v10431_v16, 0.0  ;;  %v3428_v50 = vsel %vm3425_vm5, %v3427_v20, %v3423_v52  ;;  %vm10764_vm12 = vcmp.eq.f32.partialorder %v4054_v51, 8.507059e+37  ;;  %vm4052_vm7 = vmor %vm4050_vm15, %vm4051_vm14 }
 0x461   : > { %v6467_v32 = vpop.eup %6466  ;;  %v3899_v0 = vadd.f32 %v10667_v24, %v3898_v19  ;;  %vm3901_vm4 = vweird.f32 %v10667_v24  ;;  %v4308_v63 = vmul.f32 1.442695, %v10745_v48  ;;  %v4057_v14 = vor.u32 1.1754944e-38, %v4056_v7 }
 0x462   : > { %v10772_v37 = vpop.eup %6468  ;;  %v3906_v16 = vand.u32 2147483648, %v10611_v42  ;;  %v4196_v20 = vmul.f32 %v10754_v9, %v10697_v6  ;;  %v10779_v29 = vmul.f32 %v13123_v27, %v4088_v47  ;;  %vm3900_vm13 = vweird.f32 %v10611_v42 }
 0x463   : > { %v3904_v59 = vand.u32 2147483647, %v10611_v42  ;;  %v4053_v54 = vsel %vm4052_vm7, %v10650_v58, %v4049_v11  ;;  %vm10784_vm0 = vmor %vm3900_vm13, %vm3901_vm4  ;;  %6470 = vrcp.f32 %v10770_v13  ;;  %v4520_v61 = vsel %vm2673_vm6, %v6467_v32, 0.0  ;;  %v13127_v58 = vld [vmem:[#allocation108_spill] sm:$0xff]  ;;  %v13129_v32 = vld [vmem:[#allocation105_spill] sm:$0xff] }
 0x464   : > { %13124 = vst [vmem:[#allocation83_spill] sm:$0xff] %v10779_v29  ;;  %v4058_v19 = vsel %vm10764_vm12, %v4057_v14, %v4053_v54  ;;  %v4521_v57 = vsel %vm2673_vm6, %v10699_v44, 0.0  ;;  %v3746_v15 = vmul.f32 %v10772_v37, %v10632_v12  ;;  %v3903_v42 = vsel %vm10784_vm0, %v10667_v24, %v3899_v0 }
 0x465   : > { %v10800_v52 = vmul.f32 %v13127_v58, %v4058_v19  ;;  %v4522_v7 = vadd.f32 %v4521_v57, %v4520_v61  ;;  %v10803_v11 = vmul.f32 %v13128_v25, %v3428_v50  ;;  %v3907_v47 = vor.u32 1.1754944e-38, %v3906_v16  ;;  %v13134_v57 = vld [vmem:[#allocation111_spill] sm:$0xff] }
 0x466   : > { %v4197_v35 = vsub.f32 1.0, %v4196_v20  ;;  %v10807_v14 = vmul.f32 %v13129_v32, %v10683_v5  ;;  %v4320_v44 = vmul.f32 1.442695, %v10779_v29  ;;  %vm3905_vm3 = vcmp.eq.f32.partialorder %v3904_v59, 8.507059e+37 }
 0x467   : > { %v4316_v27 = vmul.f32 1.442695, %v10800_v52  ;;  %v10811_v54 = vadd.f32 %v4523_v41, %v4522_v7  ;;  %v13130_v24 = vrot.slane %v10608_v45, 2  ;;  %v13131_v50 = vsub.f32 1.0, %v10576_v23 }
 0x468   : > { %6472 = vpow2.f32 %v4308_v63  ;;  %v3908_v20 = vsel %vm3905_vm3, %v3907_v47, %v3903_v42  ;;  %v10823_v5 = vadd.f32 %v10462_v60, %v10596_v46  ;;  %vm3360_vm8 = vweird.f32 %v13081_v18 }
 0x469   : > { %v10816_v0 = vadd.f32 %v13130_v24, %v10608_v45  ;;  %v3358_v16 = vmul.f32 %v10551_v21, %v13131_v50  ;;  %v3747_v59 = vsub.f32 1.0, %v3746_v15  ;;  %6474 = vpow2.f32 %v4316_v27  ;;  %v10826_v41 = vpop.eup %6470  ;;  %v13132_v45 = vld [vmem:[#allocation116_spill] sm:$0xff] }
 0x46a   : > { %6476 = vpow2.f32 %v10602_v2  ;;  %v4457_v51 = vadd.f32 %v10689_v28, %v13132_v45  ;;  %v4198_v23 = vmul.f32 %v10754_v9, %v4197_v35  ;;  %v4216_v63 = vmul.f32 1.442695, %v10807_v14 }
 0x46b   : > { %v13133_v19 = vand.u32 2147483648, %v13081_v18  ;;  %v4232_v46 = vmul.f32 1.442695, %v10803_v11  ;;  %6478 = vpow2.f32 %v4320_v44  ;;  %v10837_v15 = vmul.f32 %v13134_v57, %v3908_v20  ;;  %v10864_v20 = vpop.xlane.xlu1 %3176 }
 0x46c   : > { %v3359_v2 = vadd.f32 %v10551_v21, %v3358_v16  ;;  %vm3361_vm1 = vweird.f32 %v10551_v21  ;;  %v13136_v28 = vand.u32 2147483647, %v13081_v18  ;;  %v4510_v7 = vsel %vm2673_vm6, %v10400_v56, 0.0 }
 0x46d   : > { %v3367_v61 = vor.u32 1.1754944e-38, %v13133_v19  ;;  %13135 = vst [vmem:[#allocation128_spill] sm:$0xff] %v10837_v15  ;;  %v3748_v25 = vmul.f32 %v10772_v37, %v3747_v59  ;;  %vm3750_vm9 = vweird.f32 %v10632_v12  ;;  %v3956_v47 = vmul.f32 %v10826_v41, %v10770_v13  ;;  %vm10872_vm11 = vmor %vm3360_vm8, %vm3361_vm1 }
 0x46e   : > { %vm10844_vm2 = vcmp.eq.f32.partialorder %v13136_v28, 8.507059e+37  ;;  %v4507_v35 = vsel %vm2673_vm6, %v10408_v36, 0.0  ;;  %v6473_v32 = vpop.eup %6472  ;;  %v4199_v44 = vadd.f32 %v10754_v9, %v4198_v23  ;;  %vm4201_vm10 = vweird.f32 %v10754_v9 }
 0x46f   : > { %v10859_v27 = vadd.f32 %v10406_v40, %v4457_v51  ;;  %6480 = vpow2.f32 %v4216_v63  ;;  %v6475_v56 = vpop.eup %6474  ;;  %v3756_v24 = vand.u32 2147483648, %v10632_v12  ;;  %v4296_v50 = vmul.f32 1.442695, %v10837_v15 }
 0x470   : > { %6482 = vpow2.f32 %v4232_v46  ;;  %v4206_v16 = vand.u32 2147483648, %v10697_v6  ;;  %v10866_v36 = vpop.eup %6476  ;;  %vm4200_vm14 = vweird.f32 %v10697_v6  ;;  %v4204_v59 = vand.u32 2147483647, %v10697_v6 }
 0x471   : > { %v4508_v45 = vsel %vm2673_vm6, %v6475_v56, 0.0  ;;  %6484 = vrcp.f32 %v10864_v20  ;;  %v6479_v51 = vpop.eup %6478  ;;  %v4410_v23 = vrot.slane %v10389_v8, 4  ;;  %v4495_v63 = vsel %vm2673_vm6, %v6473_v32, 0.0  ;;  %vm10884_vm5 = vmor %vm4200_vm14, %vm4201_vm10 }
 0x472   : > { %v3957_v19 = vsub.f32 1.0, %v3956_v47  ;;  %v4509_v46 = vadd.f32 %v4508_v45, %v4507_v35  ;;  %v10889_v57 = vadd.f32 %v10772_v37, %v3748_v25  ;;  %vm3751_vm15 = vweird.f32 %v10772_v37  ;;  %v13143_v35 = vld [vmem:[#allocation15_spill] sm:$0xff] }
 0x473   : > { %v4203_v6 = vsel %vm10884_vm5, %v10754_v9, %v4199_v44  ;;  %v3363_v28 = vsel %vm10872_vm11, %v10551_v21, %v3359_v2  ;;  %6486 = vpow2.f32 %v4296_v50  ;;  %v4207_v56 = vor.u32 1.1754944e-38, %v4206_v16  ;;  %vm10906_vm7 = vmor %vm3750_vm9, %vm3751_vm15 }
 0x474   : > { %v4511_v42 = vadd.f32 %v4510_v7, %v4509_v46  ;;  %vm4171_vm12 = vweird.f32 %v10462_v60  ;;  %v4512_v25 = vsel %vm2673_vm6, %v6479_v51, 0.0  ;;  %vm4205_vm4 = vcmp.eq.f32.partialorder %v4204_v59, 8.507059e+37 }
 0x475   : > { %v6481_v47 = vpop.eup %6480  ;;  %v4496_v45 = vadd.f32 %v4495_v63, %v13143_v35  ;;  %v4497_v9 = vsel %vm2673_vm6, %v10448_v1, 0.0  ;;  %v4208_v2 = vsel %vm4205_vm4, %v4207_v56, %v4203_v6  ;;  %v3958_v7 = vmul.f32 %v10826_v41, %v3957_v19  ;;  %v10923_v63 = vpop.xlane.xlu0 %3236  ;;  %v13149_v19 = vld [vmem:[#allocation101_spill] sm:$0xff] }
 0x476   : > { %v6483_v44 = vpop.eup %6482  ;;  %v4513_v50 = vadd.f32 %v4512_v25, %v4511_v42  ;;  %v3368_v16 = vsel %vm10844_vm2, %v3367_v61, %v3363_v28  ;;  %vm4170_vm13 = vweird.f32 %v9779_v34  ;;  %v10915_v59 = vadd.f32 %v4410_v23, %v10389_v8  ;;  %v13150_v6 = vld [vmem:[#allocation33_spill] sm:$0xff] }
 0x477   : > { %v6485_v40 = vpop.eup %6484  ;;  %v10921_v51 = vor.u32 1.1754944e-38, %v3756_v24  ;;  %v10925_v18 = vadd.f32 %v4497_v9, %v4496_v45  ;;  %6488 = vrcp.f32 %v10923_v63  ;;  %v4343_v58 = vsel %vm2673_vm6, %v6481_v47, 0.0  ;;  %vm4172_vm14 = vmor %vm4170_vm13, %vm4171_vm12 }
 0x478   : > { %v4514_v42 = vrot.slane %v4513_v50, 4  ;;  %v3836_v61 = vmul.f32 %v6485_v40, %v10864_v20  ;;  %v13146_v8 = vand.u32 2147483647, %v9779_v34  ;;  %v10937_v24 = vsel %vm2673_vm6, %v6483_v44, 0.0 }
 0x479   : > { %v10940_v46 = vmul.f32 %v13149_v19, %v4208_v2  ;;  %vm3960_vm3 = vweird.f32 %v10770_v13  ;;  %v10944_v28 = vmul.f32 %v13150_v6, %v3368_v16  ;;  %v6487_v56 = vpop.eup %6486  ;;  %v3959_v47 = vadd.f32 %v10826_v41, %v3958_v7  ;;  %v10953_v6 = vpop.xlane.xlu1 %3212 }
 0x47a   : > { %vm10932_vm0 = vcmp.eq.f32.partialorder %v13146_v8, 8.507059e+37  ;;  %vm3961_vm8 = vweird.f32 %v10826_v41  ;;  %v4515_v25 = vadd.f32 %v4514_v42, %v4513_v50  ;;  %v3837_v35 = vsub.f32 1.0, %v3836_v61 }
 0x47b   : > { %v3964_v45 = vand.u32 2147483647, %v10770_v13  ;;  %v3966_v9 = vand.u32 2147483648, %v10770_v13  ;;  %v3846_v44 = vand.u32 2147483648, %v10864_v20  ;;  %v4344_v2 = vadd.f32 %v4343_v58, %v10586_v17  ;;  %vm10959_vm2 = vmor %vm3960_vm3, %vm3961_vm8 }
 0x47c   : > { %v4516_v8 = vrot.slane %v4515_v25, 2  ;;  %v3838_v19 = vmul.f32 %v6485_v40, %v3837_v35  ;;  %vm3841_vm1 = vweird.f32 %v6485_v40  ;;  %v3844_v16 = vand.u32 2147483647, %v10864_v20 }
 0x47d   : > { %v4473_v7 = vsel %vm2673_vm6, %v6487_v56, 0.0  ;;  %v4336_v50 = vmul.f32 1.442695, %v10940_v46  ;;  %6490 = vrcp.f32 %v10953_v6  ;;  %v4224_v17 = vmul.f32 1.442695, %v10944_v28  ;;  %v6489_v61 = vpop.eup %6488 }
 0x47e   : > { %v3963_v58 = vsel %vm10959_vm2, %v10826_v41, %v3959_v47  ;;  %v4517_v35 = vadd.f32 %v4516_v8, %v4515_v25  ;;  %v3839_v1 = vadd.f32 %v6485_v40, %v3838_v19  ;;  %vm3840_vm9 = vweird.f32 %v10864_v20 }
 0x47f   : > { %vm3965_vm10 = vcmp.eq.f32.partialorder %v3964_v45, 8.507059e+37  ;;  %v3967_v56 = vor.u32 1.1754944e-38, %v3966_v9  ;;  %vm3842_vm11 = vmor %vm3840_vm9, %vm3841_vm1  ;;  %v3847_v13 = vor.u32 1.1754944e-38, %v3846_v44  ;;  %v4136_v32 = vmul.f32 %v6489_v61, %v10923_v63  ;;  %v13153_v9 = vld [vmem:[#allocation114_spill] sm:$0xff] }
 0x480   : > { %v4518_v15 = vrot.slane %v4517_v35, 1  ;;  %v3843_v29 = vsel %vm3842_vm11, %v6485_v40, %v3839_v1  ;;  %vm3845_vm5 = vcmp.eq.f32.partialorder %v3844_v16, 8.507059e+37  ;;  %v4345_v41 = vrot.slane %v4344_v2, 4 }
 0x481   : > { %v3968_v47 = vsel %vm3965_vm10, %v3967_v56, %v3963_v58  ;;  %v3848_v25 = vsel %vm3845_vm5, %v3847_v13, %v3843_v29  ;;  %v4137_v8 = vsub.f32 1.0, %v4136_v32  ;;  %v4173_v20 = vsel %vm4172_vm14, %v10462_v60, %v10823_v5  ;;  %v13155_v32 = vld [vmem:[#allocation76_spill] sm:$0xff] }
 0x482   : > { %v4519_v45 = vadd.f32 %v4518_v15, %v4517_v35  ;;  %v10978_v44 = vmul.f32 %v13153_v9, %v3848_v25  ;;  %v4146_v19 = vand.u32 2147483648, %v10923_v63  ;;  %v4178_v34 = vsel %vm10932_vm0, %v10580_v3, %v4173_v20  ;;  %v13160_v25 = vld [vmem:[#allocation112_spill] sm:$0xff] }
 0x483   : > { %v10984_v42 = vpop.eup %6490  ;;  %v4138_v40 = vmul.f32 %v6489_v61, %v4137_v8  ;;  %vm4141_vm15 = vweird.f32 %v6489_v61  ;;  %v4144_v29 = vand.u32 2147483647, %v10923_v63  ;;  %v10988_v1 = vmul.f32 %v13155_v32, %v4178_v34  ;;  %v5047_v32 = vpop.permute.xlu0 %5046 }
 0x484   : > { %13154 = vst [vmem:[#allocation4_spill] sm:$0xff] %v10978_v44  ;;  %6492 = vlog2.f32 %v4519_v45  ;;  %v4288_v60 = vmul.f32 1.442695, %v10978_v44  ;;  %v4016_v5 = vmul.f32 %v10984_v42, %v10953_v6  ;;  %v4346_v15 = vadd.f32 %v4345_v41, %v4344_v2  ;;  %v13186_v44 = vld [vmem:[#allocation97_spill] sm:$0xff] }
 0x485   : > { %v13156_v16 = vand.u32 2147483647, %v10632_v12  ;;  %v4139_v23 = vadd.f32 %v6489_v61, %v4138_v40  ;;  %vm4140_vm4 = vweird.f32 %v10923_v63  ;;  %v13159_v58 = vrot.slane %v10558_v53, 2 }
 0x486   : > { %v4332_v56 = vmul.f32 1.442695, %v10988_v1  ;;  %v4474_v13 = vadd.f32 %v4473_v7, %v10759_v62  ;;  %v11006_v8 = vmul.f32 %v13160_v25, %v3968_v47  ;;  %vm4142_vm13 = vmor %vm4140_vm4, %vm4141_vm15  ;;  %v4147_v12 = vor.u32 1.1754944e-38, %v4146_v19  ;;  %v13162_v62 = vld [vmem:[#allocation19_spill] sm:$0xff] }
 0x487   : > { %vm10995_vm12 = vcmp.eq.f32.partialorder %v13156_v16, 8.507059e+37  ;;  %v4387_v35 = vadd.f32 %v13159_v58, %v10558_v53  ;;  %v4017_v2 = vsub.f32 1.0, %v4016_v5  ;;  %6494 = vpow2.f32 %v4288_v60 }
 0x488   : > { %13161 = vst [vmem:[#allocation35_spill] sm:$0xff] %v11006_v8  ;;  %v4143_v41 = vsel %vm4142_vm13, %v6489_v61, %v4139_v23  ;;  %vm4145_vm0 = vcmp.eq.f32.partialorder %v4144_v29, 8.507059e+37  ;;  %v4347_v9 = vrot.slane %v4346_v15, 2  ;;  %6496 = vpow2.f32 %v4332_v56  ;;  %v11017_v61 = vld [vmem:[%s12296_s6] ss:$0 sm:$0xff]  ;;  %v13184_v23 = vld [vmem:[#allocation96_spill] sm:$0xff] }
 0x489   : > { %v4388_v20 = vrot.slane %v4387_v35, 1  ;;  %v4148_v45 = vsel %vm4145_vm0, %v4147_v12, %v4143_v41  ;;  %v4018_v63 = vmul.f32 %v10984_v42, %v4017_v2  ;;  %v4370_v53 = vadd.f32 %v10937_v24, %v10322_v10  ;;  %v11024_v10 = vld [vmem:[%s12297_s7] ss:$0 sm:$0xff] }
 0x48a   : > { %6498 = vpow2.f32 %v4336_v50  ;;  %v11012_v7 = vmul.f32 %v13162_v62, %v4148_v45  ;;  %v6493_v34 = vpop.eup %6492  ;;  %v4475_v19 = vrot.slane %v4474_v13, 4  ;;  %v4304_v40 = vmul.f32 1.442695, %v11006_v8  ;;  %v13166_v62 = vld [vmem:[#allocation80_spill] sm:$0xff]  ;;  %v13185_v8 = vld [vmem:[#allocation69_spill] sm:$0xff] }
 0x48b   : > { %v4389_v47 = vadd.f32 %v4388_v20, %v4387_v35  ;;  %v4026_v29 = vand.u32 2147483648, %v10953_v6  ;;  %6500 = vpow2.f32 %v4224_v17  ;;  %v11026_v24 = vmul.f32 0.6931472, %v6493_v34  ;;  %v13168_v34 = vld [vmem:[#allocation29_spill] sm:$0xff] }
 0x48c   : > { %13163 = vst [vmem:[#allocation41_spill] sm:$0xff] %v11012_v7  ;;  %v4328_v50 = vmul.f32 1.442695, %v11012_v7  ;;  %v4019_v60 = vadd.f32 %v10984_v42, %v4018_v63  ;;  %vm4021_vm3 = vweird.f32 %v10984_v42  ;;  %vm4020_vm8 = vweird.f32 %v10953_v6 }
 0x48d   : > { %v4024_v5 = vand.u32 2147483647, %v10953_v6  ;;  %v4348_v16 = vadd.f32 %v4347_v9, %v4346_v15  ;;  %6502 = vlog2.f32 %v4389_v47  ;;  %v6495_v17 = vpop.eup %6494  ;;  %vm5172_vm1 = vcmp.gt.f32.partialorder %v5047_v32, %v11017_v61  ;;  %vm4022_vm9 = vmor %vm4020_vm8, %vm4021_vm3 }
 0x48e   : > { %6504 = vpow2.f32 %v4328_v50  ;;  %vm5240_vm2 = vcmp.le.f32.partialorder %v5047_v32, %v11024_v10  ;;  %v6497_v58 = vpop.eup %6496  ;;  %v4412_v35 = vrot.slane %v10915_v59, 2  ;;  %v4371_v56 = vrot.slane %v4370_v53, 4  ;;  %v13169_v32 = vld [vmem:[#allocation115_spill] sm:$0xff] }
 0x48f   : > { %v13164_v6 = vsel %vm10906_vm7, %v10772_v37, %v10889_v57  ;;  %6506 = vpow2.f32 %v4304_v40  ;;  %v4027_v12 = vor.u32 1.1754944e-38, %v4026_v29  ;;  %v4630_v2 = vsub.f32 %v10057_v26, %v11026_v24  ;;  %vm5304_vm10 = vmand %vm5172_vm1, %vm5240_vm2 }
 0x490   : > { %v3758_v15 = vsel %vm10995_vm12, %v10921_v51, %v13164_v6  ;;  %v6499_v25 = vpop.eup %6498  ;;  %v4023_v41 = vsel %vm4022_vm9, %v10984_v42, %v4019_v60  ;;  %v4534_v21 = vsel %vm2673_vm6, %v6497_v58, 0.0  ;;  %v4476_v45 = vadd.f32 %v4475_v19, %v4474_v13 }
 0x491   : > { %v6501_v20 = vpop.eup %6500  ;;  %vm4025_vm7 = vcmp.eq.f32.partialorder %v4024_v5, 8.507059e+37  ;;  %v4349_v37 = vrot.slane %v4348_v16, 1  ;;  %v4533_v57 = vsel %vm2673_vm6, %v10413_v55, 0.0  ;;  %v4460_v51 = vsel %vm2673_vm6, %v6495_v17, 0.0 }
 0x492   : > { %v11059_v3 = vsel %vm5304_vm10, %v4630_v2, 0.0  ;;  %v4028_v26 = vsel %vm4025_vm7, %v4027_v12, %v4023_v41  ;;  %v4535_v42 = vadd.f32 %v4534_v21, %v4533_v57  ;;  %v13165_v13 = vrot.slane %v10816_v0, 1  ;;  %v13171_v21 = vld [vmem:[#allocation121_spill] sm:$0xff]  ;;  %v13172_v57 = vld [vmem:[#allocation90_spill] sm:$0xff] }
 0x493   : > { %v6503_v63 = vpop.eup %6502  ;;  %v11065_v47 = vmul.f32 %v13166_v62, %v3758_v15  ;;  %v11068_v19 = vmul.f32 %v13168_v34, %v4028_v26  ;;  %v4536_v55 = vsel %vm2673_vm6, %v10866_v36, 0.0  ;;  %v4372_v29 = vadd.f32 %v4371_v56, %v4370_v53  ;;  %v13170_v56 = vld [vmem:[#allocation87_spill] sm:$0xff]  ;;  %v13174_v34 = vld [vmem:[#allocation37_spill] sm:$0xff] }
 0x494   : > { %v4428_v9 = vadd.f32 %v13165_v13, %v10816_v0  ;;  %v6505_v40 = vpop.eup %6504  ;;  %v4354_v50 = vsel %vm2673_vm6, %v13169_v32, 0.0  ;;  %v11074_v60 = vmul.f32 0.6931472, %v6503_v63  ;;  %v4537_v5 = vadd.f32 %v4536_v55, %v4535_v42  ;;  %v13173_v63 = vld [vmem:[#allocation88_spill] sm:$0xff]  ;;  %v13175_v55 = vld [vmem:[#allocation91_spill] sm:$0xff] }
 0x495   : > { %13167 = vst [vmem:[#allocation104_spill] sm:$0xff] %v11065_v47  ;;  %v6507_v17 = vpop.eup %6506  ;;  %v4461_v0 = vadd.f32 %v4460_v51, %v10859_v27  ;;  %v4525_v58 = vsel %vm2673_vm6, %v6505_v40, 0.0  ;;  %v4312_v6 = vmul.f32 1.442695, %v11068_v19  ;;  %v4350_v15 = vadd.f32 %v4349_v37, %v4348_v16 }
 0x496   : > { %v11080_v12 = vadd.f32 %v4412_v35, %v10915_v59  ;;  %v4477_v36 = vrot.slane %v4476_v45, 2  ;;  %v4526_v53 = vadd.f32 %v4525_v58, %v10811_v54  ;;  %v4276_v41 = vmul.f32 1.442695, %v11065_v47 }
 0x497   : > { %6508 = vpow2.f32 %v4312_v6  ;;  %v4538_v16 = vsel %vm2673_vm6, %v6499_v25, 0.0  ;;  %v4486_v59 = vsel %vm2673_vm6, %v6507_v17, 0.0  ;;  %v4355_v37 = vadd.f32 %v4354_v50, %v10752_v4  ;;  %v13176_v50 = vld [vmem:[#allocation21_spill] sm:$0xff] }
 0x498   : > { %v4527_v35 = vrot.slane %v4526_v53, 4  ;;  %v4462_v54 = vrot.slane %v4461_v0, 4  ;;  %v4356_v26 = vsel %vm2673_vm6, %v6501_v20, 0.0  ;;  %v4373_v42 = vrot.slane %v4372_v29, 2  ;;  %v13177_v6 = vld [vmem:[#allocation89_spill] sm:$0xff] }
 0x499   : > { %6510 = vlog2.f32 %v4350_v15  ;;  %vm5120_vm11 = vcmp.gt.f32.partialorder %v13173_v63, %v11017_v61  ;;  %vm5188_vm14 = vcmp.le.f32.partialorder %v13173_v63, %v11024_v10  ;;  %v4478_v13 = vadd.f32 %v4477_v36, %v4476_v45  ;;  %v13189_v63 = vld [vmem:[#allocation98_spill] sm:$0xff] }
 0x49a   : > { %6512 = vpow2.f32 %v10403_v30  ;;  %v4528_v25 = vadd.f32 %v4527_v35, %v4526_v53  ;;  %v4357_v62 = vadd.f32 %v4356_v26, %v4355_v37  ;;  %vm5137_vm5 = vcmp.gt.f32.partialorder %v13174_v34, %v11017_v61  ;;  %v13180_v26 = vld [vmem:[#allocation43_spill] sm:$0xff]  ;;  %v13183_v37 = vld [vmem:[#allocation17_spill] sm:$0xff]  ;;  %vm11169_vm10 = vmand %vm5120_vm11, %vm5188_vm14 }
 0x49b   : > { %vm5205_vm15 = vcmp.le.f32.partialorder %v13174_v34, %v11024_v10  ;;  %6514 = vpow2.f32 %v4276_v41  ;;  %v4374_v4 = vadd.f32 %v4373_v42, %v4372_v29  ;;  %v4539_v20 = vadd.f32 %v4538_v16, %v4537_v5  ;;  %v13178_v41 = vld [vmem:[#allocation93_spill] sm:$0xff] }
 0x49c   : > { %vm5123_vm12 = vcmp.gt.f32.partialorder %v13175_v55, %v11017_v61  ;;  %vm5191_vm4 = vcmp.le.f32.partialorder %v13175_v55, %v11024_v10  ;;  %6516 = vlog2.f32 %v4428_v9  ;;  %v4487_v30 = vadd.f32 %v4486_v59, %v10724_v22  ;;  %vm5269_vm1 = vmand %vm5137_vm5, %vm5205_vm15 }
 0x49d   : > { %v4529_v45 = vrot.slane %v4528_v25, 2  ;;  %v4358_v40 = vrot.slane %v4357_v62, 4  ;;  %v6509_v32 = vpop.eup %6508  ;;  %vm5122_vm13 = vcmp.gt.f32.partialorder %v13176_v50, %v11017_v61  ;;  %vm5190_vm0 = vcmp.le.f32.partialorder %v13176_v50, %v11024_v10  ;;  %vm11198_vm5 = vmand %vm5123_vm12, %vm5191_vm4 }
 0x49e   : > { %v4414_v29 = vrot.slane %v11080_v12, 1  ;;  %v4463_v5 = vadd.f32 %v4462_v54, %v4461_v0  ;;  %v4375_v17 = vrot.slane %v4374_v4, 1  ;;  %v4540_v58 = vrot.slane %v4539_v20, 4  ;;  %v13179_v0 = vld [vmem:[#allocation92_spill] sm:$0xff]  ;;  %vm11217_vm12 = vmand %vm5122_vm13, %vm5190_vm0 }
 0x49f   : > { %vm5121_vm3 = vcmp.gt.f32.partialorder %v13177_v6, %v11017_v61  ;;  %vm5189_vm8 = vcmp.le.f32.partialorder %v13177_v6, %v11024_v10  ;;  %v4479_v22 = vrot.slane %v4478_v13, 1  ;;  %v4530_v9 = vadd.f32 %v4529_v45, %v4528_v25  ;;  %v6511_v53 = vpop.eup %6510  ;;  %v13204_v6 = vld [vmem:[#allocation7_spill] sm:$0xff] }
 0x4a0   : > { %v4499_v15 = vsel %vm2673_vm6, %v6509_v32, 0.0  ;;  %v4359_v36 = vadd.f32 %v4358_v40, %v4357_v62  ;;  %vm5193_vm2 = vcmp.le.f32.partialorder %v13178_v41, %v11024_v10  ;;  %v4376_v59 = vadd.f32 %v4375_v17, %v4374_v4  ;;  %v6513_v54 = vpop.eup %6512  ;;  %vm5253_vm4 = vmand %vm5121_vm3, %vm5189_vm8 }
 0x4a1   : > { %v4500_v16 = vadd.f32 %v4499_v15, %v10925_v18  ;;  %v4541_v35 = vadd.f32 %v4540_v58, %v4539_v20  ;;  %v4488_v42 = vrot.slane %v4487_v30, 4  ;;  %v4531_v25 = vrot.slane %v4530_v9, 1  ;;  %v6515_v40 = vpop.eup %6514  ;;  %v13181_v18 = vld [vmem:[#allocation95_spill] sm:$0xff]  ;;  %v13182_v58 = vld [vmem:[#allocation14_spill] sm:$0xff] }
 0x4a2   : > { %v4360_v62 = vrot.slane %v4359_v36, 2  ;;  %v11133_v45 = vmul.f32 0.6931472, %v6511_v53  ;;  %v4464_v4 = vrot.slane %v4463_v5, 2  ;;  %6518 = vlog2.f32 %v4376_v59  ;;  %v6517_v17 = vpop.eup %6516 }
 0x4a3   : > { %v4501_v20 = vrot.slane %v4500_v16, 4  ;;  %v4542_v32 = vrot.slane %v4541_v35, 2  ;;  %v4415_v15 = vadd.f32 %v4414_v29, %v11080_v12  ;;  %v4532_v53 = vadd.f32 %v4531_v25, %v4530_v9  ;;  %v11157_v29 = vpop.permute.xlu2 %5033  ;;  %v13192_v25 = vld [vmem:[#allocation94_spill] sm:$0xff] }
 0x4a4   : > { %v4361_v51 = vadd.f32 %v4360_v62, %v4359_v36  ;;  %v4578_v2 = vsub.f32 %v13183_v37, %v11133_v45  ;;  %vm5129_vm9 = vcmp.gt.f32.partialorder %v13184_v23, %v11017_v61  ;;  %vm5197_vm7 = vcmp.le.f32.partialorder %v13184_v23, %v11024_v10 }
 0x4a5   : > { %v4480_v59 = vadd.f32 %v4479_v22, %v4478_v13  ;;  %v4502_v27 = vadd.f32 %v4501_v20, %v4500_v16  ;;  %v4580_v47 = vsub.f32 %v13185_v8, %v11133_v45  ;;  %v4543_v7 = vadd.f32 %v4542_v32, %v4541_v35  ;;  %v11161_v13 = vpop.permute.xlu0 %4764 }
 0x4a6   : > { %v4443_v12 = vsel %vm2673_vm6, %v6515_v40, 0.0  ;;  %v11159_v9 = vadd.f32 %v4488_v42, %v4487_v30  ;;  %6520 = vlog2.f32 %v4532_v53  ;;  %v4362_v36 = vrot.slane %v4361_v51, 1 }
 0x4a7   : > { %v4445_v16 = vsel %vm2673_vm6, %v10049_v31, 0.0  ;;  %v4442_v30 = vsel %vm2673_vm6, %v6513_v54, 0.0  ;;  %v11176_v35 = vadd.f32 %v4464_v4, %v4463_v5  ;;  %v4503_v37 = vrot.slane %v4502_v27, 2 }
 0x4a8   : > { %vm5199_vm14 = vcmp.le.f32.partialorder %v13189_v63, %v11024_v10  ;;  %v11188_v42 = vmul.f32 0.6931472, %v6517_v17  ;;  %6522 = vlog2.f32 %v4415_v15  ;;  %v4363_v31 = vadd.f32 %v4362_v36, %v4361_v51  ;;  %v6519_v54 = vpop.eup %6518  ;;  %v13207_v36 = vld [vmem:[#allocation10_spill] sm:$0xff] }
 0x4a9   : > { %v4579_v5 = vsub.f32 %v10336_v43, %v11133_v45  ;;  %vm5194_vm11 = vcmp.le.f32.partialorder %v13192_v25, %v11024_v10  ;;  %v13193_v43 = vsub.f32 %v10199_v39, %v10429_v38  ;;  %v4444_v62 = vadd.f32 %v4443_v12, %v4442_v30 }
 0x4aa   : > { %6524 = vlog2.f32 %v4480_v59  ;;  %v4544_v40 = vrot.slane %v4543_v7, 1  ;;  %v4490_v4 = vrot.slane %v11159_v9, 2  ;;  %v4504_v20 = vadd.f32 %v4503_v37, %v4502_v27 }
 0x4ab   : > { %v11209_v51 = vsel %vm5269_vm1, %v13193_v43, 0.0  ;;  %6526 = vlog2.f32 %v4363_v31  ;;  %v4551_v39 = vmul.f32 0.6931472, %v6519_v54  ;;  %v4466_v32 = vrot.slane %v11176_v35, 1  ;;  %v13216_v43 = vld [vmem:[#allocation74_spill] sm:$0xff] }
 0x4ac   : > { %v4581_v50 = vsub.f32 %v10807_v14, %v11133_v45  ;;  %v4593_v17 = vsub.f32 %v10358_v33, %v11074_v60  ;;  %v4545_v15 = vadd.f32 %v4544_v40, %v4543_v7  ;;  %v6521_v53 = vpop.eup %6520  ;;  %vm13196_vm13 = vcmp.gt.f32.partialorder %v13178_v41, %v11017_v61  ;;  %v13203_v14 = vld [vmem:[#allocation25_spill] sm:$0xff] }
 0x4ad   : > { %vm11239_vm0 = vmand %vm13196_vm13, %vm5193_vm2  ;;  %vm13199_vm3 = vcmp.le.f32.partialorder %v13179_v0, %v11024_v10  ;;  %vm13200_vm8 = vcmp.gt.f32.partialorder %v13179_v0, %v11017_v61  ;;  %v4586_v7 = vsub.f32 %v13203_v14, %v4551_v39  ;;  %v4588_v59 = vsub.f32 %v13204_v6, %v4551_v39 }
 0x4ae   : > { %vm11249_vm1 = vmand %vm13200_vm8, %vm13199_vm3  ;;  %v5316_v41 = vsel %vm11169_vm10, %v4578_v2, 0.0  ;;  %v5317_v12 = vsel %vm5253_vm4, %v4579_v5, 0.0  ;;  %vm13205_vm2 = vcmp.le.f32.partialorder %v13180_v26, %v11024_v10  ;;  %vm13206_vm13 = vcmp.gt.f32.partialorder %v13180_v26, %v11017_v61  ;;  %v11268_v31 = vpop.eup %6522 }
 0x4af   : > { %vm5265_vm15 = vmand %vm13206_vm13, %vm13205_vm2  ;;  %v11263_v0 = vmul.f32 0.6931472, %v6521_v53  ;;  %v4587_v30 = vsub.f32 %v13207_v36, %v4551_v39  ;;  %6528 = vlog2.f32 %v4545_v15  ;;  %v11266_v37 = vadd.f32 %v4445_v16, %v4444_v62  ;;  %v11289_v16 = vpop.xlane.xlu0 %3164  ;;  %v13250_v62 = vld [vmem:[#allocation53_spill] sm:$0xff] }
 0x4b0   : > { %vm13208_vm10 = vcmp.le.f32.partialorder %v13181_v18, %v11024_v10  ;;  %vm13209_vm4 = vcmp.gt.f32.partialorder %v13181_v18, %v11017_v61  ;;  %v4505_v26 = vrot.slane %v4504_v20, 1  ;;  %v13212_v22 = vsub.f32 %v13171_v21, %v11074_v60  ;;  %v11291_v54 = vpop.eup %6524  ;;  %v13215_v21 = vld [vmem:[#allocation79_spill] sm:$0xff] }
 0x4b1   : > { %vm11276_vm3 = vmand %vm13209_vm4, %vm13208_vm10  ;;  %vm5127_vm8 = vcmp.gt.f32.partialorder %v11161_v13, %v11017_v61  ;;  %vm5195_vm2 = vcmp.le.f32.partialorder %v11161_v13, %v11024_v10  ;;  %vm13213_vm13 = vcmp.le.f32.partialorder %v13182_v58, %v11024_v10  ;;  %vm13214_vm10 = vcmp.gt.f32.partialorder %v13182_v58, %v11017_v61  ;;  %v6527_v53 = vpop.eup %6526  ;;  %v11316_v58 = vpop.permute.xlu2 %5052 }
 0x4b2   : > { %v11283_v5 = vsel %vm5265_vm15, %v13212_v22, 0.0  ;;  %vm5267_vm4 = vmand %vm13214_vm10, %vm13213_vm13  ;;  %v5318_v40 = vsel %vm11217_vm12, %v4580_v47, 0.0  ;;  %v5319_v15 = vsel %vm11198_vm5, %v4581_v50, 0.0  ;;  %v4589_v14 = vsub.f32 %v10803_v11, %v4551_v39 }
 0x4b3   : > { %vm5261_vm15 = vmand %vm5129_vm9, %vm5197_vm7  ;;  %v5331_v6 = vsel %vm5267_vm4, %v4593_v17, 0.0  ;;  %v5380_v8 = vsel %vm2673_vm6, %v5316_v41, 0.0  ;;  %v5411_v47 = vsel %vm2673_vm6, %v5317_v12, 0.0  ;;  %vm13217_vm5 = vcmp.le.f32.partialorder %v13186_v44, %v11024_v10  ;;  %v13225_v12 = vld [vmem:[#allocation40_spill] sm:$0xff] }
 0x4b4   : > { %vm13218_vm12 = vcmp.gt.f32.partialorder %v13186_v44, %v11017_v61  ;;  %v4549_v45 = vmul.f32 0.6931472, %v6527_v53  ;;  %v5324_v23 = vsel %vm11276_vm3, %v4586_v7, 0.0  ;;  %v5325_v34 = vsel %vm5261_vm15, %v4587_v30, 0.0  ;;  %vm11338_vm9 = vmand %vm5127_vm8, %vm5195_vm2  ;;  %v13223_v7 = vld [vmem:[#allocation73_spill] sm:$0xff] }
 0x4b5   : > { %vm5262_vm13 = vmand %vm13218_vm12, %vm13217_vm5  ;;  %6530 = vrcp.f32 %v11289_v16  ;;  %v4506_v11 = vadd.f32 %v4505_v26, %v4504_v20  ;;  %v5442_v39 = vsel %vm2673_vm6, %v5318_v40, 0.0  ;;  %v5473_v50 = vsel %vm2673_vm6, %v5319_v15, 0.0  ;;  %v6529_v17 = vpop.eup %6528  ;;  %v13222_v20 = vld [vmem:[#allocation32_spill] sm:$0xff] }
 0x4b6   : > { %v5326_v55 = vsel %vm5262_vm13, %v4588_v59, 0.0  ;;  %vm13221_vm7 = vcmp.gt.f32.partialorder %v13189_v63, %v11017_v61  ;;  %vm5149_vm10 = vcmp.gt.f32.partialorder %v13222_v20, %v11017_v61  ;;  %vm5217_vm4 = vcmp.le.f32.partialorder %v13222_v20, %v11024_v10  ;;  %v13224_v59 = vld [vmem:[#allocation31_spill] sm:$0xff] }
 0x4b7   : > { %vm5263_vm3 = vmand %vm13221_vm7, %vm5199_vm14  ;;  %v4582_v13 = vsub.f32 %v13223_v7, %v4549_v45  ;;  %v4583_v41 = vsub.f32 %v13224_v59, %v4549_v45  ;;  %v4584_v36 = vsub.f32 %v13225_v12, %v4549_v45  ;;  %v4585_v30 = vsub.f32 %v10944_v28, %v4549_v45 }
 0x4b8   : > { %vm13226_vm14 = vcmp.gt.f32.partialorder %v13192_v25, %v11017_v61  ;;  %v5327_v63 = vsel %vm5263_vm3, %v4589_v14, 0.0  ;;  %v5383_v2 = vsel %vm2673_vm6, %v5324_v23, 0.0  ;;  %v5414_v26 = vsel %vm2673_vm6, %v5325_v34, 0.0  ;;  %vm5281_vm12 = vmand %vm5149_vm10, %vm5217_vm4 }
 0x4b9   : > { %vm5258_vm8 = vmand %vm13226_vm14, %vm5194_vm11  ;;  %v11364_v22 = vmul.f32 0.6931472, %v6529_v17  ;;  %v5320_v40 = vsel %vm11249_vm1, %v4582_v13, 0.0  ;;  %v5321_v28 = vsel %vm11239_vm0, %v4583_v41, 0.0  ;;  %v5323_v53 = vsel %vm11338_vm9, %v4585_v30, 0.0  ;;  %v13227_v13 = vld [vmem:[#allocation58_spill] sm:$0xff]  ;;  %v11386_v59 = vpop.permute.xlu2 %5071 }
 0x4ba   : > { %v5322_v15 = vsel %vm5258_vm8, %v4584_v36, 0.0  ;;  %v5381_v25 = vsel %vm2673_vm6, %v5320_v40, 0.0  ;;  %v5412_v14 = vsel %vm2673_vm6, %v5321_v28, 0.0  ;;  %v5445_v23 = vsel %vm2673_vm6, %v5326_v55, 0.0 }
 0x4bb   : > { %v5443_v45 = vsel %vm2673_vm6, %v5322_v15, 0.0  ;;  %v11376_v34 = vpop.eup %6530  ;;  %v5382_v17 = vadd.f32 %v5381_v25, %v5380_v8  ;;  %v5413_v33 = vadd.f32 %v5412_v14, %v5411_v47  ;;  %v5474_v27 = vsel %vm2673_vm6, %v5323_v53, 0.0  ;;  %v13230_v15 = vld [vmem:[#allocation26_spill] sm:$0xff]  ;;  %v13232_v25 = vld [vmem:[#allocation113_spill] sm:$0xff]  ;;  %v13252_v14 = vld [vmem:[#allocation119_spill] sm:$0xff] }
 0x4bc   : > { %v5444_v7 = vadd.f32 %v5443_v45, %v5442_v39  ;;  %vm5132_vm11 = vcmp.gt.f32.partialorder %v13227_v13, %v11017_v61  ;;  %vm5200_vm0 = vcmp.le.f32.partialorder %v13227_v13, %v11024_v10  ;;  %v4467_v44 = vadd.f32 %v4466_v32, %v11176_v35  ;;  %v13233_v45 = vld [vmem:[#allocation16_spill] sm:$0xff] }
 0x4bd   : > { %v5476_v55 = vsel %vm2673_vm6, %v5327_v63, 0.0  ;;  %v5475_v41 = vadd.f32 %v5474_v27, %v5473_v50  ;;  %v11391_v47 = vadd.f32 %v5383_v2, %v5382_v17  ;;  %v5415_v39 = vadd.f32 %v5414_v26, %v5413_v33  ;;  %v13229_v63 = vld [vmem:[#allocation50_spill] sm:$0xff]  ;;  %v13254_v17 = vld [vmem:[#allocation49_spill] sm:$0xff] }
 0x4be   : > { %v11393_v12 = vadd.f32 %v5445_v23, %v5444_v7  ;;  %v3776_v36 = vmul.f32 %v11376_v34, %v11289_v16  ;;  %v5418_v30 = vsel %vm2673_vm6, %v11209_v51, 0.0  ;;  %v11400_v35 = vmul.f32 0.6931472, %v11268_v31  ;;  %v13234_v23 = vld [vmem:[#allocation75_spill] sm:$0xff]  ;;  %v13235_v33 = vld [vmem:[#allocation54_spill] sm:$0xff]  ;;  %v13236_v7 = vld [vmem:[#allocation44_spill] sm:$0xff] }
 0x4bf   : > { %v5416_v32 = vsel %vm2673_vm6, %v11283_v5, 0.0  ;;  %v5477_v50 = vadd.f32 %v5476_v55, %v5475_v41  ;;  %vm5136_vm1 = vcmp.gt.f32.partialorder %v13229_v63, %v11017_v61  ;;  %vm5204_vm2 = vcmp.le.f32.partialorder %v13229_v63, %v11024_v10  ;;  %v11415_v5 = vpop.permute.xlu1 %5039  ;;  %v13239_v41 = vld [vmem:[#allocation55_spill] sm:$0xff] }
 0x4c0   : > { %13228 = vst [vmem:[#allocation61_spill] sm:$0xff] %v11393_v12  ;;  %v11409_v2 = vmul.f32 0.6931472, %v11291_v54  ;;  %6532 = vlog2.f32 %v4506_v11  ;;  %v5417_v26 = vadd.f32 %v5416_v32, %v5415_v39  ;;  %v5478_v51 = vsel %vm2673_vm6, %v5331_v6, 0.0  ;;  %v13240_v32 = vld [vmem:[#allocation38_spill] sm:$0xff] }
 0x4c1   : > { %v4491_v31 = vadd.f32 %v4490_v4, %v11159_v9  ;;  %6534 = vlog2.f32 %v4467_v44  ;;  %v11417_v40 = vadd.f32 %v5478_v51, %v5477_v50  ;;  %v3777_v28 = vsub.f32 1.0, %v3776_v36  ;;  %v13231_v9 = vld [vmem:[#allocation125_spill] sm:$0xff]  ;;  %v13238_v44 = vld [vmem:[#allocation20_spill] sm:$0xff]  ;;  %v11456_v39 = vpop.permute.xlu2 %5083 }
 0x4c2   : > { %vm5208_vm5 = vcmp.le.f32.partialorder %v13230_v15, %v11024_v10  ;;  %v11423_v54 = vadd.f32 %v5418_v30, %v5417_v26  ;;  %v3784_v6 = vand.u32 2147483647, %v11289_v16  ;;  %v3786_v11 = vand.u32 2147483648, %v11289_v16 }
 0x4c3   : > { %v3778_v53 = vmul.f32 %v11376_v34, %v3777_v28  ;;  %vm3781_vm13 = vweird.f32 %v11376_v34  ;;  %vm5161_vm9 = vcmp.gt.f32.partialorder %v13235_v33, %v11017_v61  ;;  %vm5229_vm7 = vcmp.le.f32.partialorder %v13235_v33, %v11024_v10 }
 0x4c4   : > { %v13237_v20 = vsub.f32 %v13236_v7, %v13233_v45  ;;  %vm5173_vm10 = vcmp.gt.f32.partialorder %v11316_v58, %v11017_v61  ;;  %vm5241_vm4 = vcmp.le.f32.partialorder %v11316_v58, %v11024_v10  ;;  %vm3780_vm14 = vweird.f32 %v11289_v16  ;;  %v13243_v16 = vld [vmem:[#allocation72_spill] sm:$0xff] }
 0x4c5   : > { %v3779_v36 = vadd.f32 %v11376_v34, %v3778_v53  ;;  %v4619_v50 = vsub.f32 %v13240_v32, %v11409_v2  ;;  %v4492_v26 = vrot.slane %v4491_v31, 1  ;;  %vm3782_vm8 = vmor %vm3780_vm14, %vm3781_vm13  ;;  %v3787_v51 = vor.u32 1.1754944e-38, %v3786_v11  ;;  %v13242_v53 = vld [vmem:[#allocation120_spill] sm:$0xff]  ;;  %v13247_v11 = vld [vmem:[#allocation67_spill] sm:$0xff] }
 0x4c6   : > { %v5345_v27 = vsel %vm5281_vm12, %v13237_v20, 0.0  ;;  %v6533_v30 = vpop.eup %6532  ;;  %vm3785_vm12 = vcmp.eq.f32.partialorder %v3784_v6, 8.507059e+37  ;;  %v13241_v20 = vld [vmem:[#allocation122_spill] sm:$0xff]  ;;  %vm11477_vm13 = vmand %vm5132_vm11, %vm5200_vm0  ;;  %v13248_v32 = vld [vmem:[#allocation36_spill] sm:$0xff]  ;;  %vm5216_vm3 = vcmp.le.f32.partialorder %v13247_v11, %v11024_v10 }
 0x4c7   : > { %v6535_v28 = vpop.eup %6534  ;;  %v3783_v7 = vsel %vm3782_vm8, %v11376_v34, %v3779_v36  ;;  %v4598_v55 = vsub.f32 %v13241_v20, %v11400_v35  ;;  %v13246_v34 = vld [vmem:[#allocation47_spill] sm:$0xff]  ;;  %v13249_v20 = vld [vmem:[#allocation52_spill] sm:$0xff]  ;;  %v5059_v13 = vpop.permute.xlu1 %5058  ;;  %v11517_v8 = vsel %vm2673_vm6, %v5345_v27, 0.0  ;;  %v4493_v33 = vadd.f32 %v4492_v26, %v4491_v31  ;;  %vm5268_vm0 = vmand %vm5136_vm1, %vm5204_vm2 }
 0x4c8   : > { %v3788_v36 = vsel %vm3785_vm12, %v3787_v51, %v3783_v7  ;;  %vm5293_vm12 = vmand %vm5161_vm9, %vm5229_vm7  ;;  %v13251_v51 = vld [vmem:[#allocation100_spill] sm:$0xff]  ;;  %v11509_v7 = vmul.f32 0.6931472, %v6533_v30  ;;  %v11525_v30 = vmul.f32 0.6931472, %v6535_v28  ;;  %vm5134_vm7 = vcmp.gt.f32.partialorder %v13254_v17, %v11017_v61 }
 0x4c9   : > { %vm5169_vm11 = vcmp.gt.f32.partialorder %v13251_v51, %v11017_v61  ;;  %v11512_v18 = vmul.f32 %v13252_v14, %v3788_v36  ;;  %vm5237_vm14 = vcmp.le.f32.partialorder %v13251_v51, %v11024_v10  ;;  %vm5305_vm9 = vmand %vm5173_vm10, %vm5241_vm4  ;;  %vm5202_vm8 = vcmp.le.f32.partialorder %v13254_v17, %v11024_v10  ;;  %v13255_v14 = vld [vmem:[#allocation9_spill] sm:$0xff]  ;;  %v13258_v36 = vld [vmem:[#allocation6_spill] sm:$0xff]  ;;  %v11567_v6 = vpop.permute.xlu2 %5102 }
 0x4ca   : > { %vm5213_vm10 = vcmp.le.f32.partialorder %v13255_v14, %v11024_v10  ;;  %v5357_v58 = vsel %vm5293_vm12, %v4619_v50, 0.0  ;;  %v13256_v31 = vsub.f32 %v10800_v52, %v11026_v24  ;;  %v13257_v28 = vsub.f32 %v13170_v56, %v11074_v60  ;;  %v13259_v50 = vld [vmem:[#allocation57_spill] sm:$0xff] }
 0x4cb   : > { %13253 = vst [vmem:[#allocation102_spill] sm:$0xff] %v11512_v18  ;;  %v4280_v26 = vmul.f32 1.442695, %v11512_v18  ;;  %6536 = vlog2.f32 %v4493_v33  ;;  %v13260_v52 = vld [vmem:[#allocation5_spill] sm:$0xff]  ;;  %v13261_v18 = vld [vmem:[#allocation66_spill] sm:$0xff]  ;;  %vm13263_vm4 = vcmp.gt.f32.partialorder %v13230_v15, %v11017_v61  ;;  %vm5242_vm12 = vcmp.le.f32.partialorder %v5059_v13, %v11024_v10 }
 0x4cc   : > { %v5369_v27 = vsel %vm5305_vm9, %v13256_v31, 0.0  ;;  %v5328_v63 = vsel %vm11477_vm13, %v13257_v28, 0.0  ;;  %v13262_v12 = vsub.f32 %v13261_v18, %v10429_v38  ;;  %vm5272_vm13 = vmand %vm13263_vm4, %vm5208_vm5  ;;  %v13264_v33 = vld [vmem:[#allocation42_spill] sm:$0xff]  ;;  %v4627_v31 = vsub.f32 %v10745_v48, %v11509_v7 }
 0x4cd   : > { %6538 = vpow2.f32 %v4280_v26  ;;  %vm5174_vm5 = vcmp.gt.f32.partialorder %v5059_v13, %v11017_v61  ;;  %v5385_v15 = vsel %vm2673_vm6, %v5328_v63, 0.0  ;;  %vm5176_vm9 = vcmp.gt.f32.partialorder %v11386_v59, %v11017_v61  ;;  %v13278_v13 = vld [vmem:[#allocation65_spill] sm:$0xff] }
 0x4ce   : > { %v5332_v56 = vsel %vm5268_vm0, %v13262_v12, 0.0  ;;  %vm5301_vm0 = vmand %vm5169_vm11, %vm5237_vm14  ;;  %v11582_v12 = vsel %vm2673_vm6, %v5357_v58, 0.0  ;;  %v5336_v48 = vsel %vm5272_vm13, %v4598_v55, 0.0  ;;  %v5386_v18 = vadd.f32 %v5385_v15, %v11391_v47  ;;  %v13271_v55 = vld [vmem:[#allocation30_spill] sm:$0xff] }
 0x4cf   : > { %13266 = vst [vmem:[#allocation126_spill] sm:$0xff] %v11582_v12  ;;  %v11589_v26 = vsel %vm5301_vm0, %v4627_v31, 0.0  ;;  %vm13268_vm14 = vcmp.le.f32.partialorder %v13239_v41, %v11024_v10  ;;  %vm13269_vm11 = vcmp.gt.f32.partialorder %v13239_v41, %v11017_v61  ;;  %v11599_v51 = vsel %vm2673_vm6, %v5369_v27, 0.0  ;;  %v13272_v47 = vld [vmem:[#allocation22_spill] sm:$0xff]  ;;  %vm11622_vm13 = vmand %vm5174_vm5, %vm5242_vm12  ;;  %v5078_v31 = vpop.permute.xlu1 %5077  ;;  %v13313_v12 = vld [vmem:[#allocation28_spill] sm:$0xff] }
 0x4d0   : > { %13267 = vst [vmem:[#allocation118_spill] sm:$0xff] %v11589_v26  ;;  %vm5276_vm4 = vmand %vm13269_vm11, %vm13268_vm14  ;;  %vm5244_vm1 = vcmp.le.f32.partialorder %v11386_v59, %v11024_v10  ;;  %v5387_v58 = vsel %vm2673_vm6, %v5332_v56, 0.0  ;;  %v13273_v41 = vld [vmem:[#allocation70_spill] sm:$0xff]  ;;  %v13276_v56 = vsub.f32 %v13231_v9, %v11188_v42  ;;  %vm13277_vm14 = vcmp.gt.f32.partialorder %v13247_v11, %v11017_v61 }
 0x4d1   : > { %13270 = vst [vmem:[#allocation110_spill] sm:$0xff] %v11599_v51  ;;  %v5388_v63 = vadd.f32 %v5387_v58, %v5386_v18  ;;  %v6537_v28 = vpop.eup %6536  ;;  %vm5280_vm11 = vmand %vm13277_vm14, %vm5216_vm3  ;;  %v5389_v9 = vsel %vm2673_vm6, %v5336_v48, 0.0  ;;  %vm13279_vm3 = vcmp.le.f32.partialorder %v13246_v34, %v11024_v10  ;;  %vm13280_vm14 = vcmp.gt.f32.partialorder %v13246_v34, %v11017_v61  ;;  %v13283_v58 = vld [vmem:[#allocation63_spill] sm:$0xff] }
 0x4d2   : > { %v5340_v15 = vsel %vm5276_vm4, %v13276_v56, 0.0  ;;  %vm11652_vm5 = vmand %vm13280_vm14, %vm13279_vm3  ;;  %v11662_v48 = vmul.f32 0.6931472, %v6537_v28  ;;  %v13284_v56 = vsub.f32 %v13234_v23, %v13233_v45  ;;  %vm13285_vm3 = vcmp.le.f32.partialorder %v13249_v20, %v11024_v10  ;;  %v13291_v23 = vld [vmem:[#allocation27_spill] sm:$0xff] }
 0x4d3   : > { %v6539_v18 = vpop.eup %6538  ;;  %v5390_v34 = vadd.f32 %v5389_v9, %v5388_v63  ;;  %vm13286_vm14 = vcmp.gt.f32.partialorder %v13249_v20, %v11017_v61  ;;  %vm13289_vm0 = vcmp.le.f32.partialorder %v13250_v62, %v11024_v10  ;;  %vm13290_vm2 = vcmp.gt.f32.partialorder %v13250_v62, %v11017_v61  ;;  %v13293_v62 = vld [vmem:[#allocation71_spill] sm:$0xff] }
 0x4d4   : > { %v5344_v51 = vsel %vm5280_vm11, %v13284_v56, 0.0  ;;  %vm11673_vm12 = vmand %vm13286_vm14, %vm13285_vm3  ;;  %vm5228_vm15 = vcmp.le.f32.partialorder %v13291_v23, %v11024_v10  ;;  %v13292_v20 = vsub.f32 %v10004_v49, %v11026_v24  ;;  %vm5177_vm3 = vcmp.gt.f32.partialorder %v5078_v31, %v11017_v61  ;;  %v5115_v49 = vpop.permute.xlu2 %5114 }
 0x4d5   : > { %vm5273_vm4 = vmand %vm13290_vm2, %vm13289_vm0  ;;  %v4447_v63 = vsel %vm2673_vm6, %v6539_v18, 0.0  ;;  %v5391_v9 = vsel %vm2673_vm6, %v5340_v15, 0.0  ;;  %v13294_v18 = vld [vmem:[#allocation11_spill] sm:$0xff]  ;;  %v13295_v15 = vsub.f32 %v13242_v53, %v11400_v35  ;;  %v13300_v17 = vsub.f32 %v13215_v21, %v11263_v0  ;;  %v13305_v21 = vld [vmem:[#allocation64_spill] sm:$0xff] }
 0x4d6   : > { %v5370_v28 = vsel %vm11622_vm13, %v13292_v20, 0.0  ;;  %vm5308_vm14 = vmand %vm5176_vm9, %vm5244_vm1  ;;  %v4448_v27 = vadd.f32 %v4447_v63, %v11266_v37  ;;  %v5392_v26 = vadd.f32 %v5391_v9, %v5390_v34  ;;  %v13298_v37 = vld [vmem:[#allocation45_spill] sm:$0xff]  ;;  %v4629_v34 = vsub.f32 %v11068_v19, %v11509_v7  ;;  %v13350_v19 = vld [vmem:[#allocation62_spill] sm:$0xff] }
 0x4d7   : > { %v5337_v20 = vsel %vm5273_vm4, %v13295_v15, 0.0  ;;  %vm11717_vm13 = vmand %vm5134_vm7, %vm5202_vm8  ;;  %vm13299_vm4 = vcmp.gt.f32.partialorder %v13255_v14, %v11017_v61  ;;  %v5372_v53 = vsel %vm5308_vm14, %v13300_v17, 0.0  ;;  %vm5245_vm8 = vcmp.le.f32.partialorder %v5078_v31, %v11024_v10  ;;  %v13312_v17 = vld [vmem:[#allocation78_spill] sm:$0xff] }
 0x4d8   : > { %vm5277_vm2 = vmand %vm13299_vm4, %vm5213_vm10  ;;  %v5393_v63 = vsel %vm2673_vm6, %v5344_v51, 0.0  ;;  %vm13301_vm7 = vcmp.le.f32.partialorder %v13258_v36, %v11024_v10  ;;  %vm13302_vm1 = vcmp.gt.f32.partialorder %v13258_v36, %v11017_v61  ;;  %vm13306_vm4 = vcmp.le.f32.partialorder %v11456_v39, %v11024_v10  ;;  %v13360_v14 = vld [vmem:[#allocation86_spill] sm:$0xff] }
 0x4d9   : > { %vm11744_vm9 = vmand %vm13302_vm1, %vm13301_vm7  ;;  %vm13307_vm0 = vcmp.gt.f32.partialorder %v11456_v39, %v11017_v61  ;;  %v4449_v36 = vrot.slane %v4448_v27, 4  ;;  %v13310_v51 = vsub.f32 %v13232_v25, %v11188_v42  ;;  %v11765_v15 = vadd.f32 %v5393_v63, %v5392_v26 }
 0x4da   : > { %vm11758_vm11 = vmand %vm13307_vm0, %vm13306_vm4  ;;  %v4597_v56 = vsub.f32 %v13312_v17, %v10429_v38  ;;  %v11775_v39 = vsel %vm2673_vm6, %v11059_v3, 0.0  ;;  %vm13315_vm0 = vcmp.le.f32.partialorder %v11567_v6, %v11024_v10  ;;  %vm5183_vm10 = vcmp.gt.f32.partialorder %v5115_v49, %v11017_v61  ;;  %v13321_v17 = vld [vmem:[#allocation99_spill] sm:$0xff] }
 0x4db   : > { %v5341_v9 = vsel %vm5277_vm2, %v13310_v51, 0.0  ;;  %13311 = vst [vmem:[#allocation77_spill] sm:$0xff] %v11765_v15  ;;  %vm13316_vm2 = vcmp.gt.f32.partialorder %v11567_v6, %v11017_v61  ;;  %vm5251_vm1 = vcmp.le.f32.partialorder %v5115_v49, %v11024_v10  ;;  %v5420_v26 = vsel %vm2673_vm6, %v5337_v20, 0.0  ;;  %vm11797_vm7 = vmand %vm5177_vm3, %vm5245_vm8 }
 0x4dc   : > { %13314 = vst [vmem:[#allocation127_spill] sm:$0xff] %v11775_v39  ;;  %vm11783_vm4 = vmand %vm13316_vm2, %vm13315_vm0  ;;  %v11791_v63 = vsel %vm2673_vm6, %v5370_v28, 0.0  ;;  %v4450_v6 = vadd.f32 %v4449_v36, %v4448_v27  ;;  %v5421_v51 = vadd.f32 %v5420_v26, %v11423_v54  ;;  %v4609_v39 = vsub.f32 %v13321_v17, %v13233_v45  ;;  %v13325_v54 = vld [vmem:[#allocation23_spill] sm:$0xff]  ;;  %v13336_v26 = vld [vmem:[#allocation24_spill] sm:$0xff] }
 0x4dd   : > { %v11805_v15 = vsel %vm2673_vm6, %v5372_v53, 0.0  ;;  %v13322_v28 = vsub.f32 %v13216_v43, %v11263_v0  ;;  %vm13323_vm3 = vcmp.le.f32.partialorder %v11415_v5, %v11024_v10  ;;  %vm13324_vm8 = vcmp.gt.f32.partialorder %v11415_v5, %v11017_v61  ;;  %v13326_v53 = vld [vmem:[#allocation85_spill] sm:$0xff] }
 0x4de   : > { %vm5303_vm0 = vmand %vm13324_vm8, %vm13323_vm3  ;;  %v4635_v31 = vsub.f32 %v13325_v54, %v11263_v0  ;;  %v5422_v27 = vsel %vm2673_vm6, %v5341_v9, 0.0  ;;  %vm5233_vm14 = vcmp.le.f32.partialorder %v13326_v53, %v11024_v10  ;;  %v4451_v5 = vrot.slane %v4450_v6, 2  ;;  %v13343_v54 = vld [vmem:[#allocation39_spill] sm:$0xff] }
 0x4df   : > { %v11812_v20 = vsel %vm11758_vm11, %v13322_v28, 0.0  ;;  %v5367_v43 = vsel %vm5303_vm0, %v4629_v34, 0.0  ;;  %vm11831_vm11 = vmand %vm5183_vm10, %vm5251_vm1  ;;  %v5423_v36 = vadd.f32 %v5422_v27, %v5421_v51  ;;  %v5335_v9 = vsel %vm11652_vm5, %v4597_v56, 0.0  ;;  %v13381_v34 = vld [vmem:[#allocation103_spill] sm:$0xff] }
 0x4e0   : > { %vm13329_vm3 = vcmp.le.f32.partialorder %v13272_v47, %v11024_v10  ;;  %vm13330_vm8 = vcmp.gt.f32.partialorder %v13272_v47, %v11017_v61  ;;  %vm13333_vm10 = vcmp.le.f32.partialorder %v13273_v41, %v11024_v10  ;;  %vm13334_vm1 = vcmp.gt.f32.partialorder %v13273_v41, %v11017_v61  ;;  %v13337_v41 = vld [vmem:[#allocation60_spill] sm:$0xff] }
 0x4e1   : > { %vm11843_vm0 = vmand %vm13330_vm8, %vm13329_vm3  ;;  %v13335_v11 = vsub.f32 %v10988_v1, %v11364_v22  ;;  %v4641_v47 = vsub.f32 %v10940_v46, %v11364_v22  ;;  %v11864_v56 = vsel %vm11797_vm7, %v4635_v31, 0.0  ;;  %v4615_v51 = vsub.f32 %v13336_v26, %v11525_v30  ;;  %v11920_v31 = vpop.permute.xlu1 %5096 }
 0x4e2   : > { %vm5283_vm2 = vmand %vm13334_vm1, %vm13333_vm10  ;;  %vm5220_vm3 = vcmp.le.f32.partialorder %v13337_v41, %v11024_v10  ;;  %vm13339_vm8 = vcmp.gt.f32.partialorder %v13278_v13, %v11017_v61  ;;  %v4452_v1 = vadd.f32 %v4451_v5, %v4450_v6  ;;  %v11883_v25 = vadd.f32 %v11517_v8, %v5423_v36 }
 0x4e3   : > { %v11858_v49 = vsel %vm11783_vm4, %v13335_v11, 0.0  ;;  %vm13338_vm4 = vcmp.le.f32.partialorder %v13278_v13, %v11024_v10  ;;  %v13342_v3 = vsub.f32 %v13243_v16, %v11400_v35  ;;  %v5347_v28 = vsel %vm5283_vm2, %v4609_v39, 0.0  ;;  %v13346_v16 = vld [vmem:[#allocation84_spill] sm:$0xff] }
 0x4e4   : > { %vm11878_vm10 = vmand %vm13339_vm8, %vm13338_vm4  ;;  %vm5153_vm7 = vcmp.gt.f32.partialorder %v13343_v54, %v11017_v61  ;;  %vm5221_vm1 = vcmp.le.f32.partialorder %v13343_v54, %v11024_v10  ;;  %vm13344_vm4 = vcmp.le.f32.partialorder %v13283_v58, %v11024_v10  ;;  %vm13345_vm8 = vcmp.gt.f32.partialorder %v13283_v58, %v11017_v61  ;;  %v13348_v58 = vld [vmem:[#allocation46_spill] sm:$0xff] }
 0x4e5   : > { %v5339_v17 = vsel %vm11673_vm12, %v13342_v3, 0.0  ;;  %vm5288_vm5 = vmand %vm13345_vm8, %vm13344_vm4  ;;  %v11901_v8 = vsel %vm2673_vm6, %v5367_v43, 0.0  ;;  %v11905_v4 = vsel %vm11831_vm11, %v4641_v47, 0.0  ;;  %v4605_v13 = vsub.f32 %v13346_v16, %v11188_v42  ;;  %v4890_v3 = vpop.permute.xlu0 %4889  ;;  %v13370_v16 = vld [vmem:[#allocation56_spill] sm:$0xff] }
 0x4e6   : > { %v5480_v39 = vsel %vm2673_vm6, %v5335_v9, 0.0  ;;  %vm13347_vm12 = vcmp.gt.f32.partialorder %v13291_v23, %v11017_v61  ;;  %v4453_v6 = vrot.slane %v4452_v1, 1  ;;  %v13349_v27 = vsub.f32 %v13259_v50, %v11525_v30  ;;  %v13352_v9 = vld [vmem:[#allocation68_spill] sm:$0xff] }
 0x4e7   : > { %vm5292_vm2 = vmand %vm13347_vm12, %vm5228_vm15  ;;  %v13351_v23 = vsub.f32 %v13172_v57, %v11074_v60  ;;  %vm13353_vm12 = vcmp.le.f32.partialorder %v13293_v62, %v11024_v10  ;;  %v5353_v50 = vsel %vm11744_vm9, %v4615_v51, 0.0  ;;  %v13355_v60 = vsub.f32 %v13260_v52, %v11409_v2 }
 0x4e8   : > { %v5352_v43 = vsel %vm5288_vm5, %v13349_v27, 0.0  ;;  %vm13354_vm5 = vcmp.gt.f32.partialorder %v13293_v62, %v11017_v61  ;;  %v5482_v59 = vsel %vm2673_vm6, %v5339_v17, 0.0  ;;  %v5486_v11 = vsel %vm2673_vm6, %v5347_v28, 0.0  ;;  %v13372_v27 = vld [vmem:[#allocation124_spill] sm:$0xff] }
 0x4e9   : > { %v5330_v36 = vsel %vm11717_vm13, %v13351_v23, 0.0  ;;  %vm5300_vm4 = vmand %vm13354_vm5, %vm13353_vm12  ;;  %v5356_v57 = vsel %vm5292_vm2, %v13355_v60, 0.0  ;;  %vm13356_vm13 = vcmp.le.f32.partialorder %v13298_v37, %v11024_v10  ;;  %vm13357_vm15 = vcmp.gt.f32.partialorder %v13298_v37, %v11017_v61 }
 0x4ea   : > { %vm11955_vm11 = vmand %vm13357_vm15, %vm13356_vm13  ;;  %v4454_v52 = vadd.f32 %v4453_v6, %v4452_v1  ;;  %v13361_v47 = vsub.f32 %v13264_v33, %v11509_v7  ;;  %v5481_v51 = vadd.f32 %v5480_v39, %v11417_v40  ;;  %v13362_v37 = vsub.f32 %v13238_v44, %v11188_v42  ;;  %v13365_v33 = vld [vmem:[#allocation18_spill] sm:$0xff]  ;;  %v13368_v44 = vld [vmem:[#allocation8_spill] sm:$0xff] }
 0x4eb   : > { %vm13363_vm15 = vcmp.le.f32.partialorder %v13305_v21, %v11024_v10  ;;  %vm13364_vm12 = vcmp.gt.f32.partialorder %v13305_v21, %v11017_v61  ;;  %v11985_v40 = vsel %vm2673_vm6, %v5352_v43, 0.0  ;;  %vm5147_vm9 = vcmp.gt.f32.partialorder %v4890_v3, %v11017_v61 }
 0x4ec   : > { %v11966_v26 = vsel %vm5300_vm4, %v13361_v47, 0.0  ;;  %v5342_v17 = vsel %vm11878_vm10, %v13362_v37, 0.0  ;;  %vm5282_vm5 = vmand %vm13364_vm12, %vm13363_vm15  ;;  %vm5215_vm10 = vcmp.le.f32.partialorder %v4890_v3, %v11024_v10  ;;  %v5447_v42 = vsel %vm2673_vm6, %v5330_v36, 0.0  ;;  %v12055_v37 = vpop.permute.xlu1 %5089 }
 0x4ed   : > { %vm13366_vm2 = vcmp.le.f32.partialorder %v13313_v12, %v11024_v10  ;;  %vm13367_vm15 = vcmp.gt.f32.partialorder %v13313_v12, %v11017_v61  ;;  %6540 = vlog2.f32 %v4454_v52  ;;  %v4623_v21 = vsub.f32 %v13368_v44, %v11662_v48  ;;  %vm5279_vm8 = vmand %vm5147_vm9, %vm5215_vm10  ;;  %v13371_v12 = vld [vmem:[#allocation13_spill] sm:$0xff]  ;;  %v13382_v44 = vld [vmem:[#allocation4_spill] sm:$0xff] }
 0x4ee   : > { %vm5296_vm12 = vmand %vm13367_vm15, %vm13366_vm2  ;;  %v5483_v46 = vadd.f32 %v5482_v59, %v5481_v51  ;;  %v13369_v1 = vsub.f32 %v13271_v55, %v13233_v45  ;;  %vm5162_vm4 = vcmp.gt.f32.partialorder %v13370_v16, %v11017_v61  ;;  %vm5230_vm13 = vcmp.le.f32.partialorder %v13370_v16, %v11024_v10  ;;  %v13373_v45 = vld [vmem:[#allocation82_spill] sm:$0xff] }
 0x4ef   : > { %v12006_v39 = vsel %vm2673_vm6, %v5356_v57, 0.0  ;;  %v4616_v6 = vsub.f32 %v13371_v12, %v11525_v30  ;;  %v5453_v23 = vsel %vm2673_vm6, %v5342_v17, 0.0  ;;  %v13374_v55 = vsub.f32 %v13294_v18, %v11662_v48  ;;  %v13375_v57 = vld [vmem:[#allocation51_spill] sm:$0xff] }
 0x4f0   : > { %v5346_v28 = vsel %vm5282_vm5, %v13369_v1, 0.0  ;;  %vm5226_vm5 = vcmp.le.f32.partialorder %v13373_v45, %v11024_v10  ;;  %v5343_v60 = vsel %vm5279_vm8, %v4605_v13, 0.0  ;;  %v13376_v59 = vsub.f32 %v13375_v57, %v10429_v38  ;;  %v13379_v18 = vld [vmem:[#allocation59_spill] sm:$0xff]  ;;  %v13393_v57 = vld [vmem:[#allocation41_spill] sm:$0xff] }
 0x4f1   : > { %v5360_v36 = vsel %vm5296_vm12, %v13374_v55, 0.0  ;;  %v13377_v47 = vsub.f32 %v13248_v32, %v11400_v35  ;;  %vm13378_vm9 = vcmp.gt.f32.partialorder %v13326_v53, %v11017_v61  ;;  %v5484_v38 = vsel %vm2673_vm6, %v5343_v60, 0.0  ;;  %v13380_v35 = vld [vmem:[#allocation123_spill] sm:$0xff]  ;;  %v13383_v55 = vld [vmem:[#allocation61_spill] sm:$0xff] }
 0x4f2   : > { %v5334_v52 = vsel %vm11955_vm11, %v13376_v59, 0.0  ;;  %vm5297_vm10 = vmand %vm13378_vm9, %vm5233_vm14  ;;  %v5455_v62 = vsel %vm2673_vm6, %v5346_v28, 0.0  ;;  %v12049_v53 = vld [vmem:[%s12296_s6] ss:$0 sm:$0xff]  ;;  %v5485_v17 = vadd.f32 %v5484_v38, %v5483_v46  ;;  %v4617_v1 = vsub.f32 %v13382_v44, %v11525_v30  ;;  %v13390_v44 = vld [vmem:[#allocation128_spill] sm:$0xff] }
 0x4f3   : > { %v5338_v51 = vsel %vm11843_vm0, %v13377_v47, 0.0  ;;  %v5361_v3 = vsel %vm5297_vm10, %v4623_v21, 0.0  ;;  %v5448_v28 = vadd.f32 %v5447_v42, %v13383_v55  ;;  %vm13384_vm11 = vcmp.gt.f32.partialorder %v13337_v41, %v11017_v61  ;;  %v13387_v46 = vld [vmem:[#allocation83_spill] sm:$0xff]  ;;  %v6541_v47 = vpop.eup %6540 }
 0x4f4   : > { %vm12066_vm12 = vmand %vm13384_vm11, %vm5220_vm3  ;;  %v12071_v21 = vsel %vm2673_vm6, %v5360_v36, 0.0  ;;  %v5449_v59 = vsel %vm2673_vm6, %v5334_v52, 0.0  ;;  %v5451_v42 = vsel %vm2673_vm6, %v5338_v51, 0.0  ;;  %v5428_v36 = vsel %vm2673_vm6, %v5353_v50, 0.0  ;;  %v5015_v52 = vpop.permute.xlu0 %5014  ;;  %v13406_v50 = vld [vmem:[#allocation34_spill] sm:$0xff] }
 0x4f5   : > { %vm12083_vm3 = vmand %vm5153_vm7, %vm5221_vm1  ;;  %v5487_v38 = vadd.f32 %v5486_v11, %v5485_v17  ;;  %v4621_v55 = vsub.f32 %v13390_v44, %v11409_v2  ;;  %v5450_v5 = vadd.f32 %v5449_v59, %v5448_v28  ;;  %vm13391_vm9 = vcmp.le.f32.partialorder %v13348_v58, %v11024_v10  ;;  %v13400_v17 = vld [vmem:[#allocation81_spill] sm:$0xff]  ;;  %v13401_v59 = vld [vmem:[#allocation104_spill] sm:$0xff] }
 0x4f6   : > { %vm13392_vm10 = vcmp.gt.f32.partialorder %v13348_v58, %v11017_v61  ;;  %v4563_v54 = vmul.f32 0.6931472, %v6541_v47  ;;  %v12097_v51 = vsel %vm2673_vm6, %v5361_v3, 0.0  ;;  %vm13394_vm1 = vcmp.le.f32.partialorder %v13352_v9, %v11024_v10  ;;  %v12118_v58 = vld [vmem:[%s12297_s7] ss:$0 sm:$0xff] }
 0x4f7   : > { %vm5291_vm11 = vmand %vm13392_vm10, %vm13391_vm9  ;;  %vm13395_vm14 = vcmp.gt.f32.partialorder %v13352_v9, %v11017_v61  ;;  %vm5167_vm7 = vcmp.gt.f32.partialorder %v5015_v52, %v12049_v53  ;;  %vm5235_vm8 = vcmp.le.f32.partialorder %v5015_v52, %v12118_v58  ;;  %v5452_v9 = vadd.f32 %v5451_v42, %v5450_v5  ;;  %v13405_v5 = vld [vmem:[#allocation35_spill] sm:$0xff] }
 0x4f8   : > { %vm12109_vm0 = vmand %vm13395_vm14, %vm13394_vm1  ;;  %v5355_v3 = vsel %vm5291_vm11, %v4617_v1, 0.0  ;;  %vm13398_vm14 = vcmp.le.f32.partialorder %v13360_v14, %v11024_v10  ;;  %vm13399_vm1 = vcmp.gt.f32.partialorder %v13360_v14, %v11017_v61  ;;  %v4610_v28 = vsub.f32 %v13400_v17, %v4563_v54  ;;  %v13402_v1 = vld [vmem:[#allocation102_spill] sm:$0xff] }
 0x4f9   : > { %vm5295_vm9 = vmand %vm13399_vm1, %vm13398_vm14  ;;  %v4611_v47 = vsub.f32 %v13401_v59, %v4563_v54  ;;  %vm5247_vm10 = vcmp.le.f32.partialorder %v12055_v37, %v12118_v58  ;;  %v4613_v44 = vsub.f32 %v13402_v1, %v4563_v54  ;;  %vm13403_vm11 = vcmp.le.f32.partialorder %v13365_v33, %v11024_v10 }
 0x4fa   : > { %vm13404_vm15 = vcmp.gt.f32.partialorder %v13365_v33, %v11017_v61  ;;  %v4625_v14 = vsub.f32 %v13405_v5, %v11662_v48  ;;  %v5359_v42 = vsel %vm5295_vm9, %v4621_v55, 0.0  ;;  %v4612_v17 = vsub.f32 %v13406_v50, %v4563_v54  ;;  %v13408_v55 = vld [vmem:[#allocation77_spill] sm:$0xff] }
 0x4fb   : > { %vm5286_vm2 = vmand %vm13404_vm15, %vm13403_vm11  ;;  %v5454_v13 = vadd.f32 %v5453_v23, %v5452_v9  ;;  %v5348_v59 = vsel %vm12066_vm12, %v4610_v28, 0.0  ;;  %v5349_v1 = vsel %vm12083_vm3, %v4611_v47, 0.0  ;;  %v5351_v32 = vsel %vm12109_vm0, %v4613_v44, 0.0 }
 0x4fc   : > { %v5490_v43 = vsel %vm2673_vm6, %v5355_v3, 0.0  ;;  %vm5299_vm15 = vmand %vm5167_vm7, %vm5235_vm8  ;;  %v5395_v33 = vsel %vm2673_vm6, %v5348_v59, 0.0  ;;  %v5426_v23 = vsel %vm2673_vm6, %v5349_v1, 0.0  ;;  %v5488_v60 = vsel %vm2673_vm6, %v5351_v32, 0.0  ;;  %v5065_v11 = vpop.permute.xlu0 %5064 }
 0x4fd   : > { %vm5294_vm12 = vmand %vm5162_vm4, %vm5230_vm13  ;;  %v5350_v41 = vsel %vm5286_vm2, %v4612_v17, 0.0  ;;  %vm13407_vm8 = vcmp.gt.f32.partialorder %v13373_v45, %v11017_v61  ;;  %v5396_v52 = vadd.f32 %v5395_v33, %v13408_v55  ;;  %v5427_v54 = vadd.f32 %v5426_v23, %v11883_v25 }
 0x4fe   : > { %vm5290_vm0 = vmand %vm13407_vm8, %vm5226_vm5  ;;  %v5489_v16 = vadd.f32 %v5488_v60, %v5487_v38  ;;  %v5456_v50 = vadd.f32 %v5455_v62, %v5454_v13  ;;  %vm13409_vm4 = vcmp.le.f32.partialorder %v13379_v18, %v11024_v10  ;;  %vm13410_vm13 = vcmp.gt.f32.partialorder %v13379_v18, %v11017_v61 }
 0x4ff   : > { %vm5298_vm2 = vmand %vm13410_vm13, %vm13409_vm4  ;;  %v5363_v32 = vsel %vm5299_vm15, %v4625_v14, 0.0  ;;  %v5354_v45 = vsel %vm5290_vm0, %v4616_v6, 0.0  ;;  %v13411_v3 = vsub.f32 %v13372_v27, %v11409_v2  ;;  %v5457_v25 = vsel %vm2673_vm6, %v5350_v41, 0.0  ;;  %v13425_v14 = vld [vmem:[#allocation118_spill] sm:$0xff] }
 0x500   : > { %vm13412_vm5 = vcmp.le.f32.partialorder %v11157_v29, %v11024_v10  ;;  %vm13413_vm3 = vcmp.gt.f32.partialorder %v11157_v29, %v12049_v53  ;;  %v5398_v18 = vadd.f32 %v11985_v40, %v5396_v52  ;;  %v5429_v30 = vadd.f32 %v5428_v36, %v5427_v54  ;;  %v13430_v52 = vld [vmem:[#allocation110_spill] sm:$0xff] }
 0x501   : > { %v5358_v9 = vsel %vm5294_vm12, %v13411_v3, 0.0  ;;  %vm12191_vm7 = vmand %vm13413_vm3, %vm13412_vm5  ;;  %v5491_v12 = vadd.f32 %v5490_v43, %v5489_v16  ;;  %vm5175_vm9 = vcmp.gt.f32.partialorder %v5065_v11, %v12049_v53  ;;  %vm13416_vm14 = vcmp.gt.f32.partialorder %v12055_v37, %v12049_v53  ;;  %v13420_v43 = vld [vmem:[#allocation126_spill] sm:$0xff] }
 0x502   : > { %vm12203_vm1 = vmand %vm13416_vm14, %vm5247_vm10  ;;  %v5492_v29 = vsel %vm2673_vm6, %v5359_v42, 0.0  ;;  %vm5243_vm11 = vcmp.le.f32.partialorder %v5065_v11, %v12118_v58  ;;  %v13419_v2 = vsub.f32 %v13380_v35, %v11662_v48  ;;  %v5458_v6 = vadd.f32 %v5457_v25, %v5456_v50 }
 0x503   : > { %v5400_v27 = vadd.f32 %v12006_v39, %v5398_v18  ;;  %v5431_v13 = vadd.f32 %v13420_v43, %v5429_v30  ;;  %v5493_v62 = vadd.f32 %v5492_v29, %v5491_v12  ;;  %vm5307_vm15 = vmand %vm5175_vm9, %vm5243_vm11  ;;  %v5459_v37 = vsel %vm2673_vm6, %v5354_v45, 0.0 }
 0x504   : > { %v5362_v40 = vsel %vm5298_vm2, %v13419_v2, 0.0  ;;  %v5494_v36 = vsel %vm2673_vm6, %v5363_v32, 0.0  ;;  %v13421_v38 = vsub.f32 %v13381_v34, %v11509_v7  ;;  %v5460_v47 = vadd.f32 %v5459_v37, %v5458_v6  ;;  %v13432_v37 = vld [vmem:[#allocation3_spill] sm:$0xff] }
 0x505   : > { %v5461_v48 = vsel %vm2673_vm6, %v5358_v9, 0.0  ;;  %vm13422_vm10 = vcmp.le.f32.partialorder %v11920_v31, %v12118_v58  ;;  %vm13423_vm12 = vcmp.gt.f32.partialorder %v11920_v31, %v12049_v53  ;;  %v5402_v39 = vadd.f32 %v12071_v21, %v5400_v27 }
 0x506   : > { %v5366_v28 = vsel %vm12191_vm7, %v13421_v38, 0.0  ;;  %vm5312_vm8 = vmand %vm13423_vm12, %vm13422_vm10  ;;  %v5433_v35 = vadd.f32 %v12097_v51, %v5431_v13  ;;  %v5495_v44 = vadd.f32 %v5494_v36, %v5493_v62  ;;  %v13424_v7 = vsub.f32 %v13387_v46, %v11026_v24  ;;  %v13427_v46 = vld [vmem:[#allocation48_spill] sm:$0xff] }
 0x507   : > { %v5403_v5 = vsel %vm2673_vm6, %v11966_v26, 0.0  ;;  %v5434_v42 = vsel %vm2673_vm6, %v13425_v14, 0.0  ;;  %v13426_v17 = vsub.f32 %v13393_v57, %v11263_v0  ;;  %v5462_v21 = vadd.f32 %v5461_v48, %v5460_v47  ;;  %v5109_v0 = vpop.permute.xlu0 %5108  ;;  %v13429_v57 = vld [vmem:[#allocation127_spill] sm:$0xff] }
 0x508   : > { %v5371_v34 = vsel %vm5307_vm15, %v13424_v7, 0.0  ;;  %v5404_v59 = vadd.f32 %v5403_v5, %v5402_v39  ;;  %v5435_v51 = vadd.f32 %v5434_v42, %v5433_v35  ;;  %v5497_v1 = vadd.f32 %v11901_v8, %v5495_v44 }
 0x509   : > { %v5375_v31 = vsel %vm12203_vm1, %v13426_v17, 0.0  ;;  %v5463_v24 = vsel %vm2673_vm6, %v5362_v40, 0.0  ;;  %v13428_v33 = vsub.f32 %v13427_v46, %v11364_v22  ;;  %v5498_v23 = vsel %vm2673_vm6, %v5371_v34, 0.0 }
 0x50a   : > { %v5464_v60 = vadd.f32 %v5463_v24, %v5462_v21  ;;  %v5465_v41 = vsel %vm2673_vm6, %v5366_v28, 0.0  ;;  %v5406_v55 = vadd.f32 %v13429_v57, %v5404_v59  ;;  %v5437_v54 = vadd.f32 %v13430_v52, %v5435_v51 }
 0x50b   : > { %v5376_v26 = vsel %vm5312_vm8, %v13428_v33, 0.0  ;;  %v5499_v16 = vadd.f32 %v5498_v23, %v5497_v1  ;;  %vm5182_vm0 = vcmp.gt.f32.partialorder %v5109_v0, %v12049_v53  ;;  %v5438_v8 = vsel %vm2673_vm6, %v11864_v56, 0.0 }
 0x50c   : > { %v5500_v50 = vsel %vm2673_vm6, %v5375_v31, 0.0  ;;  %v5466_v32 = vadd.f32 %v5465_v41, %v5464_v60  ;;  %vm5250_vm4 = vcmp.le.f32.partialorder %v5109_v0, %v12118_v58  ;;  %v5440_v11 = vsel %vm2673_vm6, %v11858_v49, 0.0 }
 0x50d   : > { %v5408_v45 = vadd.f32 %v11805_v15, %v5406_v55  ;;  %v5439_v3 = vadd.f32 %v5438_v8, %v5437_v54  ;;  %v5501_v9 = vadd.f32 %v5500_v50, %v5499_v16  ;;  %vm5314_vm13 = vmand %vm5182_vm0, %vm5250_vm4  ;;  %v5502_v25 = vsel %vm2673_vm6, %v11905_v4, 0.0 }
 0x50e   : > { %v5409_v53 = vsel %vm2673_vm6, %v5376_v26, 0.0  ;;  %v5468_v56 = vadd.f32 %v11791_v63, %v5466_v32  ;;  %v13431_v61 = vsub.f32 %v13350_v19, %v11364_v22  ;;  %v5469_v49 = vsel %vm2673_vm6, %v11812_v20, 0.0 }
 0x50f   : > { %v5410_v18 = vadd.f32 %v5409_v53, %v5408_v45  ;;  %v5441_v15 = vadd.f32 %v5440_v11, %v5439_v3  ;;  %v5503_v30 = vadd.f32 %v5502_v25, %v5501_v9  ;;  %vm5519_vm2 = vcmp.eq.s32.totalorder %v13432_v37, 0 }
 0x510   : > { %v5378_v58 = vsel %vm5314_vm13, %v13431_v61, 0.0  ;;  %v5470_v12 = vadd.f32 %v5469_v49, %v5468_v56 }
 0x511   : > { %v5504_v10 = vsel %vm2673_vm6, %v5410_v18, 0.0  ;;  %v5505_v4 = vsel %vm2673_vm6, %v5441_v15, 0.0  ;;  %v5471_v29 = vsel %vm2673_vm6, %v5378_v58, 0.0  ;;  %v5509_v40 = vsel %vm2673_vm6, %v5503_v30, 0.0 }
 0x512   : > { %v5506_v63 = vadd.f32 %v5505_v4, %v5504_v10  ;;  %v5472_v2 = vadd.f32 %v5471_v29, %v5470_v12 }
 0x514   : > { %v5507_v22 = vsel %vm2673_vm6, %v5472_v2, 0.0 }
 0x515   : > { %v5508_v19 = vadd.f32 %v5507_v22, %v5506_v63 }
 0x517   : > { %v5510_v6 = vadd.f32 %v5509_v40, %v5508_v19 }
 0x519   : > { %v5511_v20 = vrot.slane %v5510_v6, 4 }
 0x51b   : > { %v5512_v27 = vadd.f32 %v5511_v20, %v5510_v6 }
 0x51d   : > { %v5513_v43 = vrot.slane %v5512_v27, 2 }
 0x51f   : > { %v5514_v13 = vadd.f32 %v5513_v43, %v5512_v27 }
 0x521   : > { %v5515_v62 = vrot.slane %v5514_v13, 1 }
 0x523   : > { %v5516_v36 = vadd.f32 %v5515_v62, %v5514_v13 }
 0x525   : > { %v5520_v38 = vsel %vm5519_vm2, %v5516_v36, 0.0 }
 0x526   : > { %5521 = vst.msk [vmem:[%s647_s18] sm:$0xff] %vm2673_vm6, %v5520_v38 }
 0x527 PF: > { %p15_p11 = scmp.ge.s32.totalorder %s6638_s9, 4   ;;  %s13433_s27 = smov %s6563_s28 }
 0x528   : > { %s13434_s28 = smov %s6647_s12  ;;  %s13435_s29 = smov %s6638_s9 }
 0x529   :  { %17 = sbr.rel (!%p15_p11) target bundleno = 2 (0x2), region = 134 }

</bundles_post_ra>
